<compile_context>
chip_gen: v7x
topology: tpu7x:2x2x1
jax: 0.10.0
libtpu: 0.0.40
codegen_flags: <defaults>
</compile_context>

<pallas_src>
import jax
import jax.numpy as jnp
from jax import lax
from jax.experimental import pallas as pl
from jax.experimental.pallas import tpu as pltpu

BN_EPS = 1e-5


def fused_mul_conv_bn_add_kernel(scale_ref, w_ref, x_ref, res_ref,
                                 gamma_ref, beta_ref, o_ref):
    # x197 = x196 * x191 : fold the per-input-channel scale into x in f32,
    # then cast once to bf16 for the MXU.  (Cin, HW)
    xb = (x_ref[...] * scale_ref[...]).astype(jnp.bfloat16)

    # W is already bf16 (stored that way where the parameters live) -> stream
    # it straight from VMEM into the MXU; accumulate in f32.
    y = jnp.dot(w_ref[...], xb, preferred_element_type=jnp.float32)   # (TN, HW)

    # BatchNorm2d (training mode, N == 1): per-output-channel batch stats over
    # the spatial axis, single pass (sum / sum-of-squares).
    hw = x_ref.shape[-1]
    inv_m = jnp.float32(1.0 / hw)
    s1 = jnp.sum(y, axis=-1, keepdims=True)                           # (TN, 1)
    s2 = jnp.sum(y * y, axis=-1, keepdims=True)                       # (TN, 1)
    mean = s1 * inv_m
    var = jnp.maximum(s2 * inv_m - mean * mean, 0.0)                  # no -eps cancel
    a = gamma_ref[...] * lax.rsqrt(var + BN_EPS)                      # (TN, 1)
    b = beta_ref[...] - a * mean                                      # (TN, 1)

    # x200 = x185 + BN(conv(x196 * x191))  -> one broadcasted FMA + add.
    o_ref[...] = res_ref[...] + a * y + b


def _num_tensorcores_per_device() -> int:
    """Heuristic: 2 on megacore / dual-TC chips (v4, v5p, v7x), else 1."""
    try:
        kind = jax.devices()[0].device_kind.lower()
    except Exception:  # pragma: no cover - defensive
        return 1
    for tag in ("v4", "v5p", "7"):
        if tag in kind:
            return 2
    return 1


@jax.jit
def model_forward(x196, x191, x185, conv_w_bf16, bn_gamma, bn_beta):
    """Forward of module M.

    x196: (N, Cin, 1, 1)      broadcast multiplier (f32)
    x191: (N, Cin, H, W)      input to the 1x1 conv (f32)
    x185: (N, Cout, H, W)     residual (f32)
    conv_w_bf16: (Cout, Cin, 1, 1) conv weight, STORED in bf16
    bn_gamma / bn_beta: (Cout,) f32
    """
    N, Cin, H, W = x191.shape
    assert N == 1, "kernel assumes batch size 1 (matches module spec)"
    HW = H * W
    Cout = conv_w_bf16.shape[0]
    assert x185.shape[1] == Cout, "residual channel dim must equal Cout"
    assert conv_w_bf16.dtype == jnp.bfloat16, "store conv weight as bf16"

    # All of these are free (zero-copy) views for N == 1 -- no transposes,
    # no casts, no padding in the wrapper.
    x = x191.reshape(Cin, HW)                 # (Cin, HW)  f32
    res = x185.reshape(Cout, HW)              # (Cout, HW) f32
    scale = x196.reshape(Cin, 1)              # (Cin, 1)   f32 -- broadcasts over lanes
    w = conv_w_bf16.reshape(Cout, Cin)        # (Cout, Cin) bf16
    gamma = bn_gamma.reshape(Cout, 1)
    beta = bn_beta.reshape(Cout, 1)

    # Grid: 1 step on single-TensorCore chips (v5e/v6e); 2 "parallel" steps
    # over Cout on dual-TC chips (v7x megacore) so both cores get half of W.
    n_tc = _num_tensorcores_per_device()
    if n_tc >= 2 and Cout % 2 == 0 and (Cout // 2) % 8 == 0:
        TN = Cout // 2
    else:
        TN = Cout
    grid = (Cout // TN,)

    bytes_accessed = (w.size * 2                 # bf16 weight
                      + x.size * 4 + res.size * 4 + Cout * HW * 4
                      + scale.size * 4 + gamma.size * 4 + beta.size * 4)
    cost = pl.CostEstimate(flops=2 * Cout * Cin * HW,
                           bytes_accessed=bytes_accessed,
                           transcendentals=Cout)

    out = pl.pallas_call(
        fused_mul_conv_bn_add_kernel,
        out_shape=jax.ShapeDtypeStruct((Cout, HW), jnp.float32),
        grid_spec=pltpu.PrefetchScalarGridSpec(
            num_scalar_prefetch=0,
            grid=grid,
            in_specs=[
                pl.BlockSpec((Cin, 1), lambda i: (0, 0)),      # scale (x196)
                pl.BlockSpec((TN, Cin), lambda i: (i, 0)),     # bf16 W tile
                pl.BlockSpec((Cin, HW), lambda i: (0, 0)),     # x (resident)
                pl.BlockSpec((TN, HW), lambda i: (i, 0)),      # residual tile
                pl.BlockSpec((TN, 1), lambda i: (i, 0)),       # gamma tile
                pl.BlockSpec((TN, 1), lambda i: (i, 0)),       # beta tile
            ],
            out_specs=pl.BlockSpec((TN, HW), lambda i: (i, 0)),
        ),
        compiler_params=pltpu.CompilerParams(
            dimension_semantics=("parallel",)),
        cost_estimate=cost,
    )(scale, w, x, res, gamma, beta)

    # Free view back to NCHW.
    return out.reshape(N, Cout, H, W)
    # TODO(synk): PyTorch BatchNorm2d training mode also updates
    # running_mean/running_var buffers; only the normalization itself is
    # computed here (forward output is identical).


def reference_forward(x196, x191, x185, conv_w, bn_gamma, bn_beta):
    Cout, Cin = conv_w.shape[0], conv_w.shape[1]
    x197 = x196 * x191
    x198 = jnp.einsum('oc,nchw->nohw', conv_w.reshape(Cout, Cin), x197)
    mean = jnp.mean(x198, axis=(0, 2, 3), keepdims=True)
    var = jnp.mean((x198 - mean) ** 2, axis=(0, 2, 3), keepdims=True)
    x199 = (bn_gamma.reshape(1, -1, 1, 1) * (x198 - mean)
            / jnp.sqrt(var + BN_EPS) + bn_beta.reshape(1, -1, 1, 1))
    return x185 + x199


if __name__ == "__main__":
    key = jax.random.PRNGKey(0)
    k1, k2, k3, k4 = jax.random.split(key, 4)

    C = 576
    x185 = jax.random.normal(k1, (1, C, 14, 14), dtype=jnp.float32)
    x191 = jax.random.normal(k2, (1, C, 14, 14), dtype=jnp.float32)
    x196 = jax.random.normal(k3, (1, C, 1, 1), dtype=jnp.float32)

    # Deterministic parameter init (Conv2d kaiming-style scale, BN defaults).
    fan_in = C  # 1x1 kernel
    w_scale = 1.0 / jnp.sqrt(jnp.float32(fan_in))
    conv_w = jax.random.uniform(k4, (C, C, 1, 1), dtype=jnp.float32,
                                minval=-w_scale, maxval=w_scale)
    # Parameter is STORED in bf16 (done once at init, not per call).
    conv_w_bf16 = conv_w.astype(jnp.bfloat16)
    bn_gamma = jnp.ones((C,), dtype=jnp.float32)
    bn_beta = jnp.zeros((C,), dtype=jnp.float32)

    out = model_forward(x196, x191, x185, conv_w_bf16, bn_gamma, bn_beta)
    out = jax.block_until_ready(out)

    ref = reference_forward(x196, x191, x185, conv_w, bn_gamma, bn_beta)
    assert out.shape == (1, C, 14, 14)
    assert jnp.allclose(out, ref, rtol=5e-2, atol=5e-2), "mismatch vs reference"

    print("KERNEL_OK")
</pallas_src>

<mosaic_0001>
module attributes {stable_mosaic.version = 11 : i64} {
  func.func @fused_mul_conv_bn_add_kernel(%arg0: i32, %arg1: memref<576x1xf32, #tpu.memory_space<vmem>>, %arg2: memref<576x576xbf16, #tpu.memory_space<vmem>>, %arg3: memref<576x196xf32, #tpu.memory_space<vmem>>, %arg4: memref<576x196xf32, #tpu.memory_space<vmem>>, %arg5: memref<576x1xf32, #tpu.memory_space<vmem>>, %arg6: memref<576x1xf32, #tpu.memory_space<vmem>>, %arg7: memref<576x196xf32, #tpu.memory_space<vmem>>) attributes {dimension_semantics = [#tpu.dimension_semantics<parallel>], iteration_bounds = array<i64: 1>, scalar_prefetch = 0 : i64, scratch_operands = 0 : i64, tpu.core_type = #tpu.core_type<tc>, window_params = [{pipeline_mode = #tpu.pipeline_mode<synchronous>, transform_indices = @transform_0, window_bounds = array<i64: 576, 1>}, {transform_indices = @transform_1, window_bounds = array<i64: 576, 576>}, {pipeline_mode = #tpu.pipeline_mode<synchronous>, transform_indices = @transform_2, window_bounds = array<i64: 576, 196>}, {transform_indices = @transform_3, window_bounds = array<i64: 576, 196>}, {transform_indices = @transform_4, window_bounds = array<i64: 576, 1>}, {transform_indices = @transform_5, window_bounds = array<i64: 576, 1>}, {transform_indices = @transform_6, window_bounds = array<i64: 576, 196>}]} {
    %c0 = arith.constant 0 : index
    %c0_0 = arith.constant 0 : index
    %0 = vector.load %arg3[%c0, %c0_0] : memref<576x196xf32, #tpu.memory_space<vmem>>, vector<576x196xf32>
    %c0_1 = arith.constant 0 : index
    %c0_2 = arith.constant 0 : index
    %1 = vector.load %arg1[%c0_1, %c0_2] : memref<576x1xf32, #tpu.memory_space<vmem>>, vector<576x1xf32>
    %2 = vector.broadcast %1 : vector<576x1xf32> to vector<576x196xf32>
    %3 = arith.mulf %0, %2 : vector<576x196xf32>
    %4 = arith.truncf %3 : vector<576x196xf32> to vector<576x196xbf16>
    %c0_3 = arith.constant 0 : index
    %c0_4 = arith.constant 0 : index
    %5 = vector.load %arg2[%c0_3, %c0_4] : memref<576x576xbf16, #tpu.memory_space<vmem>>, vector<576x576xbf16>
    %cst = arith.constant dense<0.000000e+00> : vector<576x196xf32>
    %6 = tpu.matmul %5, %4, %cst {dimension_numbers = #tpu.dot_dimension_numbers<[1], [0], [0], [1], [0, 0, 1, 1], [], []>} : vector<576x576xbf16>, vector<576x196xbf16>, vector<576x196xf32> -> vector<576x196xf32>
    %cst_5 = arith.constant dense<0.000000e+00> : vector<576xf32>
    %7 = vector.multi_reduction <add>, %6, %cst_5 [1] : vector<576x196xf32> to vector<576xf32>
    %8 = vector.shape_cast %7 : vector<576xf32> to vector<576x1xf32>
    %9 = arith.mulf %6, %6 : vector<576x196xf32>
    %cst_6 = arith.constant dense<0.000000e+00> : vector<576xf32>
    %10 = vector.multi_reduction <add>, %9, %cst_6 [1] : vector<576x196xf32> to vector<576xf32>
    %11 = vector.shape_cast %10 : vector<576xf32> to vector<576x1xf32>
    %cst_7 = arith.constant 0.00510204071 : f32
    %12 = vector.broadcast %cst_7 : f32 to vector<576x1xf32>
    %13 = arith.mulf %8, %12 : vector<576x1xf32>
    %cst_8 = arith.constant 0.00510204071 : f32
    %14 = vector.broadcast %cst_8 : f32 to vector<576x1xf32>
    %15 = arith.mulf %11, %14 : vector<576x1xf32>
    %16 = arith.mulf %13, %13 : vector<576x1xf32>
    %17 = arith.subf %15, %16 : vector<576x1xf32>
    %cst_9 = arith.constant 0.000000e+00 : f32
    %18 = vector.broadcast %cst_9 : f32 to vector<576x1xf32>
    %19 = arith.maximumf %17, %18 : vector<576x1xf32>
    %c0_10 = arith.constant 0 : index
    %c0_11 = arith.constant 0 : index
    %20 = vector.load %arg5[%c0_10, %c0_11] : memref<576x1xf32, #tpu.memory_space<vmem>>, vector<576x1xf32>
    %cst_12 = arith.constant 9.99999974E-6 : f32
    %21 = vector.broadcast %cst_12 : f32 to vector<576x1xf32>
    %22 = arith.addf %19, %21 : vector<576x1xf32>
    %23 = math.rsqrt %22 : vector<576x1xf32>
    %24 = arith.mulf %20, %23 : vector<576x1xf32>
    %c0_13 = arith.constant 0 : index
    %c0_14 = arith.constant 0 : index
    %25 = vector.load %arg6[%c0_13, %c0_14] : memref<576x1xf32, #tpu.memory_space<vmem>>, vector<576x1xf32>
    %26 = arith.mulf %24, %13 : vector<576x1xf32>
    %27 = arith.subf %25, %26 : vector<576x1xf32>
    %c0_15 = arith.constant 0 : index
    %c0_16 = arith.constant 0 : index
    %28 = vector.load %arg4[%c0_15, %c0_16] : memref<576x196xf32, #tpu.memory_space<vmem>>, vector<576x196xf32>
    %29 = vector.broadcast %24 : vector<576x1xf32> to vector<576x196xf32>
    %30 = arith.mulf %29, %6 : vector<576x196xf32>
    %31 = arith.addf %28, %30 : vector<576x196xf32>
    %32 = vector.broadcast %27 : vector<576x1xf32> to vector<576x196xf32>
    %33 = arith.addf %31, %32 : vector<576x196xf32>
    %c0_17 = arith.constant 0 : index
    %c0_18 = arith.constant 0 : index
    %34 = vector.load %arg7[%c0_17, %c0_18] : memref<576x196xf32, #tpu.memory_space<vmem>>, vector<576x196xf32>
    tpu.vector_store %arg7[%c0_17, %c0_18], %33 {strides = array<i32>} : memref<576x196xf32, #tpu.memory_space<vmem>>, vector<576x196xf32>,
    return
  }
  func.func @transform_0(%arg0: i32) -> (i32, i32) {
    %c0_i32 = arith.constant 0 : i32
    %c0_i32_0 = arith.constant 0 : i32
    %c0_i32_1 = arith.constant 0 : i32
    return %c0_i32, %c0_i32_0 : i32, i32
  }
  func.func @transform_1(%arg0: i32) -> (i32, i32) {
    %c0_i32 = arith.constant 0 : i32
    %c0_i32_0 = arith.constant 0 : i32
    return %arg0, %c0_i32 : i32, i32
  }
  func.func @transform_2(%arg0: i32) -> (i32, i32) {
    %c0_i32 = arith.constant 0 : i32
    %c0_i32_0 = arith.constant 0 : i32
    %c0_i32_1 = arith.constant 0 : i32
    return %c0_i32, %c0_i32_0 : i32, i32
  }
  func.func @transform_3(%arg0: i32) -> (i32, i32) {
    %c0_i32 = arith.constant 0 : i32
    %c0_i32_0 = arith.constant 0 : i32
    return %arg0, %c0_i32 : i32, i32
  }
  func.func @transform_4(%arg0: i32) -> (i32, i32) {
    %c0_i32 = arith.constant 0 : i32
    %c0_i32_0 = arith.constant 0 : i32
    return %arg0, %c0_i32 : i32, i32
  }
  func.func @transform_5(%arg0: i32) -> (i32, i32) {
    %c0_i32 = arith.constant 0 : i32
    %c0_i32_0 = arith.constant 0 : i32
    return %arg0, %c0_i32 : i32, i32
  }
  func.func @transform_6(%arg0: i32) -> (i32, i32) {
    %c0_i32 = arith.constant 0 : i32
    %c0_i32_0 = arith.constant 0 : i32
    return %arg0, %c0_i32 : i32, i32
  }
}

</mosaic_0001>

<bundles_post_ra>
// kernel: model_forward.1
= control target key start
LH: loop header
LB: loop body
LE: loop exit
PB: predicated region body
PF: predicated region fallthrough
CT: control target
= control target key end

     0   :  { %v12032_v0 = vmov 0   ;;  %vm1932_vm0 = vcmask 523264   ;;  %vm3220_vm1 = vcmask 556032   ;;  %s12025_s0 = inlined_call_operand.vmem [shape: f32[576,1], index: 0, kind: input, shape index: {}]   ;;  %s12026_s1 = inlined_call_operand.vmem [shape: bf16[576,576], index: 1, kind: input, shape index: {}]   ;;  %s12027_s2 = inlined_call_operand.vmem [shape: f32[576,196], index: 2, kind: input, shape index: {}]   ;;  %s12028_s4 = inlined_call_operand.vmem [shape: f32[576,1], index: 4, kind: input, shape index: {}]   ;;  %s12029_s5 = inlined_call_operand.vmem [shape: f32[576,1], index: 5, kind: input, shape index: {}]   ;;  %s12030_s3 = inlined_call_operand.vmem [shape: f32[576,196], index: 3, kind: input, shape index: {}]   ;;  %s12031_s6 = inlined_call_operand.vmem [shape: f32[576,196], index: 6, kind: output, shape index: {}]  }
   0x1   :  { %6787 = vset.pattern.permute.xlu1 %v12032_v0  ;;  %6786 = vset.pattern.permute.xlu0 %v12032_v0  ;;  %v170_v1 = vld [vmem:[%s12025_s0 + $0x10] sm:$0xff]  ;;  %v168_v2 = vld [vmem:[%s12025_s0] sm:$0xff]  ;;  %v171_v3 = vld [vmem:[%s12025_s0 + $0x18] sm:$0xff] }
   0x2   :  { %252 = vperm.xlu1 %6787, %v170_v1   ;;  %242 = vperm.xlu0 %6786, %v168_v2   ;;  %v169_v4 = vld [vmem:[%s12025_s0 + $0x8] sm:$0xff]  ;;  %v172_v6 = vld [vmem:[%s12025_s0 + $0x20] sm:$0xff]  ;;  %v175_v7 = vld [vmem:[%s12025_s0 + $0x38] sm:$0xff] }
   0x3   :  { %v173_v5 = vld [vmem:[%s12025_s0 + $0x28] sm:$0xff]  ;;  %v174_v8 = vld [vmem:[%s12025_s0 + $0x30] sm:$0xff]  ;;  %v176_v10 = vld [vmem:[%s12025_s0 + $0x40] sm:$0xff] }
   0x4   :  { %v177_v9 = vld [vmem:[%s12025_s0 + $0x48] sm:$0xff]  ;;  %v179_v11 = vld [vmem:[%s12025_s0 + $0x58] sm:$0xff]  ;;  %v178_v12 = vld [vmem:[%s12025_s0 + $0x50] sm:$0xff] }
   0x5   :  { %v181_v13 = vld [vmem:[%s12025_s0 + $0x68] sm:$0xff]  ;;  %v180_v14 = vld [vmem:[%s12025_s0 + $0x60] sm:$0xff]  ;;  %v183_v15 = vld [vmem:[%s12025_s0 + $0x78] sm:$0xff] }
   0x6   :  { %257 = vperm.xlu1 %6787, %v171_v3   ;;  %247 = vperm.xlu0 %6786, %v169_v4   ;;  %v182_v16 = vld [vmem:[%s12025_s0 + $0x70] sm:$0xff]  ;;  %v185_v17 = vld [vmem:[%s12025_s0 + $0x88] sm:$0xff]  ;;  %v184_v18 = vld [vmem:[%s12025_s0 + $0x80] sm:$0xff] }
   0x7   :  { %v187_v19 = vld [vmem:[%s12025_s0 + $0x98] sm:$0xff]  ;;  %v186_v20 = vld [vmem:[%s12025_s0 + $0x90] sm:$0xff]  ;;  %v189_v21 = vld [vmem:[%s12025_s0 + $0xa8] sm:$0xff] }
   0x8   :  { %v188_v22 = vld [vmem:[%s12025_s0 + $0xa0] sm:$0xff]  ;;  %v191_v23 = vld [vmem:[%s12025_s0 + $0xb8] sm:$0xff]  ;;  %v190_v24 = vld [vmem:[%s12025_s0 + $0xb0] sm:$0xff] }
   0x9   :  { %v193_v25 = vld [vmem:[%s12025_s0 + $0xc8] sm:$0xff]  ;;  %v192_v26 = vld [vmem:[%s12025_s0 + $0xc0] sm:$0xff]  ;;  %v195_v27 = vld [vmem:[%s12025_s0 + $0xd8] sm:$0xff] }
   0xa   :  { %267 = vperm.xlu1 %6787, %v173_v5   ;;  %262 = vperm.xlu0 %6786, %v172_v6   ;;  %v194_v28 = vld [vmem:[%s12025_s0 + $0xd0] sm:$0xff]  ;;  %v197_v29 = vld [vmem:[%s12025_s0 + $0xe8] sm:$0xff]  ;;  %v196_v30 = vld [vmem:[%s12025_s0 + $0xe0] sm:$0xff] }
   0xb   :  { %v199_v31 = vld [vmem:[%s12025_s0 + $0xf8] sm:$0xff]  ;;  %v198_v32 = vld [vmem:[%s12025_s0 + $0xf0] sm:$0xff]  ;;  %v201_v33 = vld [vmem:[%s12025_s0 + $0x108] sm:$0xff] }
   0xc   :  { %v200_v34 = vld [vmem:[%s12025_s0 + $0x100] sm:$0xff]  ;;  %v203_v35 = vld [vmem:[%s12025_s0 + $0x118] sm:$0xff]  ;;  %v202_v36 = vld [vmem:[%s12025_s0 + $0x110] sm:$0xff] }
   0xd   :  { %v205_v37 = vld [vmem:[%s12025_s0 + $0x128] sm:$0xff]  ;;  %v204_v38 = vld [vmem:[%s12025_s0 + $0x120] sm:$0xff]  ;;  %v207_v40 = vld [vmem:[%s12025_s0 + $0x138] sm:$0xff] }
   0xe   :  { %277 = vperm.xlu1 %6787, %v175_v7   ;;  %272 = vperm.xlu0 %6786, %v174_v8   ;;  %v6790_v39 = vld [vmem:[%s12026_s1 + $0x4] ss:$20 sps:$4 sm:$0xff]   ;;  %v206_v41 = vld [vmem:[%s12025_s0 + $0x130] sm:$0xff]  ;;  %v209_v42 = vld [vmem:[%s12025_s0 + $0x148] sm:$0xff] }
   0xf   :  { %2073 = vmatprep.mubr.bf16.mxu1 %v6790_v39  ;;  %v208_v43 = vld [vmem:[%s12025_s0 + $0x140] sm:$0xff]  ;;  %v211_v44 = vld [vmem:[%s12025_s0 + $0x158] sm:$0xff]  ;;  %v210_v45 = vld [vmem:[%s12025_s0 + $0x150] sm:$0xff] }
  0x10   :  { %v213_v46 = vld [vmem:[%s12025_s0 + $0x168] sm:$0xff]  ;;  %v212_v47 = vld [vmem:[%s12025_s0 + $0x160] sm:$0xff]  ;;  %v215_v48 = vld [vmem:[%s12025_s0 + $0x178] sm:$0xff] }
  0x11   :  { %v214_v49 = vld [vmem:[%s12025_s0 + $0x170] sm:$0xff]  ;;  %v217_v50 = vld [vmem:[%s12025_s0 + $0x188] sm:$0xff]  ;;  %v216_v51 = vld [vmem:[%s12025_s0 + $0x180] sm:$0xff] }
  0x12   :  { %287 = vperm.xlu1 %6787, %v177_v9   ;;  %282 = vperm.xlu0 %6786, %v176_v10   ;;  %v219_v52 = vld [vmem:[%s12025_s0 + $0x198] sm:$0xff]  ;;  %v218_v53 = vld [vmem:[%s12025_s0 + $0x190] sm:$0xff]  ;;  %v221_v54 = vld [vmem:[%s12025_s0 + $0x1a8] sm:$0xff] }
  0x13   :  { %v220_v55 = vld [vmem:[%s12025_s0 + $0x1a0] sm:$0xff]  ;;  %v223_v56 = vld [vmem:[%s12025_s0 + $0x1b8] sm:$0xff]  ;;  %v222_v57 = vld [vmem:[%s12025_s0 + $0x1b0] sm:$0xff] }
  0x14   :  { %v225_v58 = vld [vmem:[%s12025_s0 + $0x1c8] sm:$0xff]  ;;  %v224_v59 = vld [vmem:[%s12025_s0 + $0x1c0] sm:$0xff]  ;;  %v227_v60 = vld [vmem:[%s12025_s0 + $0x1d8] sm:$0xff] }
  0x15   :  { %v226_v61 = vld [vmem:[%s12025_s0 + $0x1d0] sm:$0xff]  ;;  %v229_v62 = vld [vmem:[%s12025_s0 + $0x1e8] sm:$0xff]  ;;  %v228_v63 = vld [vmem:[%s12025_s0 + $0x1e0] sm:$0xff] }
  0x16   :  { %297 = vperm.xlu1 %6787, %v179_v11   ;;  %292 = vperm.xlu0 %6786, %v178_v12   ;;  %v231_v1 = vld [vmem:[%s12025_s0 + $0x1f8] sm:$0xff]  ;;  %v230_v2 = vld [vmem:[%s12025_s0 + $0x1f0] sm:$0xff]  ;;  %v233_v3 = vld [vmem:[%s12025_s0 + $0x208] sm:$0xff] }
  0x17   :  { %v232_v4 = vld [vmem:[%s12025_s0 + $0x200] sm:$0xff]  ;;  %v235_v7 = vld [vmem:[%s12025_s0 + $0x218] sm:$0xff]  ;;  %v234_v8 = vld [vmem:[%s12025_s0 + $0x210] sm:$0xff] }
  0x18   :  { %v25_v9 = vld [vmem:[%s12027_s2 + $0x8] sm:$0xff]  ;;  %v27_v10 = vld [vmem:[%s12027_s2 + $0x18] sm:$0xff]  ;;  %v24_v12 = vld [vmem:[%s12027_s2] sm:$0xff] }
  0x19   :  { %v31_v11 = vld [vmem:[%s12027_s2 + $0x38] sm:$0xff] }
  0x1a   :  { %307 = vperm.xlu1 %6787, %v181_v13   ;;  %302 = vperm.xlu0 %6786, %v180_v14   ;;  %v26_v13 = vld [vmem:[%s12027_s2 + $0x10] sm:$0xff]  ;;  %v6814_v14 = vld [vmem:[%s12026_s1 + $0xc] ss:$20 sps:$4 sm:$0xff]   ;;  %v239_v39 = vld [vmem:[%s12025_s0 + $0x238] sm:$0xff] }
  0x1b   :  { %2466 = vmatprep.mubr.bf16.mxu0 %v6814_v14  ;;  %v49_v14 = vld [vmem:[%s12027_s2 + $0xc8] sm:$0xff] }
  0x1e   :  { %317 = vperm.xlu1 %6787, %v183_v15   ;;  %312 = vperm.xlu0 %6786, %v182_v16   ;;  %v29_v15 = vld [vmem:[%s12027_s2 + $0x28] sm:$0xff] }
  0x22   :  { %327 = vperm.xlu1 %6787, %v185_v17   ;;  %322 = vperm.xlu0 %6786, %v184_v18   ;;  %v30_v18 = vld [vmem:[%s12027_s2 + $0x30] sm:$0xff] }
  0x26   :  { %337 = vperm.xlu1 %6787, %v187_v19   ;;  %332 = vperm.xlu0 %6786, %v186_v20   ;;  %v237_v19 = vld [vmem:[%s12025_s0 + $0x228] sm:$0xff] }
  0x2a   :  { %347 = vperm.xlu1 %6787, %v189_v21   ;;  %342 = vperm.xlu0 %6786, %v188_v22   ;;  %v28_v22 = vld [vmem:[%s12027_s2 + $0x20] sm:$0xff] }
  0x2e   :  { %357 = vperm.xlu1 %6787, %v191_v23   ;;  %352 = vperm.xlu0 %6786, %v190_v24  }
  0x32   :  { %367 = vperm.xlu1 %6787, %v193_v25   ;;  %362 = vperm.xlu0 %6786, %v192_v26   ;;  %v35_v26 = vld [vmem:[%s12027_s2 + $0x58] sm:$0xff] }
  0x36   :  { %377 = vperm.xlu1 %6787, %v195_v27   ;;  %372 = vperm.xlu0 %6786, %v194_v28   ;;  %v33_v27 = vld [vmem:[%s12027_s2 + $0x48] sm:$0xff]  ;;  %v236_v28 = vld [vmem:[%s12025_s0 + $0x220] sm:$0xff] }
  0x3a   :  { %387 = vperm.xlu1 %6787, %v197_v29   ;;  %382 = vperm.xlu0 %6786, %v196_v30  }
  0x3e   :  { %397 = vperm.xlu1 %6787, %v199_v31   ;;  %392 = vperm.xlu0 %6786, %v198_v32   ;;  %v34_v31 = vld [vmem:[%s12027_s2 + $0x50] sm:$0xff] }
  0x42   :  { %407 = vperm.xlu1 %6787, %v201_v33   ;;  %402 = vperm.xlu0 %6786, %v200_v34   ;;  %v32_v33 = vld [vmem:[%s12027_s2 + $0x40] sm:$0xff] }
  0x46   :  { %417 = vperm.xlu1 %6787, %v203_v35   ;;  %412 = vperm.xlu0 %6786, %v202_v36  }
  0x4a   :  { %427 = vperm.xlu1 %6787, %v205_v37   ;;  %422 = vperm.xlu0 %6786, %v204_v38   ;;  %v39_v37 = vld [vmem:[%s12027_s2 + $0x78] sm:$0xff]  ;;  %v37_v38 = vld [vmem:[%s12027_s2 + $0x68] sm:$0xff] }
  0x4e   :  { %437 = vperm.xlu1 %6787, %v207_v40   ;;  %432 = vperm.xlu0 %6786, %v206_v41  }
  0x52   :  { %447 = vperm.xlu1 %6787, %v209_v42   ;;  %442 = vperm.xlu0 %6786, %v208_v43  }
  0x56   :  { %457 = vperm.xlu1 %6787, %v211_v44   ;;  %452 = vperm.xlu0 %6786, %v210_v45   ;;  %v238_v44 = vld [vmem:[%s12025_s0 + $0x230] sm:$0xff] }
  0x57   :  { %v38_v45 = vld [vmem:[%s12027_s2 + $0x70] sm:$0xff] }
  0x5a   :  { %467 = vperm.xlu1 %6787, %v213_v46   ;;  %462 = vperm.xlu0 %6786, %v212_v47  }
  0x5e   :  { %477 = vperm.xlu1 %6787, %v215_v48   ;;  %472 = vperm.xlu0 %6786, %v214_v49  }
  0x62   :  { %487 = vperm.xlu1 %6787, %v217_v50   ;;  %482 = vperm.xlu0 %6786, %v216_v51   ;;  %v36_v50 = vld [vmem:[%s12027_s2 + $0x60] sm:$0xff] }
  0x66   :  { %497 = vperm.xlu1 %6787, %v219_v52   ;;  %492 = vperm.xlu0 %6786, %v218_v53   ;;  %v43_v52 = vld [vmem:[%s12027_s2 + $0x98] sm:$0xff] }
  0x6a   :  { %507 = vperm.xlu1 %6787, %v221_v54   ;;  %502 = vperm.xlu0 %6786, %v220_v55  }
  0x6e   :  { %517 = vperm.xlu1 %6787, %v223_v56   ;;  %512 = vperm.xlu0 %6786, %v222_v57   ;;  %v41_v56 = vld [vmem:[%s12027_s2 + $0x88] sm:$0xff]  ;;  %v42_v57 = vld [vmem:[%s12027_s2 + $0x90] sm:$0xff] }
  0x72   :  { %527 = vperm.xlu1 %6787, %v225_v58   ;;  %522 = vperm.xlu0 %6786, %v224_v59   ;;  %v40_v59 = vld [vmem:[%s12027_s2 + $0x80] sm:$0xff] }
  0x76   :  { %537 = vperm.xlu1 %6787, %v227_v60   ;;  %532 = vperm.xlu0 %6786, %v226_v61  }
  0x7a   :  { %547 = vperm.xlu1 %6787, %v229_v62   ;;  %542 = vperm.xlu0 %6786, %v228_v63  }
  0x7e   :  { %557 = vperm.xlu1 %6787, %v231_v1   ;;  %552 = vperm.xlu0 %6786, %v230_v2  }
  0x81   :  { %v253_v5 = vpop.permute.xlu1 %252  ;;  %v243_v6 = vpop.permute.xlu0 %242 }
  0x82   :  { %567 = vperm.xlu1 %6787, %v233_v3   ;;  %562 = vperm.xlu0 %6786, %v232_v4   ;;  %v601_v20 = vmul.f32 %v243_v6, %v25_v9  ;;  %v600_v24 = vmul.f32 %v243_v6, %v24_v12  ;;  %v605_v30 = vmul.f32 %v253_v5, %v29_v15  ;;  %v47_v4 = vld [vmem:[%s12027_s2 + $0xb8] sm:$0xff]  ;;  %v46_v6 = vld [vmem:[%s12027_s2 + $0xb0] sm:$0xff] }
  0x83   :  { %v604_v43 = vmul.f32 %v253_v5, %v28_v22  ;;  %v45_v5 = vld [vmem:[%s12027_s2 + $0xa8] sm:$0xff] }
  0x85   :  { %v258_v16 = vpop.permute.xlu1 %257  ;;  %v248_v17 = vpop.permute.xlu0 %247 }
  0x86   :  { %577 = vperm.xlu1 %6787, %v235_v7   ;;  %572 = vperm.xlu0 %6786, %v234_v8   ;;  %v603_v21 = vmul.f32 %v248_v17, %v27_v10  ;;  %v607_v23 = vmul.f32 %v258_v16, %v31_v11  ;;  %v602_v25 = vmul.f32 %v248_v17, %v26_v13  ;;  %v44_v8 = vld [vmem:[%s12027_s2 + $0xa0] sm:$0xff]  ;;  %v51_v13 = vld [vmem:[%s12027_s2 + $0xd8] sm:$0xff] }
  0x87   :  { %v606_v36 = vmul.f32 %v258_v16, %v30_v18  ;;  %v50_v18 = vld [vmem:[%s12027_s2 + $0xd0] sm:$0xff] }
  0x88   :  { %v745_v29 = vpack.c.bf16 %v603_v21, %v601_v20  ;;  %v744_v35 = vpack.c.bf16 %v602_v25, %v600_v24  ;;  %v747_v42 = vpack.c.bf16 %v607_v23, %v605_v30  ;;  %v48_v20 = vld [vmem:[%s12027_s2 + $0xc0] sm:$0xff]  ;;  %v54_v30 = vld [vmem:[%s12027_s2 + $0xf0] sm:$0xff] }
  0x89   :  { %v268_v32 = vpop.permute.xlu1 %267  ;;  %v263_v34 = vpop.permute.xlu0 %262  ;;  %v746_v51 = vpack.c.bf16 %v606_v36, %v604_v43 }
  0x8a   :  { %587 = vperm.xlu1 %6787, %v237_v19   ;;  %v611_v40 = vmul.f32 %v268_v32, %v35_v26  ;;  %v609_v41 = vmul.f32 %v263_v34, %v33_v27  ;;  %582 = vperm.xlu0 %6786, %v236_v28   ;;  %v610_v48 = vmul.f32 %v268_v32, %v34_v31  ;;  %v55_v28 = vld [vmem:[%s12027_s2 + $0xf8] sm:$0xff]  ;;  %v52_v32 = vld [vmem:[%s12027_s2 + $0xe0] sm:$0xff] }
  0x8b   :  { %2041 = vmatprep.subr.bf16.mxu1 %v745_v29  ;;  %v608_v49 = vmul.f32 %v263_v34, %v32_v33  ;;  %v53_v29 = vld [vmem:[%s12027_s2 + $0xe8] sm:$0xff] }
  0x8c   :  { %2042 = vmatpush1.bf16.msra.mxu1 %v744_v35  ;;  %v749_v55 = vpack.c.bf16 %v611_v40, %v609_v41 }
  0x8d   :  { %2043 = vmatprep.subr.bf16.mxu1 %v747_v42  ;;  %v278_v46 = vpop.permute.xlu1 %277  ;;  %v273_v47 = vpop.permute.xlu0 %272  ;;  %v748_v63 = vpack.c.bf16 %v610_v48, %v608_v49  ;;  %v58_v42 = vld [vmem:[%s12027_s2 + $0x110] sm:$0xff] }
  0x8e   :  { %597 = vperm.xlu1 %6787, %v239_v39   ;;  %v615_v53 = vmul.f32 %v278_v46, %v39_v37  ;;  %v613_v54 = vmul.f32 %v273_v47, %v37_v38  ;;  %592 = vperm.xlu0 %6786, %v238_v44   ;;  %v614_v61 = vmul.f32 %v278_v46, %v38_v45  ;;  %v59_v37 = vld [vmem:[%s12027_s2 + $0x118] sm:$0xff]  ;;  %v57_v38 = vld [vmem:[%s12027_s2 + $0x108] sm:$0xff]  ;;  %v56_v44 = vld [vmem:[%s12027_s2 + $0x100] sm:$0xff] }
  0x8f   :  { %v612_v62 = vmul.f32 %v273_v47, %v36_v50 }
  0x90   :  { %2044 = vmatpush1.bf16.msra.mxu1 %v746_v51  ;;  %v751_v3 = vpack.c.bf16 %v615_v53, %v613_v54  ;;  %v61_v53 = vld [vmem:[%s12027_s2 + $0x128] sm:$0xff]  ;;  %v62_v54 = vld [vmem:[%s12027_s2 + $0x130] sm:$0xff] }
  0x91   :  { %2045 = vmatprep.subr.bf16.mxu1 %v749_v55  ;;  %v288_v58 = vpop.permute.xlu1 %287  ;;  %v283_v60 = vpop.permute.xlu0 %282  ;;  %v750_v12 = vpack.c.bf16 %v614_v61, %v612_v62  ;;  %v67_v61 = vld [vmem:[%s12027_s2 + $0x158] sm:$0xff]  ;;  %v65_v62 = vld [vmem:[%s12027_s2 + $0x148] sm:$0xff] }
  0x92   :  { %v619_v1 = vmul.f32 %v288_v58, %v43_v52  ;;  %v617_v2 = vmul.f32 %v283_v60, %v41_v56  ;;  %v618_v10 = vmul.f32 %v288_v58, %v42_v57  ;;  %v616_v11 = vmul.f32 %v283_v60, %v40_v59  ;;  %v63_v52 = vld [vmem:[%s12027_s2 + $0x138] sm:$0xff]  ;;  %v60_v56 = vld [vmem:[%s12027_s2 + $0x120] sm:$0xff] }
  0x94   :  { %2046 = vmatpush1.bf16.msra.mxu1 %v748_v63  ;;  %v753_v17 = vpack.c.bf16 %v619_v1, %v617_v2  ;;  %v752_v24 = vpack.c.bf16 %v618_v10, %v616_v11 }
  0x95   :  { %2047 = vmatprep.subr.bf16.mxu1 %v751_v3  ;;  %v298_v7 = vpop.permute.xlu1 %297  ;;  %v293_v9 = vpop.permute.xlu0 %292  ;;  %v66_v3 = vld [vmem:[%s12027_s2 + $0x150] sm:$0xff] }
  0x96   :  { %v623_v15 = vmul.f32 %v298_v7, %v47_v4  ;;  %v621_v16 = vmul.f32 %v293_v9, %v45_v5  ;;  %v622_v22 = vmul.f32 %v298_v7, %v46_v6  ;;  %v620_v23 = vmul.f32 %v293_v9, %v44_v8  ;;  %v64_v5 = vld [vmem:[%s12027_s2 + $0x140] sm:$0xff] }
  0x98   :  { %2048 = vmatpush1.bf16.msra.mxu1 %v750_v12  ;;  %v755_v27 = vpack.c.bf16 %v623_v15, %v621_v16  ;;  %v754_v36 = vpack.c.bf16 %v622_v22, %v620_v23  ;;  %v70_v15 = vld [vmem:[%s12027_s2 + $0x170] sm:$0xff]  ;;  %v75_v22 = vld [vmem:[%s12027_s2 + $0x198] sm:$0xff]  ;;  %v73_v23 = vld [vmem:[%s12027_s2 + $0x188] sm:$0xff] }
  0x99   :  { %2049 = vmatprep.subr.bf16.mxu1 %v753_v17  ;;  %v308_v19 = vpop.permute.xlu1 %307  ;;  %v303_v21 = vpop.permute.xlu0 %302  ;;  %v68_v17 = vld [vmem:[%s12027_s2 + $0x160] sm:$0xff] }
  0x9a   :  { %v627_v25 = vmul.f32 %v308_v19, %v51_v13  ;;  %v625_v26 = vmul.f32 %v303_v21, %v49_v14  ;;  %v626_v34 = vmul.f32 %v308_v19, %v50_v18  ;;  %v624_v35 = vmul.f32 %v303_v21, %v48_v20  ;;  %v71_v13 = vld [vmem:[%s12027_s2 + $0x178] sm:$0xff]  ;;  %v69_v14 = vld [vmem:[%s12027_s2 + $0x168] sm:$0xff] }
  0x9c   :  { %2050 = vmatpush1.bf16.msra.mxu1 %v752_v24  ;;  %v757_v41 = vpack.c.bf16 %v627_v25, %v625_v26  ;;  %v756_v48 = vpack.c.bf16 %v626_v34, %v624_v35 }
  0x9d   :  { %2051 = vmatprep.subr.bf16.mxu1 %v755_v27  ;;  %v318_v31 = vpop.permute.xlu1 %317  ;;  %v313_v33 = vpop.permute.xlu0 %312  ;;  %v74_v27 = vld [vmem:[%s12027_s2 + $0x190] sm:$0xff] }
  0x9e   :  { %v631_v39 = vmul.f32 %v318_v31, %v55_v28  ;;  %v629_v40 = vmul.f32 %v313_v33, %v53_v29  ;;  %v630_v46 = vmul.f32 %v318_v31, %v54_v30  ;;  %v628_v47 = vmul.f32 %v313_v33, %v52_v32  ;;  %v72_v29 = vld [vmem:[%s12027_s2 + $0x180] sm:$0xff] }
  0xa0   :  { %2052 = vmatpush1.bf16.msra.mxu1 %v754_v36  ;;  %v759_v51 = vpack.c.bf16 %v631_v39, %v629_v40  ;;  %v758_v60 = vpack.c.bf16 %v630_v46, %v628_v47  ;;  %v76_v46 = vld [vmem:[%s12027_s2 + $0x1a0] sm:$0xff] }
  0xa1   :  { %2053 = vmatprep.subr.bf16.mxu1 %v757_v41  ;;  %v328_v43 = vpop.permute.xlu1 %327  ;;  %v323_v45 = vpop.permute.xlu0 %322 }
  0xa2   :  { %v635_v49 = vmul.f32 %v328_v43, %v59_v37  ;;  %v633_v50 = vmul.f32 %v323_v45, %v57_v38  ;;  %v634_v58 = vmul.f32 %v328_v43, %v58_v42  ;;  %v632_v59 = vmul.f32 %v323_v45, %v56_v44  ;;  %v79_v37 = vld [vmem:[%s12027_s2 + $0x1b8] sm:$0xff]  ;;  %v77_v38 = vld [vmem:[%s12027_s2 + $0x1a8] sm:$0xff]  ;;  %v78_v44 = vld [vmem:[%s12027_s2 + $0x1b0] sm:$0xff] }
  0xa4   :  { %2054 = vmatpush1.bf16.msra.mxu1 %v756_v48  ;;  %v761_v2 = vpack.c.bf16 %v635_v49, %v633_v50  ;;  %v760_v9 = vpack.c.bf16 %v634_v58, %v632_v59  ;;  %v83_v49 = vld [vmem:[%s12027_s2 + $0x1d8] sm:$0xff]  ;;  %v81_v50 = vld [vmem:[%s12027_s2 + $0x1c8] sm:$0xff] }
  0xa5   :  { %2055 = vmatprep.subr.bf16.mxu1 %v759_v51  ;;  %v338_v55 = vpop.permute.xlu1 %337  ;;  %v333_v57 = vpop.permute.xlu0 %332 }
  0xa6   :  { %v639_v63 = vmul.f32 %v338_v55, %v63_v52  ;;  %v637_v1 = vmul.f32 %v333_v57, %v61_v53  ;;  %v638_v7 = vmul.f32 %v338_v55, %v62_v54  ;;  %v636_v8 = vmul.f32 %v333_v57, %v60_v56  ;;  %v82_v55 = vld [vmem:[%s12027_s2 + $0x1d0] sm:$0xff]  ;;  %v80_v56 = vld [vmem:[%s12027_s2 + $0x1c0] sm:$0xff] }
  0xa8   :  { %2056 = vmatpush1.bf16.msra.mxu1 %v758_v60  ;;  %v763_v12 = vpack.c.bf16 %v639_v63, %v637_v1  ;;  %v762_v21 = vpack.c.bf16 %v638_v7, %v636_v8  ;;  %v89_v7 = vld [vmem:[%s12027_s2 + $0x208] sm:$0xff] }
  0xa9   :  { %2057 = vmatprep.subr.bf16.mxu1 %v761_v2  ;;  %v348_v4 = vpop.permute.xlu1 %347  ;;  %v343_v6 = vpop.permute.xlu0 %342 }
  0xaa   :  { %v643_v10 = vmul.f32 %v348_v4, %v67_v61  ;;  %v641_v11 = vmul.f32 %v343_v6, %v65_v62  ;;  %v642_v19 = vmul.f32 %v348_v4, %v66_v3  ;;  %v640_v20 = vmul.f32 %v343_v6, %v64_v5  ;;  %v87_v61 = vld [vmem:[%s12027_s2 + $0x1f8] sm:$0xff]  ;;  %v85_v62 = vld [vmem:[%s12027_s2 + $0x1e8] sm:$0xff]  ;;  %v86_v4 = vld [vmem:[%s12027_s2 + $0x1f0] sm:$0xff] }
  0xab   :  { %v84_v5 = vld [vmem:[%s12027_s2 + $0x1e0] sm:$0xff] }
  0xac   :  { %2058 = vmatpush1.bf16.msra.mxu1 %v760_v9  ;;  %v765_v26 = vpack.c.bf16 %v643_v10, %v641_v11  ;;  %v764_v33 = vpack.c.bf16 %v642_v19, %v640_v20  ;;  %v91_v11 = vld [vmem:[%s12027_s2 + $0x218] sm:$0xff]  ;;  %v94_v19 = vld [vmem:[%s12027_s2 + $0x230] sm:$0xff] }
  0xad   :  { %2059 = vmatprep.subr.bf16.mxu1 %v763_v12  ;;  %v358_v16 = vpop.permute.xlu1 %357  ;;  %v353_v18 = vpop.permute.xlu0 %352  ;;  %v88_v12 = vld [vmem:[%s12027_s2 + $0x200] sm:$0xff] }
  0xae   :  { %v647_v24 = vmul.f32 %v358_v16, %v71_v13  ;;  %v645_v25 = vmul.f32 %v353_v18, %v69_v14  ;;  %v646_v31 = vmul.f32 %v358_v16, %v70_v15  ;;  %v644_v32 = vmul.f32 %v353_v18, %v68_v17  ;;  %v90_v13 = vld [vmem:[%s12027_s2 + $0x210] sm:$0xff] }
  0xb0   :  { %2060 = vmatpush1.bf16.msra.mxu1 %v762_v21  ;;  %v767_v36 = vpack.c.bf16 %v647_v24, %v645_v25  ;;  %v766_v43 = vpack.c.bf16 %v646_v31, %v644_v32  ;;  %v95_v25 = vld [vmem:[%s12027_s2 + $0x238] sm:$0xff] }
  0xb1   :  { %2061 = vmatprep.subr.bf16.mxu1 %v765_v26  ;;  %v368_v28 = vpop.permute.xlu1 %367  ;;  %v363_v30 = vpop.permute.xlu0 %362  ;;  %v92_v26 = vld [vmem:[%s12027_s2 + $0x220] sm:$0xff] }
  0xb2   :  { %v651_v34 = vmul.f32 %v368_v28, %v75_v22  ;;  %v649_v35 = vmul.f32 %v363_v30, %v73_v23  ;;  %v650_v41 = vmul.f32 %v368_v28, %v74_v27  ;;  %v648_v42 = vmul.f32 %v363_v30, %v72_v29  ;;  %v93_v27 = vld [vmem:[%s12027_s2 + $0x228] sm:$0xff] }
  0xb4   :  { %2062 = vmatpush1.bf16.msra.mxu1 %v764_v33  ;;  %v769_v48 = vpack.c.bf16 %v651_v34, %v649_v35  ;;  %v768_v57 = vpack.c.bf16 %v650_v41, %v648_v42  ;;  %v97_v41 = vld [vmem:[%s12027_s2 + $0x248] sm:$0xff] }
  0xb5   :  { %2063 = vmatprep.subr.bf16.mxu1 %v767_v36  ;;  %v378_v39 = vpop.permute.xlu1 %377  ;;  %v373_v40 = vpop.permute.xlu0 %372 }
  0xb6   :  { %v655_v45 = vmul.f32 %v378_v39, %v79_v37  ;;  %v653_v47 = vmul.f32 %v373_v40, %v77_v38  ;;  %v654_v53 = vmul.f32 %v378_v39, %v78_v44  ;;  %v652_v54 = vmul.f32 %v373_v40, %v76_v46  ;;  %v6788_v37 = vld [vmem:[%s12026_s1] ss:$20 sps:$4 sm:$0xff]   ;;  %v99_v39 = vld [vmem:[%s12027_s2 + $0x258] sm:$0xff] }
  0xb7   :  { %v98_v38 = vld [vmem:[%s12027_s2 + $0x250] sm:$0xff]  ;;  %v96_v40 = vld [vmem:[%s12027_s2 + $0x240] sm:$0xff] }
  0xb8   :  { %2064 = vmatpush1.bf16.msra.mxu1 %v766_v43  ;;  %v771_v60 = vpack.c.bf16 %v655_v45, %v653_v47  ;;  %v770_v6 = vpack.c.bf16 %v654_v53, %v652_v54  ;;  %v6791_v44 = vld [vmem:[%s12026_s1 + $0x2c] ss:$20 sps:$4 sm:$0xff]  }
  0xb9   :  { %2065 = vmatprep.subr.bf16.mxu1 %v769_v48  ;;  %v388_v51 = vpop.permute.xlu1 %387  ;;  %v383_v52 = vpop.permute.xlu0 %382  ;;  %v100_v53 = vld [vmem:[%s12027_s2 + $0x260] sm:$0xff]  ;;  %v101_v54 = vld [vmem:[%s12027_s2 + $0x268] sm:$0xff] }
  0xba   :  { %v659_v58 = vmul.f32 %v388_v51, %v83_v49  ;;  %v657_v59 = vmul.f32 %v383_v52, %v81_v50  ;;  %v658_v63 = vmul.f32 %v388_v51, %v82_v55  ;;  %v656_v1 = vmul.f32 %v383_v52, %v80_v56  ;;  %v102_v51 = vld [vmem:[%s12027_s2 + $0x270] sm:$0xff]  ;;  %v103_v52 = vld [vmem:[%s12027_s2 + $0x278] sm:$0xff] }
  0xbc   :  { %2066 = vmatpush1.bf16.msra.mxu1 %v768_v57  ;;  %v773_v10 = vpack.c.bf16 %v659_v58, %v657_v59  ;;  %v772_v18 = vpack.c.bf16 %v658_v63, %v656_v1  ;;  %v106_v63 = vld [vmem:[%s12027_s2 + $0x290] sm:$0xff]  ;;  %v107_v1 = vld [vmem:[%s12027_s2 + $0x298] sm:$0xff] }
  0xbd   :  { %2067 = vmatprep.subr.bf16.mxu1 %v771_v60  ;;  %v398_v2 = vpop.permute.xlu1 %397  ;;  %v393_v3 = vpop.permute.xlu0 %392 }
  0xbe   :  { %v663_v8 = vmul.f32 %v398_v2, %v87_v61  ;;  %v661_v9 = vmul.f32 %v393_v3, %v85_v62  ;;  %v662_v14 = vmul.f32 %v398_v2, %v86_v4  ;;  %v660_v15 = vmul.f32 %v393_v3, %v84_v5  ;;  %v104_v2 = vld [vmem:[%s12027_s2 + $0x280] sm:$0xff]  ;;  %v105_v3 = vld [vmem:[%s12027_s2 + $0x288] sm:$0xff] }
  0xbf   :  { %v6793_v4 = vld [vmem:[%s12026_s1 + $0x28] ss:$20 sps:$4 sm:$0xff]  }
  0xc0   :  { %2068 = vmatpush1.bf16.msra.mxu1 %v770_v6  ;;  %v775_v24 = vpack.c.bf16 %v663_v8, %v661_v9  ;;  %v774_v32 = vpack.c.bf16 %v662_v14, %v660_v15  ;;  %v110_v14 = vld [vmem:[%s12027_s2 + $0x2b0] sm:$0xff]  ;;  %v111_v15 = vld [vmem:[%s12027_s2 + $0x2b8] sm:$0xff] }
  0xc1   :  { %2069 = vmatprep.subr.bf16.mxu1 %v773_v10  ;;  %v408_v16 = vpop.permute.xlu1 %407  ;;  %v403_v17 = vpop.permute.xlu0 %402 }
  0xc2   :  { %v665_v20 = vmul.f32 %v403_v17, %v89_v7  ;;  %v667_v21 = vmul.f32 %v408_v16, %v91_v11  ;;  %v664_v22 = vmul.f32 %v403_v17, %v88_v12  ;;  %v666_v23 = vmul.f32 %v408_v16, %v90_v13  ;;  %v6794_v7 = vld [vmem:[%s12026_s1 + $0x54] ss:$20 sps:$4 sm:$0xff]   ;;  %v108_v16 = vld [vmem:[%s12027_s2 + $0x2a0] sm:$0xff] }
  0xc3   :  { %v109_v17 = vld [vmem:[%s12027_s2 + $0x2a8] sm:$0xff] }
  0xc4   :  { %2070 = vmatpush1.bf16.msra.mxu1 %v772_v18  ;;  %v777_v28 = vpack.c.bf16 %v667_v21, %v665_v20  ;;  %v776_v29 = vpack.c.bf16 %v666_v23, %v664_v22 }
  0xc5   :  { %2071 = vmatprep.subr.bf16.mxu1 %v775_v24  ;;  %v418_v30 = vpop.permute.xlu1 %417  ;;  %v413_v31 = vpop.permute.xlu0 %412 }
  0xc6   :  { %v670_v33 = vmul.f32 %v418_v30, %v94_v19  ;;  %v671_v34 = vmul.f32 %v418_v30, %v95_v25  ;;  %v668_v35 = vmul.f32 %v413_v31, %v92_v26  ;;  %v669_v36 = vmul.f32 %v413_v31, %v93_v27  ;;  %2434 = vmatprep.subr.bf16.mxu0 %v777_v28  ;;  %v114_v26 = vld [vmem:[%s12027_s2 + $0x2d0] sm:$0xff]  ;;  %v115_v27 = vld [vmem:[%s12027_s2 + $0x2d8] sm:$0xff] }
  0xc7   :  { %2435 = vmatpush1.bf16.msra.mxu0 %v776_v29  ;;  %v6796_v30 = vld [vmem:[%s12026_s1 + $0x50] ss:$20 sps:$4 sm:$0xff]  }
  0xc8   :  { %2072 = vmatpush1.bf16.msra.mxu1 %v774_v32  ;;  %v779_v42 = vpack.c.bf16 %v671_v34, %v669_v36  ;;  %v778_v43 = vpack.c.bf16 %v670_v33, %v668_v35  ;;  %v6797_v33 = vld [vmem:[%s12026_s1 + $0x7c] ss:$20 sps:$4 sm:$0xff]  }
  0xc9   :  { %6465 = vmatprep.subr.bf16.mxu1 %v777_v28  ;;  %v428_v45 = vpop.permute.xlu1 %427  ;;  %v423_v46 = vpop.permute.xlu0 %422  ;;  %v112_v28 = vld [vmem:[%s12027_s2 + $0x2c0] sm:$0xff] }
  0xca   :  { %v674_v47 = vmul.f32 %v428_v45, %v98_v38  ;;  %v675_v48 = vmul.f32 %v428_v45, %v99_v39  ;;  %v672_v49 = vmul.f32 %v423_v46, %v96_v40  ;;  %v673_v50 = vmul.f32 %v423_v46, %v97_v41  ;;  %2436 = vmatprep.subr.bf16.mxu0 %v779_v42  ;;  %v118_v40 = vld [vmem:[%s12027_s2 + $0x2f0] sm:$0xff]  ;;  %v119_v41 = vld [vmem:[%s12027_s2 + $0x2f8] sm:$0xff] }
  0xcb   :  { %2074 = vmatmul.mubr.bf16.vlgmr.msra.gmra.mrb[0].mxu1 %v6788_v37  ;;  %2437 = vmatpush1.bf16.msra.mxu0 %v778_v43 }
  0xcc   :  { %6481 = vmatpush1.bf16.msra.mxu1 %v776_v29  ;;  %v781_v55 = vpack.c.bf16 %v675_v48, %v673_v50  ;;  %v780_v56 = vpack.c.bf16 %v674_v47, %v672_v49  ;;  %2083 = vmatprep.mubr.bf16.mxu1 %v6791_v44  ;;  %v113_v29 = vld [vmem:[%s12027_s2 + $0x2c8] sm:$0xff] }
  0xcd   :  { %6466 = vmatprep.subr.bf16.mxu1 %v779_v42  ;;  %v438_v57 = vpop.permute.xlu1 %437  ;;  %v433_v58 = vpop.permute.xlu0 %432  ;;  %v116_v42 = vld [vmem:[%s12027_s2 + $0x2e0] sm:$0xff] }
  0xce   :  { %v678_v59 = vmul.f32 %v438_v57, %v102_v51  ;;  %v679_v60 = vmul.f32 %v438_v57, %v103_v52  ;;  %v676_v61 = vmul.f32 %v433_v58, %v100_v53  ;;  %v677_v62 = vmul.f32 %v433_v58, %v101_v54  ;;  %2438 = vmatprep.subr.bf16.mxu0 %v781_v55  ;;  %v122_v52 = vld [vmem:[%s12027_s2 + $0x310] sm:$0xff]  ;;  %v123_v53 = vld [vmem:[%s12027_s2 + $0x318] sm:$0xff]  ;;  %v120_v54 = vld [vmem:[%s12027_s2 + $0x300] sm:$0xff] }
  0xcf   :  { %2439 = vmatpush1.bf16.msra.mxu0 %v780_v56 }
  0xd0   :  { %6482 = vmatpush1.bf16.msra.mxu1 %v778_v43  ;;  %v783_v5 = vpack.c.bf16 %v679_v60, %v677_v62  ;;  %v782_v6 = vpack.c.bf16 %v678_v59, %v676_v61  ;;  %v117_v43 = vld [vmem:[%s12027_s2 + $0x2e8] sm:$0xff]  ;;  %v6800_v59 = vld [vmem:[%s12026_s1 + $0xa4] ss:$20 sps:$4 sm:$0xff]  }
  0xd1   :  { %6467 = vmatprep.subr.bf16.mxu1 %v781_v55  ;;  %v448_v8 = vpop.permute.xlu1 %447  ;;  %v443_v9 = vpop.permute.xlu0 %442  ;;  %v121_v55 = vld [vmem:[%s12027_s2 + $0x308] sm:$0xff] }
  0xd2   :  { %v682_v10 = vmul.f32 %v448_v8, %v106_v63  ;;  %v683_v11 = vmul.f32 %v448_v8, %v107_v1  ;;  %v680_v12 = vmul.f32 %v443_v9, %v104_v2  ;;  %v681_v13 = vmul.f32 %v443_v9, %v105_v3  ;;  %2440 = vmatprep.subr.bf16.mxu0 %v783_v5  ;;  %v126_v3 = vld [vmem:[%s12027_s2 + $0x330] sm:$0xff] }
  0xd3   :  { %2084 = vmatmul.mubr.bf16.gmra.mrb[4].mxu1 %v6793_v4  ;;  %2441 = vmatpush1.bf16.msra.mxu0 %v782_v6  ;;  %v127_v4 = vld [vmem:[%s12027_s2 + $0x338] sm:$0xff] }
  0xd4   :  { %6483 = vmatpush1.bf16.msra.mxu1 %v780_v56  ;;  %v785_v18 = vpack.c.bf16 %v683_v11, %v681_v13  ;;  %v784_v19 = vpack.c.bf16 %v682_v10, %v680_v12  ;;  %2093 = vmatprep.mubr.bf16.mxu1 %v6794_v7  ;;  %v6799_v56 = vld [vmem:[%s12026_s1 + $0x78] ss:$20 sps:$4 sm:$0xff]  }
  0xd5   :  { %6468 = vmatprep.subr.bf16.mxu1 %v783_v5  ;;  %v458_v20 = vpop.permute.xlu1 %457  ;;  %v453_v21 = vpop.permute.xlu0 %452  ;;  %v124_v5 = vld [vmem:[%s12027_s2 + $0x320] sm:$0xff] }
  0xd6   :  { %v686_v22 = vmul.f32 %v458_v20, %v110_v14  ;;  %v687_v23 = vmul.f32 %v458_v20, %v111_v15  ;;  %v684_v24 = vmul.f32 %v453_v21, %v108_v16  ;;  %v685_v25 = vmul.f32 %v453_v21, %v109_v17  ;;  %2442 = vmatprep.subr.bf16.mxu0 %v785_v18  ;;  %v130_v15 = vld [vmem:[%s12027_s2 + $0x350] sm:$0xff]  ;;  %v131_v16 = vld [vmem:[%s12027_s2 + $0x358] sm:$0xff]  ;;  %v128_v17 = vld [vmem:[%s12027_s2 + $0x340] sm:$0xff] }
  0xd7   :  { %2443 = vmatpush1.bf16.msra.mxu0 %v784_v19 }
  0xd8   :  { %6484 = vmatpush1.bf16.msra.mxu1 %v782_v6  ;;  %v787_v31 = vpack.c.bf16 %v687_v23, %v685_v25  ;;  %v786_v32 = vpack.c.bf16 %v686_v22, %v684_v24  ;;  %v125_v6 = vld [vmem:[%s12027_s2 + $0x328] sm:$0xff] }
  0xd9   :  { %6469 = vmatprep.subr.bf16.mxu1 %v785_v18  ;;  %v468_v34 = vpop.permute.xlu1 %467  ;;  %v463_v35 = vpop.permute.xlu0 %462  ;;  %v129_v18 = vld [vmem:[%s12027_s2 + $0x348] sm:$0xff] }
  0xda   :  { %v690_v36 = vmul.f32 %v468_v34, %v114_v26  ;;  %v691_v37 = vmul.f32 %v468_v34, %v115_v27  ;;  %v688_v38 = vmul.f32 %v463_v35, %v112_v28  ;;  %v689_v39 = vmul.f32 %v463_v35, %v113_v29  ;;  %2444 = vmatprep.subr.bf16.mxu0 %v787_v31  ;;  %v6803_v22 = vld [vmem:[%s12026_s1 + $0xcc] ss:$20 sps:$4 sm:$0xff]   ;;  %v134_v29 = vld [vmem:[%s12027_s2 + $0x370] sm:$0xff] }
  0xdb   :  { %2094 = vmatmul.mubr.bf16.gmra.mrb[8].mxu1 %v6796_v30  ;;  %2445 = vmatpush1.bf16.msra.mxu0 %v786_v32  ;;  %v135_v30 = vld [vmem:[%s12027_s2 + $0x378] sm:$0xff] }
  0xdc   :  { %6485 = vmatpush1.bf16.msra.mxu1 %v784_v19  ;;  %v789_v44 = vpack.c.bf16 %v691_v37, %v689_v39  ;;  %v788_v45 = vpack.c.bf16 %v690_v36, %v688_v38  ;;  %2103 = vmatprep.mubr.bf16.mxu1 %v6797_v33  ;;  %v6802_v19 = vld [vmem:[%s12026_s1 + $0xa0] ss:$20 sps:$4 sm:$0xff]  }
  0xdd   :  { %6470 = vmatprep.subr.bf16.mxu1 %v787_v31  ;;  %v478_v46 = vpop.permute.xlu1 %477  ;;  %v473_v47 = vpop.permute.xlu0 %472  ;;  %v132_v31 = vld [vmem:[%s12027_s2 + $0x360] sm:$0xff] }
  0xde   :  { %v694_v48 = vmul.f32 %v478_v46, %v118_v40  ;;  %v695_v49 = vmul.f32 %v478_v46, %v119_v41  ;;  %v692_v50 = vmul.f32 %v473_v47, %v116_v42  ;;  %v693_v51 = vmul.f32 %v473_v47, %v117_v43  ;;  %2446 = vmatprep.subr.bf16.mxu0 %v789_v44  ;;  %v138_v41 = vld [vmem:[%s12027_s2 + $0x390] sm:$0xff]  ;;  %v139_v42 = vld [vmem:[%s12027_s2 + $0x398] sm:$0xff]  ;;  %v136_v43 = vld [vmem:[%s12027_s2 + $0x380] sm:$0xff] }
  0xdf   :  { %2447 = vmatpush1.bf16.msra.mxu0 %v788_v45 }
  0xe0   :  { %6486 = vmatpush1.bf16.msra.mxu1 %v786_v32  ;;  %v791_v57 = vpack.c.bf16 %v695_v49, %v693_v51  ;;  %v790_v58 = vpack.c.bf16 %v694_v48, %v692_v50  ;;  %v133_v32 = vld [vmem:[%s12027_s2 + $0x368] sm:$0xff] }
  0xe1   :  { %6471 = vmatprep.subr.bf16.mxu1 %v789_v44  ;;  %v488_v60 = vpop.permute.xlu1 %487  ;;  %v483_v61 = vpop.permute.xlu0 %482  ;;  %v137_v44 = vld [vmem:[%s12027_s2 + $0x388] sm:$0xff] }
  0xe2   :  { %v698_v62 = vmul.f32 %v488_v60, %v122_v52  ;;  %v699_v63 = vmul.f32 %v488_v60, %v123_v53  ;;  %v696_v1 = vmul.f32 %v483_v61, %v120_v54  ;;  %v697_v2 = vmul.f32 %v483_v61, %v121_v55  ;;  %2448 = vmatprep.subr.bf16.mxu0 %v791_v57  ;;  %v6806_v48 = vld [vmem:[%s12026_s1 + $0xf4] ss:$20 sps:$4 sm:$0xff]  }
  0xe3   :  { %2104 = vmatmul.mubr.bf16.gmra.mrb[12].mxu1 %v6799_v56  ;;  %2449 = vmatpush1.bf16.msra.mxu0 %v790_v58  ;;  %v142_v55 = vld [vmem:[%s12027_s2 + $0x3b0] sm:$0xff]  ;;  %v143_v56 = vld [vmem:[%s12027_s2 + $0x3b8] sm:$0xff] }
  0xe4   :  { %6487 = vmatpush1.bf16.msra.mxu1 %v788_v45  ;;  %v793_v7 = vpack.c.bf16 %v699_v63, %v697_v2  ;;  %v792_v8 = vpack.c.bf16 %v698_v62, %v696_v1  ;;  %2113 = vmatprep.mubr.bf16.mxu1 %v6800_v59  ;;  %v6805_v45 = vld [vmem:[%s12026_s1 + $0xc8] ss:$20 sps:$4 sm:$0xff]  }
  0xe5   :  { %6472 = vmatprep.subr.bf16.mxu1 %v791_v57  ;;  %v498_v9 = vpop.permute.xlu1 %497  ;;  %v493_v10 = vpop.permute.xlu0 %492  ;;  %v140_v57 = vld [vmem:[%s12027_s2 + $0x3a0] sm:$0xff] }
  0xe6   :  { %v702_v11 = vmul.f32 %v498_v9, %v126_v3  ;;  %v703_v12 = vmul.f32 %v498_v9, %v127_v4  ;;  %v700_v13 = vmul.f32 %v493_v10, %v124_v5  ;;  %v701_v14 = vmul.f32 %v493_v10, %v125_v6  ;;  %2450 = vmatprep.subr.bf16.mxu0 %v793_v7  ;;  %v146_v4 = vld [vmem:[%s12027_s2 + $0x3d0] sm:$0xff]  ;;  %v147_v5 = vld [vmem:[%s12027_s2 + $0x3d8] sm:$0xff]  ;;  %v144_v6 = vld [vmem:[%s12027_s2 + $0x3c0] sm:$0xff] }
  0xe7   :  { %2451 = vmatpush1.bf16.msra.mxu0 %v792_v8 }
  0xe8   :  { %6488 = vmatpush1.bf16.msra.mxu1 %v790_v58  ;;  %v795_v20 = vpack.c.bf16 %v703_v12, %v701_v14  ;;  %v794_v21 = vpack.c.bf16 %v702_v11, %v700_v13  ;;  %v141_v58 = vld [vmem:[%s12027_s2 + $0x3a8] sm:$0xff]  ;;  %v6809_v11 = vld [vmem:[%s12026_s1 + $0x11c] ss:$20 sps:$4 sm:$0xff]  }
  0xe9   :  { %6473 = vmatprep.subr.bf16.mxu1 %v793_v7  ;;  %v508_v23 = vpop.permute.xlu1 %507  ;;  %v503_v24 = vpop.permute.xlu0 %502  ;;  %v145_v7 = vld [vmem:[%s12027_s2 + $0x3c8] sm:$0xff] }
  0xea   :  { %v706_v25 = vmul.f32 %v508_v23, %v130_v15  ;;  %v707_v26 = vmul.f32 %v508_v23, %v131_v16  ;;  %v704_v27 = vmul.f32 %v503_v24, %v128_v17  ;;  %v705_v28 = vmul.f32 %v503_v24, %v129_v18  ;;  %2452 = vmatprep.subr.bf16.mxu0 %v795_v20  ;;  %v150_v18 = vld [vmem:[%s12027_s2 + $0x3f0] sm:$0xff] }
  0xeb   :  { %2114 = vmatmul.mubr.bf16.gmra.mrb[16].mxu1 %v6802_v19  ;;  %2453 = vmatpush1.bf16.msra.mxu0 %v794_v21  ;;  %v151_v19 = vld [vmem:[%s12027_s2 + $0x3f8] sm:$0xff] }
  0xec   :  { %6489 = vmatpush1.bf16.msra.mxu1 %v792_v8  ;;  %v797_v33 = vpack.c.bf16 %v707_v26, %v705_v28  ;;  %v796_v34 = vpack.c.bf16 %v706_v25, %v704_v27  ;;  %2123 = vmatprep.mubr.bf16.mxu1 %v6803_v22  ;;  %v6808_v8 = vld [vmem:[%s12026_s1 + $0xf0] ss:$20 sps:$4 sm:$0xff]  }
  0xed   :  { %6474 = vmatprep.subr.bf16.mxu1 %v795_v20  ;;  %v518_v35 = vpop.permute.xlu1 %517  ;;  %v513_v36 = vpop.permute.xlu0 %512  ;;  %v148_v20 = vld [vmem:[%s12027_s2 + $0x3e0] sm:$0xff] }
  0xee   :  { %v710_v37 = vmul.f32 %v518_v35, %v134_v29  ;;  %v711_v38 = vmul.f32 %v518_v35, %v135_v30  ;;  %v708_v39 = vmul.f32 %v513_v36, %v132_v31  ;;  %v709_v40 = vmul.f32 %v513_v36, %v133_v32  ;;  %2454 = vmatprep.subr.bf16.mxu0 %v797_v33  ;;  %v154_v30 = vld [vmem:[%s12027_s2 + $0x410] sm:$0xff]  ;;  %v155_v31 = vld [vmem:[%s12027_s2 + $0x418] sm:$0xff]  ;;  %v152_v32 = vld [vmem:[%s12027_s2 + $0x400] sm:$0xff] }
  0xef   :  { %2455 = vmatpush1.bf16.msra.mxu0 %v796_v34 }
  0xf0   :  { %6490 = vmatpush1.bf16.msra.mxu1 %v794_v21  ;;  %v799_v46 = vpack.c.bf16 %v711_v38, %v709_v40  ;;  %v798_v47 = vpack.c.bf16 %v710_v37, %v708_v39  ;;  %v149_v21 = vld [vmem:[%s12027_s2 + $0x3e8] sm:$0xff]  ;;  %v6815_v37 = vld [vmem:[%s12026_s1 + $0x144] ss:$20 sps:$4 sm:$0xff]  }
  0xf1   :  { %6475 = vmatprep.subr.bf16.mxu1 %v797_v33  ;;  %v528_v49 = vpop.permute.xlu1 %527  ;;  %v523_v50 = vpop.permute.xlu0 %522  ;;  %v153_v33 = vld [vmem:[%s12027_s2 + $0x408] sm:$0xff] }
  0xf2   :  { %v714_v51 = vmul.f32 %v528_v49, %v138_v41  ;;  %v715_v52 = vmul.f32 %v528_v49, %v139_v42  ;;  %v712_v53 = vmul.f32 %v523_v50, %v136_v43  ;;  %v713_v54 = vmul.f32 %v523_v50, %v137_v44  ;;  %2456 = vmatprep.subr.bf16.mxu0 %v799_v46  ;;  %v6812_v44 = vld [vmem:[%s12026_s1 + $0x8] ss:$20 sps:$4 sm:$0xff]  }
  0xf3   :  { %2124 = vmatmul.mubr.bf16.gmra.mrb[20].mxu1 %v6805_v45  ;;  %2457 = vmatpush1.bf16.msra.mxu0 %v798_v47  ;;  %v158_v45 = vld [vmem:[%s12027_s2 + $0x430] sm:$0xff] }
  0xf4   :  { %6491 = vmatpush1.bf16.msra.mxu1 %v796_v34  ;;  %v801_v59 = vpack.c.bf16 %v715_v52, %v713_v54  ;;  %v800_v60 = vpack.c.bf16 %v714_v51, %v712_v53  ;;  %2133 = vmatprep.mubr.bf16.mxu1 %v6806_v48  ;;  %v6811_v34 = vld [vmem:[%s12026_s1 + $0x118] ss:$20 sps:$4 sm:$0xff]   ;;  %v6818_v49 = vld [vmem:[%s12026_s1 + $0x34] ss:$20 sps:$4 sm:$0xff]  }
  0xf5   :  { %6476 = vmatprep.subr.bf16.mxu1 %v799_v46  ;;  %v538_v61 = vpop.permute.xlu1 %537  ;;  %v533_v62 = vpop.permute.xlu0 %532  ;;  %v159_v46 = vld [vmem:[%s12027_s2 + $0x438] sm:$0xff]  ;;  %v157_v48 = vld [vmem:[%s12027_s2 + $0x428] sm:$0xff] }
  0xf6   :  { %v718_v63 = vmul.f32 %v538_v61, %v142_v55  ;;  %v719_v1 = vmul.f32 %v538_v61, %v143_v56  ;;  %v716_v2 = vmul.f32 %v533_v62, %v140_v57  ;;  %v717_v3 = vmul.f32 %v533_v62, %v141_v58  ;;  %2458 = vmatprep.subr.bf16.mxu0 %v801_v59  ;;  %v162_v58 = vld [vmem:[%s12027_s2 + $0x450] sm:$0xff]  ;;  %v160_v62 = vld [vmem:[%s12027_s2 + $0x440] sm:$0xff] }
  0xf7   :  { %2459 = vmatpush1.bf16.msra.mxu0 %v800_v60 }
  0xf8   :  { %6492 = vmatpush1.bf16.msra.mxu1 %v798_v47  ;;  %v803_v9 = vpack.c.bf16 %v719_v1, %v717_v3  ;;  %v802_v10 = vpack.c.bf16 %v718_v63, %v716_v2  ;;  %v156_v47 = vld [vmem:[%s12027_s2 + $0x420] sm:$0xff]  ;;  %v161_v63 = vld [vmem:[%s12027_s2 + $0x448] sm:$0xff] }
  0xf9   :  { %6477 = vmatprep.subr.bf16.mxu1 %v801_v59  ;;  %v548_v12 = vpop.permute.xlu1 %547  ;;  %v543_v13 = vpop.permute.xlu0 %542  ;;  %v163_v59 = vld [vmem:[%s12027_s2 + $0x458] sm:$0xff]  ;;  %v6821_v2 = vld [vmem:[%s12026_s1 + $0x16c] ss:$20 sps:$4 sm:$0xff]  }
  0xfa   :  { %v722_v14 = vmul.f32 %v548_v12, %v146_v4  ;;  %v723_v15 = vmul.f32 %v548_v12, %v147_v5  ;;  %v720_v16 = vmul.f32 %v543_v13, %v144_v6  ;;  %v721_v17 = vmul.f32 %v543_v13, %v145_v7  ;;  %2460 = vmatprep.subr.bf16.mxu0 %v803_v9  ;;  %v6820_v7 = vld [vmem:[%s12026_s1 + $0x30] ss:$20 sps:$4 sm:$0xff]  }
  0xfb   :  { %2134 = vmatmul.mubr.bf16.gmra.mrb[24].mxu1 %v6808_v8  ;;  %2461 = vmatpush1.bf16.msra.mxu0 %v802_v10  ;;  %v6824_v12 = vld [vmem:[%s12026_s1 + $0x5c] ss:$20 sps:$4 sm:$0xff]   ;;  %v164_v13 = vld [vmem:[%s12027_s2 + $0x460] sm:$0xff] }
  0xfc   :  { %6493 = vmatpush1.bf16.msra.mxu1 %v800_v60  ;;  %v805_v22 = vpack.c.bf16 %v723_v15, %v721_v17  ;;  %v804_v23 = vpack.c.bf16 %v722_v14, %v720_v16  ;;  %2143 = vmatprep.mubr.bf16.mxu1 %v6809_v11  ;;  %v6817_v60 = vld [vmem:[%s12026_s1 + $0x140] ss:$20 sps:$4 sm:$0xff]   ;;  %v167_v11 = vld [vmem:[%s12027_s2 + $0x478] sm:$0xff]  ;;  %v165_v14 = vld [vmem:[%s12027_s2 + $0x468] sm:$0xff] }
  0xfd   :  { %6478 = vmatprep.subr.bf16.mxu1 %v803_v9  ;;  %v558_v24 = vpop.permute.xlu1 %557  ;;  %v553_v25 = vpop.permute.xlu0 %552 }
  0xfe   :  { %v726_v26 = vmul.f32 %v558_v24, %v150_v18  ;;  %v727_v27 = vmul.f32 %v558_v24, %v151_v19  ;;  %v724_v28 = vmul.f32 %v553_v25, %v148_v20  ;;  %v725_v29 = vmul.f32 %v553_v25, %v149_v21  ;;  %2462 = vmatprep.subr.bf16.mxu0 %v805_v22  ;;  %v6827_v24 = vld [vmem:[%s12026_s1 + $0x194] ss:$20 sps:$4 sm:$0xff]  }
  0xff   :  { %2463 = vmatpush1.bf16.msra.mxu0 %v804_v23 }
 0x100   :  { %6494 = vmatpush1.bf16.msra.mxu1 %v802_v10  ;;  %v807_v35 = vpack.c.bf16 %v727_v27, %v725_v29  ;;  %v806_v36 = vpack.c.bf16 %v726_v26, %v724_v28  ;;  %v166_v10 = vld [vmem:[%s12027_s2 + $0x470] sm:$0xff]  ;;  %v6826_v27 = vld [vmem:[%s12026_s1 + $0x58] ss:$20 sps:$4 sm:$0xff]  }
 0x101   :  { %6479 = vmatprep.subr.bf16.mxu1 %v805_v22  ;;  %v568_v38 = vpop.permute.xlu1 %567  ;;  %v563_v39 = vpop.permute.xlu0 %562  ;;  %v6830_v28 = vld [vmem:[%s12026_s1 + $0x84] ss:$20 sps:$4 sm:$0xff]  }
 0x102   :  { %v730_v40 = vmul.f32 %v568_v38, %v154_v30  ;;  %v731_v41 = vmul.f32 %v568_v38, %v155_v31  ;;  %v728_v42 = vmul.f32 %v563_v39, %v152_v32  ;;  %v729_v43 = vmul.f32 %v563_v39, %v153_v33  ;;  %2464 = vmatprep.subr.bf16.mxu0 %v807_v35  ;;  %v6829_v29 = vld [vmem:[%s12026_s1 + $0x190] ss:$20 sps:$4 sm:$0xff]   ;;  %v6832_v31 = vld [vmem:[%s12026_s1 + $0x80] ss:$20 sps:$4 sm:$0xff]   ;;  %v6835_v33 = vld [vmem:[%s12026_s1 + $0x1b8] ss:$20 sps:$4 sm:$0xff]  }
 0x103   :  { %2144 = vmatmul.mubr.bf16.gmra.mrb[28].mxu1 %v6811_v34  ;;  %2465 = vmatpush1.bf16.msra.mxu0 %v806_v36  ;;  %v6833_v30 = vld [vmem:[%s12026_s1 + $0x1bc] ss:$20 sps:$4 sm:$0xff]   ;;  %v6836_v32 = vld [vmem:[%s12026_s1 + $0xac] ss:$20 sps:$4 sm:$0xff]   ;;  %v6839_v34 = vld [vmem:[%s12026_s1 + $0x1e4] ss:$20 sps:$4 sm:$0xff]  }
 0x104   :  { %v808_v50 = vpack.c.bf16 %v730_v40, %v728_v42  ;;  %6495 = vmatpush1.bf16.msra.mxu1 %v804_v23  ;;  %v809_v51 = vpack.c.bf16 %v731_v41, %v729_v43  ;;  %2153 = vmatprep.mubr.bf16.mxu1 %v6815_v37  ;;  %v6823_v23 = vld [vmem:[%s12026_s1 + $0x168] ss:$20 sps:$4 sm:$0xff]   ;;  %v6841_v37 = vld [vmem:[%s12026_s1 + $0x1e0] ss:$20 sps:$4 sm:$0xff]   ;;  %v6844_v39 = vld [vmem:[%s12026_s1 + $0xd0] ss:$20 sps:$4 sm:$0xff]  }
 0x105   :  { %6480 = vmatprep.subr.bf16.mxu1 %v807_v35  ;;  %v578_v52 = vpop.permute.xlu1 %577  ;;  %v573_v53 = vpop.permute.xlu0 %572  ;;  %v6838_v35 = vld [vmem:[%s12026_s1 + $0xa8] ss:$20 sps:$4 sm:$0xff]   ;;  %v6845_v38 = vld [vmem:[%s12026_s1 + $0x20c] ss:$20 sps:$4 sm:$0xff]  }
 0x106   :  { %v734_v54 = vmul.f32 %v578_v52, %v158_v45  ;;  %v735_v55 = vmul.f32 %v578_v52, %v159_v46  ;;  %v732_v56 = vmul.f32 %v573_v53, %v156_v47  ;;  %v733_v57 = vmul.f32 %v573_v53, %v157_v48  ;;  %2467 = vmatmul.mubr.bf16.vlgmr.msra.gmra.mrb[0].mxu0 %v6812_v44  ;;  %v6848_v40 = vld [vmem:[%s12026_s1 + $0xfc] ss:$20 sps:$4 sm:$0xff]   ;;  %v6851_v42 = vld [vmem:[%s12026_s1 + $0x234] ss:$20 sps:$4 sm:$0xff]   ;;  %v6850_v43 = vld [vmem:[%s12026_s1 + $0xf8] ss:$20 sps:$4 sm:$0xff]  }
 0x107   :  { %2827 = vmatprep.subr.bf16.mxu0 %v809_v51  ;;  %2476 = vmatprep.mubr.bf16.mxu0 %v6818_v49  ;;  %v6847_v41 = vld [vmem:[%s12026_s1 + $0x208] ss:$20 sps:$4 sm:$0xff]   ;;  %v6854_v44 = vld [vmem:[%s12026_s1 + $0x124] ss:$20 sps:$4 sm:$0xff]   ;;  %v6856_v47 = vld [vmem:[%s12026_s1 + $0x120] ss:$20 sps:$4 sm:$0xff]  }
 0x108   :  { %v810_v61 = vpack.c.bf16 %v734_v54, %v732_v56  ;;  %6496 = vmatpush1.bf16.msra.mxu1 %v806_v36  ;;  %2828 = vmatpush1.bf16.msra.mxu0 %v808_v50  ;;  %v811_v1 = vpack.c.bf16 %v735_v55, %v733_v57  ;;  %v6842_v36 = vld [vmem:[%s12026_s1 + $0xd4] ss:$20 sps:$4 sm:$0xff]   ;;  %v6853_v45 = vld [vmem:[%s12026_s1 + $0x230] ss:$20 sps:$4 sm:$0xff]   ;;  %v6860_v48 = vld [vmem:[%s12026_s1 + $0x14c] ss:$20 sps:$4 sm:$0xff]  }
 0x109   :  { %v588_v3 = vpop.permute.xlu1 %587  ;;  %v583_v6 = vpop.permute.xlu0 %582  ;;  %v6857_v46 = vld [vmem:[%s12026_s1 + $0x25c] ss:$20 sps:$4 sm:$0xff]   ;;  %v6859_v49 = vld [vmem:[%s12026_s1 + $0x258] ss:$20 sps:$4 sm:$0xff]   ;;  %v6866_v52 = vld [vmem:[%s12026_s1 + $0x174] ss:$20 sps:$4 sm:$0xff]  }
 0x10a   :  { %v738_v4 = vmul.f32 %v588_v3, %v162_v58  ;;  %v739_v5 = vmul.f32 %v588_v3, %v163_v59  ;;  %2829 = vmatprep.subr.bf16.mxu0 %v811_v1  ;;  %v736_v8 = vmul.f32 %v583_v6, %v160_v62  ;;  %v737_v9 = vmul.f32 %v583_v6, %v161_v63  ;;  %v6863_v50 = vld [vmem:[%s12026_s1 + $0x284] ss:$20 sps:$4 sm:$0xff]   ;;  %v6862_v51 = vld [vmem:[%s12026_s1 + $0x148] ss:$20 sps:$4 sm:$0xff]   ;;  %v6865_v53 = vld [vmem:[%s12026_s1 + $0x280] ss:$20 sps:$4 sm:$0xff]  }
 0x10b   :  { %2154 = vmatmul.mubr.bf16.gmra.mrb[32].mxu1 %v6817_v60  ;;  %v6869_v54 = vld [vmem:[%s12026_s1 + $0x2ac] ss:$20 sps:$4 sm:$0xff]   ;;  %v6868_v55 = vld [vmem:[%s12026_s1 + $0x170] ss:$20 sps:$4 sm:$0xff]   ;;  %v6871_v57 = vld [vmem:[%s12026_s1 + $0x2a8] ss:$20 sps:$4 sm:$0xff]  }
 0x10c   :  { %2830 = vmatpush1.bf16.msra.mxu0 %v810_v61  ;;  %2163 = vmatprep.mubr.bf16.mxu1 %v6821_v2  ;;  %v812_v15 = vpack.c.bf16 %v738_v4, %v736_v8  ;;  %v813_v17 = vpack.c.bf16 %v739_v5, %v737_v9  ;;  %v6872_v56 = vld [vmem:[%s12026_s1 + $0x19c] ss:$20 sps:$4 sm:$0xff]   ;;  %v6875_v58 = vld [vmem:[%s12026_s1 + $0x2d4] ss:$20 sps:$4 sm:$0xff]   ;;  %v6874_v59 = vld [vmem:[%s12026_s1 + $0x198] ss:$20 sps:$4 sm:$0xff]  }
 0x10d   :  { %v598_v16 = vpop.permute.xlu1 %597  ;;  %v593_v20 = vpop.permute.xlu0 %592  ;;  %v6878_v60 = vld [vmem:[%s12026_s1 + $0x1c4] ss:$20 sps:$4 sm:$0xff]   ;;  %v6881_v62 = vld [vmem:[%s12026_s1 + $0x2fc] ss:$20 sps:$4 sm:$0xff]   ;;  %v6880_v63 = vld [vmem:[%s12026_s1 + $0x1c0] ss:$20 sps:$4 sm:$0xff]  }
 0x10e   :  { %v742_v18 = vmul.f32 %v598_v16, %v166_v10  ;;  %v743_v19 = vmul.f32 %v598_v16, %v167_v11  ;;  %2477 = vmatmul.mubr.bf16.gmra.mrb[4].mxu0 %v6820_v7  ;;  %v740_v21 = vmul.f32 %v593_v20, %v164_v13  ;;  %v741_v22 = vmul.f32 %v593_v20, %v165_v14  ;;  %v6877_v61 = vld [vmem:[%s12026_s1 + $0x2d0] ss:$20 sps:$4 sm:$0xff]   ;;  %v6884_v1 = vld [vmem:[%s12026_s1 + $0x1ec] ss:$20 sps:$4 sm:$0xff]   ;;  %v6886_v4 = vld [vmem:[%s12026_s1 + $0x1e8] ss:$20 sps:$4 sm:$0xff]  }
 0x10f   :  { %2831 = vmatprep.subr.bf16.mxu0 %v813_v17  ;;  %2486 = vmatprep.mubr.bf16.mxu0 %v6824_v12  ;;  %v6883_v2 = vld [vmem:[%s12026_s1 + $0x2f8] ss:$20 sps:$4 sm:$0xff]   ;;  %v6890_v5 = vld [vmem:[%s12026_s1 + $0x214] ss:$20 sps:$4 sm:$0xff]   ;;  %v6892_v8 = vld [vmem:[%s12026_s1 + $0x210] ss:$20 sps:$4 sm:$0xff]  }
 0x110   :  { %2832 = vmatpush1.bf16.msra.mxu0 %v812_v15  ;;  %v814_v25 = vpack.c.bf16 %v742_v18, %v740_v21  ;;  %v815_v26 = vpack.c.bf16 %v743_v19, %v741_v22  ;;  %v6887_v3 = vld [vmem:[%s12026_s1 + $0x324] ss:$20 sps:$4 sm:$0xff]   ;;  %v6889_v6 = vld [vmem:[%s12026_s1 + $0x320] ss:$20 sps:$4 sm:$0xff]   ;;  %v6896_v9 = vld [vmem:[%s12026_s1 + $0x23c] ss:$20 sps:$4 sm:$0xff]  }
 0x111   :  { %v6893_v7 = vld [vmem:[%s12026_s1 + $0x34c] ss:$20 sps:$4 sm:$0xff]   ;;  %v6895_v10 = vld [vmem:[%s12026_s1 + $0x348] ss:$20 sps:$4 sm:$0xff]   ;;  %v6902_v13 = vld [vmem:[%s12026_s1 + $0x264] ss:$20 sps:$4 sm:$0xff]  }
 0x112   :  { %2833 = vmatprep.subr.bf16.mxu0 %v815_v26  ;;  %v6899_v11 = vld [vmem:[%s12026_s1 + $0x374] ss:$20 sps:$4 sm:$0xff]   ;;  %v6898_v12 = vld [vmem:[%s12026_s1 + $0x238] ss:$20 sps:$4 sm:$0xff]   ;;  %v6901_v14 = vld [vmem:[%s12026_s1 + $0x370] ss:$20 sps:$4 sm:$0xff]  }
 0x113   :  { %2164 = vmatmul.mubr.bf16.gmra.mrb[36].mxu1 %v6823_v23  ;;  %v6905_v15 = vld [vmem:[%s12026_s1 + $0x39c] ss:$20 sps:$4 sm:$0xff]   ;;  %v6904_v16 = vld [vmem:[%s12026_s1 + $0x260] ss:$20 sps:$4 sm:$0xff]   ;;  %v6907_v18 = vld [vmem:[%s12026_s1 + $0x398] ss:$20 sps:$4 sm:$0xff]  }
 0x114   :  { %2834 = vmatpush1.bf16.msra.mxu0 %v814_v25  ;;  %2173 = vmatprep.mubr.bf16.mxu1 %v6827_v24  ;;  %v6908_v17 = vld [vmem:[%s12026_s1 + $0x28c] ss:$20 sps:$4 sm:$0xff]   ;;  %v6911_v19 = vld [vmem:[%s12026_s1 + $0x3c4] ss:$20 sps:$4 sm:$0xff]   ;;  %v6910_v20 = vld [vmem:[%s12026_s1 + $0x288] ss:$20 sps:$4 sm:$0xff]  }
 0x115   :  { %v6914_v21 = vld [vmem:[%s12026_s1 + $0x2b4] ss:$20 sps:$4 sm:$0xff]   ;;  %v6917_v23 = vld [vmem:[%s12026_s1 + $0x3ec] ss:$20 sps:$4 sm:$0xff]   ;;  %v6916_v24 = vld [vmem:[%s12026_s1 + $0x2b0] ss:$20 sps:$4 sm:$0xff]  }
 0x116   :  { %2487 = vmatmul.mubr.bf16.gmra.mrb[8].mxu0 %v6826_v27  ;;  %v6913_v22 = vld [vmem:[%s12026_s1 + $0x3c0] ss:$20 sps:$4 sm:$0xff]   ;;  %v6919_v25 = vld [vmem:[%s12026_s1 + $0x3e8] ss:$20 sps:$4 sm:$0xff]   ;;  %v6920_v27 = vld [vmem:[%s12026_s1 + $0x10] ss:$20 sps:$4 sm:$0xff]  }
 0x117   :  { %2496 = vmatprep.mubr.bf16.mxu0 %v6830_v28  ;;  %v6921_v26 = vld [vmem:[%s12026_s1 + $0x414] ss:$20 sps:$4 sm:$0xff]   ;;  %v6923_v28 = vld [vmem:[%s12026_s1 + $0x410] ss:$20 sps:$4 sm:$0xff]  }
 0x11b   :  { %2174 = vmatmul.mubr.bf16.gmra.mrb[40].mxu1 %v6829_v29  ;;  %v6925_v29 = vld [vmem:[%s12026_s1 + $0x43c] ss:$20 sps:$4 sm:$0xff]  }
 0x11c   :  { %2183 = vmatprep.mubr.bf16.mxu1 %v6833_v30  ;;  %v6924_v30 = vld [vmem:[%s12026_s1 + $0x38] ss:$20 sps:$4 sm:$0xff]  }
 0x11e   :  { %2497 = vmatmul.mubr.bf16.gmra.mrb[12].mxu0 %v6832_v31 }
 0x11f   :  { %2506 = vmatprep.mubr.bf16.mxu0 %v6836_v32  ;;  %v6927_v32 = vld [vmem:[%s12026_s1 + $0x438] ss:$20 sps:$4 sm:$0xff]  }
 0x123   :  { %2184 = vmatmul.mubr.bf16.gmra.mrb[44].mxu1 %v6835_v33 }
 0x124   :  { %2193 = vmatprep.mubr.bf16.mxu1 %v6839_v34  ;;  %v6929_v34 = vld [vmem:[%s12026_s1 + $0x464] ss:$20 sps:$4 sm:$0xff]  }
 0x126   :  { %2507 = vmatmul.mubr.bf16.gmra.mrb[16].mxu0 %v6838_v35 }
 0x127   :  { %2516 = vmatprep.mubr.bf16.mxu0 %v6842_v36 }
 0x12b   :  { %2194 = vmatmul.mubr.bf16.gmra.mrb[48].mxu1 %v6841_v37  ;;  %v6928_v37 = vld [vmem:[%s12026_s1 + $0x60] ss:$20 sps:$4 sm:$0xff]  }
 0x12c   :  { %2203 = vmatprep.mubr.bf16.mxu1 %v6845_v38 }
 0x12e   :  { %2517 = vmatmul.mubr.bf16.gmra.mrb[20].mxu0 %v6844_v39  ;;  %v6931_v39 = vld [vmem:[%s12026_s1 + $0x460] ss:$20 sps:$4 sm:$0xff]  }
 0x12f   :  { %2526 = vmatprep.mubr.bf16.mxu0 %v6848_v40 }
 0x133   :  { %2204 = vmatmul.mubr.bf16.gmra.mrb[52].mxu1 %v6847_v41  ;;  %v6933_v41 = vld [vmem:[%s12026_s1 + $0x48c] ss:$20 sps:$4 sm:$0xff]  }
 0x134   :  { %2213 = vmatprep.mubr.bf16.mxu1 %v6851_v42 }
 0x136   :  { %2527 = vmatmul.mubr.bf16.gmra.mrb[24].mxu0 %v6850_v43 }
 0x137   :  { %2536 = vmatprep.mubr.bf16.mxu0 %v6854_v44  ;;  %v6932_v44 = vld [vmem:[%s12026_s1 + $0x88] ss:$20 sps:$4 sm:$0xff]  }
 0x13b   :  { %2214 = vmatmul.mubr.bf16.gmra.mrb[56].mxu1 %v6853_v45 }
 0x13c   :  { %2223 = vmatprep.mubr.bf16.mxu1 %v6857_v46  ;;  %v6935_v46 = vld [vmem:[%s12026_s1 + $0x488] ss:$20 sps:$4 sm:$0xff]  }
 0x13e   :  { %2537 = vmatmul.mubr.bf16.gmra.mrb[28].mxu0 %v6856_v47 }
 0x13f   :  { %2546 = vmatprep.mubr.bf16.mxu0 %v6860_v48  ;;  %v6937_v48 = vld [vmem:[%s12026_s1 + $0x4b4] ss:$20 sps:$4 sm:$0xff]  }
 0x143   :  { %2224 = vmatmul.mubr.bf16.gmra.mrb[60].mxu1 %v6859_v49 }
 0x144   :  { %2233 = vmatprep.mubr.bf16.mxu1 %v6863_v50 }
 0x146   :  { %2547 = vmatmul.mubr.bf16.gmra.mrb[32].mxu0 %v6862_v51  ;;  %v6936_v51 = vld [vmem:[%s12026_s1 + $0xb0] ss:$20 sps:$4 sm:$0xff]  }
 0x147   :  { %2556 = vmatprep.mubr.bf16.mxu0 %v6866_v52 }
 0x14b   :  { %2234 = vmatmul.mubr.bf16.gmra.mrb[64].mxu1 %v6865_v53  ;;  %v6939_v53 = vld [vmem:[%s12026_s1 + $0x4b0] ss:$20 sps:$4 sm:$0xff]  }
 0x14c   :  { %2243 = vmatprep.mubr.bf16.mxu1 %v6869_v54 }
 0x14e   :  { %2557 = vmatmul.mubr.bf16.gmra.mrb[36].mxu0 %v6868_v55  ;;  %v6941_v55 = vld [vmem:[%s12026_s1 + $0x4dc] ss:$20 sps:$4 sm:$0xff]  }
 0x14f   :  { %2566 = vmatprep.mubr.bf16.mxu0 %v6872_v56 }
 0x153   :  { %2244 = vmatmul.mubr.bf16.gmra.mrb[68].mxu1 %v6871_v57 }
 0x154   :  { %2253 = vmatprep.mubr.bf16.mxu1 %v6875_v58  ;;  %v6940_v58 = vld [vmem:[%s12026_s1 + $0xd8] ss:$20 sps:$4 sm:$0xff]  }
 0x156   :  { %2567 = vmatmul.mubr.bf16.gmra.mrb[40].mxu0 %v6874_v59 }
 0x157   :  { %2576 = vmatprep.mubr.bf16.mxu0 %v6878_v60  ;;  %v6943_v60 = vld [vmem:[%s12026_s1 + $0x4d8] ss:$20 sps:$4 sm:$0xff]  }
 0x15b   :  { %2254 = vmatmul.mubr.bf16.gmra.mrb[72].mxu1 %v6877_v61 }
 0x15c   :  { %2263 = vmatprep.mubr.bf16.mxu1 %v6881_v62  ;;  %v6945_v62 = vld [vmem:[%s12026_s1 + $0x504] ss:$20 sps:$4 sm:$0xff]  }
 0x15e   :  { %2577 = vmatmul.mubr.bf16.gmra.mrb[44].mxu0 %v6880_v63 }
 0x15f   :  { %2586 = vmatprep.mubr.bf16.mxu0 %v6884_v1 }
 0x163   :  { %2264 = vmatmul.mubr.bf16.gmra.mrb[76].mxu1 %v6883_v2  ;;  %v6944_v2 = vld [vmem:[%s12026_s1 + $0x100] ss:$20 sps:$4 sm:$0xff]  }
 0x164   :  { %2273 = vmatprep.mubr.bf16.mxu1 %v6887_v3 }
 0x166   :  { %2587 = vmatmul.mubr.bf16.gmra.mrb[48].mxu0 %v6886_v4  ;;  %v6947_v4 = vld [vmem:[%s12026_s1 + $0x500] ss:$20 sps:$4 sm:$0xff]  }
 0x167   :  { %2596 = vmatprep.mubr.bf16.mxu0 %v6890_v5 }
 0x16b   :  { %2274 = vmatmul.mubr.bf16.gmra.mrb[80].mxu1 %v6889_v6  ;;  %v6949_v6 = vld [vmem:[%s12026_s1 + $0x52c] ss:$20 sps:$4 sm:$0xff]  }
 0x16c   :  { %2283 = vmatprep.mubr.bf16.mxu1 %v6893_v7 }
 0x16e   :  { %2597 = vmatmul.mubr.bf16.gmra.mrb[52].mxu0 %v6892_v8 }
 0x16f   :  { %2606 = vmatprep.mubr.bf16.mxu0 %v6896_v9  ;;  %v6948_v9 = vld [vmem:[%s12026_s1 + $0x128] ss:$20 sps:$4 sm:$0xff]  }
 0x173   :  { %2284 = vmatmul.mubr.bf16.gmra.mrb[84].mxu1 %v6895_v10 }
 0x174   :  { %2293 = vmatprep.mubr.bf16.mxu1 %v6899_v11  ;;  %v6951_v11 = vld [vmem:[%s12026_s1 + $0x528] ss:$20 sps:$4 sm:$0xff]  }
 0x176   :  { %2607 = vmatmul.mubr.bf16.gmra.mrb[56].mxu0 %v6898_v12 }
 0x177   :  { %2616 = vmatprep.mubr.bf16.mxu0 %v6902_v13  ;;  %v6953_v13 = vld [vmem:[%s12026_s1 + $0x554] ss:$20 sps:$4 sm:$0xff]  }
 0x17b   :  { %2294 = vmatmul.mubr.bf16.gmra.mrb[88].mxu1 %v6901_v14 }
 0x17c   :  { %2303 = vmatprep.mubr.bf16.mxu1 %v6905_v15 }
 0x17e   :  { %2617 = vmatmul.mubr.bf16.gmra.mrb[60].mxu0 %v6904_v16  ;;  %v6952_v16 = vld [vmem:[%s12026_s1 + $0x150] ss:$20 sps:$4 sm:$0xff]  }
 0x17f   :  { %2626 = vmatprep.mubr.bf16.mxu0 %v6908_v17 }
 0x183   :  { %2304 = vmatmul.mubr.bf16.gmra.mrb[92].mxu1 %v6907_v18  ;;  %v6955_v18 = vld [vmem:[%s12026_s1 + $0x550] ss:$20 sps:$4 sm:$0xff]  }
 0x184   :  { %2313 = vmatprep.mubr.bf16.mxu1 %v6911_v19 }
 0x186   :  { %2627 = vmatmul.mubr.bf16.gmra.mrb[64].mxu0 %v6910_v20  ;;  %v6957_v20 = vld [vmem:[%s12026_s1 + $0x57c] ss:$20 sps:$4 sm:$0xff]  }
 0x187   :  { %2636 = vmatprep.mubr.bf16.mxu0 %v6914_v21 }
 0x18b   :  { %2314 = vmatmul.mubr.bf16.gmra.mrb[96].mxu1 %v6913_v22 }
 0x18c   :  { %2323 = vmatprep.mubr.bf16.mxu1 %v6917_v23  ;;  %v6956_v23 = vld [vmem:[%s12026_s1 + $0x178] ss:$20 sps:$4 sm:$0xff]  }
 0x18e   :  { %2637 = vmatmul.mubr.bf16.gmra.mrb[68].mxu0 %v6916_v24 }
 0x18f   :  { %2859 = vmatprep.mubr.bf16.mxu0 %v12032_v0 }
 0x193   :  { %2324 = vmatmul.mubr.bf16.gmra.mrb[100].mxu1 %v6919_v25  ;;  %v6959_v25 = vld [vmem:[%s12026_s1 + $0x578] ss:$20 sps:$4 sm:$0xff]  }
 0x194   :  { %2333 = vmatprep.mubr.bf16.mxu1 %v6921_v26 }
 0x196   :  { %6429 = vmatmul.mubr.msk.bf16.vlgmr.msra.gmra.mrb[0].mxu0 %vm1932_vm0, %v6920_v27  ;;  %v6963_v27 = vld [vmem:[%s12026_s1 + $0x2dc] ss:$20 sps:$4 sm:$0xff]  }
 0x197   :  { %2869 = vmatprep.mubr.bf16.mxu0 %v12032_v0 }
 0x19b   :  { %2334 = vmatmul.mubr.bf16.gmra.mrb[104].mxu1 %v6923_v28 }
 0x19c   :  { %2343 = vmatprep.mubr.bf16.mxu1 %v6925_v29 }
 0x19e   :  { %6430 = vmatmul.mubr.msk.bf16.gmra.mrb[4].mxu0 %vm1932_vm0, %v6924_v30  ;;  %v8153_v31 = vpop.f32.mrb[0].mxu1  ;;  %v6960_v30 = vld [vmem:[%s12026_s1 + $0x1a0] ss:$20 sps:$4 sm:$0xff]  }
 0x19f   :  { %2879 = vmatprep.mubr.bf16.mxu0 %v12032_v0  ;;  %v8159_v33 = vpop.f32.mrb[1].mxu1 }
 0x1a0   :  { %v8164_v35 = vpop.f32.mrb[2].mxu1 }
 0x1a1   :  { %v8166_v36 = vpop.f32.mrb[3].mxu1 }
 0x1a3   :  { %2344 = vmatmul.mubr.bf16.gmra.mrb[108].mxu1 %v6927_v32 }
 0x1a4   :  { %2353 = vmatprep.mubr.bf16.mxu1 %v6929_v34  ;;  %v6961_v34 = vld [vmem:[%s12026_s1 + $0x2d8] ss:$20 sps:$4 sm:$0xff]  }
 0x1a6   :  { %6431 = vmatmul.mubr.msk.bf16.gmra.mrb[8].mxu0 %vm1932_vm0, %v6928_v37  ;;  %v8172_v38 = vpop.f32.mrb[4].mxu1 }
 0x1a7   :  { %2889 = vmatprep.mubr.bf16.mxu0 %v12032_v0  ;;  %v8178_v40 = vpop.f32.mrb[5].mxu1 }
 0x1a8   :  { %v8183_v42 = vpop.f32.mrb[6].mxu1 }
 0x1a9   :  { %v8185_v43 = vpop.f32.mrb[7].mxu1 }
 0x1ab   :  { %2354 = vmatmul.mubr.bf16.gmra.mrb[112].mxu1 %v6931_v39  ;;  %v6965_v39 = vld [vmem:[%s12026_s1 + $0x304] ss:$20 sps:$4 sm:$0xff]  }
 0x1ac   :  { %2363 = vmatprep.mubr.bf16.mxu1 %v6933_v41 }
 0x1ae   :  { %6432 = vmatmul.mubr.msk.bf16.gmra.mrb[12].mxu0 %vm1932_vm0, %v6932_v44  ;;  %v8191_v45 = vpop.f32.mrb[8].mxu1 }
 0x1af   :  { %2899 = vmatprep.mubr.bf16.mxu0 %v12032_v0  ;;  %v8197_v47 = vpop.f32.mrb[9].mxu1 }
 0x1b0   :  { %v8202_v49 = vpop.f32.mrb[10].mxu1 }
 0x1b1   :  { %v8204_v50 = vpop.f32.mrb[11].mxu1 }
 0x1b3   :  { %2364 = vmatmul.mubr.bf16.gmra.mrb[116].mxu1 %v6935_v46  ;;  %v6964_v46 = vld [vmem:[%s12026_s1 + $0x1c8] ss:$20 sps:$4 sm:$0xff]  }
 0x1b4   :  { %2373 = vmatprep.mubr.bf16.mxu1 %v6937_v48 }
 0x1b6   :  { %6433 = vmatmul.mubr.msk.bf16.gmra.mrb[16].mxu0 %vm1932_vm0, %v6936_v51  ;;  %v8210_v52 = vpop.f32.mrb[12].mxu1  ;;  %v6967_v51 = vld [vmem:[%s12026_s1 + $0x300] ss:$20 sps:$4 sm:$0xff]  }
 0x1b7   :  { %2909 = vmatprep.mubr.bf16.mxu0 %v12032_v0  ;;  %v8216_v54 = vpop.f32.mrb[13].mxu1 }
 0x1b8   :  { %v8221_v56 = vpop.f32.mrb[14].mxu1 }
 0x1b9   :  { %v8223_v57 = vpop.f32.mrb[15].mxu1 }
 0x1bb   :  { %2374 = vmatmul.mubr.bf16.gmra.mrb[120].mxu1 %v6939_v53 }
 0x1bc   :  { %2383 = vmatprep.mubr.bf16.mxu1 %v6941_v55  ;;  %v6969_v55 = vld [vmem:[%s12026_s1 + $0x32c] ss:$20 sps:$4 sm:$0xff]  }
 0x1be   :  { %6434 = vmatmul.mubr.msk.bf16.gmra.mrb[20].mxu0 %vm1932_vm0, %v6940_v58  ;;  %v8229_v59 = vpop.f32.mrb[16].mxu1 }
 0x1bf   :  { %2919 = vmatprep.mubr.bf16.mxu0 %v12032_v0  ;;  %v8235_v61 = vpop.f32.mrb[17].mxu1 }
 0x1c0   :  { %v8240_v63 = vpop.f32.mrb[18].mxu1 }
 0x1c1   :  { %v8242_v1 = vpop.f32.mrb[19].mxu1 }
 0x1c3   :  { %2384 = vmatmul.mubr.bf16.gmra.mrb[124].mxu1 %v6943_v60 }
 0x1c4   :  { %2393 = vmatprep.mubr.bf16.mxu1 %v6945_v62  ;;  %v6968_v62 = vld [vmem:[%s12026_s1 + $0x1f0] ss:$20 sps:$4 sm:$0xff]  }
 0x1c6   :  { %6435 = vmatmul.mubr.msk.bf16.gmra.mrb[24].mxu0 %vm1932_vm0, %v6944_v2  ;;  %v8248_v3 = vpop.f32.mrb[20].mxu1 }
 0x1c7   :  { %2929 = vmatprep.mubr.bf16.mxu0 %v12032_v0  ;;  %v8254_v5 = vpop.f32.mrb[21].mxu1 }
 0x1c8   :  { %v8259_v7 = vpop.f32.mrb[22].mxu1 }
 0x1c9   :  { %v8261_v8 = vpop.f32.mrb[23].mxu1 }
 0x1cb   :  { %2394 = vmatmul.mubr.bf16.gmra.mrb[128].mxu1 %v6947_v4  ;;  %v6971_v4 = vld [vmem:[%s12026_s1 + $0x328] ss:$20 sps:$4 sm:$0xff]  }
 0x1cc   :  { %2403 = vmatprep.mubr.bf16.mxu1 %v6949_v6 }
 0x1ce   :  { %6436 = vmatmul.mubr.msk.bf16.gmra.mrb[28].mxu0 %vm1932_vm0, %v6948_v9  ;;  %v8267_v10 = vpop.f32.mrb[24].mxu1  ;;  %v6973_v9 = vld [vmem:[%s12026_s1 + $0x354] ss:$20 sps:$4 sm:$0xff]  }
 0x1cf   :  { %2939 = vmatprep.mubr.bf16.mxu0 %v12032_v0  ;;  %v8273_v12 = vpop.f32.mrb[25].mxu1 }
 0x1d0   :  { %v8278_v14 = vpop.f32.mrb[26].mxu1 }
 0x1d1   :  { %v8280_v15 = vpop.f32.mrb[27].mxu1 }
 0x1d3   :  { %2404 = vmatmul.mubr.bf16.gmra.mrb[132].mxu1 %v6951_v11 }
 0x1d4   :  { %2413 = vmatprep.mubr.bf16.mxu1 %v6953_v13 }
 0x1d6   :  { %6437 = vmatmul.mubr.msk.bf16.gmra.mrb[32].mxu0 %vm1932_vm0, %v6952_v16  ;;  %v8286_v17 = vpop.f32.mrb[28].mxu1  ;;  %v6972_v16 = vld [vmem:[%s12026_s1 + $0x218] ss:$20 sps:$4 sm:$0xff]  }
 0x1d7   :  { %2949 = vmatprep.mubr.bf16.mxu0 %v12032_v0  ;;  %v8292_v19 = vpop.f32.mrb[29].mxu1 }
 0x1d8   :  { %v8297_v21 = vpop.f32.mrb[30].mxu1 }
 0x1d9   :  { %v8299_v22 = vpop.f32.mrb[31].mxu1 }
 0x1db   :  { %2414 = vmatmul.mubr.bf16.gmra.mrb[136].mxu1 %v6955_v18 }
 0x1dc   :  { %2423 = vmatprep.mubr.bf16.mxu1 %v6957_v20  ;;  %v6975_v20 = vld [vmem:[%s12026_s1 + $0x350] ss:$20 sps:$4 sm:$0xff]  }
 0x1de   :  { %6438 = vmatmul.mubr.msk.bf16.gmra.mrb[36].mxu0 %vm1932_vm0, %v6956_v23  ;;  %v8305_v24 = vpop.f32.mrb[32].mxu1 }
 0x1df   :  { %2959 = vmatprep.mubr.bf16.mxu0 %v12032_v0  ;;  %v8311_v26 = vpop.f32.mrb[33].mxu1 }
 0x1e0   :  { %v8316_v28 = vpop.f32.mrb[34].mxu1 }
 0x1e1   :  { %v8318_v29 = vpop.f32.mrb[35].mxu1 }
 0x1e3   :  { %2424 = vmatmul.mubr.bf16.gmra.mrb[140].mxu1 %v6959_v25  ;;  %v6977_v25 = vld [vmem:[%s12026_s1 + $0x37c] ss:$20 sps:$4 sm:$0xff]  }
 0x1e4   :  { %2646 = vmatprep.mubr.bf16.mxu1 %v6963_v27 }
 0x1e6   :  { %6439 = vmatmul.mubr.msk.bf16.gmra.mrb[40].mxu0 %vm1932_vm0, %v6960_v30  ;;  %v8324_v32 = vpop.f32.mrb[36].mxu1 }
 0x1e7   :  { %2969 = vmatprep.mubr.bf16.mxu0 %v12032_v0  ;;  %v8330_v37 = vpop.f32.mrb[37].mxu1 }
 0x1e8   :  { %v8335_v41 = vpop.f32.mrb[38].mxu1 }
 0x1e9   :  { %v8337_v44 = vpop.f32.mrb[39].mxu1 }
 0x1eb   :  { %2647 = vmatmul.mubr.bf16.vlgmr.msra.gmra.mrb[72].mxu1 %v6961_v34  ;;  %v6976_v34 = vld [vmem:[%s12026_s1 + $0x240] ss:$20 sps:$4 sm:$0xff]  }
 0x1ec   :  { %2656 = vmatprep.mubr.bf16.mxu1 %v6965_v39 }
 0x1ee   :  { %6440 = vmatmul.mubr.msk.bf16.gmra.mrb[44].mxu0 %vm1932_vm0, %v6964_v46  ;;  %v8343_v48 = vpop.f32.mrb[40].mxu1  ;;  %v6979_v46 = vld [vmem:[%s12026_s1 + $0x378] ss:$20 sps:$4 sm:$0xff]  }
 0x1ef   :  { %2979 = vmatprep.mubr.bf16.mxu0 %v12032_v0  ;;  %v8349_v53 = vpop.f32.mrb[41].mxu1 }
 0x1f0   :  { %v8354_v58 = vpop.f32.mrb[42].mxu1 }
 0x1f1   :  { %v8356_v60 = vpop.f32.mrb[43].mxu1 }
 0x1f3   :  { %2657 = vmatmul.mubr.bf16.gmra.mrb[76].mxu1 %v6967_v51 }
 0x1f4   :  { %2666 = vmatprep.mubr.bf16.mxu1 %v6969_v55  ;;  %v6981_v55 = vld [vmem:[%s12026_s1 + $0x3a4] ss:$20 sps:$4 sm:$0xff]  }
 0x1f6   :  { %6441 = vmatmul.mubr.msk.bf16.gmra.mrb[48].mxu0 %vm1932_vm0, %v6968_v62  ;;  %v8362_v2 = vpop.f32.mrb[44].mxu1 }
 0x1f7   :  { %2989 = vmatprep.mubr.bf16.mxu0 %v12032_v0  ;;  %v8368_v6 = vpop.f32.mrb[45].mxu1 }
 0x1f8   :  { %v8373_v11 = vpop.f32.mrb[46].mxu1 }
 0x1f9   :  { %v8375_v13 = vpop.f32.mrb[47].mxu1 }
 0x1fb   :  { %2667 = vmatmul.mubr.bf16.gmra.mrb[80].mxu1 %v6971_v4 }
 0x1fc   :  { %2676 = vmatprep.mubr.bf16.mxu1 %v6973_v9  ;;  %v6980_v9 = vld [vmem:[%s12026_s1 + $0x268] ss:$20 sps:$4 sm:$0xff]  }
 0x1fe   :  { %6442 = vmatmul.mubr.msk.bf16.gmra.mrb[52].mxu0 %vm1932_vm0, %v6972_v16  ;;  %v8381_v18 = vpop.f32.mrb[48].mxu1 }
 0x1ff   :  { %2999 = vmatprep.mubr.bf16.mxu0 %v12032_v0  ;;  %v8387_v23 = vpop.f32.mrb[49].mxu1 }
 0x200   :  { %v8392_v27 = vpop.f32.mrb[50].mxu1 }
 0x201   :  { %v8394_v30 = vpop.f32.mrb[51].mxu1 }
 0x202   :  { %12201 = vst [vmem:[#allocation2_spill] sm:$0xff] %v8394_v30 }
 0x203   :  { %2677 = vmatmul.mubr.bf16.gmra.mrb[84].mxu1 %v6975_v20  ;;  %v6983_v20 = vld [vmem:[%s12026_s1 + $0x3a0] ss:$20 sps:$4 sm:$0xff]  }
 0x204   :  { %2686 = vmatprep.mubr.bf16.mxu1 %v6977_v25 }
 0x206   :  { %6443 = vmatmul.mubr.msk.bf16.gmra.mrb[56].mxu0 %vm1932_vm0, %v6976_v34  ;;  %v8400_v39 = vpop.f32.mrb[52].mxu1  ;;  %v6985_v34 = vld [vmem:[%s12026_s1 + $0x3cc] ss:$20 sps:$4 sm:$0xff]  }
 0x207   :  { %12202 = vst [vmem:[#allocation3_spill] sm:$0xff] %v8400_v39  ;;  %3009 = vmatprep.mubr.bf16.mxu0 %v12032_v0  ;;  %v8406_v51 = vpop.f32.mrb[53].mxu1 }
 0x208   :  { %12203 = vst [vmem:[#allocation4_spill] sm:$0xff] %v8406_v51  ;;  %v8411_v62 = vpop.f32.mrb[54].mxu1 }
 0x209   :  { %12204 = vst [vmem:[#allocation5_spill] sm:$0xff] %v8411_v62  ;;  %v8413_v4 = vpop.f32.mrb[55].mxu1 }
 0x20a   :  { %12205 = vst [vmem:[#allocation6_spill] sm:$0xff] %v8413_v4 }
 0x20b   :  { %2687 = vmatmul.mubr.bf16.gmra.mrb[88].mxu1 %v6979_v46 }
 0x20c   :  { %2696 = vmatprep.mubr.bf16.mxu1 %v6981_v55  ;;  %v6984_v55 = vld [vmem:[%s12026_s1 + $0x290] ss:$20 sps:$4 sm:$0xff]  }
 0x20e   :  { %6444 = vmatmul.mubr.msk.bf16.gmra.mrb[60].mxu0 %vm1932_vm0, %v6980_v9  ;;  %v8419_v16 = vpop.f32.mrb[56].mxu1 }
 0x20f   :  { %12206 = vst [vmem:[#allocation7_spill] sm:$0xff] %v8419_v16  ;;  %3019 = vmatprep.mubr.bf16.mxu0 %v12032_v0  ;;  %v8425_v25 = vpop.f32.mrb[57].mxu1  ;;  %v6987_v0 = vld [vmem:[%s12026_s1 + $0x3c8] ss:$20 sps:$4 sm:$0xff]  }
 0x210   :  { %12207 = vst [vmem:[#allocation8_spill] sm:$0xff] %v8425_v25  ;;  %v8430_v4 = vpop.f32.mrb[58].mxu1  ;;  %v12211_v25 = vmov 0  }
 0x211   :  { %12208 = vst [vmem:[#allocation9_spill] sm:$0xff] %v8430_v4  ;;  %v8432_v46 = vpop.f32.mrb[59].mxu1 }
 0x212   :  { %12209 = vst [vmem:[#allocation10_spill] sm:$0xff] %v8432_v46  ;;  %v6989_v46 = vld [vmem:[%s12026_s1 + $0x3f4] ss:$20 sps:$4 sm:$0xff]  }
 0x213   :  { %2697 = vmatmul.mubr.bf16.gmra.mrb[92].mxu1 %v6983_v20 }
 0x214   :  { %2706 = vmatprep.mubr.bf16.mxu1 %v6985_v34  ;;  %v6988_v34 = vld [vmem:[%s12026_s1 + $0x2b8] ss:$20 sps:$4 sm:$0xff]  }
 0x216   :  { %6445 = vmatmul.mubr.msk.bf16.gmra.mrb[64].mxu0 %vm1932_vm0, %v6984_v55  ;;  %v8438_v9 = vpop.f32.mrb[60].mxu1 }
 0x217   :  { %12210 = vst [vmem:[#allocation11_spill] sm:$0xff] %v8438_v9  ;;  %3029 = vmatprep.mubr.bf16.mxu0 %v12211_v25  ;;  %v8444_v16 = vpop.f32.mrb[61].mxu1 }
 0x218   :  { %12212 = vst [vmem:[#allocation12_spill] sm:$0xff] %v8444_v16  ;;  %v8449_v4 = vpop.f32.mrb[62].mxu1  ;;  %v6991_v16 = vld [vmem:[%s12026_s1 + $0x3f0] ss:$20 sps:$4 sm:$0xff]  }
 0x219   :  { %12213 = vst [vmem:[#allocation13_spill] sm:$0xff] %v8449_v4  ;;  %v8451_v20 = vpop.f32.mrb[63].mxu1 }
 0x21a   :  { %12214 = vst [vmem:[#allocation14_spill] sm:$0xff] %v8451_v20  ;;  %v6993_v20 = vld [vmem:[%s12026_s1 + $0x41c] ss:$20 sps:$4 sm:$0xff]  }
 0x21b   :  { %2707 = vmatmul.mubr.bf16.gmra.mrb[96].mxu1 %v6987_v0 }
 0x21c   :  { %2716 = vmatprep.mubr.bf16.mxu1 %v6989_v46  ;;  %v6992_v46 = vld [vmem:[%s12026_s1 + $0x2e0] ss:$20 sps:$4 sm:$0xff]  }
 0x21e   :  { %6446 = vmatmul.mubr.msk.bf16.gmra.mrb[68].mxu0 %vm1932_vm0, %v6988_v34  ;;  %v8457_v55 = vpop.f32.mrb[64].mxu1 }
 0x21f   :  { %12215 = vst [vmem:[#allocation15_spill] sm:$0xff] %v8457_v55  ;;  %3039 = vmatprep.mubr.bf16.mxu0 %v12211_v25  ;;  %v8463_v9 = vpop.f32.mrb[65].mxu1 }
 0x220   :  { %12216 = vst [vmem:[#allocation16_spill] sm:$0xff] %v8463_v9  ;;  %v8468_v4 = vpop.f32.mrb[66].mxu1  ;;  %v6995_v9 = vld [vmem:[%s12026_s1 + $0x418] ss:$20 sps:$4 sm:$0xff]  }
 0x221   :  { %12217 = vst [vmem:[#allocation17_spill] sm:$0xff] %v8468_v4  ;;  %v8470_v0 = vpop.f32.mrb[67].mxu1 }
 0x222   :  { %12218 = vst [vmem:[#allocation18_spill] sm:$0xff] %v8470_v0  ;;  %v6997_v0 = vld [vmem:[%s12026_s1 + $0x444] ss:$20 sps:$4 sm:$0xff]  }
 0x223   :  { %2717 = vmatmul.mubr.bf16.gmra.mrb[100].mxu1 %v6991_v16 }
 0x224   :  { %2726 = vmatprep.mubr.bf16.mxu1 %v6993_v20  ;;  %v6996_v20 = vld [vmem:[%s12026_s1 + $0x308] ss:$20 sps:$4 sm:$0xff]  }
 0x226   :  { %6447 = vmatmul.mubr.msk.bf16.gmra.mrb[72].mxu0 %vm1932_vm0, %v6992_v46  ;;  %v8476_v34 = vpop.f32.mrb[68].mxu1  ;;  %v6999_v46 = vld [vmem:[%s12026_s1 + $0x440] ss:$20 sps:$4 sm:$0xff]  }
 0x227   :  { %12219 = vst [vmem:[#allocation19_spill] sm:$0xff] %v8476_v34  ;;  %3049 = vmatprep.mubr.bf16.mxu0 %v12211_v25  ;;  %v8482_v55 = vpop.f32.mrb[69].mxu1 }
 0x228   :  { %12220 = vst [vmem:[#allocation20_spill] sm:$0xff] %v8482_v55  ;;  %v8487_v4 = vpop.f32.mrb[70].mxu1 }
 0x229   :  { %12221 = vst [vmem:[#allocation21_spill] sm:$0xff] %v8487_v4  ;;  %v8489_v16 = vpop.f32.mrb[71].mxu1  ;;  %v7001_v4 = vld [vmem:[%s12026_s1 + $0x46c] ss:$20 sps:$4 sm:$0xff]  }
 0x22a   :  { %12222 = vst [vmem:[#allocation22_spill] sm:$0xff] %v8489_v16  ;;  %v7000_v16 = vld [vmem:[%s12026_s1 + $0x330] ss:$20 sps:$4 sm:$0xff]  }
 0x22b   :  { %2727 = vmatmul.mubr.bf16.gmra.mrb[104].mxu1 %v6995_v9  ;;  %v7003_v9 = vld [vmem:[%s12026_s1 + $0x468] ss:$20 sps:$4 sm:$0xff]  }
 0x22c   :  { %2736 = vmatprep.mubr.bf16.mxu1 %v6997_v0  ;;  %v7005_v0 = vld [vmem:[%s12026_s1 + $0x494] ss:$20 sps:$4 sm:$0xff]  }
 0x22e   :  { %6448 = vmatmul.mubr.msk.bf16.gmra.mrb[76].mxu0 %vm1932_vm0, %v6996_v20  ;;  %v7004_v20 = vld [vmem:[%s12026_s1 + $0x358] ss:$20 sps:$4 sm:$0xff]  }
 0x22f   :  { %3059 = vmatprep.mubr.bf16.mxu0 %v12211_v25 }
 0x233   :  { %2737 = vmatmul.mubr.bf16.gmra.mrb[108].mxu1 %v6999_v46  ;;  %v7008_v46 = vld [vmem:[%s12026_s1 + $0x380] ss:$20 sps:$4 sm:$0xff]  }
 0x234   :  { %2746 = vmatprep.mubr.bf16.mxu1 %v7001_v4  ;;  %v7007_v4 = vld [vmem:[%s12026_s1 + $0x490] ss:$20 sps:$4 sm:$0xff]  }
 0x236   :  { %6449 = vmatmul.mubr.msk.bf16.gmra.mrb[80].mxu0 %vm1932_vm0, %v7000_v16  ;;  %v7009_v16 = vld [vmem:[%s12026_s1 + $0x4bc] ss:$20 sps:$4 sm:$0xff]  }
 0x237   :  { %3069 = vmatprep.mubr.bf16.mxu0 %v12211_v25 }
 0x23b   :  { %2747 = vmatmul.mubr.bf16.gmra.mrb[112].mxu1 %v7003_v9  ;;  %v7011_v9 = vld [vmem:[%s12026_s1 + $0x4b8] ss:$20 sps:$4 sm:$0xff]  }
 0x23c   :  { %2756 = vmatprep.mubr.bf16.mxu1 %v7005_v0  ;;  %v7013_v0 = vld [vmem:[%s12026_s1 + $0x4e4] ss:$20 sps:$4 sm:$0xff]  }
 0x23e   :  { %6450 = vmatmul.mubr.msk.bf16.gmra.mrb[84].mxu0 %vm1932_vm0, %v7004_v20  ;;  %v7012_v20 = vld [vmem:[%s12026_s1 + $0x3a8] ss:$20 sps:$4 sm:$0xff]  }
 0x23f   :  { %3079 = vmatprep.mubr.bf16.mxu0 %v12211_v25 }
 0x243   :  { %2757 = vmatmul.mubr.bf16.gmra.mrb[116].mxu1 %v7007_v4  ;;  %v7015_v4 = vld [vmem:[%s12026_s1 + $0x4e0] ss:$20 sps:$4 sm:$0xff]  }
 0x244   :  { %2766 = vmatprep.mubr.bf16.mxu1 %v7009_v16  ;;  %v7017_v16 = vld [vmem:[%s12026_s1 + $0x50c] ss:$20 sps:$4 sm:$0xff]  }
 0x246   :  { %6451 = vmatmul.mubr.msk.bf16.gmra.mrb[88].mxu0 %vm1932_vm0, %v7008_v46  ;;  %v7016_v46 = vld [vmem:[%s12026_s1 + $0x3d0] ss:$20 sps:$4 sm:$0xff]  }
 0x247   :  { %3089 = vmatprep.mubr.bf16.mxu0 %v12211_v25 }
 0x24b   :  { %2767 = vmatmul.mubr.bf16.gmra.mrb[120].mxu1 %v7011_v9  ;;  %v7019_v9 = vld [vmem:[%s12026_s1 + $0x508] ss:$20 sps:$4 sm:$0xff]  }
 0x24c   :  { %2776 = vmatprep.mubr.bf16.mxu1 %v7013_v0  ;;  %v7021_v0 = vld [vmem:[%s12026_s1 + $0x534] ss:$20 sps:$4 sm:$0xff]  }
 0x24e   :  { %6452 = vmatmul.mubr.msk.bf16.gmra.mrb[92].mxu0 %vm1932_vm0, %v7012_v20  ;;  %v7020_v20 = vld [vmem:[%s12026_s1 + $0x3f8] ss:$20 sps:$4 sm:$0xff]  }
 0x24f   :  { %3099 = vmatprep.mubr.bf16.mxu0 %v12211_v25 }
 0x253   :  { %2777 = vmatmul.mubr.bf16.gmra.mrb[124].mxu1 %v7015_v4  ;;  %v7023_v4 = vld [vmem:[%s12026_s1 + $0x530] ss:$20 sps:$4 sm:$0xff]  }
 0x254   :  { %2786 = vmatprep.mubr.bf16.mxu1 %v7017_v16  ;;  %v7025_v16 = vld [vmem:[%s12026_s1 + $0x55c] ss:$20 sps:$4 sm:$0xff]  }
 0x256   :  { %6453 = vmatmul.mubr.msk.bf16.gmra.mrb[96].mxu0 %vm1932_vm0, %v7016_v46  ;;  %v7024_v46 = vld [vmem:[%s12026_s1 + $0x420] ss:$20 sps:$4 sm:$0xff]  }
 0x257   :  { %3109 = vmatprep.mubr.bf16.mxu0 %v12211_v25 }
 0x25b   :  { %2787 = vmatmul.mubr.bf16.gmra.mrb[128].mxu1 %v7019_v9  ;;  %v7027_v9 = vld [vmem:[%s12026_s1 + $0x558] ss:$20 sps:$4 sm:$0xff]  }
 0x25c   :  { %2796 = vmatprep.mubr.bf16.mxu1 %v7021_v0  ;;  %v7029_v0 = vld [vmem:[%s12026_s1 + $0x584] ss:$20 sps:$4 sm:$0xff]  }
 0x25e   :  { %6454 = vmatmul.mubr.msk.bf16.gmra.mrb[100].mxu0 %vm1932_vm0, %v7020_v20 }
 0x25f   :  { %3119 = vmatprep.mubr.bf16.mxu0 %v12211_v25 }
 0x263   :  { %2797 = vmatmul.mubr.bf16.gmra.mrb[132].mxu1 %v7023_v4  ;;  %v7028_v4 = vld [vmem:[%s12026_s1 + $0x448] ss:$20 sps:$4 sm:$0xff]  }
 0x264   :  { %2806 = vmatprep.mubr.bf16.mxu1 %v7025_v16 }
 0x266   :  { %6455 = vmatmul.mubr.msk.bf16.gmra.mrb[104].mxu0 %vm1932_vm0, %v7024_v46 }
 0x267   :  { %3129 = vmatprep.mubr.bf16.mxu0 %v12211_v25 }
 0x269   :  { %v2861_v20 = vpop.f32.mrb[0].mxu0 }
 0x26a   :  { %v8580_v55 = vadd.f32 %v2861_v20, %v8153_v31  ;;  %v2863_v34 = vpop.f32.mrb[1].mxu0 }
 0x26b   :  { %2807 = vmatmul.mubr.bf16.gmra.mrb[136].mxu1 %v7027_v9  ;;  %v8586_v16 = vadd.f32 %v2863_v34, %v8159_v33  ;;  %v2865_v46 = vpop.f32.mrb[2].mxu0 }
 0x26c   :  { %12223 = vst [vmem:[#allocation23_spill] sm:$0xff] %v8580_v55  ;;  %v8589_v62 = vadd.f32 %v2865_v46, %v8164_v35  ;;  %v2867_v51 = vpop.f32.mrb[3].mxu0  ;;  %2816 = vmatprep.mubr.bf16.mxu1 %v7029_v0  ;;  %v7031_v35 = vld [vmem:[%s12026_s1 + $0x580] ss:$20 sps:$4 sm:$0xff]  }
 0x26d   :  { %12224 = vst [vmem:[#allocation24_spill] sm:$0xff] %v8586_v16  ;;  %v8592_v39 = vadd.f32 %v2867_v51, %v8166_v36  ;;  %v3221_v31 = vsel %vm3220_vm1, %v8586_v16, 0.0  ;;  %v3510_v20 = vmul.f32 %v8586_v16, %v8586_v16 }
 0x26e   :  { %12225 = vst [vmem:[#allocation25_spill] sm:$0xff] %v8589_v62  ;;  %6456 = vmatmul.mubr.msk.bf16.gmra.mrb[108].mxu0 %vm1932_vm0, %v7028_v4  ;;  %v3222_v33 = vadd.f32 %v8580_v55, %v3221_v31  ;;  %v3511_v9 = vmul.f32 %v8589_v62, %v8589_v62 }
 0x26f   :  { %12226 = vst [vmem:[#allocation26_spill] sm:$0xff] %v8592_v39  ;;  %v3225_v34 = vsel %vm3220_vm1, %v8592_v39, 0.0  ;;  %v3512_v36 = vmul.f32 %v8592_v39, %v8592_v39  ;;  %3139 = vmatprep.mubr.bf16.mxu0 %v12211_v25  ;;  %v3653_v46 = vsel %vm3220_vm1, %v3510_v20, 0.0 }
 0x270   :  { %3223 = vadd.xlane.f32.xlu0 %v3222_v33  ;;  %v3226_v51 = vadd.f32 %v8589_v62, %v3225_v34  ;;  %v7032_v33 = vld [vmem:[%s12026_s1 + $0x470] ss:$20 sps:$4 sm:$0xff]   ;;  %v3509_v34 = vmul.f32 %v8580_v55, %v8580_v55 }
 0x271   :  { %v2871_v0 = vpop.f32.mrb[4].mxu0  ;;  %v3657_v4 = vsel %vm3220_vm1, %v3512_v36, 0.0 }
 0x272   :  { %v8614_v31 = vadd.f32 %v2871_v0, %v8172_v38  ;;  %v2873_v16 = vpop.f32.mrb[5].mxu0  ;;  %3227 = vadd.xlane.f32.xlu1 %v3226_v51  ;;  %v3658_v30 = vadd.f32 %v3657_v4, %v3511_v9  ;;  %v3654_v0 = vadd.f32 %v3653_v46, %v3509_v34 }
 0x273   :  { %2817 = vmatmul.mubr.bf16.gmra.mrb[140].mxu1 %v7031_v35  ;;  %v8622_v39 = vadd.f32 %v2873_v16, %v8178_v40  ;;  %v2875_v36 = vpop.f32.mrb[6].mxu0 }
 0x274   :  { %12227 = vst [vmem:[#allocation27_spill] sm:$0xff] %v8614_v31  ;;  %v8625_v20 = vadd.f32 %v2875_v36, %v8183_v42  ;;  %v2877_v38 = vpop.f32.mrb[7].mxu0  ;;  %3659 = vadd.xlane.f32.xlu0 %v3658_v30  ;;  %v3513_v42 = vmul.f32 %v8614_v31, %v8614_v31 }
 0x275   :  { %12228 = vst [vmem:[#allocation28_spill] sm:$0xff] %v8622_v39  ;;  %v8628_v51 = vadd.f32 %v2877_v38, %v8185_v43  ;;  %v3229_v9 = vsel %vm3220_vm1, %v8622_v39, 0.0  ;;  %v3514_v4 = vmul.f32 %v8622_v39, %v8622_v39  ;;  %v7033_v38 = vld [vmem:[%s12026_s1 + $0x498] ss:$20 sps:$4 sm:$0xff]  }
 0x276   :  { %12229 = vst [vmem:[#allocation29_spill] sm:$0xff] %v8625_v20  ;;  %6457 = vmatmul.mubr.msk.bf16.gmra.mrb[112].mxu0 %vm1932_vm0, %v7032_v33  ;;  %3655 = vadd.xlane.f32.xlu1 %v3654_v0  ;;  %v3230_v40 = vadd.f32 %v8614_v31, %v3229_v9 }
 0x277   :  { %12230 = vst [vmem:[#allocation30_spill] sm:$0xff] %v8628_v51  ;;  %v3661_v30 = vsel %vm3220_vm1, %v3514_v4, 0.0  ;;  %v3233_v43 = vsel %vm3220_vm1, %v8628_v51, 0.0  ;;  %3149 = vmatprep.mubr.bf16.mxu0 %v12211_v25  ;;  %v3516_v16 = vmul.f32 %v8628_v51, %v8628_v51 }
 0x278   :  { %3231 = vadd.xlane.f32.xlu0 %v3230_v40  ;;  %v3662_v35 = vadd.f32 %v3661_v30, %v3513_v42  ;;  %v3234_v36 = vadd.f32 %v8625_v20, %v3233_v43 }
 0x279   :  { %v2881_v46 = vpop.f32.mrb[8].mxu0  ;;  %v3665_v4 = vsel %vm3220_vm1, %v3516_v16, 0.0 }
 0x27a   :  { %v8645_v33 = vadd.f32 %v2881_v46, %v8191_v45  ;;  %v2883_v34 = vpop.f32.mrb[9].mxu0  ;;  %3663 = vadd.xlane.f32.xlu1 %v3662_v35  ;;  %v3515_v45 = vmul.f32 %v8625_v20, %v8625_v20 }
 0x27b   :  { %v8652_v0 = vadd.f32 %v2883_v34, %v8197_v47  ;;  %v2885_v9 = vpop.f32.mrb[10].mxu0 }
 0x27c   :  { %12231 = vst [vmem:[#allocation31_spill] sm:$0xff] %v8645_v33  ;;  %v8656_v40 = vadd.f32 %v2885_v9, %v8202_v49  ;;  %v2887_v42 = vpop.f32.mrb[11].mxu0  ;;  %3235 = vadd.xlane.f32.xlu0 %v3234_v36  ;;  %v3666_v49 = vadd.f32 %v3665_v4, %v3515_v45  ;;  %v3517_v34 = vmul.f32 %v8645_v33, %v8645_v33  ;;  %v7034_v45 = vld [vmem:[%s12026_s1 + $0x4c0] ss:$20 sps:$4 sm:$0xff]  }
 0x27d   :  { %12232 = vst [vmem:[#allocation32_spill] sm:$0xff] %v8652_v0  ;;  %v8661_v30 = vadd.f32 %v2887_v42, %v8204_v50  ;;  %v3237_v43 = vsel %vm3220_vm1, %v8652_v0, 0.0  ;;  %v3518_v47 = vmul.f32 %v8652_v0, %v8652_v0 }
 0x27e   :  { %12233 = vst [vmem:[#allocation33_spill] sm:$0xff] %v8656_v40  ;;  %6458 = vmatmul.mubr.msk.bf16.gmra.mrb[116].mxu0 %vm1932_vm0, %v7033_v38  ;;  %v3238_v16 = vadd.f32 %v8645_v33, %v3237_v43 }
 0x27f   :  { %12234 = vst [vmem:[#allocation34_spill] sm:$0xff] %v8661_v30  ;;  %v3669_v35 = vsel %vm3220_vm1, %v3518_v47, 0.0  ;;  %v3241_v46 = vsel %vm3220_vm1, %v8661_v30, 0.0  ;;  %3159 = vmatprep.mubr.bf16.mxu0 %v12211_v25  ;;  %v3520_v50 = vmul.f32 %v8661_v30, %v8661_v30 }
 0x280   :  { %3239 = vadd.xlane.f32.xlu1 %v3238_v16  ;;  %3667 = vadd.xlane.f32.xlu0 %v3666_v49  ;;  %v3670_v4 = vadd.f32 %v3669_v35, %v3517_v34  ;;  %v3242_v42 = vadd.f32 %v8656_v40, %v3241_v46 }
 0x281   :  { %v2891_v36 = vpop.f32.mrb[12].mxu0  ;;  %v3673_v16 = vsel %vm3220_vm1, %v3520_v50, 0.0 }
 0x282   :  { %v8678_v38 = vadd.f32 %v2891_v36, %v8210_v52  ;;  %v2893_v9 = vpop.f32.mrb[13].mxu0  ;;  %v3519_v52 = vmul.f32 %v8656_v40, %v8656_v40 }
 0x283   :  { %v8685_v43 = vadd.f32 %v2893_v9, %v8216_v54  ;;  %v2895_v47 = vpop.f32.mrb[14].mxu0 }
 0x284   :  { %12235 = vst [vmem:[#allocation35_spill] sm:$0xff] %v8678_v38  ;;  %v8689_v49 = vadd.f32 %v2895_v47, %v8221_v56  ;;  %v2897_v30 = vpop.f32.mrb[15].mxu0  ;;  %3671 = vadd.xlane.f32.xlu1 %v3670_v4  ;;  %3243 = vadd.xlane.f32.xlu0 %v3242_v42  ;;  %v3674_v50 = vadd.f32 %v3673_v16, %v3519_v52  ;;  %v7035_v16 = vld [vmem:[%s12026_s1 + $0x4e8] ss:$20 sps:$4 sm:$0xff]  }
 0x285   :  { %12236 = vst [vmem:[#allocation36_spill] sm:$0xff] %v8685_v43  ;;  %v8694_v35 = vadd.f32 %v2897_v30, %v8223_v57  ;;  %v3245_v46 = vsel %vm3220_vm1, %v8685_v43, 0.0  ;;  %v3522_v54 = vmul.f32 %v8685_v43, %v8685_v43  ;;  %v3521_v30 = vmul.f32 %v8678_v38, %v8678_v38 }
 0x286   :  { %12237 = vst [vmem:[#allocation37_spill] sm:$0xff] %v8689_v49  ;;  %6459 = vmatmul.mubr.msk.bf16.gmra.mrb[120].mxu0 %vm1932_vm0, %v7034_v45  ;;  %v3246_v56 = vadd.f32 %v8678_v38, %v3245_v46 }
 0x287   :  { %12238 = vst [vmem:[#allocation38_spill] sm:$0xff] %v8694_v35  ;;  %v3677_v34 = vsel %vm3220_vm1, %v3522_v54, 0.0  ;;  %v3249_v36 = vsel %vm3220_vm1, %v8694_v35, 0.0  ;;  %3169 = vmatprep.mubr.bf16.mxu0 %v12211_v25  ;;  %v3524_v57 = vmul.f32 %v8694_v35, %v8694_v35 }
 0x288   :  { %3247 = vadd.xlane.f32.xlu1 %v3246_v56  ;;  %3675 = vadd.xlane.f32.xlu0 %v3674_v50  ;;  %v3678_v45 = vadd.f32 %v3677_v34, %v3521_v30  ;;  %v3250_v47 = vadd.f32 %v8689_v49, %v3249_v36 }
 0x289   :  { %v2901_v9 = vpop.f32.mrb[16].mxu0  ;;  %v3681_v54 = vsel %vm3220_vm1, %v3524_v57, 0.0 }
 0x28a   :  { %v8711_v4 = vadd.f32 %v2901_v9, %v8229_v59  ;;  %v2903_v42 = vpop.f32.mrb[17].mxu0  ;;  %v3523_v59 = vmul.f32 %v8689_v49, %v8689_v49 }
 0x28b   :  { %v8718_v52 = vadd.f32 %v2903_v42, %v8235_v61  ;;  %v2905_v46 = vpop.f32.mrb[18].mxu0 }
 0x28c   :  { %12239 = vst [vmem:[#allocation39_spill] sm:$0xff] %v8711_v4  ;;  %v8722_v56 = vadd.f32 %v2905_v46, %v8240_v63  ;;  %v2907_v50 = vpop.f32.mrb[19].mxu0  ;;  %3679 = vadd.xlane.f32.xlu1 %v3678_v45  ;;  %3251 = vadd.xlane.f32.xlu0 %v3250_v47  ;;  %v3682_v57 = vadd.f32 %v3681_v54, %v3523_v59 }
 0x28d   :  { %12240 = vst [vmem:[#allocation40_spill] sm:$0xff] %v8718_v52  ;;  %v8727_v34 = vadd.f32 %v2907_v50, %v8242_v1  ;;  %v3253_v36 = vsel %vm3220_vm1, %v8718_v52, 0.0  ;;  %v3526_v61 = vmul.f32 %v8718_v52, %v8718_v52  ;;  %v3525_v42 = vmul.f32 %v8711_v4, %v8711_v4  ;;  %v7036_v50 = vld [vmem:[%s12026_s1 + $0x510] ss:$20 sps:$4 sm:$0xff]  }
 0x28e   :  { %12241 = vst [vmem:[#allocation41_spill] sm:$0xff] %v8722_v56  ;;  %6460 = vmatmul.mubr.msk.bf16.gmra.mrb[124].mxu0 %vm1932_vm0, %v7035_v16  ;;  %v3254_v63 = vadd.f32 %v8711_v4, %v3253_v36 }
 0x28f   :  { %12242 = vst [vmem:[#allocation42_spill] sm:$0xff] %v8727_v34  ;;  %v3685_v30 = vsel %vm3220_vm1, %v3526_v61, 0.0  ;;  %v3257_v9 = vsel %vm3220_vm1, %v8727_v34, 0.0  ;;  %3179 = vmatprep.mubr.bf16.mxu0 %v12211_v25  ;;  %v3528_v1 = vmul.f32 %v8727_v34, %v8727_v34 }
 0x290   :  { %3255 = vadd.xlane.f32.xlu1 %v3254_v63  ;;  %3683 = vadd.xlane.f32.xlu0 %v3682_v57  ;;  %v3686_v46 = vadd.f32 %v3685_v30, %v3525_v42  ;;  %v3258_v54 = vadd.f32 %v8722_v56, %v3257_v9 }
 0x291   :  { %v2911_v45 = vpop.f32.mrb[20].mxu0  ;;  %v3689_v61 = vsel %vm3220_vm1, %v3528_v1, 0.0 }
 0x292   :  { %v8744_v47 = vadd.f32 %v2911_v45, %v8248_v3  ;;  %v2913_v16 = vpop.f32.mrb[21].mxu0  ;;  %v3527_v3 = vmul.f32 %v8722_v56, %v8722_v56 }
 0x293   :  { %v8751_v59 = vadd.f32 %v2913_v16, %v8254_v5  ;;  %v2915_v36 = vpop.f32.mrb[22].mxu0 }
 0x294   :  { %12243 = vst [vmem:[#allocation43_spill] sm:$0xff] %v8744_v47  ;;  %v8755_v63 = vadd.f32 %v2915_v36, %v8259_v7  ;;  %v2917_v57 = vpop.f32.mrb[23].mxu0  ;;  %3687 = vadd.xlane.f32.xlu1 %v3686_v46  ;;  %3259 = vadd.xlane.f32.xlu0 %v3258_v54  ;;  %v3690_v1 = vadd.f32 %v3689_v61, %v3527_v3 }
 0x295   :  { %12244 = vst [vmem:[#allocation44_spill] sm:$0xff] %v8751_v59  ;;  %v8760_v30 = vadd.f32 %v2917_v57, %v8261_v8  ;;  %v3261_v9 = vsel %vm3220_vm1, %v8751_v59, 0.0  ;;  %v3530_v5 = vmul.f32 %v8751_v59, %v8751_v59  ;;  %v3529_v16 = vmul.f32 %v8744_v47, %v8744_v47  ;;  %v7037_v57 = vld [vmem:[%s12026_s1 + $0x538] ss:$20 sps:$4 sm:$0xff]  }
 0x296   :  { %12245 = vst [vmem:[#allocation45_spill] sm:$0xff] %v8755_v63  ;;  %6461 = vmatmul.mubr.msk.bf16.gmra.mrb[128].mxu0 %vm1932_vm0, %v7036_v50  ;;  %v3262_v7 = vadd.f32 %v8744_v47, %v3261_v9 }
 0x297   :  { %12246 = vst [vmem:[#allocation46_spill] sm:$0xff] %v8760_v30  ;;  %v3693_v42 = vsel %vm3220_vm1, %v3530_v5, 0.0  ;;  %v3265_v45 = vsel %vm3220_vm1, %v8760_v30, 0.0  ;;  %3189 = vmatprep.mubr.bf16.mxu0 %v12211_v25  ;;  %v3532_v8 = vmul.f32 %v8760_v30, %v8760_v30  ;;  %v12310_v30 = vld [vmem:[#allocation20_spill] sm:$0xff] }
 0x298   :  { %3263 = vadd.xlane.f32.xlu1 %v3262_v7  ;;  %3691 = vadd.xlane.f32.xlu0 %v3690_v1  ;;  %v3694_v36 = vadd.f32 %v3693_v42, %v3529_v16  ;;  %v3266_v61 = vadd.f32 %v8755_v63, %v3265_v45 }
 0x299   :  { %v2921_v46 = vpop.f32.mrb[24].mxu0  ;;  %v3697_v5 = vsel %vm3220_vm1, %v3532_v8, 0.0 }
 0x29a   :  { %v8777_v54 = vadd.f32 %v2921_v46, %v8267_v10  ;;  %v2923_v50 = vpop.f32.mrb[25].mxu0  ;;  %v3531_v10 = vmul.f32 %v8755_v63, %v8755_v63 }
 0x29b   :  { %v8784_v3 = vadd.f32 %v2923_v50, %v8273_v12  ;;  %v2925_v9 = vpop.f32.mrb[26].mxu0 }
 0x29c   :  { %12247 = vst [vmem:[#allocation47_spill] sm:$0xff] %v8777_v54  ;;  %v8788_v7 = vadd.f32 %v2925_v9, %v8278_v14  ;;  %v2927_v1 = vpop.f32.mrb[27].mxu0  ;;  %3695 = vadd.xlane.f32.xlu1 %v3694_v36  ;;  %3267 = vadd.xlane.f32.xlu0 %v3266_v61  ;;  %v3698_v8 = vadd.f32 %v3697_v5, %v3531_v10 }
 0x29d   :  { %12248 = vst [vmem:[#allocation48_spill] sm:$0xff] %v8784_v3  ;;  %v8793_v42 = vadd.f32 %v2927_v1, %v8280_v15  ;;  %v3269_v45 = vsel %vm3220_vm1, %v8784_v3, 0.0  ;;  %v3534_v12 = vmul.f32 %v8784_v3, %v8784_v3  ;;  %v3533_v50 = vmul.f32 %v8777_v54, %v8777_v54  ;;  %v7038_v1 = vld [vmem:[%s12026_s1 + $0x560] ss:$20 sps:$4 sm:$0xff]  }
 0x29e   :  { %12249 = vst [vmem:[#allocation49_spill] sm:$0xff] %v8788_v7  ;;  %6462 = vmatmul.mubr.msk.bf16.gmra.mrb[132].mxu0 %vm1932_vm0, %v7037_v57  ;;  %v3270_v14 = vadd.f32 %v8777_v54, %v3269_v45 }
 0x29f   :  { %12250 = vst [vmem:[#allocation50_spill] sm:$0xff] %v8793_v42  ;;  %v3536_v16 = vmul.f32 %v8793_v42, %v8793_v42  ;;  %v3701_v46 = vsel %vm3220_vm1, %v3534_v12, 0.0  ;;  %v3273_v15 = vsel %vm3220_vm1, %v8793_v42, 0.0  ;;  %3199 = vmatprep.mubr.bf16.mxu0 %v12211_v25  ;;  %v12302_v42 = vld [vmem:[#allocation16_spill] sm:$0xff] }
 0x2a0   :  { %3271 = vadd.xlane.f32.xlu1 %v3270_v14  ;;  %3699 = vadd.xlane.f32.xlu0 %v3698_v8  ;;  %v3702_v9 = vadd.f32 %v3701_v46, %v3533_v50  ;;  %v3274_v5 = vadd.f32 %v8788_v7, %v3273_v15  ;;  %v3535_v14 = vmul.f32 %v8788_v7, %v8788_v7 }
 0x2a1   :  { %v2931_v36 = vpop.f32.mrb[28].mxu0  ;;  %v3705_v12 = vsel %vm3220_vm1, %v3536_v16, 0.0 }
 0x2a2   :  { %v8810_v61 = vadd.f32 %v2931_v36, %v8286_v17  ;;  %v2933_v57 = vpop.f32.mrb[29].mxu0  ;;  %v3706_v50 = vadd.f32 %v3705_v12, %v3535_v14  ;;  %v7039_v14 = vld [vmem:[%s12026_s1 + $0x588] ss:$20 sps:$4 sm:$0xff]  }
 0x2a3   :  { %v8817_v10 = vadd.f32 %v2933_v57, %v8292_v19  ;;  %v2935_v45 = vpop.f32.mrb[30].mxu0 }
 0x2a4   :  { %12251 = vst [vmem:[#allocation51_spill] sm:$0xff] %v8810_v61  ;;  %v8823_v17 = vadd.f32 %v2935_v45, %v8297_v21  ;;  %v2937_v8 = vpop.f32.mrb[31].mxu0  ;;  %3703 = vadd.xlane.f32.xlu1 %v3702_v9  ;;  %3275 = vadd.xlane.f32.xlu0 %v3274_v5 }
 0x2a5   :  { %12252 = vst [vmem:[#allocation52_spill] sm:$0xff] %v8817_v10  ;;  %v3538_v46 = vmul.f32 %v8817_v10, %v8817_v10  ;;  %v8828_v15 = vadd.f32 %v2937_v8, %v8299_v22  ;;  %v3277_v19 = vsel %vm3220_vm1, %v8817_v10, 0.0  ;;  %v3537_v22 = vmul.f32 %v8810_v61, %v8810_v61 }
 0x2a6   :  { %12253 = vst [vmem:[#allocation53_spill] sm:$0xff] %v8823_v17  ;;  %6463 = vmatmul.mubr.msk.bf16.gmra.mrb[136].mxu0 %vm1932_vm0, %v7038_v1  ;;  %v3278_v16 = vadd.f32 %v8810_v61, %v3277_v19  ;;  %v3539_v19 = vmul.f32 %v8823_v17, %v8823_v17 }
 0x2a7   :  { %12254 = vst [vmem:[#allocation54_spill] sm:$0xff] %v8828_v15  ;;  %v3540_v21 = vmul.f32 %v8828_v15, %v8828_v15  ;;  %v3709_v36 = vsel %vm3220_vm1, %v3538_v46, 0.0  ;;  %v3281_v57 = vsel %vm3220_vm1, %v8828_v15, 0.0  ;;  %3209 = vmatprep.mubr.bf16.mxu0 %v12211_v25  ;;  %v12294_v15 = vld [vmem:[#allocation12_spill] sm:$0xff] }
 0x2a8   :  { %3279 = vadd.xlane.f32.xlu1 %v3278_v16  ;;  %3707 = vadd.xlane.f32.xlu0 %v3706_v50  ;;  %v3710_v45 = vadd.f32 %v3709_v36, %v3537_v22  ;;  %v3282_v12 = vadd.f32 %v8823_v17, %v3281_v57 }
 0x2a9   :  { %v2941_v9 = vpop.f32.mrb[32].mxu0  ;;  %v3713_v46 = vsel %vm3220_vm1, %v3540_v21, 0.0 }
 0x2aa   :  { %v8843_v5 = vadd.f32 %v2941_v9, %v8305_v24  ;;  %v2943_v1 = vpop.f32.mrb[33].mxu0  ;;  %v3714_v57 = vadd.f32 %v3713_v46, %v3539_v19 }
 0x2ab   :  { %v8850_v8 = vadd.f32 %v2943_v1, %v8311_v26  ;;  %v2945_v25 = vpop.f32.mrb[34].mxu0 }
 0x2ac   :  { %12255 = vst [vmem:[#allocation55_spill] sm:$0xff] %v8843_v5  ;;  %v8856_v24 = vadd.f32 %v2945_v25, %v8316_v28  ;;  %v2947_v16 = vpop.f32.mrb[35].mxu0  ;;  %3711 = vadd.xlane.f32.xlu1 %v3710_v45  ;;  %3283 = vadd.xlane.f32.xlu0 %v3282_v12 }
 0x2ad   :  { %12256 = vst [vmem:[#allocation56_spill] sm:$0xff] %v8850_v8  ;;  %v3542_v50 = vmul.f32 %v8850_v8, %v8850_v8  ;;  %v8861_v36 = vadd.f32 %v2947_v16, %v8318_v29  ;;  %v3285_v26 = vsel %vm3220_vm1, %v8850_v8, 0.0  ;;  %v3541_v29 = vmul.f32 %v8843_v5, %v8843_v5 }
 0x2ae   :  { %12257 = vst [vmem:[#allocation57_spill] sm:$0xff] %v8856_v24  ;;  %6464 = vmatmul.mubr.msk.bf16.gmra.mrb[140].mxu0 %vm1932_vm0, %v7039_v14  ;;  %v3286_v21 = vadd.f32 %v8843_v5, %v3285_v26 }
 0x2af   :  { %12258 = vst [vmem:[#allocation58_spill] sm:$0xff] %v8861_v36  ;;  %v3544_v28 = vmul.f32 %v8861_v36, %v8861_v36  ;;  %v3717_v22 = vsel %vm3220_vm1, %v3542_v50, 0.0  ;;  %v3289_v9 = vsel %vm3220_vm1, %v8861_v36, 0.0  ;;  %v3543_v50 = vmul.f32 %v8856_v24, %v8856_v24  ;;  %v12286_v36 = vld [vmem:[#allocation8_spill] sm:$0xff] }
 0x2b0   :  { %3287 = vadd.xlane.f32.xlu1 %v3286_v21  ;;  %3715 = vadd.xlane.f32.xlu0 %v3714_v57  ;;  %v3718_v14 = vadd.f32 %v3717_v22, %v3541_v29  ;;  %v3290_v25 = vadd.f32 %v8856_v24, %v3289_v9 }
 0x2b1   :  { %v2951_v1 = vpop.f32.mrb[36].mxu0  ;;  %v3721_v16 = vsel %vm3220_vm1, %v3544_v28, 0.0 }
 0x2b2   :  { %v8875_v45 = vadd.f32 %v2951_v1, %v8324_v32  ;;  %v2953_v12 = vpop.f32.mrb[37].mxu0  ;;  %v3722_v22 = vadd.f32 %v3721_v16, %v3543_v50 }
 0x2b3   :  { %v8879_v46 = vadd.f32 %v2953_v12, %v8330_v37  ;;  %v2955_v19 = vpop.f32.mrb[38].mxu0 }
 0x2b4   :  { %12259 = vst [vmem:[#allocation59_spill] sm:$0xff] %v8875_v45  ;;  %v8885_v26 = vadd.f32 %v2955_v19, %v8335_v41  ;;  %v2957_v21 = vpop.f32.mrb[39].mxu0  ;;  %3719 = vadd.xlane.f32.xlu1 %v3718_v14  ;;  %3291 = vadd.xlane.f32.xlu0 %v3290_v25  ;;  %v3545_v1 = vmul.f32 %v8875_v45, %v8875_v45 }
 0x2b5   :  { %12260 = vst [vmem:[#allocation60_spill] sm:$0xff] %v8879_v46  ;;  %v3546_v32 = vmul.f32 %v8879_v46, %v8879_v46  ;;  %v8890_v57 = vadd.f32 %v2957_v21, %v8337_v44  ;;  %v3293_v37 = vsel %vm3220_vm1, %v8879_v46, 0.0 }
 0x2b6   :  { %12261 = vst [vmem:[#allocation61_spill] sm:$0xff] %v8885_v26  ;;  %v3294_v28 = vadd.f32 %v8875_v45, %v3293_v37 }
 0x2b7   :  { %12262 = vst [vmem:[#allocation62_spill] sm:$0xff] %v8890_v57  ;;  %v3548_v9 = vmul.f32 %v8890_v57, %v8890_v57  ;;  %v3725_v41 = vsel %vm3220_vm1, %v3546_v32, 0.0  ;;  %v3297_v29 = vsel %vm3220_vm1, %v8890_v57, 0.0  ;;  %v3547_v32 = vmul.f32 %v8885_v26, %v8885_v26  ;;  %v12278_v57 = vld [vmem:[#allocation4_spill] sm:$0xff] }
 0x2b8   :  { %3295 = vadd.xlane.f32.xlu1 %v3294_v28  ;;  %3723 = vadd.xlane.f32.xlu0 %v3722_v22  ;;  %v3726_v25 = vadd.f32 %v3725_v41, %v3545_v1  ;;  %v3298_v19 = vadd.f32 %v8885_v26, %v3297_v29 }
 0x2b9   :  { %v2961_v44 = vpop.f32.mrb[40].mxu0  ;;  %v3729_v21 = vsel %vm3220_vm1, %v3548_v9, 0.0 }
 0x2ba   :  { %v8903_v12 = vadd.f32 %v2961_v44, %v8343_v48  ;;  %v2963_v14 = vpop.f32.mrb[41].mxu0  ;;  %v3730_v29 = vadd.f32 %v3729_v21, %v3547_v32 }
 0x2bb   :  { %v8907_v16 = vadd.f32 %v2963_v14, %v8349_v53  ;;  %v2965_v50 = vpop.f32.mrb[42].mxu0 }
 0x2bc   :  { %12263 = vst [vmem:[#allocation63_spill] sm:$0xff] %v8903_v12  ;;  %v8913_v37 = vadd.f32 %v2965_v50, %v8354_v58  ;;  %v2967_v28 = vpop.f32.mrb[43].mxu0  ;;  %3727 = vadd.xlane.f32.xlu1 %v3726_v25  ;;  %3299 = vadd.xlane.f32.xlu0 %v3298_v19 }
 0x2bd   :  { %12264 = vst [vmem:[#allocation64_spill] sm:$0xff] %v8907_v16  ;;  %v3550_v48 = vmul.f32 %v8907_v16, %v8907_v16  ;;  %v8918_v22 = vadd.f32 %v2967_v28, %v8356_v60  ;;  %v3301_v53 = vsel %vm3220_vm1, %v8907_v16, 0.0  ;;  %v3549_v60 = vmul.f32 %v8903_v12, %v8903_v12 }
 0x2be   :  { %12265 = vst [vmem:[#allocation65_spill] sm:$0xff] %v8913_v37  ;;  %v8922_v41 = vpop.f32.mrb[72].mxu1  ;;  %v3302_v9 = vadd.f32 %v8903_v12, %v3301_v53 }
 0x2bf   :  { %12266 = vst [vmem:[#allocation66_spill] sm:$0xff] %v8918_v22  ;;  %v3552_v58 = vmul.f32 %v8918_v22, %v8918_v22  ;;  %v8927_v1 = vpop.f32.mrb[73].mxu1  ;;  %v3733_v44 = vsel %vm3220_vm1, %v3550_v48, 0.0  ;;  %v3305_v14 = vsel %vm3220_vm1, %v8918_v22, 0.0 }
 0x2c0   :  { %v8934_v25 = vpop.f32.mrb[74].mxu1  ;;  %3303 = vadd.xlane.f32.xlu1 %v3302_v9  ;;  %3731 = vadd.xlane.f32.xlu0 %v3730_v29  ;;  %v3734_v28 = vadd.f32 %v3733_v44, %v3549_v60  ;;  %v3306_v48 = vadd.f32 %v8913_v37, %v3305_v14  ;;  %v3551_v9 = vmul.f32 %v8913_v37, %v8913_v37 }
 0x2c1   :  { %v8936_v19 = vpop.f32.mrb[75].mxu1  ;;  %v2971_v50 = vpop.f32.mrb[44].mxu0  ;;  %v3737_v16 = vsel %vm3220_vm1, %v3552_v58, 0.0 }
 0x2c2   :  { %v8939_v21 = vadd.f32 %v2971_v50, %v8362_v2  ;;  %v2973_v32 = vpop.f32.mrb[45].mxu0  ;;  %v3738_v60 = vadd.f32 %v3737_v16, %v3551_v9 }
 0x2c3   :  { %v8943_v53 = vadd.f32 %v2973_v32, %v8368_v6  ;;  %v2975_v22 = vpop.f32.mrb[46].mxu0 }
 0x2c4   :  { %12267 = vst [vmem:[#allocation67_spill] sm:$0xff] %v8939_v21  ;;  %v8949_v29 = vadd.f32 %v2975_v22, %v8373_v11  ;;  %v2977_v12 = vpop.f32.mrb[47].mxu0  ;;  %3735 = vadd.xlane.f32.xlu1 %v3734_v28  ;;  %3307 = vadd.xlane.f32.xlu0 %v3306_v48 }
 0x2c5   :  { %12268 = vst [vmem:[#allocation68_spill] sm:$0xff] %v8943_v53  ;;  %v3554_v2 = vmul.f32 %v8943_v53, %v8943_v53  ;;  %v8954_v44 = vadd.f32 %v2977_v12, %v8375_v13  ;;  %v3309_v6 = vsel %vm3220_vm1, %v8943_v53, 0.0  ;;  %v3553_v13 = vmul.f32 %v8939_v21, %v8939_v21 }
 0x2c6   :  { %12269 = vst [vmem:[#allocation69_spill] sm:$0xff] %v8949_v29  ;;  %v8958_v14 = vpop.f32.mrb[76].mxu1  ;;  %v3310_v58 = vadd.f32 %v8939_v21, %v3309_v6 }
 0x2c7   :  { %12270 = vst [vmem:[#allocation70_spill] sm:$0xff] %v8954_v44  ;;  %v3556_v11 = vmul.f32 %v8954_v44, %v8954_v44  ;;  %v8963_v22 = vpop.f32.mrb[77].mxu1  ;;  %v3741_v50 = vsel %vm3220_vm1, %v3554_v2, 0.0  ;;  %v3313_v32 = vsel %vm3220_vm1, %v8954_v44, 0.0 }
 0x2c8   :  { %v8970_v12 = vpop.f32.mrb[78].mxu1  ;;  %3311 = vadd.xlane.f32.xlu1 %v3310_v58  ;;  %3739 = vadd.xlane.f32.xlu0 %v3738_v60  ;;  %v3742_v6 = vadd.f32 %v3741_v50, %v3553_v13  ;;  %v3314_v2 = vadd.f32 %v8949_v29, %v3313_v32  ;;  %v3555_v58 = vmul.f32 %v8949_v29, %v8949_v29  ;;  %v12274_v50 = vld [vmem:[#allocation2_spill] sm:$0xff] }
 0x2c9   :  { %v8972_v28 = vpop.f32.mrb[79].mxu1  ;;  %v2981_v16 = vpop.f32.mrb[48].mxu0  ;;  %v3745_v21 = vsel %vm3220_vm1, %v3556_v11, 0.0 }
 0x2ca   :  { %v8975_v48 = vadd.f32 %v2981_v16, %v8381_v18  ;;  %v2983_v9 = vpop.f32.mrb[49].mxu0  ;;  %v3746_v16 = vadd.f32 %v3745_v21, %v3555_v58  ;;  %v12276_v58 = vld [vmem:[#allocation3_spill] sm:$0xff] }
 0x2cb   :  { %v8979_v53 = vadd.f32 %v2983_v9, %v8387_v23  ;;  %v2985_v44 = vpop.f32.mrb[50].mxu0 }
 0x2cc   :  { %12271 = vst [vmem:[#allocation71_spill] sm:$0xff] %v8975_v48  ;;  %v8985_v60 = vadd.f32 %v2985_v44, %v8392_v27  ;;  %v2987_v37 = vpop.f32.mrb[51].mxu0  ;;  %3743 = vadd.xlane.f32.xlu1 %v3742_v6  ;;  %3315 = vadd.xlane.f32.xlu0 %v3314_v2 }
 0x2cd   :  { %12272 = vst [vmem:[#allocation72_spill] sm:$0xff] %v8979_v53  ;;  %v3558_v18 = vmul.f32 %v8979_v53, %v8979_v53  ;;  %v8990_v32 = vadd.f32 %v2987_v37, %v12274_v50  ;;  %v3317_v23 = vsel %vm3220_vm1, %v8979_v53, 0.0  ;;  %v3557_v37 = vmul.f32 %v8975_v48, %v8975_v48 }
 0x2ce   :  { %12273 = vst [vmem:[#allocation73_spill] sm:$0xff] %v8985_v60  ;;  %v8994_v13 = vpop.f32.mrb[80].mxu1  ;;  %v3318_v11 = vadd.f32 %v8975_v48, %v3317_v23 }
 0x2cf   :  { %12275 = vst [vmem:[#allocation2_spill] sm:$0xff] %v8990_v32  ;;  %v3560_v27 = vmul.f32 %v8990_v32, %v8990_v32  ;;  %v8999_v44 = vpop.f32.mrb[81].mxu1  ;;  %v3749_v9 = vsel %vm3220_vm1, %v3558_v18, 0.0  ;;  %v3321_v6 = vsel %vm3220_vm1, %v8990_v32, 0.0 }
 0x2d0   :  { %v9006_v2 = vpop.f32.mrb[82].mxu1  ;;  %3319 = vadd.xlane.f32.xlu1 %v3318_v11  ;;  %3747 = vadd.xlane.f32.xlu0 %v3746_v16  ;;  %v3750_v29 = vadd.f32 %v3749_v9, %v3557_v37  ;;  %v3322_v18 = vadd.f32 %v8985_v60, %v3321_v6  ;;  %v3559_v11 = vmul.f32 %v8985_v60, %v8985_v60  ;;  %v12280_v16 = vld [vmem:[#allocation5_spill] sm:$0xff]  ;;  %v12282_v37 = vld [vmem:[#allocation6_spill] sm:$0xff] }
 0x2d1   :  { %v9008_v50 = vpop.f32.mrb[83].mxu1  ;;  %v2991_v21 = vpop.f32.mrb[52].mxu0  ;;  %v3753_v48 = vsel %vm3220_vm1, %v3560_v27, 0.0 }
 0x2d2   :  { %v9011_v23 = vadd.f32 %v2991_v21, %v12276_v58  ;;  %v2993_v53 = vpop.f32.mrb[53].mxu0  ;;  %v3754_v21 = vadd.f32 %v3753_v48, %v3559_v11  ;;  %v12284_v11 = vld [vmem:[#allocation7_spill] sm:$0xff] }
 0x2d3   :  { %v9015_v26 = vadd.f32 %v2993_v53, %v12278_v57  ;;  %v2995_v32 = vpop.f32.mrb[54].mxu0 }
 0x2d4   :  { %12277 = vst [vmem:[#allocation3_spill] sm:$0xff] %v9011_v23  ;;  %v9021_v46 = vadd.f32 %v2995_v32, %v12280_v16  ;;  %v2997_v45 = vpop.f32.mrb[55].mxu0  ;;  %3751 = vadd.xlane.f32.xlu1 %v3750_v29  ;;  %3323 = vadd.xlane.f32.xlu0 %v3322_v18 }
 0x2d5   :  { %12279 = vst [vmem:[#allocation4_spill] sm:$0xff] %v9015_v26  ;;  %v3562_v9 = vmul.f32 %v9015_v26, %v9015_v26  ;;  %v9026_v6 = vadd.f32 %v2997_v45, %v12282_v37  ;;  %v3325_v57 = vsel %vm3220_vm1, %v9015_v26, 0.0  ;;  %v3561_v45 = vmul.f32 %v9011_v23, %v9011_v23 }
 0x2d6   :  { %12281 = vst [vmem:[#allocation5_spill] sm:$0xff] %v9021_v46  ;;  %v9030_v53 = vpop.f32.mrb[84].mxu1  ;;  %v3326_v27 = vadd.f32 %v9011_v23, %v3325_v57 }
 0x2d7   :  { %12283 = vst [vmem:[#allocation6_spill] sm:$0xff] %v9026_v6  ;;  %v3564_v32 = vmul.f32 %v9026_v6, %v9026_v6  ;;  %v9035_v58 = vpop.f32.mrb[85].mxu1  ;;  %v3757_v29 = vsel %vm3220_vm1, %v3562_v9, 0.0  ;;  %v3329_v18 = vsel %vm3220_vm1, %v9026_v6, 0.0 }
 0x2d8   :  { %v9042_v16 = vpop.f32.mrb[86].mxu1  ;;  %3327 = vadd.xlane.f32.xlu1 %v3326_v27  ;;  %3755 = vadd.xlane.f32.xlu0 %v3754_v21  ;;  %v3758_v60 = vadd.f32 %v3757_v29, %v3561_v45  ;;  %v3330_v9 = vadd.f32 %v9021_v46, %v3329_v18  ;;  %v3563_v27 = vmul.f32 %v9021_v46, %v9021_v46  ;;  %v12288_v21 = vld [vmem:[#allocation9_spill] sm:$0xff]  ;;  %v12290_v45 = vld [vmem:[#allocation10_spill] sm:$0xff] }
 0x2d9   :  { %v9044_v37 = vpop.f32.mrb[87].mxu1  ;;  %v3001_v48 = vpop.f32.mrb[56].mxu0  ;;  %v3761_v23 = vsel %vm3220_vm1, %v3564_v32, 0.0 }
 0x2da   :  { %v9047_v57 = vadd.f32 %v3001_v48, %v12284_v11  ;;  %v3003_v26 = vpop.f32.mrb[57].mxu0  ;;  %v3762_v48 = vadd.f32 %v3761_v23, %v3563_v27  ;;  %v12292_v27 = vld [vmem:[#allocation11_spill] sm:$0xff] }
 0x2db   :  { %v9051_v24 = vadd.f32 %v3003_v26, %v12286_v36  ;;  %v3005_v6 = vpop.f32.mrb[58].mxu0 }
 0x2dc   :  { %12285 = vst [vmem:[#allocation7_spill] sm:$0xff] %v9047_v57  ;;  %v9057_v8 = vadd.f32 %v3005_v6, %v12288_v21  ;;  %v3007_v5 = vpop.f32.mrb[59].mxu0  ;;  %3759 = vadd.xlane.f32.xlu1 %v3758_v60  ;;  %3331 = vadd.xlane.f32.xlu0 %v3330_v9 }
 0x2dd   :  { %12287 = vst [vmem:[#allocation8_spill] sm:$0xff] %v9051_v24  ;;  %v3566_v29 = vmul.f32 %v9051_v24, %v9051_v24  ;;  %v9062_v18 = vadd.f32 %v3007_v5, %v12290_v45  ;;  %v3333_v36 = vsel %vm3220_vm1, %v9051_v24, 0.0  ;;  %v3565_v5 = vmul.f32 %v9047_v57, %v9047_v57 }
 0x2de   :  { %12289 = vst [vmem:[#allocation9_spill] sm:$0xff] %v9057_v8  ;;  %v9066_v26 = vpop.f32.mrb[88].mxu1  ;;  %v3334_v32 = vadd.f32 %v9047_v57, %v3333_v36 }
 0x2df   :  { %12291 = vst [vmem:[#allocation10_spill] sm:$0xff] %v9062_v18  ;;  %v3568_v6 = vmul.f32 %v9062_v18, %v9062_v18  ;;  %v9071_v11 = vpop.f32.mrb[89].mxu1  ;;  %v3765_v60 = vsel %vm3220_vm1, %v3566_v29, 0.0  ;;  %v3337_v9 = vsel %vm3220_vm1, %v9062_v18, 0.0 }
 0x2e0   :  { %v9078_v21 = vpop.f32.mrb[90].mxu1  ;;  %3335 = vadd.xlane.f32.xlu1 %v3334_v32  ;;  %3763 = vadd.xlane.f32.xlu0 %v3762_v48  ;;  %v3766_v46 = vadd.f32 %v3765_v60, %v3565_v5  ;;  %v3338_v29 = vadd.f32 %v9057_v8, %v3337_v9  ;;  %v3567_v32 = vmul.f32 %v9057_v8, %v9057_v8  ;;  %v12296_v48 = vld [vmem:[#allocation13_spill] sm:$0xff]  ;;  %v12298_v5 = vld [vmem:[#allocation14_spill] sm:$0xff] }
 0x2e1   :  { %v9080_v45 = vpop.f32.mrb[91].mxu1  ;;  %v3011_v23 = vpop.f32.mrb[60].mxu0  ;;  %v3769_v57 = vsel %vm3220_vm1, %v3568_v6, 0.0 }
 0x2e2   :  { %v9083_v36 = vadd.f32 %v3011_v23, %v12292_v27  ;;  %v3013_v24 = vpop.f32.mrb[61].mxu0  ;;  %v3770_v23 = vadd.f32 %v3769_v57, %v3567_v32  ;;  %v12300_v32 = vld [vmem:[#allocation15_spill] sm:$0xff] }
 0x2e3   :  { %v9087_v17 = vadd.f32 %v3013_v24, %v12294_v15  ;;  %v3015_v18 = vpop.f32.mrb[62].mxu0 }
 0x2e4   :  { %12293 = vst [vmem:[#allocation11_spill] sm:$0xff] %v9083_v36  ;;  %v9093_v10 = vadd.f32 %v3015_v18, %v12296_v48  ;;  %v3017_v61 = vpop.f32.mrb[63].mxu0  ;;  %3767 = vadd.xlane.f32.xlu1 %v3766_v46  ;;  %3339 = vadd.xlane.f32.xlu0 %v3338_v29 }
 0x2e5   :  { %12295 = vst [vmem:[#allocation12_spill] sm:$0xff] %v9087_v17  ;;  %v3570_v60 = vmul.f32 %v9087_v17, %v9087_v17  ;;  %v9098_v9 = vadd.f32 %v3017_v61, %v12298_v5  ;;  %v3341_v15 = vsel %vm3220_vm1, %v9087_v17, 0.0  ;;  %v3569_v61 = vmul.f32 %v9083_v36, %v9083_v36 }
 0x2e6   :  { %12297 = vst [vmem:[#allocation13_spill] sm:$0xff] %v9093_v10  ;;  %v9102_v24 = vpop.f32.mrb[92].mxu1  ;;  %v3342_v6 = vadd.f32 %v9083_v36, %v3341_v15 }
 0x2e7   :  { %12299 = vst [vmem:[#allocation14_spill] sm:$0xff] %v9098_v9  ;;  %v3572_v18 = vmul.f32 %v9098_v9, %v9098_v9  ;;  %v9107_v27 = vpop.f32.mrb[93].mxu1  ;;  %v3773_v46 = vsel %vm3220_vm1, %v3570_v60, 0.0  ;;  %v3345_v29 = vsel %vm3220_vm1, %v9098_v9, 0.0 }
 0x2e8   :  { %v9114_v48 = vpop.f32.mrb[94].mxu1  ;;  %3343 = vadd.xlane.f32.xlu1 %v3342_v6  ;;  %3771 = vadd.xlane.f32.xlu0 %v3770_v23  ;;  %v3774_v8 = vadd.f32 %v3773_v46, %v3569_v61  ;;  %v3346_v60 = vadd.f32 %v9093_v10, %v3345_v29  ;;  %v3571_v6 = vmul.f32 %v9093_v10, %v9093_v10  ;;  %v12304_v23 = vld [vmem:[#allocation17_spill] sm:$0xff]  ;;  %v12306_v61 = vld [vmem:[#allocation18_spill] sm:$0xff] }
 0x2e9   :  { %v9116_v5 = vpop.f32.mrb[95].mxu1  ;;  %v3021_v57 = vpop.f32.mrb[64].mxu0  ;;  %v3777_v36 = vsel %vm3220_vm1, %v3572_v18, 0.0 }
 0x2ea   :  { %v9119_v15 = vadd.f32 %v3021_v57, %v12300_v32  ;;  %v3023_v17 = vpop.f32.mrb[65].mxu0  ;;  %v3778_v57 = vadd.f32 %v3777_v36, %v3571_v6  ;;  %v12308_v6 = vld [vmem:[#allocation19_spill] sm:$0xff] }
 0x2eb   :  { %v9123_v7 = vadd.f32 %v3023_v17, %v12302_v42  ;;  %v3025_v9 = vpop.f32.mrb[66].mxu0 }
 0x2ec   :  { %12301 = vst [vmem:[#allocation15_spill] sm:$0xff] %v9119_v15  ;;  %v9129_v3 = vadd.f32 %v3025_v9, %v12304_v23  ;;  %v3027_v54 = vpop.f32.mrb[67].mxu0  ;;  %3775 = vadd.xlane.f32.xlu1 %v3774_v8  ;;  %3347 = vadd.xlane.f32.xlu0 %v3346_v60 }
 0x2ed   :  { %12303 = vst [vmem:[#allocation16_spill] sm:$0xff] %v9123_v7  ;;  %v3574_v46 = vmul.f32 %v9123_v7, %v9123_v7  ;;  %v9134_v29 = vadd.f32 %v3027_v54, %v12306_v61  ;;  %v3349_v42 = vsel %vm3220_vm1, %v9123_v7, 0.0  ;;  %v3573_v54 = vmul.f32 %v9119_v15, %v9119_v15 }
 0x2ee   :  { %12305 = vst [vmem:[#allocation17_spill] sm:$0xff] %v9129_v3  ;;  %v9138_v17 = vpop.f32.mrb[96].mxu1  ;;  %v3350_v18 = vadd.f32 %v9119_v15, %v3349_v42 }
 0x2ef   :  { %12307 = vst [vmem:[#allocation18_spill] sm:$0xff] %v9134_v29  ;;  %v3576_v9 = vmul.f32 %v9134_v29, %v9134_v29  ;;  %v9143_v32 = vpop.f32.mrb[97].mxu1  ;;  %v3781_v8 = vsel %vm3220_vm1, %v3574_v46, 0.0  ;;  %v3353_v60 = vsel %vm3220_vm1, %v9134_v29, 0.0 }
 0x2f0   :  { %v9150_v23 = vpop.f32.mrb[98].mxu1  ;;  %3351 = vadd.xlane.f32.xlu1 %v3350_v18  ;;  %3779 = vadd.xlane.f32.xlu0 %v3778_v57  ;;  %v3782_v10 = vadd.f32 %v3781_v8, %v3573_v54  ;;  %v3354_v46 = vadd.f32 %v9129_v3, %v3353_v60  ;;  %v3575_v18 = vmul.f32 %v9129_v3, %v9129_v3  ;;  %v12312_v57 = vld [vmem:[#allocation21_spill] sm:$0xff]  ;;  %v12314_v54 = vld [vmem:[#allocation22_spill] sm:$0xff] }
 0x2f1   :  { %v9152_v61 = vpop.f32.mrb[99].mxu1  ;;  %v3031_v36 = vpop.f32.mrb[68].mxu0  ;;  %v3785_v15 = vsel %vm3220_vm1, %v3576_v9, 0.0 }
 0x2f2   :  { %v9155_v42 = vadd.f32 %v3031_v36, %v12308_v6  ;;  %v3033_v7 = vpop.f32.mrb[69].mxu0  ;;  %v3786_v36 = vadd.f32 %v3785_v15, %v3575_v18 }
 0x2f3   :  { %v9159_v63 = vadd.f32 %v3033_v7, %v12310_v30  ;;  %v3035_v29 = vpop.f32.mrb[70].mxu0 }
 0x2f4   :  { %12309 = vst [vmem:[#allocation19_spill] sm:$0xff] %v9155_v42  ;;  %v9165_v59 = vadd.f32 %v3035_v29, %v12312_v57  ;;  %v3037_v47 = vpop.f32.mrb[71].mxu0  ;;  %3783 = vadd.xlane.f32.xlu1 %v3782_v10  ;;  %3355 = vadd.xlane.f32.xlu0 %v3354_v46 }
 0x2f5   :  { %12311 = vst [vmem:[#allocation20_spill] sm:$0xff] %v9159_v63  ;;  %v3578_v8 = vmul.f32 %v9159_v63, %v9159_v63  ;;  %v9170_v60 = vadd.f32 %v3037_v47, %v12314_v54  ;;  %v3357_v30 = vsel %vm3220_vm1, %v9159_v63, 0.0  ;;  %v3577_v47 = vmul.f32 %v9155_v42, %v9155_v42 }
 0x2f6   :  { %12313 = vst [vmem:[#allocation21_spill] sm:$0xff] %v9165_v59  ;;  %v9174_v7 = vpop.f32.mrb[100].mxu1  ;;  %v3358_v9 = vadd.f32 %v9155_v42, %v3357_v30 }
 0x2f7   :  { %12315 = vst [vmem:[#allocation22_spill] sm:$0xff] %v9170_v60  ;;  %v3580_v29 = vmul.f32 %v9170_v60, %v9170_v60  ;;  %v9179_v6 = vpop.f32.mrb[101].mxu1  ;;  %v3789_v10 = vsel %vm3220_vm1, %v3578_v8, 0.0  ;;  %v3361_v46 = vsel %vm3220_vm1, %v9170_v60, 0.0 }
 0x2f8   :  { %v9186_v57 = vpop.f32.mrb[102].mxu1  ;;  %3359 = vadd.xlane.f32.xlu1 %v3358_v9  ;;  %3787 = vadd.xlane.f32.xlu0 %v3786_v36  ;;  %v3790_v63 = vadd.f32 %v3789_v10, %v3577_v47  ;;  %v3362_v8 = vadd.f32 %v9165_v59, %v3361_v46  ;;  %v3579_v9 = vmul.f32 %v9165_v59, %v9165_v59 }
 0x2f9   :  { %v9188_v54 = vpop.f32.mrb[103].mxu1  ;;  %v3041_v15 = vpop.f32.mrb[72].mxu0  ;;  %v3793_v42 = vsel %vm3220_vm1, %v3580_v29, 0.0 }
 0x2fa   :  { %v9191_v18 = vadd.f32 %v3041_v15, %v8922_v41  ;;  %v3043_v30 = vpop.f32.mrb[73].mxu0  ;;  %v3794_v15 = vadd.f32 %v3793_v42, %v3579_v9 }
 0x2fb   :  { %v9195_v3 = vadd.f32 %v3043_v30, %v8927_v1  ;;  %v3045_v60 = vpop.f32.mrb[74].mxu0 }
 0x2fc   :  { %12316 = vst [vmem:[#allocation74_spill] sm:$0xff] %v9191_v18  ;;  %v9201_v36 = vadd.f32 %v3045_v60, %v8934_v25  ;;  %v3047_v34 = vpop.f32.mrb[75].mxu0  ;;  %3791 = vadd.xlane.f32.xlu1 %v3790_v63  ;;  %3363 = vadd.xlane.f32.xlu0 %v3362_v8 }
 0x2fd   :  { %12317 = vst [vmem:[#allocation75_spill] sm:$0xff] %v9195_v3  ;;  %v3582_v41 = vmul.f32 %v9195_v3, %v9195_v3  ;;  %v9206_v10 = vadd.f32 %v3047_v34, %v8936_v19  ;;  %v3224_v1 = vpop.xlane.xlu0 %3223  ;;  %v3365_v46 = vsel %vm3220_vm1, %v9195_v3, 0.0  ;;  %v3581_v19 = vmul.f32 %v9191_v18, %v9191_v18 }
 0x2fe   :  { %12318 = vst [vmem:[#allocation76_spill] sm:$0xff] %v9201_v36  ;;  %v9210_v29 = vpop.f32.mrb[104].mxu1  ;;  %v3366_v47 = vadd.f32 %v9191_v18, %v3365_v46 }
 0x2ff   :  { %12319 = vst [vmem:[#allocation77_spill] sm:$0xff] %v9206_v10  ;;  %v3584_v25 = vmul.f32 %v9206_v10, %v9206_v10  ;;  %v9215_v63 = vpop.f32.mrb[105].mxu1  ;;  %v3228_v60 = vpop.xlane.xlu1 %3227  ;;  %v3797_v30 = vsel %vm3220_vm1, %v3582_v41, 0.0  ;;  %v3369_v34 = vsel %vm3220_vm1, %v9206_v10, 0.0 }
 0x300   :  { %v9222_v8 = vpop.f32.mrb[106].mxu1  ;;  %3367 = vadd.xlane.f32.xlu1 %v3366_v47  ;;  %3795 = vadd.xlane.f32.xlu0 %v3794_v15  ;;  %v3798_v56 = vadd.f32 %v3797_v30, %v3581_v19  ;;  %v3370_v41 = vadd.f32 %v9201_v36, %v3369_v34  ;;  %v3583_v47 = vmul.f32 %v9201_v36, %v9201_v36  ;;  %v9270_v36 = vmul.f32 0.0051020407, %v3228_v60 }
 0x301   :  { %v9224_v46 = vpop.f32.mrb[107].mxu1  ;;  %v3051_v42 = vpop.f32.mrb[76].mxu0  ;;  %v3801_v4 = vsel %vm3220_vm1, %v3584_v25, 0.0 }
 0x302   :  { %v9227_v9 = vadd.f32 %v3051_v42, %v8958_v14  ;;  %v3660_v3 = vpop.xlane.xlu0 %3659  ;;  %v3053_v59 = vpop.f32.mrb[77].mxu0  ;;  %v9239_v42 = vmul.f32 0.0051020407, %v3224_v1 }
 0x303   :  { %v9231_v10 = vadd.f32 %v3053_v59, %v8963_v22  ;;  %v3055_v52 = vpop.f32.mrb[78].mxu0  ;;  %v3656_v18 = vpop.xlane.xlu1 %3655 }
 0x304   :  { %12320 = vst [vmem:[#allocation78_spill] sm:$0xff] %v9227_v9  ;;  %v9237_v15 = vadd.f32 %v3055_v52, %v8970_v12  ;;  %v3057_v14 = vpop.f32.mrb[79].mxu0  ;;  %3799 = vadd.xlane.f32.xlu1 %v3798_v56  ;;  %3371 = vadd.xlane.f32.xlu0 %v3370_v41  ;;  %v3802_v12 = vadd.f32 %v3801_v4, %v3583_v47  ;;  %v4013_v56 = vmul.f32 0.0051020407, %v3656_v18 }
 0x305   :  { %12321 = vst [vmem:[#allocation79_spill] sm:$0xff] %v9231_v10  ;;  %v3586_v30 = vmul.f32 %v9231_v10, %v9231_v10  ;;  %v9244_v59 = vadd.f32 %v3057_v14, %v8972_v28  ;;  %v3373_v22 = vsel %vm3220_vm1, %v9231_v10, 0.0  ;;  %v3585_v28 = vmul.f32 %v9227_v9, %v9227_v9 }
 0x306   :  { %12322 = vst [vmem:[#allocation80_spill] sm:$0xff] %v9237_v15  ;;  %v9248_v25 = vpop.f32.mrb[108].mxu1  ;;  %v9250_v34 = vpop.xlane.xlu0 %3231  ;;  %v3374_v52 = vadd.f32 %v9227_v9, %v3373_v22  ;;  %v4085_v18 = vmul.f32 %v9239_v42, %v9239_v42  ;;  %v3587_v60 = vmul.f32 %v9237_v15, %v9237_v15 }
 0x307   :  { %12323 = vst [vmem:[#allocation81_spill] sm:$0xff] %v9244_v59  ;;  %v3588_v1 = vmul.f32 %v9244_v59, %v9244_v59  ;;  %v9255_v19 = vpop.f32.mrb[109].mxu1  ;;  %v3805_v41 = vsel %vm3220_vm1, %v3586_v30, 0.0  ;;  %v9262_v10 = vpop.xlane.xlu1 %3663  ;;  %v3377_v4 = vsel %vm3220_vm1, %v9244_v59, 0.0 }
 0x308   :  { %v9260_v14 = vpop.f32.mrb[110].mxu1  ;;  %3375 = vadd.xlane.f32.xlu1 %v3374_v52  ;;  %3803 = vadd.xlane.f32.xlu0 %v3802_v12  ;;  %v3806_v49 = vadd.f32 %v3805_v41, %v3585_v28  ;;  %v3378_v52 = vadd.f32 %v9237_v15, %v3377_v4  ;;  %v4157_v12 = vsub.f32 %v4013_v56, %v4085_v18 }
 0x309   :  { %v9268_v47 = vpop.f32.mrb[111].mxu1  ;;  %v3061_v22 = vpop.f32.mrb[80].mxu0  ;;  %v3809_v38 = vsel %vm3220_vm1, %v3588_v1, 0.0 }
 0x30a   :  { %v9273_v30 = vadd.f32 %v3061_v22, %v8994_v13  ;;  %v9275_v9 = vpop.xlane.xlu0 %3235  ;;  %v3063_v35 = vpop.f32.mrb[81].mxu0  ;;  %v4229_v4 = vmax.f32 %v4157_v12, 0.0 }
 0x30b   :  { %v9279_v59 = vadd.f32 %v3063_v35, %v8999_v44  ;;  %v3065_v43 = vpop.f32.mrb[82].mxu0  ;;  %v4086_v44 = vmul.f32 %v9270_v36, %v9270_v36 }
 0x30c   :  { %12324 = vst [vmem:[#allocation82_spill] sm:$0xff] %v9273_v30  ;;  %v9285_v40 = vadd.f32 %v3065_v43, %v9006_v2  ;;  %v3067_v13 = vpop.f32.mrb[83].mxu0  ;;  %3807 = vadd.xlane.f32.xlu1 %v3806_v49  ;;  %3379 = vadd.xlane.f32.xlu0 %v3378_v52  ;;  %v3810_v49 = vadd.f32 %v3809_v38, %v3587_v60  ;;  %v4014_v2 = vmul.f32 0.0051020407, %v3660_v3  ;;  %v4373_v0 = vadd.f32 1e-05, %v4229_v4 }
 0x30d   :  { %12325 = vst [vmem:[#allocation83_spill] sm:$0xff] %v9279_v59  ;;  %v3590_v41 = vmul.f32 %v9279_v59, %v9279_v59  ;;  %v9290_v56 = vadd.f32 %v3067_v13, %v9008_v50  ;;  %v9292_v35 = vpop.xlane.xlu1 %3239  ;;  %v3381_v43 = vsel %vm3220_vm1, %v9279_v59, 0.0  ;;  %v3589_v38 = vmul.f32 %v9273_v30, %v9273_v30 }
 0x30e   :  { %12326 = vst [vmem:[#allocation84_spill] sm:$0xff] %v9285_v40  ;;  %v9296_v1 = vpop.f32.mrb[112].mxu1  ;;  %v9298_v28 = vpop.xlane.xlu0 %3667  ;;  %v3382_v22 = vadd.f32 %v9273_v30, %v3381_v43  ;;  %v3591_v30 = vmul.f32 %v9285_v40, %v9285_v40  ;;  %7040 = vrsqrt.f32 %v4373_v0 }
 0x30f   :  { %12327 = vst [vmem:[#allocation85_spill] sm:$0xff] %v9290_v56  ;;  %v3592_v18 = vmul.f32 %v9290_v56, %v9290_v56  ;;  %v9304_v50 = vpop.f32.mrb[113].mxu1  ;;  %v3813_v13 = vsel %vm3220_vm1, %v3590_v41, 0.0  ;;  %v3385_v15 = vsel %vm3220_vm1, %v9290_v56, 0.0  ;;  %v4158_v41 = vsub.f32 %v4014_v2, %v4086_v44 }
 0x310   :  { %v9307_v52 = vpop.f32.mrb[114].mxu1  ;;  %3811 = vadd.xlane.f32.xlu0 %v3810_v49  ;;  %3383 = vadd.xlane.f32.xlu1 %v3382_v22  ;;  %v3386_v49 = vadd.f32 %v9285_v40, %v3385_v15  ;;  %v3814_v56 = vadd.f32 %v3813_v13, %v3589_v38 }
 0x311   :  { %v9314_v3 = vpop.f32.mrb[115].mxu1  ;;  %v3071_v12 = vpop.f32.mrb[84].mxu0  ;;  %v3817_v51 = vsel %vm3220_vm1, %v3592_v18, 0.0  ;;  %v4230_v18 = vmax.f32 %v4158_v41, 0.0 }
 0x312   :  { %v9317_v60 = vadd.f32 %v3071_v12, %v9030_v53  ;;  %v9319_v59 = vpop.xlane.xlu1 %3671  ;;  %v9321_v43 = vpop.xlane.xlu0 %3243  ;;  %v3818_v4 = vadd.f32 %v3817_v51, %v3591_v30 }
 0x313   :  { %v3073_v33 = vpop.f32.mrb[85].mxu0 }
 0x314   :  { %12328 = vst [vmem:[#allocation86_spill] sm:$0xff] %v9317_v60  ;;  %v9328_v22 = vadd.f32 %v3073_v33, %v9035_v58  ;;  %v3075_v53 = vpop.f32.mrb[86].mxu0  ;;  %3387 = vadd.xlane.f32.xlu0 %v3386_v49  ;;  %3815 = vadd.xlane.f32.xlu1 %v3814_v56  ;;  %v4374_v49 = vadd.f32 1e-05, %v4230_v18 }
 0x315   :  { %v9331_v12 = vadd.f32 %v3075_v53, %v9042_v16  ;;  %v3077_v20 = vpop.f32.mrb[87].mxu0 }
 0x316   :  { %12329 = vst [vmem:[#allocation87_spill] sm:$0xff] %v9328_v22  ;;  %v9334_v15 = vadd.f32 %v3077_v20, %v9044_v37  ;;  %v9336_v44 = vpop.f32.mrb[116].mxu1  ;;  %v9338_v2 = vpop.xlane.xlu1 %3247  ;;  %7042 = vrsqrt.f32 %v4374_v49 }
 0x317   :  { %12330 = vst [vmem:[#allocation88_spill] sm:$0xff] %v9331_v12  ;;  %12332 = vst [vmem:[#allocation90_spill] sm:$0xff] %v9338_v2  ;;  %v9340_v13 = vpop.xlane.xlu0 %3675  ;;  %v9342_v33 = vpop.f32.mrb[117].mxu1 }
 0x318   :  { %12331 = vst [vmem:[#allocation89_spill] sm:$0xff] %v9334_v15  ;;  %v9344_v58 = vpop.f32.mrb[118].mxu1  ;;  %3819 = vadd.xlane.f32.xlu0 %v3818_v4 }
 0x319   :  { %v9346_v16 = vpop.f32.mrb[119].mxu1  ;;  %v3081_v56 = vpop.f32.mrb[88].mxu0 }
 0x31a   :  { %v9349_v20 = vadd.f32 %v3081_v56, %v9066_v26  ;;  %v9351_v37 = vpop.xlane.xlu1 %3679  ;;  %v3083_v38 = vpop.f32.mrb[89].mxu0 }
 0x31b   :  { %12334 = vst [vmem:[#allocation92_spill] sm:$0xff] %v9351_v37  ;;  %v9353_v51 = vpop.xlane.xlu0 %3251  ;;  %v9356_v0 = vadd.f32 %v3083_v38, %v9071_v11  ;;  %v3085_v30 = vpop.f32.mrb[90].mxu0 }
 0x31c   :  { %12333 = vst [vmem:[#allocation91_spill] sm:$0xff] %v9349_v20  ;;  %12335 = vst [vmem:[#allocation93_spill] sm:$0xff] %v9353_v51  ;;  %v9359_v41 = vadd.f32 %v3085_v30, %v9078_v21  ;;  %v3087_v53 = vpop.f32.mrb[91].mxu0  ;;  %v7041_v11 = vpop.eup %7040 }
 0x31d   :  { %12336 = vst [vmem:[#allocation94_spill] sm:$0xff] %v9356_v0  ;;  %v9362_v4 = vadd.f32 %v3087_v53, %v9080_v45  ;;  %v4301_v45 = vld [vmem:[%s12028_s4] sm:$0xff] }
 0x31e   :  { %12337 = vst [vmem:[#allocation95_spill] sm:$0xff] %v9359_v41  ;;  %v9364_v40 = vpop.f32.mrb[120].mxu1  ;;  %v9366_v26 = vpop.xlane.xlu1 %3255  ;;  %v4517_v37 = vmul.f32 %v7041_v11, %v4301_v45 }
 0x31f   :  { %12338 = vst [vmem:[#allocation96_spill] sm:$0xff] %v9362_v4  ;;  %12339 = vst [vmem:[#allocation97_spill] sm:$0xff] %v9366_v26  ;;  %v9368_v56 = vpop.xlane.xlu0 %3683  ;;  %v9370_v18 = vpop.f32.mrb[121].mxu1 }
 0x320   :  { %12340 = vst [vmem:[#allocation98_spill] sm:$0xff] %v9368_v56  ;;  %v9372_v39 = vpop.f32.mrb[122].mxu1 }
 0x321   :  { %v9374_v38 = vpop.f32.mrb[123].mxu1  ;;  %v3091_v21 = vpop.f32.mrb[92].mxu0 }
 0x322   :  { %v9380_v30 = vadd.f32 %v3091_v21, %v9102_v24  ;;  %v9382_v53 = vpop.xlane.xlu1 %3687  ;;  %v3093_v49 = vpop.f32.mrb[93].mxu0 }
 0x323   :  { %12342 = vst [vmem:[#allocation100_spill] sm:$0xff] %v9382_v53  ;;  %v9384_v26 = vpop.xlane.xlu0 %3259  ;;  %v9387_v31 = vadd.f32 %v3093_v49, %v9107_v27  ;;  %v3095_v62 = vpop.f32.mrb[94].mxu0 }
 0x324   :  { %12341 = vst [vmem:[#allocation99_spill] sm:$0xff] %v9380_v30  ;;  %12343 = vst [vmem:[#allocation101_spill] sm:$0xff] %v9384_v26  ;;  %v9390_v56 = vadd.f32 %v3095_v62, %v9114_v48  ;;  %v3097_v51 = vpop.f32.mrb[95].mxu0  ;;  %v7043_v49 = vpop.eup %7042  ;;  %v4302_v48 = vld [vmem:[%s12028_s4 + $0x8] sm:$0xff] }
 0x325   :  { %12344 = vst [vmem:[#allocation102_spill] sm:$0xff] %v9387_v31  ;;  %v9393_v2 = vadd.f32 %v3097_v51, %v9116_v5  ;;  %4951 = vperm.xlu1 %6787, %v4517_v37   ;;  %v9423_v31 = vmul.f32 %v7043_v49, %v4302_v48 }
 0x326   :  { %12345 = vst [vmem:[#allocation103_spill] sm:$0xff] %v9390_v56  ;;  %v9395_v55 = vpop.f32.mrb[124].mxu1  ;;  %v9397_v24 = vpop.xlane.xlu1 %3263 }
 0x327   :  { %12346 = vst [vmem:[#allocation104_spill] sm:$0xff] %v9393_v2  ;;  %12347 = vst [vmem:[#allocation105_spill] sm:$0xff] %v9397_v24  ;;  %v9399_v21 = vpop.xlane.xlu0 %3691  ;;  %v9401_v26 = vpop.f32.mrb[125].mxu1  ;;  %v4661_v2 = vmul.f32 %v4517_v37, %v9239_v42 }
 0x328   :  { %12348 = vst [vmem:[#allocation106_spill] sm:$0xff] %v9399_v21  ;;  %v9403_v27 = vpop.f32.mrb[126].mxu1 }
 0x329   :  { %v9405_v53 = vpop.f32.mrb[127].mxu1  ;;  %v3101_v62 = vpop.f32.mrb[96].mxu0 }
 0x32a   :  { %v9411_v5 = vadd.f32 %v3101_v62, %v9138_v17  ;;  %v9413_v51 = vpop.xlane.xlu1 %3695  ;;  %v3103_v11 = vpop.f32.mrb[97].mxu0  ;;  %v4589_v62 = vld [vmem:[%s12029_s5] sm:$0xff] }
 0x32b   :  { %12350 = vst [vmem:[#allocation108_spill] sm:$0xff] %v9413_v51  ;;  %v9415_v45 = vpop.xlane.xlu0 %3267  ;;  %v9418_v24 = vadd.f32 %v3103_v11, %v9143_v32  ;;  %v3105_v21 = vpop.f32.mrb[98].mxu0  ;;  %v4733_v42 = vsub.f32 %v4589_v62, %v4661_v2 }
 0x32c   :  { %12349 = vst [vmem:[#allocation107_spill] sm:$0xff] %v9411_v5  ;;  %12351 = vst [vmem:[#allocation109_spill] sm:$0xff] %v9415_v45  ;;  %v9421_v30 = vadd.f32 %v3105_v21, %v9150_v23  ;;  %v3107_v56 = vpop.f32.mrb[99].mxu0 }
 0x32d   :  { %12352 = vst [vmem:[#allocation110_spill] sm:$0xff] %v9418_v24  ;;  %v9427_v17 = vadd.f32 %v3107_v56, %v9152_v61 }
 0x32e   :  { %12353 = vst [vmem:[#allocation111_spill] sm:$0xff] %v9421_v30  ;;  %v9432_v45 = vpop.f32.mrb[128].mxu1  ;;  %v9434_v32 = vpop.xlane.xlu1 %3271  ;;  %4956 = vperm.xlu0 %6786, %v9423_v31  }
 0x32f   :  { %12354 = vst [vmem:[#allocation112_spill] sm:$0xff] %v9427_v17  ;;  %12355 = vst [vmem:[#allocation113_spill] sm:$0xff] %v9434_v32  ;;  %v9437_v23 = vpop.xlane.xlu0 %3699  ;;  %v9439_v21 = vpop.f32.mrb[129].mxu1 }
 0x330   :  { %12356 = vst [vmem:[#allocation114_spill] sm:$0xff] %v9437_v23  ;;  %v9441_v49 = vpop.f32.mrb[130].mxu1 }
 0x331   :  { %v9443_v37 = vpop.f32.mrb[131].mxu1  ;;  %v3111_v61 = vpop.f32.mrb[100].mxu0 }
 0x332   :  { %v9446_v56 = vadd.f32 %v3111_v61, %v9174_v7  ;;  %v9448_v48 = vpop.xlane.xlu1 %3703  ;;  %v3113_v11 = vpop.f32.mrb[101].mxu0  ;;  %5599 = vperm.xlu0 %6786, %v4733_v42  }
 0x333   :  { %12358 = vst [vmem:[#allocation116_spill] sm:$0xff] %v9448_v48  ;;  %v9450_v32 = vpop.xlane.xlu0 %3275  ;;  %v9453_v51 = vadd.f32 %v3113_v11, %v9179_v6  ;;  %v3115_v23 = vpop.f32.mrb[102].mxu0 }
 0x334   :  { %12357 = vst [vmem:[#allocation115_spill] sm:$0xff] %v9446_v56  ;;  %12359 = vst [vmem:[#allocation117_spill] sm:$0xff] %v9450_v32  ;;  %v9456_v5 = vadd.f32 %v3115_v23, %v9186_v57  ;;  %v3117_v2 = vpop.f32.mrb[103].mxu0 }
 0x335   :  { %12360 = vst [vmem:[#allocation118_spill] sm:$0xff] %v9453_v51  ;;  %v9459_v62 = vadd.f32 %v3117_v2, %v9188_v54 }
 0x336   :  { %12361 = vst [vmem:[#allocation119_spill] sm:$0xff] %v9456_v5  ;;  %v9461_v30 = vpop.f32.mrb[132].mxu1  ;;  %v9463_v7 = vpop.xlane.xlu1 %3279 }
 0x337   :  { %12362 = vst [vmem:[#allocation120_spill] sm:$0xff] %v9459_v62  ;;  %12363 = vst [vmem:[#allocation121_spill] sm:$0xff] %v9463_v7  ;;  %v9465_v61 = vpop.xlane.xlu0 %3707  ;;  %v9467_v42 = vpop.f32.mrb[133].mxu1 }
 0x338   :  { %12364 = vst [vmem:[#allocation122_spill] sm:$0xff] %v9465_v61  ;;  %v9469_v32 = vpop.f32.mrb[134].mxu1 }
 0x339   :  { %v9471_v6 = vpop.f32.mrb[135].mxu1  ;;  %v3121_v11 = vpop.f32.mrb[104].mxu0 }
 0x33a   :  { %v9474_v57 = vadd.f32 %v3121_v11, %v9210_v29  ;;  %v9476_v23 = vpop.xlane.xlu1 %3711  ;;  %v3123_v54 = vpop.f32.mrb[105].mxu0  ;;  %v9494_v11 = vmul.f32 0.0051020407, %v9250_v34  ;;  %v4015_v34 = vmul.f32 0.0051020407, %v9262_v10  ;;  %v3389_v10 = vsel %vm3220_vm1, %v9328_v22, 0.0 }
 0x33b   :  { %12366 = vst [vmem:[#allocation124_spill] sm:$0xff] %v9476_v23  ;;  %v9478_v2 = vpop.xlane.xlu0 %3283  ;;  %v9481_v48 = vadd.f32 %v3123_v54, %v9215_v63  ;;  %v3125_v7 = vpop.f32.mrb[106].mxu0 }
 0x33c   :  { %12365 = vst [vmem:[#allocation123_spill] sm:$0xff] %v9474_v57  ;;  %12367 = vst [vmem:[#allocation125_spill] sm:$0xff] %v9478_v2  ;;  %v9484_v61 = vadd.f32 %v3125_v7, %v9222_v8  ;;  %v3127_v56 = vpop.f32.mrb[107].mxu0 }
 0x33d   :  { %12368 = vst [vmem:[#allocation126_spill] sm:$0xff] %v9481_v48  ;;  %v9487_v5 = vadd.f32 %v3127_v56, %v9224_v46 }
 0x33e   :  { %12369 = vst [vmem:[#allocation127_spill] sm:$0xff] %v9484_v61  ;;  %v9489_v51 = vpop.f32.mrb[136].mxu1  ;;  %v9491_v29 = vpop.xlane.xlu1 %3287 }
 0x33f   :  { %12370 = vst [vmem:[#allocation128_spill] sm:$0xff] %v9487_v5  ;;  %12371 = vst [vmem:[#allocation129_spill] sm:$0xff] %v9491_v29  ;;  %v9496_v23 = vpop.xlane.xlu0 %3715  ;;  %v9498_v2 = vpop.f32.mrb[137].mxu1  ;;  %v4087_v29 = vmul.f32 %v9494_v11, %v9494_v11 }
 0x340   :  { %12372 = vst [vmem:[#allocation130_spill] sm:$0xff] %v9496_v23  ;;  %v9500_v63 = vpop.f32.mrb[138].mxu1 }
 0x341   :  { %v9502_v54 = vpop.f32.mrb[139].mxu1  ;;  %v3131_v8 = vpop.f32.mrb[108].mxu0 }
 0x342   :  { %v9505_v7 = vadd.f32 %v3131_v8, %v9248_v25  ;;  %v9507_v46 = vpop.xlane.xlu1 %3719  ;;  %v3133_v56 = vpop.f32.mrb[109].mxu0  ;;  %v9521_v25 = vmul.f32 0.0051020407, %v9275_v9  ;;  %v3594_v8 = vmul.f32 %v9328_v22, %v9328_v22 }
 0x343   :  { %12374 = vst [vmem:[#allocation132_spill] sm:$0xff] %v9507_v46  ;;  %v9512_v57 = vpop.xlane.xlu0 %3291  ;;  %v9515_v23 = vadd.f32 %v3133_v56, %v9255_v19  ;;  %v3135_v61 = vpop.f32.mrb[110].mxu0  ;;  %v4159_v56 = vsub.f32 %v4015_v34, %v4087_v29  ;;  %v3593_v29 = vmul.f32 %v9317_v60, %v9317_v60 }
 0x344   :  { %12373 = vst [vmem:[#allocation131_spill] sm:$0xff] %v9505_v7  ;;  %12375 = vst [vmem:[#allocation133_spill] sm:$0xff] %v9512_v57  ;;  %v9518_v48 = vadd.f32 %v3135_v61, %v9260_v14  ;;  %v3137_v5 = vpop.f32.mrb[111].mxu0  ;;  %v4016_v14 = vmul.f32 0.0051020407, %v9298_v28 }
 0x345   :  { %12376 = vst [vmem:[#allocation134_spill] sm:$0xff] %v9515_v23  ;;  %v9526_v46 = vadd.f32 %v3137_v5, %v9268_v47  ;;  %v4088_v47 = vmul.f32 %v9521_v25, %v9521_v25  ;;  %v3821_v23 = vsel %vm3220_vm1, %v3594_v8, 0.0  ;;  %v3596_v8 = vmul.f32 %v9334_v15, %v9334_v15 }
 0x346   :  { %12377 = vst [vmem:[#allocation135_spill] sm:$0xff] %v9518_v48  ;;  %v9530_v57 = vpop.f32.mrb[140].mxu1  ;;  %v9532_v19 = vpop.xlane.xlu1 %3295  ;;  %v3390_v48 = vadd.f32 %v9317_v60, %v3389_v10 }
 0x347   :  { %12378 = vst [vmem:[#allocation136_spill] sm:$0xff] %v9526_v46  ;;  %12379 = vst [vmem:[#allocation137_spill] sm:$0xff] %v9532_v19  ;;  %v9535_v61 = vpop.xlane.xlu0 %3723  ;;  %v9537_v9 = vpop.f32.mrb[141].mxu1  ;;  %v4160_v10 = vsub.f32 %v4016_v14, %v4088_v47 }
 0x348   :  { %12380 = vst [vmem:[#allocation138_spill] sm:$0xff] %v9535_v61  ;;  %v9539_v7 = vpop.f32.mrb[142].mxu1  ;;  %v4231_v61 = vmax.f32 %v4159_v56, 0.0 }
 0x349   :  { %v9544_v5 = vpop.f32.mrb[143].mxu1  ;;  %v3141_v22 = vpop.f32.mrb[112].mxu0  ;;  %3391 = vadd.xlane.f32.xlu1 %v3390_v48  ;;  %v3393_v48 = vsel %vm3220_vm1, %v9334_v15, 0.0 }
 0x34a   :  { %v9550_v28 = vadd.f32 %v3141_v22, %v9296_v1  ;;  %v9552_v34 = vpop.xlane.xlu1 %3727  ;;  %v3143_v19 = vpop.f32.mrb[113].mxu0  ;;  %v3822_v22 = vadd.f32 %v3821_v23, %v3593_v29  ;;  %v4375_v47 = vadd.f32 1e-05, %v4231_v61 }
 0x34b   :  { %v9554_v46 = vpop.xlane.xlu0 %3299  ;;  %v9557_v62 = vadd.f32 %v3143_v19, %v9304_v50  ;;  %v3145_v24 = vpop.f32.mrb[114].mxu0  ;;  %v3394_v19 = vadd.f32 %v9331_v12, %v3393_v48 }
 0x34c   :  { %12381 = vst [vmem:[#allocation139_spill] sm:$0xff] %v9550_v28  ;;  %12382 = vst [vmem:[#allocation140_spill] sm:$0xff] %v9554_v46  ;;  %v9562_v60 = vadd.f32 %v3145_v24, %v9307_v52  ;;  %v3147_v1 = vpop.f32.mrb[115].mxu0  ;;  %v4232_v46 = vmax.f32 %v4160_v10, 0.0  ;;  %v3825_v52 = vsel %vm3220_vm1, %v3596_v8, 0.0  ;;  %v3595_v24 = vmul.f32 %v9331_v12, %v9331_v12 }
 0x34d   :  { %12383 = vst [vmem:[#allocation141_spill] sm:$0xff] %v9557_v62  ;;  %v9567_v56 = vadd.f32 %v3147_v1, %v9314_v3  ;;  %3823 = vadd.xlane.f32.xlu1 %v3822_v22  ;;  %7044 = vrsqrt.f32 %v4375_v47 }
 0x34e   :  { %12384 = vst [vmem:[#allocation142_spill] sm:$0xff] %v9562_v60  ;;  %v9569_v14 = vpop.xlane.xlu1 %3303  ;;  %v3826_v10 = vadd.f32 %v3825_v52, %v3595_v24  ;;  %v4376_v8 = vadd.f32 1e-05, %v4232_v46 }
 0x34f   :  { %12385 = vst [vmem:[#allocation143_spill] sm:$0xff] %v9567_v56  ;;  %v9571_v50 = vpop.xlane.xlu0 %3731 }
 0x350   :  { %7046 = vrsqrt.f32 %v4376_v8 }
 0x351   :  { %v3151_v23 = vpop.f32.mrb[116].mxu0  ;;  %3395 = vadd.xlane.f32.xlu0 %v3394_v19 }
 0x352   :  { %v9578_v29 = vadd.f32 %v3151_v23, %v9336_v44  ;;  %v9580_v3 = vpop.xlane.xlu1 %3735  ;;  %v3153_v1 = vpop.f32.mrb[117].mxu0 }
 0x353   :  { %v9582_v22 = vpop.xlane.xlu0 %3307  ;;  %v9585_v15 = vadd.f32 %v3153_v1, %v9342_v33  ;;  %v3155_v61 = vpop.f32.mrb[118].mxu0  ;;  %v4662_v33 = vmul.f32 %v9423_v31, %v9270_v36 }
 0x354   :  { %12386 = vst [vmem:[#allocation144_spill] sm:$0xff] %v9578_v29  ;;  %12387 = vst [vmem:[#allocation145_spill] sm:$0xff] %v9582_v22  ;;  %v9588_v48 = vadd.f32 %v3155_v61, %v9344_v58  ;;  %v3157_v12 = vpop.f32.mrb[119].mxu0 }
 0x355   :  { %12388 = vst [vmem:[#allocation146_spill] sm:$0xff] %v9585_v15  ;;  %v9591_v19 = vadd.f32 %v3157_v12, %v9346_v16  ;;  %3827 = vadd.xlane.f32.xlu0 %v3826_v10  ;;  %v4590_v12 = vld [vmem:[%s12029_s5 + $0x8] sm:$0xff]  ;;  %v4303_v10 = vld [vmem:[%s12028_s4 + $0x10] sm:$0xff] }
 0x356   :  { %12389 = vst [vmem:[#allocation147_spill] sm:$0xff] %v9588_v48  ;;  %v9593_v44 = vpop.xlane.xlu1 %3311  ;;  %v4734_v36 = vsub.f32 %v4590_v12, %v4662_v33  ;;  %v4304_v33 = vld [vmem:[%s12028_s4 + $0x18] sm:$0xff] }
 0x357   :  { %12390 = vst [vmem:[#allocation148_spill] sm:$0xff] %v9591_v19  ;;  %v9595_v23 = vpop.xlane.xlu0 %3739 }
 0x359   :  { %v3161_v22 = vpop.f32.mrb[120].mxu0 }
 0x35a   :  { %v9600_v47 = vadd.f32 %v3161_v22, %v9364_v40  ;;  %v9602_v46 = vpop.xlane.xlu1 %3743  ;;  %v3163_v58 = vpop.f32.mrb[121].mxu0 }
 0x35b   :  { %v9607_v16 = vpop.xlane.xlu0 %3315  ;;  %v9610_v52 = vadd.f32 %v3163_v58, %v9370_v18  ;;  %v3165_v24 = vpop.f32.mrb[122].mxu0 }
 0x35c   :  { %12391 = vst [vmem:[#allocation149_spill] sm:$0xff] %v9600_v47  ;;  %12392 = vst [vmem:[#allocation150_spill] sm:$0xff] %v9607_v16  ;;  %v9613_v1 = vadd.f32 %v3165_v24, %v9372_v39  ;;  %v3167_v31 = vpop.f32.mrb[123].mxu0  ;;  %v7045_v22 = vpop.eup %7044 }
 0x35d   :  { %12393 = vst [vmem:[#allocation151_spill] sm:$0xff] %v9610_v52  ;;  %v9616_v40 = vadd.f32 %v3167_v31, %v9374_v38  ;;  %v4519_v58 = vmul.f32 %v7045_v22, %v4303_v10  ;;  %v7047_v16 = vpop.eup %7046 }
 0x35e   :  { %12394 = vst [vmem:[#allocation152_spill] sm:$0xff] %v9613_v1  ;;  %v9618_v61 = vpop.xlane.xlu1 %3319  ;;  %5604 = vperm.xlu1 %6787, %v4734_v36  }
 0x35f   :  { %12395 = vst [vmem:[#allocation153_spill] sm:$0xff] %v9616_v40  ;;  %12396 = vst [vmem:[#allocation154_spill] sm:$0xff] %v9618_v61  ;;  %v9623_v8 = vpop.xlane.xlu0 %3747 }
 0x361   :  { %v3171_v18 = vpop.f32.mrb[124].mxu0 }
 0x362   :  { %v9626_v39 = vadd.f32 %v3171_v18, %v9395_v55  ;;  %v9628_v24 = vpop.xlane.xlu1 %3751  ;;  %v3173_v38 = vpop.f32.mrb[125].mxu0  ;;  %4961 = vperm.xlu1 %6787, %v4519_v58   ;;  %v9644_v18 = vmul.f32 %v7047_v16, %v4304_v33 }
 0x363   :  { %12398 = vst [vmem:[#allocation156_spill] sm:$0xff] %v9628_v24  ;;  %v9633_v12 = vpop.xlane.xlu0 %3323  ;;  %v9636_v31 = vadd.f32 %v3173_v38, %v9401_v26  ;;  %v3175_v36 = vpop.f32.mrb[126].mxu0  ;;  %v4663_v24 = vmul.f32 %v4519_v58, %v9494_v11  ;;  %v4591_v26 = vld [vmem:[%s12029_s5 + $0x10] sm:$0xff] }
 0x364   :  { %12397 = vst [vmem:[#allocation155_spill] sm:$0xff] %v9626_v39  ;;  %12399 = vst [vmem:[#allocation157_spill] sm:$0xff] %v9633_v12  ;;  %v9639_v22 = vadd.f32 %v3175_v36, %v9403_v27  ;;  %v3177_v10 = vpop.f32.mrb[127].mxu0 }
 0x365   :  { %12400 = vst [vmem:[#allocation158_spill] sm:$0xff] %v9636_v31  ;;  %v9642_v55 = vadd.f32 %v3177_v10, %v9405_v53  ;;  %v4735_v36 = vsub.f32 %v4591_v26, %v4663_v24 }
 0x366   :  { %12401 = vst [vmem:[#allocation159_spill] sm:$0xff] %v9639_v22  ;;  %v9647_v61 = vpop.xlane.xlu1 %3327  ;;  %4966 = vperm.xlu1 %6787, %v9644_v18  }
 0x367   :  { %12402 = vst [vmem:[#allocation160_spill] sm:$0xff] %v9642_v55  ;;  %12403 = vst [vmem:[#allocation161_spill] sm:$0xff] %v9647_v61  ;;  %v9652_v38 = vpop.xlane.xlu0 %3755 }
 0x368   :  { %12404 = vst [vmem:[#allocation162_spill] sm:$0xff] %v9652_v38 }
 0x369   :  { %v3181_v27 = vpop.f32.mrb[128].mxu0 }
 0x36a   :  { %v9656_v12 = vadd.f32 %v3181_v27, %v9432_v45  ;;  %v9658_v53 = vpop.xlane.xlu1 %3759  ;;  %v3183_v16 = vpop.f32.mrb[129].mxu0 }
 0x36b   :  { %v9660_v33 = vpop.xlane.xlu0 %3331  ;;  %v9663_v11 = vadd.f32 %v3183_v16, %v9439_v21  ;;  %v3185_v58 = vpop.f32.mrb[130].mxu0  ;;  %5609 = vperm.xlu0 %6786, %v4735_v36  }
 0x36c   :  { %12405 = vst [vmem:[#allocation163_spill] sm:$0xff] %v9656_v12  ;;  %12406 = vst [vmem:[#allocation164_spill] sm:$0xff] %v9660_v33  ;;  %v9666_v10 = vadd.f32 %v3185_v58, %v9441_v49  ;;  %v3187_v61 = vpop.f32.mrb[131].mxu0 }
 0x36d   :  { %12407 = vst [vmem:[#allocation165_spill] sm:$0xff] %v9663_v11  ;;  %v9669_v38 = vadd.f32 %v3187_v61, %v9443_v37 }
 0x36e   :  { %12408 = vst [vmem:[#allocation166_spill] sm:$0xff] %v9666_v10  ;;  %v9671_v24 = vpop.xlane.xlu1 %3335 }
 0x36f   :  { %12409 = vst [vmem:[#allocation167_spill] sm:$0xff] %v9669_v38  ;;  %12410 = vst [vmem:[#allocation168_spill] sm:$0xff] %v9671_v24  ;;  %v9673_v45 = vpop.xlane.xlu0 %3763 }
 0x371   :  { %v3191_v26 = vpop.f32.mrb[132].mxu0 }
 0x372   :  { %v9676_v27 = vadd.f32 %v3191_v26, %v9461_v30  ;;  %v9678_v33 = vpop.xlane.xlu1 %3767  ;;  %v3193_v21 = vpop.f32.mrb[133].mxu0 }
 0x373   :  { %12412 = vst [vmem:[#allocation170_spill] sm:$0xff] %v9678_v33  ;;  %v9680_v16 = vpop.xlane.xlu0 %3339  ;;  %v9683_v49 = vadd.f32 %v3193_v21, %v9467_v42  ;;  %v3195_v36 = vpop.f32.mrb[134].mxu0 }
 0x374   :  { %12411 = vst [vmem:[#allocation169_spill] sm:$0xff] %v9676_v27  ;;  %12413 = vst [vmem:[#allocation171_spill] sm:$0xff] %v9680_v16  ;;  %v9686_v37 = vadd.f32 %v3195_v36, %v9469_v32  ;;  %v3197_v61 = vpop.f32.mrb[135].mxu0 }
 0x375   :  { %12414 = vst [vmem:[#allocation172_spill] sm:$0xff] %v9683_v49  ;;  %v9689_v58 = vadd.f32 %v3197_v61, %v9471_v6 }
 0x376   :  { %12415 = vst [vmem:[#allocation173_spill] sm:$0xff] %v9686_v37  ;;  %v9691_v24 = vpop.xlane.xlu1 %3343 }
 0x377   :  { %12416 = vst [vmem:[#allocation174_spill] sm:$0xff] %v9689_v58  ;;  %12417 = vst [vmem:[#allocation175_spill] sm:$0xff] %v9691_v24  ;;  %v9693_v30 = vpop.xlane.xlu0 %3771 }
 0x378   :  { %12418 = vst [vmem:[#allocation176_spill] sm:$0xff] %v9693_v30  ;;  %v9712_v30 = vmul.f32 0.0051020407, %v9292_v35 }
 0x379   :  { %v3201_v26 = vpop.f32.mrb[136].mxu0 }
 0x37a   :  { %v9696_v33 = vadd.f32 %v3201_v26, %v9489_v51  ;;  %v9698_v16 = vpop.xlane.xlu1 %3775  ;;  %v3203_v42 = vpop.f32.mrb[137].mxu0 }
 0x37b   :  { %12420 = vst [vmem:[#allocation178_spill] sm:$0xff] %v9698_v16  ;;  %v9700_v21 = vpop.xlane.xlu0 %3347  ;;  %v9703_v32 = vadd.f32 %v3203_v42, %v9498_v2  ;;  %v3205_v36 = vpop.f32.mrb[138].mxu0  ;;  %v4017_v16 = vmul.f32 0.0051020407, %v9319_v59  ;;  %v4089_v2 = vmul.f32 %v9712_v30, %v9712_v30 }
 0x37c   :  { %12419 = vst [vmem:[#allocation177_spill] sm:$0xff] %v9696_v33  ;;  %12421 = vst [vmem:[#allocation179_spill] sm:$0xff] %v9700_v21  ;;  %v9706_v6 = vadd.f32 %v3205_v36, %v9500_v63  ;;  %v3207_v61 = vpop.f32.mrb[139].mxu0  ;;  %v9727_v36 = vmul.f32 0.0051020407, %v9321_v43  ;;  %v3401_v43 = vsel %vm3220_vm1, %v9362_v4, 0.0 }
 0x37d   :  { %12422 = vst [vmem:[#allocation180_spill] sm:$0xff] %v9703_v32  ;;  %v9709_v24 = vadd.f32 %v3207_v61, %v9502_v54  ;;  %v4161_v59 = vsub.f32 %v4017_v16, %v4089_v2 }
 0x37e   :  { %12423 = vst [vmem:[#allocation181_spill] sm:$0xff] %v9706_v6  ;;  %v9714_v51 = vpop.xlane.xlu1 %3351 }
 0x37f   :  { %12424 = vst [vmem:[#allocation182_spill] sm:$0xff] %v9709_v24  ;;  %12425 = vst [vmem:[#allocation183_spill] sm:$0xff] %v9714_v51  ;;  %v9716_v26 = vpop.xlane.xlu0 %3779 }
 0x380   :  { %12426 = vst [vmem:[#allocation184_spill] sm:$0xff] %v9716_v26 }
 0x381   :  { %v3211_v21 = vpop.f32.mrb[140].mxu0 }
 0x382   :  { %v9722_v63 = vadd.f32 %v3211_v21, %v9530_v57  ;;  %v9724_v42 = vpop.xlane.xlu1 %3783  ;;  %v3213_v54 = vpop.f32.mrb[141].mxu0  ;;  %v4018_v57 = vmul.f32 0.0051020407, %v9340_v13  ;;  %v3600_v21 = vmul.f32 %v9362_v4, %v9362_v4  ;;  %v4090_v13 = vmul.f32 %v9727_v36, %v9727_v36 }
 0x383   :  { %12428 = vst [vmem:[#allocation186_spill] sm:$0xff] %v9724_v42  ;;  %v9729_v35 = vpop.xlane.xlu0 %3355  ;;  %v9732_v61 = vadd.f32 %v3213_v54, %v9537_v9  ;;  %v3215_v51 = vpop.f32.mrb[142].mxu0  ;;  %v3598_v9 = vmul.f32 %v9356_v0, %v9356_v0  ;;  %v3599_v42 = vmul.f32 %v9359_v41, %v9359_v41 }
 0x384   :  { %12427 = vst [vmem:[#allocation185_spill] sm:$0xff] %v9722_v63  ;;  %12429 = vst [vmem:[#allocation187_spill] sm:$0xff] %v9729_v35  ;;  %v9735_v26 = vadd.f32 %v3215_v51, %v9539_v7  ;;  %v3217_v33 = vpop.f32.mrb[143].mxu0  ;;  %v3397_v7 = vsel %vm3220_vm1, %v9356_v0, 0.0  ;;  %v3402_v51 = vadd.f32 %v9359_v41, %v3401_v43  ;;  %v3833_v4 = vsel %vm3220_vm1, %v3600_v21, 0.0 }
 0x385   :  { %12430 = vst [vmem:[#allocation188_spill] sm:$0xff] %v9732_v61  ;;  %v9741_v63 = vadd.f32 %v3217_v33, %v9544_v5  ;;  %v4233_v5 = vmax.f32 %v4161_v59, 0.0  ;;  %v4162_v33 = vsub.f32 %v4018_v57, %v4090_v13  ;;  %v3398_v2 = vadd.f32 %v9349_v20, %v3397_v7 }
 0x386   :  { %12431 = vst [vmem:[#allocation189_spill] sm:$0xff] %v9735_v26  ;;  %v9747_v54 = vpop.xlane.xlu1 %3359  ;;  %v3829_v0 = vsel %vm3220_vm1, %v3598_v9, 0.0  ;;  %v3597_v26 = vmul.f32 %v9349_v20, %v9349_v20  ;;  %v3834_v59 = vadd.f32 %v3833_v4, %v3599_v42 }
 0x387   :  { %12432 = vst [vmem:[#allocation190_spill] sm:$0xff] %v9741_v63  ;;  %12433 = vst [vmem:[#allocation191_spill] sm:$0xff] %v9747_v54  ;;  %v9753_v16 = vpop.xlane.xlu0 %3787  ;;  %v4377_v57 = vadd.f32 1e-05, %v4233_v5  ;;  %v4234_v43 = vmax.f32 %v4162_v33, 0.0  ;;  %v4592_v5 = vld [vmem:[%s12029_s5 + $0x18] sm:$0xff] }
 0x388   :  { %12434 = vst [vmem:[#allocation192_spill] sm:$0xff] %v9753_v16  ;;  %v3830_v7 = vadd.f32 %v3829_v0, %v3597_v26  ;;  %v4664_v0 = vmul.f32 %v9644_v18, %v9521_v25  ;;  %v4305_v33 = vld [vmem:[%s12028_s4 + $0x20] sm:$0xff]  ;;  %v4306_v25 = vld [vmem:[%s12028_s4 + $0x28] sm:$0xff] }
 0x389   :  { %7048 = vrsqrt.f32 %v4377_v57 }
 0x38a   :  { %v9760_v54 = vpop.xlane.xlu1 %3791  ;;  %3403 = vadd.xlane.f32.xlu0 %v3402_v51  ;;  %3399 = vadd.xlane.f32.xlu1 %v3398_v2  ;;  %v4378_v51 = vadd.f32 1e-05, %v4234_v43  ;;  %v4736_v57 = vsub.f32 %v4592_v5, %v4664_v0  ;;  %v4593_v0 = vld [vmem:[%s12029_s5 + $0x20] sm:$0xff] }
 0x38b   :  { %12435 = vst [vmem:[#allocation193_spill] sm:$0xff] %v9760_v54  ;;  %v9765_v16 = vpop.xlane.xlu0 %3363 }
 0x38c   :  { %12436 = vst [vmem:[#allocation194_spill] sm:$0xff] %v9765_v16  ;;  %7050 = vrsqrt.f32 %v4378_v51 }
 0x38e   :  { %v9767_v13 = vpop.xlane.xlu1 %3367  ;;  %3835 = vadd.xlane.f32.xlu0 %v3834_v59  ;;  %3831 = vadd.xlane.f32.xlu1 %v3830_v7 }
 0x38f   :  { %12437 = vst [vmem:[#allocation195_spill] sm:$0xff] %v9767_v13  ;;  %v9769_v21 = vpop.xlane.xlu0 %3795 }
 0x390   :  { %12438 = vst [vmem:[#allocation196_spill] sm:$0xff] %v9769_v21 }
 0x392   :  { %v9771_v41 = vpop.xlane.xlu1 %3799 }
 0x393   :  { %12439 = vst [vmem:[#allocation197_spill] sm:$0xff] %v9771_v41  ;;  %v9773_v9 = vpop.xlane.xlu0 %3371  ;;  %v7049_v26 = vpop.eup %7048  ;;  %v12454_v41 = vld [vmem:[#allocation93_spill] sm:$0xff] }
 0x394   :  { %12440 = vst [vmem:[#allocation198_spill] sm:$0xff] %v9773_v9  ;;  %v4521_v43 = vmul.f32 %v7049_v26, %v4305_v33 }
 0x396   :  { %v9775_v20 = vpop.xlane.xlu1 %3375  ;;  %v7051_v7 = vpop.eup %7050 }
 0x397   :  { %12441 = vst [vmem:[#allocation199_spill] sm:$0xff] %v9775_v20  ;;  %v9777_v2 = vpop.xlane.xlu0 %3803  ;;  %v4522_v18 = vmul.f32 %v7051_v7, %v4306_v25  ;;  %v12451_v7 = vld [vmem:[#allocation24_spill] sm:$0xff] }
 0x398   :  { %12442 = vst [vmem:[#allocation200_spill] sm:$0xff] %v9777_v2 }
 0x39a   :  { %v9779_v4 = vpop.xlane.xlu1 %3807 }
 0x39b   :  { %12443 = vst [vmem:[#allocation201_spill] sm:$0xff] %v9779_v4  ;;  %v9783_v42 = vpop.xlane.xlu0 %3379  ;;  %v4665_v4 = vmul.f32 %v4521_v43, %v9712_v30 }
 0x39c   :  { %12444 = vst [vmem:[#allocation202_spill] sm:$0xff] %v9783_v42 }
 0x39d   :  { %v4737_v26 = vsub.f32 %v4593_v0, %v4665_v4 }
 0x39e   :  { %v9791_v59 = vpop.xlane.xlu1 %3383 }
 0x39f   :  { %12445 = vst [vmem:[#allocation203_spill] sm:$0xff] %v9791_v59  ;;  %v9793_v51 = vpop.xlane.xlu0 %3811  ;;  %5614 = vperm.xlu1 %6787, %v4736_v57   ;;  %v12450_v59 = vld [vmem:[#allocation23_spill] sm:$0xff] }
 0x3a0   :  { %12446 = vst [vmem:[#allocation204_spill] sm:$0xff] %v9793_v51 }
 0x3a2   :  { %v9799_v42 = vpop.xlane.xlu1 %3815 }
 0x3a3   :  { %12447 = vst [vmem:[#allocation205_spill] sm:$0xff] %v9799_v42  ;;  %v9801_v20 = vpop.xlane.xlu0 %3387  ;;  %4976 = vperm.xlu1 %6787, %v4522_v18   ;;  %v4805_v42 = vld [vmem:[%s12030_s3] sm:$0xff] }
 0x3a4   :  { %12448 = vst [vmem:[#allocation206_spill] sm:$0xff] %v9801_v20  ;;  %4971 = vperm.xlu0 %6786, %v4521_v43   ;;  %v4806_v20 = vld [vmem:[%s12030_s3 + $0x8] sm:$0xff] }
 0x3a6   :  { %v4952_v5 = vpop.permute.xlu1 %4951 }
 0x3a7   :  { %v9806_v33 = vpop.xlane.xlu0 %3819  ;;  %v5309_v57 = vmul.f32 %v12450_v59, %v4952_v5  ;;  %v5310_v25 = vmul.f32 %v12451_v7, %v4952_v5  ;;  %v12452_v59 = vld [vmem:[#allocation90_spill] sm:$0xff]  ;;  %v12453_v7 = vld [vmem:[#allocation92_spill] sm:$0xff] }
 0x3a8   :  { %5619 = vperm.xlu0 %6786, %v4737_v26   ;;  %12449 = vst [vmem:[#allocation207_spill] sm:$0xff] %v9806_v33  ;;  %v3947_v5 = vmul.f32 0.0051020407, %v12452_v59  ;;  %v4019_v33 = vmul.f32 0.0051020407, %v12453_v7 }
 0x3a9   :  { %v5453_v51 = vadd.f32 %v5309_v57, %v4805_v42  ;;  %v5454_v43 = vadd.f32 %v5310_v25, %v4806_v20  ;;  %v9826_v42 = vmul.f32 0.0051020407, %v12454_v41  ;;  %v12456_v25 = vld [vmem:[#allocation104_spill] sm:$0xff]  ;;  %v12458_v41 = vld [vmem:[#allocation103_spill] sm:$0xff] }
 0x3aa   :  { %v4091_v2 = vmul.f32 %v3947_v5, %v3947_v5 }
 0x3ab   :  { %v4092_v7 = vmul.f32 %v9826_v42, %v9826_v42 }
 0x3ac   :  { %v4163_v20 = vsub.f32 %v4019_v33, %v4091_v2 }
 0x3ad   :  { %v4957_v30 = vpop.permute.xlu0 %4956 }
 0x3ae   :  { %v4235_v2 = vmax.f32 %v4163_v20, 0.0 }
 0x3b0   :  { %v4379_v61 = vadd.f32 1e-05, %v4235_v2 }
 0x3b1   :  { %v5600_v4 = vpop.permute.xlu0 %5599 }
 0x3b2   :  { %v5957_v0 = vadd.f32 %v5600_v4, %v5453_v51  ;;  %v5958_v26 = vadd.f32 %v5600_v4, %v5454_v43  ;;  %v12455_v51 = vld [vmem:[#allocation98_spill] sm:$0xff]  ;;  %v3604_v43 = vmul.f32 %v12456_v25, %v12456_v25  ;;  %v3409_v4 = vsel %vm3220_vm1, %v12456_v25, 0.0 }
 0x3b3   :  { %v4020_v57 = vmul.f32 0.0051020407, %v12455_v51  ;;  %v3410_v9 = vadd.f32 %v12458_v41, %v3409_v4  ;;  %v12459_v51 = vld [vmem:[#allocation99_spill] sm:$0xff]  ;;  %v3603_v25 = vmul.f32 %v12458_v41, %v12458_v41  ;;  %7052 = vrsqrt.f32 %v4379_v61 }
 0x3b4   :  { %6101 = vst [vmem:[%s12031_s6] sm:$0xff] %v5957_v0  ;;  %6102 = vst.msk [vmem:[%s12031_s6 + $0x8] sm:$0xff] %vm3220_vm1, %v5958_v26  ;;  %v12457_v0 = vld [vmem:[#allocation102_spill] sm:$0xff]  ;;  %v3841_v21 = vsel %vm3220_vm1, %v3604_v43, 0.0  ;;  %v4666_v43 = vmul.f32 %v4522_v18, %v9727_v36  ;;  %v4807_v36 = vld [vmem:[%s12030_s3 + $0x10] sm:$0xff] }
 0x3b5   :  { %v3602_v26 = vmul.f32 %v12457_v0, %v12457_v0  ;;  %v3405_v59 = vsel %vm3220_vm1, %v12457_v0, 0.0  ;;  %v4164_v33 = vsub.f32 %v4020_v57, %v4092_v7  ;;  %v3601_v0 = vmul.f32 %v12459_v51, %v12459_v51  ;;  %v4808_v18 = vld [vmem:[%s12030_s3 + $0x18] sm:$0xff] }
 0x3b6   :  { %v3406_v13 = vadd.f32 %v12459_v51, %v3405_v59  ;;  %v3842_v16 = vadd.f32 %v3841_v21, %v3603_v25  ;;  %v12460_v21 = vld [vmem:[#allocation25_spill] sm:$0xff] }
 0x3b7   :  { %v3837_v54 = vsel %vm3220_vm1, %v3602_v26, 0.0  ;;  %v4236_v35 = vmax.f32 %v4164_v33, 0.0  ;;  %v4594_v26 = vld [vmem:[%s12029_s5 + $0x28] sm:$0xff]  ;;  %v4308_v7 = vld [vmem:[%s12028_s4 + $0x38] sm:$0xff] }
 0x3b8   :  { %v3838_v4 = vadd.f32 %v3837_v54, %v3601_v0  ;;  %v5311_v54 = vmul.f32 %v12460_v21, %v4957_v30 }
 0x3b9   :  { %v4380_v20 = vadd.f32 1e-05, %v4236_v35  ;;  %v4738_v35 = vsub.f32 %v4594_v26, %v4666_v43 }
 0x3ba   :  { %v5455_v2 = vadd.f32 %v5311_v54, %v4807_v36 }
 0x3bb   :  { %7054 = vrsqrt.f32 %v4380_v20 }
 0x3c7   :  { %3411 = vadd.xlane.f32.xlu0 %v3410_v9  ;;  %3407 = vadd.xlane.f32.xlu1 %v3406_v13  ;;  %v7053_v9 = vpop.eup %7052  ;;  %v4307_v13 = vld [vmem:[%s12028_s4 + $0x30] sm:$0xff] }
 0x3c8   :  { %v4523_v0 = vmul.f32 %v7053_v9, %v4307_v13  ;;  %v7055_v59 = vpop.eup %7054  ;;  %v12463_v13 = vld [vmem:[#allocation27_spill] sm:$0xff] }
 0x3ca   :  { %v4667_v20 = vmul.f32 %v4523_v0, %v3947_v5 }
 0x3cb   :  { %3843 = vadd.xlane.f32.xlu0 %v3842_v16  ;;  %3839 = vadd.xlane.f32.xlu1 %v3838_v4  ;;  %v12461_v16 = vld [vmem:[#allocation26_spill] sm:$0xff]  ;;  %v4524_v4 = vmul.f32 %v7055_v59, %v4308_v7 }
 0x3cc   :  { %v5312_v25 = vmul.f32 %v12461_v16, %v4957_v30  ;;  %v4595_v16 = vld [vmem:[%s12029_s5 + $0x30] sm:$0xff] }
 0x3cd   :  { %v4739_v9 = vsub.f32 %v4595_v16, %v4667_v20  ;;  %v12466_v20 = vld [vmem:[#allocation97_spill] sm:$0xff] }
 0x3ce   :  { %v5456_v30 = vadd.f32 %v5312_v25, %v4808_v18  ;;  %v12464_v25 = vld [vmem:[#allocation28_spill] sm:$0xff]  ;;  %v4809_v18 = vld [vmem:[%s12030_s3 + $0x20] sm:$0xff] }
 0x3d6   :  { %v9847_v57 = vpop.xlane.xlu1 %3391 }
 0x3da   :  { %v9858_v61 = vpop.xlane.xlu1 %3823 }
 0x3db   :  { %12462 = vst [vmem:[#allocation23_spill] sm:$0xff] %v9858_v61 }
 0x3dc   :  { %5624 = vperm.xlu1 %6787, %v4738_v35  }
 0x3de   :  { %v5605_v33 = vpop.permute.xlu1 %5604  ;;  %v9869_v21 = vpop.xlane.xlu0 %3395 }
 0x3df   :  { %v5959_v43 = vadd.f32 %v5605_v33, %v5455_v2  ;;  %v5960_v26 = vadd.f32 %v5605_v33, %v5456_v30 }
 0x3e0   :  { %4986 = vperm.xlu1 %6787, %v4524_v4  }
 0x3e1   :  { %4981 = vperm.xlu0 %6786, %v4523_v0   ;;  %6103 = vst [vmem:[%s12031_s6 + $0x10] sm:$0xff] %v5959_v43  ;;  %6104 = vst.msk [vmem:[%s12031_s6 + $0x18] sm:$0xff] %vm3220_vm1, %v5960_v26  ;;  %v4810_v0 = vld [vmem:[%s12030_s3 + $0x28] sm:$0xff]  ;;  %v3949_v43 = vmul.f32 0.0051020407, %v12466_v20  ;;  %v12467_v26 = vld [vmem:[#allocation100_spill] sm:$0xff] }
 0x3e2   :  { %v4962_v5 = vpop.permute.xlu1 %4961  ;;  %v9883_v36 = vpop.xlane.xlu0 %3827  ;;  %v4021_v16 = vmul.f32 0.0051020407, %v12467_v26 }
 0x3e3   :  { %v5313_v54 = vmul.f32 %v12463_v13, %v4962_v5  ;;  %v5314_v35 = vmul.f32 %v12464_v25, %v4962_v5  ;;  %12465 = vst [vmem:[#allocation24_spill] sm:$0xff] %v9883_v36  ;;  %v4093_v5 = vmul.f32 %v3949_v43, %v3949_v43  ;;  %v12469_v25 = vld [vmem:[#allocation106_spill] sm:$0xff] }
 0x3e5   :  { %5629 = vperm.xlu0 %6786, %v4739_v9   ;;  %v5457_v59 = vadd.f32 %v5313_v54, %v4809_v18  ;;  %v5458_v7 = vadd.f32 %v5314_v35, %v4810_v0  ;;  %v12468_v9 = vld [vmem:[#allocation101_spill] sm:$0xff]  ;;  %v4165_v54 = vsub.f32 %v4021_v16, %v4093_v5  ;;  %v4022_v35 = vmul.f32 0.0051020407, %v12469_v25  ;;  %v12472_v5 = vld [vmem:[#allocation107_spill] sm:$0xff] }
 0x3e6   :  { %v9901_v13 = vmul.f32 0.0051020407, %v12468_v9  ;;  %v3608_v18 = vmul.f32 %v9427_v17, %v9427_v17  ;;  %v3417_v0 = vsel %vm3220_vm1, %v9427_v17, 0.0 }
 0x3e7   :  { %v4237_v26 = vmax.f32 %v4165_v54, 0.0 }
 0x3e8   :  { %v3849_v25 = vsel %vm3220_vm1, %v3608_v18, 0.0  ;;  %v4668_v18 = vmul.f32 %v4524_v4, %v9826_v42  ;;  %v4310_v42 = vld [vmem:[%s12028_s4 + $0x48] sm:$0xff] }
 0x3e9   :  { %v4381_v36 = vadd.f32 1e-05, %v4237_v26 }
 0x3ea   :  { %v5610_v2 = vpop.permute.xlu0 %5609 }
 0x3eb   :  { %v5961_v30 = vadd.f32 %v5610_v2, %v5457_v59  ;;  %v5962_v33 = vadd.f32 %v5610_v2, %v5458_v7  ;;  %v12470_v59 = vld [vmem:[#allocation110_spill] sm:$0xff]  ;;  %7056 = vrsqrt.f32 %v4381_v36 }
 0x3ec   :  { %v3606_v7 = vmul.f32 %v12470_v59, %v12470_v59  ;;  %v3413_v2 = vsel %vm3220_vm1, %v12470_v59, 0.0  ;;  %v3605_v59 = vmul.f32 %v12472_v5, %v12472_v5 }
 0x3ed   :  { %6105 = vst [vmem:[%s12031_s6 + $0x20] sm:$0xff] %v5961_v30  ;;  %6106 = vst.msk [vmem:[%s12031_s6 + $0x28] sm:$0xff] %vm3220_vm1, %v5962_v33  ;;  %v4094_v30 = vmul.f32 %v9901_v13, %v9901_v13  ;;  %v12471_v33 = vld [vmem:[#allocation111_spill] sm:$0xff]  ;;  %v3414_v9 = vadd.f32 %v12472_v5, %v3413_v2 }
 0x3ee   :  { %v3418_v20 = vadd.f32 %v12471_v33, %v3417_v0  ;;  %v3607_v17 = vmul.f32 %v12471_v33, %v12471_v33  ;;  %v3845_v41 = vsel %vm3220_vm1, %v3606_v7, 0.0  ;;  %v4596_v7 = vld [vmem:[%s12029_s5 + $0x38] sm:$0xff] }
 0x3ef   :  { %v4166_v16 = vsub.f32 %v4022_v35, %v4094_v30  ;;  %v3846_v0 = vadd.f32 %v3845_v41, %v3605_v59  ;;  %v4967_v35 = vpop.permute.xlu1 %4966  ;;  %v4740_v41 = vsub.f32 %v4596_v7, %v4668_v18  ;;  %v4597_v18 = vld [vmem:[%s12029_s5 + $0x40] sm:$0xff] }
 0x3f0   :  { %v3850_v51 = vadd.f32 %v3849_v25, %v3607_v17  ;;  %v4309_v17 = vld [vmem:[%s12028_s4 + $0x40] sm:$0xff]  ;;  %v4811_v25 = vld [vmem:[%s12030_s3 + $0x30] sm:$0xff] }
 0x3f1   :  { %v4238_v61 = vmax.f32 %v4166_v16, 0.0 }
 0x3f3   :  { %v4382_v54 = vadd.f32 1e-05, %v4238_v61  ;;  %v12475_v61 = vld [vmem:[#allocation29_spill] sm:$0xff] }
 0x3f4   :  { %v5315_v4 = vmul.f32 %v12475_v61, %v4967_v35  ;;  %v4814_v61 = vld [vmem:[%s12030_s3 + $0x48] sm:$0xff] }
 0x3f5   :  { %7058 = vrsqrt.f32 %v4382_v54  ;;  %v7057_v2 = vpop.eup %7056 }
 0x3ff   :  { %v7059_v59 = vpop.eup %7058 }
 0x404   :  { %3419 = vadd.xlane.f32.xlu0 %v3418_v20  ;;  %3415 = vadd.xlane.f32.xlu1 %v3414_v9  ;;  %v12476_v20 = vld [vmem:[#allocation30_spill] sm:$0xff]  ;;  %v4526_v9 = vmul.f32 %v7059_v59, %v4310_v42 }
 0x405   :  { %v5316_v26 = vmul.f32 %v12476_v20, %v4967_v35  ;;  %v5459_v35 = vadd.f32 %v5315_v4, %v4811_v25  ;;  %v12479_v4 = vld [vmem:[#allocation31_spill] sm:$0xff] }
 0x408   :  { %3851 = vadd.xlane.f32.xlu0 %v3850_v51  ;;  %3847 = vadd.xlane.f32.xlu1 %v3846_v0  ;;  %v4525_v51 = vmul.f32 %v7057_v2, %v4309_v17  ;;  %v4812_v0 = vld [vmem:[%s12030_s3 + $0x38] sm:$0xff] }
 0x409   :  { %v5460_v7 = vadd.f32 %v5316_v26, %v4812_v0  ;;  %v12480_v26 = vld [vmem:[#allocation32_spill] sm:$0xff] }
 0x40a   :  { %v4669_v54 = vmul.f32 %v4525_v51, %v3949_v43 }
 0x417   :  { %v9929_v30 = vpop.xlane.xlu1 %3399  ;;  %v9931_v36 = vpop.xlane.xlu0 %3403 }
 0x418   :  { %12473 = vst [vmem:[#allocation90_spill] sm:$0xff] %v9929_v30  ;;  %12474 = vst [vmem:[#allocation92_spill] sm:$0xff] %v9931_v36 }
 0x419   :  { %5634 = vperm.xlu1 %6787, %v4740_v41   ;;  %v4741_v41 = vsub.f32 %v4597_v18, %v4669_v54 }
 0x41b   :  { %v9938_v16 = vpop.xlane.xlu1 %3831  ;;  %v9949_v2 = vpop.xlane.xlu0 %3835 }
 0x41c   :  { %12477 = vst [vmem:[#allocation93_spill] sm:$0xff] %v9938_v16  ;;  %12478 = vst [vmem:[#allocation98_spill] sm:$0xff] %v9949_v2 }
 0x41d   :  { %4996 = vperm.xlu1 %6787, %v4526_v9  }
 0x41e   :  { %4991 = vperm.xlu0 %6786, %v4525_v51   ;;  %v4813_v51 = vld [vmem:[%s12030_s3 + $0x40] sm:$0xff] }
 0x41f   :  { %v5615_v17 = vpop.permute.xlu1 %5614 }
 0x420   :  { %v5963_v59 = vadd.f32 %v5615_v17, %v5459_v35  ;;  %v5964_v42 = vadd.f32 %v5615_v17, %v5460_v7  ;;  %v12481_v17 = vld [vmem:[#allocation105_spill] sm:$0xff] }
 0x422   :  { %5639 = vperm.xlu0 %6786, %v4741_v41   ;;  %6107 = vst [vmem:[%s12031_s6 + $0x30] sm:$0xff] %v5963_v59  ;;  %6108 = vst.msk [vmem:[%s12031_s6 + $0x38] sm:$0xff] %vm3220_vm1, %v5964_v42  ;;  %v3951_v41 = vmul.f32 0.0051020407, %v12481_v17  ;;  %v12482_v59 = vld [vmem:[#allocation108_spill] sm:$0xff] }
 0x423   :  { %v4972_v43 = vpop.permute.xlu0 %4971  ;;  %v4023_v42 = vmul.f32 0.0051020407, %v12482_v59  ;;  %v12487_v59 = vld [vmem:[#allocation119_spill] sm:$0xff] }
 0x424   :  { %v5317_v20 = vmul.f32 %v12479_v4, %v4972_v43  ;;  %v5318_v25 = vmul.f32 %v12480_v26, %v4972_v43  ;;  %v4095_v4 = vmul.f32 %v3951_v41, %v3951_v41  ;;  %v12483_v43 = vld [vmem:[#allocation109_spill] sm:$0xff] }
 0x426   :  { %v5461_v0 = vadd.f32 %v5317_v20, %v4813_v51  ;;  %v5462_v54 = vadd.f32 %v5318_v25, %v4814_v61  ;;  %v9976_v51 = vmul.f32 0.0051020407, %v12483_v43  ;;  %v4167_v61 = vsub.f32 %v4023_v42, %v4095_v4  ;;  %v12484_v20 = vld [vmem:[#allocation114_spill] sm:$0xff]  ;;  %v12485_v25 = vld [vmem:[#allocation120_spill] sm:$0xff] }
 0x427   :  { %v5620_v18 = vpop.permute.xlu0 %5619  ;;  %v4024_v26 = vmul.f32 0.0051020407, %v12484_v20  ;;  %v12488_v20 = vld [vmem:[#allocation115_spill] sm:$0xff] }
 0x428   :  { %v5965_v35 = vadd.f32 %v5620_v18, %v5461_v0  ;;  %v5966_v7 = vadd.f32 %v5620_v18, %v5462_v54  ;;  %v3612_v0 = vmul.f32 %v12485_v25, %v12485_v25  ;;  %v3425_v54 = vsel %vm3220_vm1, %v12485_v25, 0.0  ;;  %v12486_v18 = vld [vmem:[#allocation118_spill] sm:$0xff] }
 0x429   :  { %v4096_v17 = vmul.f32 %v9976_v51, %v9976_v51  ;;  %v3426_v43 = vadd.f32 %v12487_v59, %v3425_v54  ;;  %v4239_v42 = vmax.f32 %v4167_v61, 0.0  ;;  %v3611_v25 = vmul.f32 %v12487_v59, %v12487_v59 }
 0x42a   :  { %6109 = vst [vmem:[%s12031_s6 + $0x40] sm:$0xff] %v5965_v35  ;;  %6110 = vst.msk [vmem:[%s12031_s6 + $0x48] sm:$0xff] %vm3220_vm1, %v5966_v7  ;;  %v3610_v35 = vmul.f32 %v12486_v18, %v12486_v18  ;;  %v3421_v7 = vsel %vm3220_vm1, %v12486_v18, 0.0  ;;  %v3857_v5 = vsel %vm3220_vm1, %v3612_v0, 0.0  ;;  %v3609_v18 = vmul.f32 %v12488_v20, %v12488_v20 }
 0x42b   :  { %v4168_v4 = vsub.f32 %v4024_v26, %v4096_v17  ;;  %v3422_v33 = vadd.f32 %v12488_v20, %v3421_v7  ;;  %v3858_v2 = vadd.f32 %v3857_v5, %v3611_v25  ;;  %v4383_v30 = vadd.f32 1e-05, %v4239_v42  ;;  %v4977_v26 = vpop.permute.xlu1 %4976 }
 0x42c   :  { %v3853_v16 = vsel %vm3220_vm1, %v3610_v35, 0.0  ;;  %v4670_v0 = vmul.f32 %v4526_v9, %v9901_v13  ;;  %v4598_v35 = vld [vmem:[%s12029_s5 + $0x48] sm:$0xff]  ;;  %v4312_v13 = vld [vmem:[%s12028_s4 + $0x58] sm:$0xff] }
 0x42d   :  { %v4240_v36 = vmax.f32 %v4168_v4, 0.0  ;;  %v3854_v54 = vadd.f32 %v3853_v16, %v3609_v18  ;;  %7060 = vrsqrt.f32 %v4383_v30  ;;  %v12492_v18 = vld [vmem:[#allocation34_spill] sm:$0xff]  ;;  %v4815_v4 = vld [vmem:[%s12030_s3 + $0x50] sm:$0xff] }
 0x42e   :  { %v4742_v16 = vsub.f32 %v4598_v35, %v4670_v0  ;;  %v5320_v17 = vmul.f32 %v12492_v18, %v4977_v26  ;;  %v4599_v0 = vld [vmem:[%s12029_s5 + $0x50] sm:$0xff] }
 0x42f   :  { %v4384_v61 = vadd.f32 1e-05, %v4240_v36  ;;  %v12491_v36 = vld [vmem:[#allocation33_spill] sm:$0xff] }
 0x430   :  { %v5319_v9 = vmul.f32 %v12491_v36, %v4977_v26  ;;  %v4818_v36 = vld [vmem:[%s12030_s3 + $0x68] sm:$0xff] }
 0x431   :  { %7062 = vrsqrt.f32 %v4384_v61 }
 0x432   :  { %v5463_v26 = vadd.f32 %v5319_v9, %v4815_v4  ;;  %v12495_v9 = vld [vmem:[#allocation35_spill] sm:$0xff] }
 0x437   :  { %v7061_v7 = vpop.eup %7060 }
 0x43b   :  { %v7063_v25 = vpop.eup %7062 }
 0x43c   :  { %v4528_v42 = vmul.f32 %v7063_v25, %v4312_v13 }
 0x441   :  { %3427 = vadd.xlane.f32.xlu0 %v3426_v43  ;;  %3423 = vadd.xlane.f32.xlu1 %v3422_v33  ;;  %v4311_v33 = vld [vmem:[%s12028_s4 + $0x50] sm:$0xff] }
 0x445   :  { %3859 = vadd.xlane.f32.xlu0 %v3858_v2  ;;  %3855 = vadd.xlane.f32.xlu1 %v3854_v54  ;;  %v4527_v2 = vmul.f32 %v7061_v7, %v4311_v33  ;;  %v4816_v54 = vld [vmem:[%s12030_s3 + $0x58] sm:$0xff] }
 0x446   :  { %v5464_v35 = vadd.f32 %v5320_v17, %v4816_v54  ;;  %v12496_v17 = vld [vmem:[#allocation36_spill] sm:$0xff] }
 0x447   :  { %v4671_v61 = vmul.f32 %v4527_v2, %v3951_v41 }
 0x454   :  { %v10004_v5 = vpop.xlane.xlu1 %3407  ;;  %v10006_v30 = vpop.xlane.xlu0 %3411 }
 0x455   :  { %12489 = vst [vmem:[#allocation25_spill] sm:$0xff] %v10004_v5  ;;  %12490 = vst [vmem:[#allocation26_spill] sm:$0xff] %v10006_v30 }
 0x456   :  { %5644 = vperm.xlu1 %6787, %v4742_v16   ;;  %v4743_v16 = vsub.f32 %v4599_v0, %v4671_v61 }
 0x458   :  { %v10013_v43 = vpop.xlane.xlu1 %3839  ;;  %v10024_v7 = vpop.xlane.xlu0 %3843 }
 0x459   :  { %12493 = vst [vmem:[#allocation27_spill] sm:$0xff] %v10013_v43  ;;  %12494 = vst [vmem:[#allocation28_spill] sm:$0xff] %v10024_v7 }
 0x45a   :  { %5006 = vperm.xlu1 %6787, %v4528_v42  }
 0x45b   :  { %5001 = vperm.xlu0 %6786, %v4527_v2   ;;  %v4817_v2 = vld [vmem:[%s12030_s3 + $0x60] sm:$0xff] }
 0x45c   :  { %v5625_v33 = vpop.permute.xlu1 %5624 }
 0x45d   :  { %v5967_v25 = vadd.f32 %v5625_v33, %v5463_v26  ;;  %v5968_v13 = vadd.f32 %v5625_v33, %v5464_v35  ;;  %v12497_v33 = vld [vmem:[#allocation113_spill] sm:$0xff] }
 0x45f   :  { %5649 = vperm.xlu0 %6786, %v4743_v16   ;;  %6111 = vst [vmem:[%s12031_s6 + $0x50] sm:$0xff] %v5967_v25  ;;  %6112 = vst.msk [vmem:[%s12031_s6 + $0x58] sm:$0xff] %vm3220_vm1, %v5968_v13  ;;  %v3953_v16 = vmul.f32 0.0051020407, %v12497_v33  ;;  %v12498_v25 = vld [vmem:[#allocation116_spill] sm:$0xff] }
 0x460   :  { %v4982_v41 = vpop.permute.xlu0 %4981  ;;  %v4025_v13 = vmul.f32 0.0051020407, %v12498_v25  ;;  %v12503_v25 = vld [vmem:[#allocation127_spill] sm:$0xff] }
 0x461   :  { %v5321_v18 = vmul.f32 %v12495_v9, %v4982_v41  ;;  %v5322_v4 = vmul.f32 %v12496_v17, %v4982_v41  ;;  %v4097_v9 = vmul.f32 %v3953_v16, %v3953_v16  ;;  %v12499_v41 = vld [vmem:[#allocation117_spill] sm:$0xff] }
 0x463   :  { %v5465_v54 = vadd.f32 %v5321_v18, %v4817_v2  ;;  %v5466_v61 = vadd.f32 %v5322_v4, %v4818_v36  ;;  %v10051_v2 = vmul.f32 0.0051020407, %v12499_v41  ;;  %v4169_v36 = vsub.f32 %v4025_v13, %v4097_v9  ;;  %v12500_v18 = vld [vmem:[#allocation122_spill] sm:$0xff]  ;;  %v12501_v4 = vld [vmem:[#allocation128_spill] sm:$0xff] }
 0x464   :  { %v5630_v0 = vpop.permute.xlu0 %5629  ;;  %v4026_v17 = vmul.f32 0.0051020407, %v12500_v18  ;;  %v12504_v18 = vld [vmem:[#allocation123_spill] sm:$0xff] }
 0x465   :  { %v5969_v26 = vadd.f32 %v5630_v0, %v5465_v54  ;;  %v5970_v35 = vadd.f32 %v5630_v0, %v5466_v61  ;;  %v3616_v54 = vmul.f32 %v12501_v4, %v12501_v4  ;;  %v3433_v61 = vsel %vm3220_vm1, %v12501_v4, 0.0  ;;  %v12502_v0 = vld [vmem:[#allocation126_spill] sm:$0xff] }
 0x466   :  { %v4098_v33 = vmul.f32 %v10051_v2, %v10051_v2  ;;  %v3434_v41 = vadd.f32 %v12503_v25, %v3433_v61  ;;  %v4241_v13 = vmax.f32 %v4169_v36, 0.0  ;;  %v3615_v4 = vmul.f32 %v12503_v25, %v12503_v25 }
 0x467   :  { %6113 = vst [vmem:[%s12031_s6 + $0x60] sm:$0xff] %v5969_v26  ;;  %6114 = vst.msk [vmem:[%s12031_s6 + $0x68] sm:$0xff] %vm3220_vm1, %v5970_v35  ;;  %v3614_v26 = vmul.f32 %v12502_v0, %v12502_v0  ;;  %v3429_v35 = vsel %vm3220_vm1, %v12502_v0, 0.0  ;;  %v3865_v20 = vsel %vm3220_vm1, %v3616_v54, 0.0  ;;  %v3613_v0 = vmul.f32 %v12504_v18, %v12504_v18 }
 0x468   :  { %v4170_v9 = vsub.f32 %v4026_v17, %v4098_v33  ;;  %v3430_v59 = vadd.f32 %v12504_v18, %v3429_v35  ;;  %v3866_v5 = vadd.f32 %v3865_v20, %v3615_v4  ;;  %v4385_v7 = vadd.f32 1e-05, %v4241_v13  ;;  %v4987_v17 = vpop.permute.xlu1 %4986 }
 0x469   :  { %v3861_v43 = vsel %vm3220_vm1, %v3614_v26, 0.0  ;;  %v4672_v54 = vmul.f32 %v4528_v42, %v9976_v51  ;;  %v4600_v26 = vld [vmem:[%s12029_s5 + $0x58] sm:$0xff]  ;;  %v4314_v51 = vld [vmem:[%s12028_s4 + $0x68] sm:$0xff] }
 0x46a   :  { %v4242_v30 = vmax.f32 %v4170_v9, 0.0  ;;  %v3862_v61 = vadd.f32 %v3861_v43, %v3613_v0  ;;  %7064 = vrsqrt.f32 %v4385_v7  ;;  %v12508_v0 = vld [vmem:[#allocation38_spill] sm:$0xff]  ;;  %v4819_v9 = vld [vmem:[%s12030_s3 + $0x70] sm:$0xff] }
 0x46b   :  { %v4744_v43 = vsub.f32 %v4600_v26, %v4672_v54  ;;  %v5324_v33 = vmul.f32 %v12508_v0, %v4987_v17  ;;  %v4601_v54 = vld [vmem:[%s12029_s5 + $0x60] sm:$0xff] }
 0x46c   :  { %v4386_v36 = vadd.f32 1e-05, %v4242_v30  ;;  %v12507_v30 = vld [vmem:[#allocation37_spill] sm:$0xff] }
 0x46d   :  { %v5323_v42 = vmul.f32 %v12507_v30, %v4987_v17  ;;  %v4822_v30 = vld [vmem:[%s12030_s3 + $0x88] sm:$0xff] }
 0x46e   :  { %7066 = vrsqrt.f32 %v4386_v36 }
 0x46f   :  { %v5467_v17 = vadd.f32 %v5323_v42, %v4819_v9  ;;  %v12511_v42 = vld [vmem:[#allocation39_spill] sm:$0xff] }
 0x474   :  { %v7065_v35 = vpop.eup %7064 }
 0x478   :  { %v7067_v4 = vpop.eup %7066 }
 0x479   :  { %v4530_v13 = vmul.f32 %v7067_v4, %v4314_v51 }
 0x47e   :  { %3435 = vadd.xlane.f32.xlu0 %v3434_v41  ;;  %3431 = vadd.xlane.f32.xlu1 %v3430_v59  ;;  %v4313_v59 = vld [vmem:[%s12028_s4 + $0x60] sm:$0xff] }
 0x482   :  { %3867 = vadd.xlane.f32.xlu0 %v3866_v5  ;;  %3863 = vadd.xlane.f32.xlu1 %v3862_v61  ;;  %v4529_v5 = vmul.f32 %v7065_v35, %v4313_v59  ;;  %v4820_v61 = vld [vmem:[%s12030_s3 + $0x78] sm:$0xff] }
 0x483   :  { %v5468_v26 = vadd.f32 %v5324_v33, %v4820_v61  ;;  %v12512_v33 = vld [vmem:[#allocation40_spill] sm:$0xff] }
 0x484   :  { %v4673_v36 = vmul.f32 %v4529_v5, %v3953_v16 }
 0x491   :  { %v10079_v20 = vpop.xlane.xlu1 %3415  ;;  %v10081_v7 = vpop.xlane.xlu0 %3419 }
 0x492   :  { %12505 = vst [vmem:[#allocation97_spill] sm:$0xff] %v10079_v20  ;;  %12506 = vst [vmem:[#allocation100_spill] sm:$0xff] %v10081_v7 }
 0x493   :  { %5654 = vperm.xlu1 %6787, %v4744_v43   ;;  %v4745_v43 = vsub.f32 %v4601_v54, %v4673_v36 }
 0x495   :  { %v10088_v41 = vpop.xlane.xlu1 %3847  ;;  %v10099_v35 = vpop.xlane.xlu0 %3851 }
 0x496   :  { %12509 = vst [vmem:[#allocation101_spill] sm:$0xff] %v10088_v41  ;;  %12510 = vst [vmem:[#allocation106_spill] sm:$0xff] %v10099_v35 }
 0x497   :  { %5016 = vperm.xlu1 %6787, %v4530_v13  }
 0x498   :  { %5011 = vperm.xlu0 %6786, %v4529_v5   ;;  %v4821_v5 = vld [vmem:[%s12030_s3 + $0x80] sm:$0xff] }
 0x499   :  { %v5635_v59 = vpop.permute.xlu1 %5634 }
 0x49a   :  { %v5971_v4 = vadd.f32 %v5635_v59, %v5467_v17  ;;  %v5972_v51 = vadd.f32 %v5635_v59, %v5468_v26  ;;  %v12513_v59 = vld [vmem:[#allocation121_spill] sm:$0xff] }
 0x49c   :  { %5659 = vperm.xlu0 %6786, %v4745_v43   ;;  %6115 = vst [vmem:[%s12031_s6 + $0x70] sm:$0xff] %v5971_v4  ;;  %6116 = vst.msk [vmem:[%s12031_s6 + $0x78] sm:$0xff] %vm3220_vm1, %v5972_v51  ;;  %v3955_v43 = vmul.f32 0.0051020407, %v12513_v59  ;;  %v12514_v4 = vld [vmem:[#allocation124_spill] sm:$0xff] }
 0x49d   :  { %v4992_v16 = vpop.permute.xlu0 %4991  ;;  %v4027_v51 = vmul.f32 0.0051020407, %v12514_v4  ;;  %v12519_v4 = vld [vmem:[#allocation135_spill] sm:$0xff] }
 0x49e   :  { %v5325_v0 = vmul.f32 %v12511_v42, %v4992_v16  ;;  %v5326_v9 = vmul.f32 %v12512_v33, %v4992_v16  ;;  %v4099_v42 = vmul.f32 %v3955_v43, %v3955_v43  ;;  %v12515_v16 = vld [vmem:[#allocation125_spill] sm:$0xff] }
 0x4a0   :  { %v5469_v61 = vadd.f32 %v5325_v0, %v4821_v5  ;;  %v5470_v36 = vadd.f32 %v5326_v9, %v4822_v30  ;;  %v10126_v5 = vmul.f32 0.0051020407, %v12515_v16  ;;  %v4171_v30 = vsub.f32 %v4027_v51, %v4099_v42  ;;  %v12516_v0 = vld [vmem:[#allocation130_spill] sm:$0xff]  ;;  %v12517_v9 = vld [vmem:[#allocation136_spill] sm:$0xff] }
 0x4a1   :  { %v5640_v54 = vpop.permute.xlu0 %5639  ;;  %v4028_v33 = vmul.f32 0.0051020407, %v12516_v0  ;;  %v12520_v0 = vld [vmem:[#allocation131_spill] sm:$0xff] }
 0x4a2   :  { %v5973_v17 = vadd.f32 %v5640_v54, %v5469_v61  ;;  %v5974_v26 = vadd.f32 %v5640_v54, %v5470_v36  ;;  %v3620_v61 = vmul.f32 %v12517_v9, %v12517_v9  ;;  %v3441_v36 = vsel %vm3220_vm1, %v12517_v9, 0.0  ;;  %v12518_v54 = vld [vmem:[#allocation134_spill] sm:$0xff] }
 0x4a3   :  { %v4100_v59 = vmul.f32 %v10126_v5, %v10126_v5  ;;  %v3442_v16 = vadd.f32 %v12519_v4, %v3441_v36  ;;  %v4243_v51 = vmax.f32 %v4171_v30, 0.0  ;;  %v3619_v9 = vmul.f32 %v12519_v4, %v12519_v4 }
 0x4a4   :  { %6117 = vst [vmem:[%s12031_s6 + $0x80] sm:$0xff] %v5973_v17  ;;  %6118 = vst.msk [vmem:[%s12031_s6 + $0x88] sm:$0xff] %vm3220_vm1, %v5974_v26  ;;  %v3618_v17 = vmul.f32 %v12518_v54, %v12518_v54  ;;  %v3437_v26 = vsel %vm3220_vm1, %v12518_v54, 0.0  ;;  %v3873_v18 = vsel %vm3220_vm1, %v3620_v61, 0.0  ;;  %v3617_v54 = vmul.f32 %v12520_v0, %v12520_v0 }
 0x4a5   :  { %v4172_v42 = vsub.f32 %v4028_v33, %v4100_v59  ;;  %v3438_v25 = vadd.f32 %v12520_v0, %v3437_v26  ;;  %v3874_v20 = vadd.f32 %v3873_v18, %v3619_v9  ;;  %v4387_v35 = vadd.f32 1e-05, %v4243_v51  ;;  %v4997_v33 = vpop.permute.xlu1 %4996 }
 0x4a6   :  { %v3869_v41 = vsel %vm3220_vm1, %v3618_v17, 0.0  ;;  %v4674_v61 = vmul.f32 %v4530_v13, %v10051_v2  ;;  %v4602_v17 = vld [vmem:[%s12029_s5 + $0x68] sm:$0xff]  ;;  %v4316_v2 = vld [vmem:[%s12028_s4 + $0x78] sm:$0xff] }
 0x4a7   :  { %v4244_v7 = vmax.f32 %v4172_v42, 0.0  ;;  %v3870_v36 = vadd.f32 %v3869_v41, %v3617_v54  ;;  %7068 = vrsqrt.f32 %v4387_v35  ;;  %v12522_v54 = vld [vmem:[#allocation42_spill] sm:$0xff]  ;;  %v4823_v42 = vld [vmem:[%s12030_s3 + $0x90] sm:$0xff] }
 0x4a8   :  { %v4746_v41 = vsub.f32 %v4602_v17, %v4674_v61  ;;  %v5328_v59 = vmul.f32 %v12522_v54, %v4997_v33  ;;  %v4603_v61 = vld [vmem:[%s12029_s5 + $0x70] sm:$0xff] }
 0x4a9   :  { %v4388_v30 = vadd.f32 1e-05, %v4244_v7  ;;  %v12521_v7 = vld [vmem:[#allocation41_spill] sm:$0xff] }
 0x4aa   :  { %v5327_v13 = vmul.f32 %v12521_v7, %v4997_v33  ;;  %v4826_v7 = vld [vmem:[%s12030_s3 + $0xa8] sm:$0xff] }
 0x4ab   :  { %7070 = vrsqrt.f32 %v4388_v30 }
 0x4ac   :  { %v5471_v33 = vadd.f32 %v5327_v13, %v4823_v42  ;;  %v12523_v13 = vld [vmem:[#allocation43_spill] sm:$0xff] }
 0x4b1   :  { %v7069_v26 = vpop.eup %7068 }
 0x4b5   :  { %v7071_v9 = vpop.eup %7070 }
 0x4b6   :  { %v4532_v51 = vmul.f32 %v7071_v9, %v4316_v2 }
 0x4bb   :  { %3443 = vadd.xlane.f32.xlu0 %v3442_v16  ;;  %3439 = vadd.xlane.f32.xlu1 %v3438_v25  ;;  %v4315_v25 = vld [vmem:[%s12028_s4 + $0x70] sm:$0xff] }
 0x4bf   :  { %3875 = vadd.xlane.f32.xlu0 %v3874_v20  ;;  %3871 = vadd.xlane.f32.xlu1 %v3870_v36  ;;  %v4531_v20 = vmul.f32 %v7069_v26, %v4315_v25  ;;  %v4824_v36 = vld [vmem:[%s12030_s3 + $0x98] sm:$0xff] }
 0x4c0   :  { %v5472_v17 = vadd.f32 %v5328_v59, %v4824_v36  ;;  %v12524_v59 = vld [vmem:[#allocation44_spill] sm:$0xff] }
 0x4c1   :  { %v4675_v30 = vmul.f32 %v4531_v20, %v3955_v43 }
 0x4ce   :  { %v10154_v18 = vpop.xlane.xlu1 %3423  ;;  %v10156_v35 = vpop.xlane.xlu0 %3427 }
 0x4d0   :  { %5664 = vperm.xlu1 %6787, %v4746_v41   ;;  %v4747_v41 = vsub.f32 %v4603_v61, %v4675_v30 }
 0x4d2   :  { %v10163_v16 = vpop.xlane.xlu1 %3855  ;;  %v10174_v26 = vpop.xlane.xlu0 %3859 }
 0x4d4   :  { %5026 = vperm.xlu1 %6787, %v4532_v51  }
 0x4d5   :  { %5021 = vperm.xlu0 %6786, %v4531_v20   ;;  %v4825_v20 = vld [vmem:[%s12030_s3 + $0xa0] sm:$0xff] }
 0x4d6   :  { %v5645_v25 = vpop.permute.xlu1 %5644 }
 0x4d7   :  { %v5975_v9 = vadd.f32 %v5645_v25, %v5471_v33  ;;  %v5976_v2 = vadd.f32 %v5645_v25, %v5472_v17  ;;  %v12525_v25 = vld [vmem:[#allocation129_spill] sm:$0xff] }
 0x4d9   :  { %5669 = vperm.xlu0 %6786, %v4747_v41   ;;  %6119 = vst [vmem:[%s12031_s6 + $0x90] sm:$0xff] %v5975_v9  ;;  %6120 = vst.msk [vmem:[%s12031_s6 + $0x98] sm:$0xff] %vm3220_vm1, %v5976_v2  ;;  %v3957_v41 = vmul.f32 0.0051020407, %v12525_v25  ;;  %v12526_v9 = vld [vmem:[#allocation132_spill] sm:$0xff] }
 0x4da   :  { %v5002_v43 = vpop.permute.xlu0 %5001  ;;  %v4029_v2 = vmul.f32 0.0051020407, %v12526_v9 }
 0x4db   :  { %v5329_v54 = vmul.f32 %v12523_v13, %v5002_v43  ;;  %v5330_v42 = vmul.f32 %v12524_v59, %v5002_v43  ;;  %v4101_v13 = vmul.f32 %v3957_v41, %v3957_v41  ;;  %v12527_v43 = vld [vmem:[#allocation133_spill] sm:$0xff] }
 0x4dd   :  { %v5473_v36 = vadd.f32 %v5329_v54, %v4825_v20  ;;  %v5474_v30 = vadd.f32 %v5330_v42, %v4826_v7  ;;  %v10201_v20 = vmul.f32 0.0051020407, %v12527_v43  ;;  %v4173_v7 = vsub.f32 %v4029_v2, %v4101_v13  ;;  %v12528_v54 = vld [vmem:[#allocation138_spill] sm:$0xff] }
 0x4de   :  { %v5650_v61 = vpop.permute.xlu0 %5649  ;;  %v4030_v59 = vmul.f32 0.0051020407, %v12528_v54  ;;  %v3624_v42 = vmul.f32 %v9567_v56, %v9567_v56  ;;  %v3623_v43 = vmul.f32 %v9562_v60, %v9562_v60 }
 0x4df   :  { %v5977_v33 = vadd.f32 %v5650_v61, %v5473_v36  ;;  %v5978_v17 = vadd.f32 %v5650_v61, %v5474_v30  ;;  %v3449_v36 = vsel %vm3220_vm1, %v9567_v56, 0.0  ;;  %v3622_v30 = vmul.f32 %v9557_v62, %v9557_v62 }
 0x4e0   :  { %v3445_v61 = vsel %vm3220_vm1, %v9557_v62, 0.0  ;;  %v4245_v25 = vmax.f32 %v4173_v7, 0.0  ;;  %v3881_v13 = vsel %vm3220_vm1, %v3624_v42, 0.0  ;;  %v3621_v56 = vmul.f32 %v9550_v28, %v9550_v28 }
 0x4e1   :  { %6121 = vst [vmem:[%s12031_s6 + $0xa0] sm:$0xff] %v5977_v33  ;;  %6122 = vst.msk [vmem:[%s12031_s6 + $0xa8] sm:$0xff] %vm3220_vm1, %v5978_v17  ;;  %v4102_v33 = vmul.f32 %v10201_v20, %v10201_v20  ;;  %v3450_v17 = vadd.f32 %v9562_v60, %v3449_v36  ;;  %v3446_v2 = vadd.f32 %v9550_v28, %v3445_v61  ;;  %v3877_v54 = vsel %vm3220_vm1, %v3622_v30, 0.0  ;;  %v4604_v30 = vld [vmem:[%s12029_s5 + $0x78] sm:$0xff] }
 0x4e2   :  { %v3882_v62 = vadd.f32 %v3881_v13, %v3623_v43  ;;  %v4389_v4 = vadd.f32 1e-05, %v4245_v25  ;;  %v3878_v36 = vadd.f32 %v3877_v54, %v3621_v56  ;;  %v4676_v42 = vmul.f32 %v4532_v51, %v10126_v5  ;;  %v4318_v5 = vld [vmem:[%s12028_s4 + $0x88] sm:$0xff]  ;;  %v4827_v54 = vld [vmem:[%s12030_s3 + $0xb0] sm:$0xff] }
 0x4e3   :  { %v4174_v9 = vsub.f32 %v4030_v59, %v4102_v33  ;;  %v5007_v59 = vpop.permute.xlu1 %5006  ;;  %v4317_v33 = vld [vmem:[%s12028_s4 + $0x80] sm:$0xff] }
 0x4e4   :  { %7072 = vrsqrt.f32 %v4389_v4  ;;  %v4748_v56 = vsub.f32 %v4604_v30, %v4676_v42  ;;  %v4605_v42 = vld [vmem:[%s12029_s5 + $0x80] sm:$0xff] }
 0x4e5   :  { %v4246_v0 = vmax.f32 %v4174_v9, 0.0  ;;  %v12530_v9 = vld [vmem:[#allocation46_spill] sm:$0xff] }
 0x4e7   :  { %v4390_v7 = vadd.f32 1e-05, %v4246_v0  ;;  %v12529_v0 = vld [vmem:[#allocation45_spill] sm:$0xff] }
 0x4e8   :  { %v5331_v51 = vmul.f32 %v12529_v0, %v5007_v59  ;;  %v4830_v0 = vld [vmem:[%s12030_s3 + $0xc8] sm:$0xff] }
 0x4e9   :  { %7074 = vrsqrt.f32 %v4390_v7 }
 0x4ee   :  { %v7073_v61 = vpop.eup %7072 }
 0x4f3   :  { %v7075_v25 = vpop.eup %7074 }
 0x4f4   :  { %v4534_v43 = vmul.f32 %v7075_v25, %v4318_v5 }
 0x4f8   :  { %3451 = vadd.xlane.f32.xlu0 %v3450_v17  ;;  %3447 = vadd.xlane.f32.xlu1 %v3446_v2  ;;  %v5332_v2 = vmul.f32 %v12530_v9, %v5007_v59  ;;  %v5475_v59 = vadd.f32 %v5331_v51, %v4827_v54  ;;  %v12531_v51 = vld [vmem:[#allocation47_spill] sm:$0xff] }
 0x4fc   :  { %3883 = vadd.xlane.f32.xlu0 %v3882_v62  ;;  %3879 = vadd.xlane.f32.xlu1 %v3878_v36  ;;  %v4533_v62 = vmul.f32 %v7073_v61, %v4317_v33  ;;  %v4828_v36 = vld [vmem:[%s12030_s3 + $0xb8] sm:$0xff] }
 0x4fd   :  { %v5476_v30 = vadd.f32 %v5332_v2, %v4828_v36  ;;  %v12532_v2 = vld [vmem:[#allocation48_spill] sm:$0xff] }
 0x4fe   :  { %v4677_v7 = vmul.f32 %v4533_v62, %v3957_v41 }
 0x50b   :  { %v10229_v17 = vpop.xlane.xlu1 %3431  ;;  %v10231_v4 = vpop.xlane.xlu0 %3435 }
 0x50d   :  { %5674 = vperm.xlu1 %6787, %v4748_v56   ;;  %v4749_v56 = vsub.f32 %v4605_v42, %v4677_v7 }
 0x50f   :  { %v10238_v13 = vpop.xlane.xlu1 %3863  ;;  %v10249_v61 = vpop.xlane.xlu0 %3867 }
 0x511   :  { %5036 = vperm.xlu1 %6787, %v4534_v43  }
 0x512   :  { %5031 = vperm.xlu0 %6786, %v4533_v62   ;;  %v4829_v62 = vld [vmem:[%s12030_s3 + $0xc0] sm:$0xff] }
 0x513   :  { %v5655_v33 = vpop.permute.xlu1 %5654 }
 0x514   :  { %v5979_v25 = vadd.f32 %v5655_v33, %v5475_v59  ;;  %v5980_v5 = vadd.f32 %v5655_v33, %v5476_v30  ;;  %v12533_v33 = vld [vmem:[#allocation137_spill] sm:$0xff] }
 0x516   :  { %5679 = vperm.xlu0 %6786, %v4749_v56   ;;  %6123 = vst [vmem:[%s12031_s6 + $0xb0] sm:$0xff] %v5979_v25  ;;  %6124 = vst.msk [vmem:[%s12031_s6 + $0xb8] sm:$0xff] %vm3220_vm1, %v5980_v5  ;;  %v3959_v56 = vmul.f32 0.0051020407, %v12533_v33  ;;  %v4031_v25 = vmul.f32 0.0051020407, %v9552_v34  ;;  %v3627_v33 = vmul.f32 %v9588_v48, %v9588_v48 }
 0x517   :  { %v5012_v41 = vpop.permute.xlu0 %5011 }
 0x518   :  { %v5333_v9 = vmul.f32 %v12531_v51, %v5012_v41  ;;  %v5334_v54 = vmul.f32 %v12532_v2, %v5012_v41  ;;  %v4103_v5 = vmul.f32 %v3959_v56, %v3959_v56  ;;  %v12534_v41 = vld [vmem:[#allocation140_spill] sm:$0xff]  ;;  %v4032_v51 = vmul.f32 0.0051020407, %v9571_v50 }
 0x519   :  { %v3457_v2 = vsel %vm3220_vm1, %v9591_v19, 0.0 }
 0x51a   :  { %v5477_v36 = vadd.f32 %v5333_v9, %v4829_v62  ;;  %v5478_v7 = vadd.f32 %v5334_v54, %v4830_v0  ;;  %v10276_v62 = vmul.f32 0.0051020407, %v12534_v41  ;;  %v4175_v0 = vsub.f32 %v4031_v25, %v4103_v5 }
 0x51b   :  { %v5660_v42 = vpop.permute.xlu0 %5659  ;;  %v3628_v9 = vmul.f32 %v9591_v19, %v9591_v19  ;;  %v3626_v54 = vmul.f32 %v9585_v15, %v9585_v15  ;;  %v3625_v5 = vmul.f32 %v9578_v29, %v9578_v29 }
 0x51c   :  { %v5981_v59 = vadd.f32 %v5660_v42, %v5477_v36  ;;  %v5982_v30 = vadd.f32 %v5660_v42, %v5478_v7  ;;  %v3453_v36 = vsel %vm3220_vm1, %v9585_v15, 0.0  ;;  %v4104_v34 = vmul.f32 %v10276_v62, %v10276_v62 }
 0x51d   :  { %v3458_v7 = vadd.f32 %v9588_v48, %v3457_v2  ;;  %v4247_v42 = vmax.f32 %v4175_v0, 0.0  ;;  %v3454_v50 = vadd.f32 %v9578_v29, %v3453_v36  ;;  %v3885_v25 = vsel %vm3220_vm1, %v3626_v54, 0.0  ;;  %v4606_v54 = vld [vmem:[%s12029_s5 + $0x88] sm:$0xff] }
 0x51e   :  { %6125 = vst [vmem:[%s12031_s6 + $0xc0] sm:$0xff] %v5981_v59  ;;  %6126 = vst.msk [vmem:[%s12031_s6 + $0xc8] sm:$0xff] %vm3220_vm1, %v5982_v30  ;;  %v4176_v59 = vsub.f32 %v4032_v51, %v4104_v34  ;;  %v3889_v30 = vsel %vm3220_vm1, %v3628_v9, 0.0  ;;  %v3886_v2 = vadd.f32 %v3885_v25, %v3625_v5  ;;  %v5017_v51 = vpop.permute.xlu1 %5016  ;;  %v4678_v9 = vmul.f32 %v4534_v43, %v10201_v20  ;;  %v4319_v34 = vld [vmem:[%s12028_s4 + $0x90] sm:$0xff]  ;;  %v12535_v20 = vld [vmem:[#allocation49_spill] sm:$0xff] }
 0x51f   :  { %v3890_v41 = vadd.f32 %v3889_v30, %v3627_v33  ;;  %v4391_v19 = vadd.f32 1e-05, %v4247_v42  ;;  %v5335_v43 = vmul.f32 %v12535_v20, %v5017_v51  ;;  %v12536_v30 = vld [vmem:[#allocation50_spill] sm:$0xff]  ;;  %v4834_v20 = vld [vmem:[%s12030_s3 + $0xe8] sm:$0xff] }
 0x520   :  { %v4248_v15 = vmax.f32 %v4176_v59, 0.0  ;;  %v4750_v42 = vsub.f32 %v4606_v54, %v4678_v9  ;;  %v5336_v33 = vmul.f32 %v12536_v30, %v5017_v51  ;;  %v4607_v9 = vld [vmem:[%s12029_s5 + $0x90] sm:$0xff]  ;;  %v12596_v48 = vld [vmem:[#allocation191_spill] sm:$0xff] }
 0x521   :  { %7076 = vrsqrt.f32 %v4391_v19  ;;  %v10767_v29 = vmul.f32 0.0051020407, %v12596_v48 }
 0x522   :  { %v4392_v0 = vadd.f32 1e-05, %v4248_v15  ;;  %v4320_v15 = vld [vmem:[%s12028_s4 + $0x98] sm:$0xff] }
 0x524   :  { %7078 = vrsqrt.f32 %v4392_v0 }
 0x52b   :  { %v7077_v36 = vpop.eup %7076 }
 0x52c   :  { %v4535_v59 = vmul.f32 %v7077_v36, %v4319_v34 }
 0x52e   :  { %v4679_v0 = vmul.f32 %v4535_v59, %v3959_v56 }
 0x535   :  { %3459 = vadd.xlane.f32.xlu0 %v3458_v7  ;;  %3455 = vadd.xlane.f32.xlu1 %v3454_v50  ;;  %v7079_v50 = vpop.eup %7078 }
 0x536   :  { %v4536_v5 = vmul.f32 %v7079_v50, %v4320_v15 }
 0x539   :  { %3891 = vadd.xlane.f32.xlu0 %v3890_v41  ;;  %3887 = vadd.xlane.f32.xlu1 %v3886_v2  ;;  %v4831_v41 = vld [vmem:[%s12030_s3 + $0xd0] sm:$0xff]  ;;  %v4832_v2 = vld [vmem:[%s12030_s3 + $0xd8] sm:$0xff] }
 0x53a   :  { %v5479_v51 = vadd.f32 %v5335_v43, %v4831_v41  ;;  %v5480_v54 = vadd.f32 %v5336_v33, %v4832_v2  ;;  %v12537_v43 = vld [vmem:[#allocation51_spill] sm:$0xff]  ;;  %v12538_v33 = vld [vmem:[#allocation52_spill] sm:$0xff] }
 0x548   :  { %v10304_v7 = vpop.xlane.xlu1 %3439  ;;  %v10306_v19 = vpop.xlane.xlu0 %3443 }
 0x54a   :  { %5684 = vperm.xlu1 %6787, %v4750_v42   ;;  %v4751_v42 = vsub.f32 %v4607_v9, %v4679_v0 }
 0x54c   :  { %v10313_v25 = vpop.xlane.xlu1 %3871  ;;  %v10324_v36 = vpop.xlane.xlu0 %3875 }
 0x54e   :  { %5046 = vperm.xlu1 %6787, %v4536_v5  }
 0x54f   :  { %5041 = vperm.xlu0 %6786, %v4535_v59   ;;  %v4833_v59 = vld [vmem:[%s12030_s3 + $0xe0] sm:$0xff] }
 0x550   :  { %v5665_v34 = vpop.permute.xlu1 %5664 }
 0x551   :  { %v5983_v50 = vadd.f32 %v5665_v34, %v5479_v51  ;;  %v5984_v15 = vadd.f32 %v5665_v34, %v5480_v54  ;;  %v3961_v34 = vmul.f32 0.0051020407, %v9569_v14  ;;  %v3461_v14 = vsel %vm3220_vm1, %v9610_v52, 0.0 }
 0x553   :  { %5689 = vperm.xlu0 %6786, %v4751_v42   ;;  %6127 = vst [vmem:[%s12031_s6 + $0xd0] sm:$0xff] %v5983_v50  ;;  %6128 = vst.msk [vmem:[%s12031_s6 + $0xd8] sm:$0xff] %vm3220_vm1, %v5984_v15  ;;  %v4033_v42 = vmul.f32 0.0051020407, %v9580_v3  ;;  %v4105_v50 = vmul.f32 %v3961_v34, %v3961_v34  ;;  %v12539_v15 = vld [vmem:[#allocation145_spill] sm:$0xff] }
 0x554   :  { %v5022_v56 = vpop.permute.xlu0 %5021 }
 0x555   :  { %v5337_v30 = vmul.f32 %v12537_v43, %v5022_v56  ;;  %v5338_v41 = vmul.f32 %v12538_v33, %v5022_v56  ;;  %v10351_v56 = vmul.f32 0.0051020407, %v12539_v15  ;;  %v3632_v43 = vmul.f32 %v9616_v40, %v9616_v40 }
 0x556   :  { %v3630_v33 = vmul.f32 %v9610_v52, %v9610_v52 }
 0x557   :  { %v5481_v2 = vadd.f32 %v5337_v30, %v4833_v59  ;;  %v5482_v0 = vadd.f32 %v5338_v41, %v4834_v20  ;;  %v4177_v59 = vsub.f32 %v4033_v42, %v4105_v50  ;;  %v4034_v20 = vmul.f32 0.0051020407, %v9595_v23 }
 0x558   :  { %v5670_v9 = vpop.permute.xlu0 %5669  ;;  %v3465_v30 = vsel %vm3220_vm1, %v9616_v40, 0.0  ;;  %v4106_v3 = vmul.f32 %v10351_v56, %v10351_v56  ;;  %v3462_v23 = vadd.f32 %v9600_v47, %v3461_v14  ;;  %v3629_v42 = vmul.f32 %v9600_v47, %v9600_v47 }
 0x559   :  { %v5985_v51 = vadd.f32 %v5670_v9, %v5481_v2  ;;  %v5986_v54 = vadd.f32 %v5670_v9, %v5482_v0  ;;  %v3466_v41 = vadd.f32 %v9613_v1, %v3465_v30  ;;  %v4249_v2 = vmax.f32 %v4177_v59, 0.0 }
 0x55a   :  { %v4178_v0 = vsub.f32 %v4034_v20, %v4106_v3  ;;  %v3897_v9 = vsel %vm3220_vm1, %v3632_v43, 0.0  ;;  %v5027_v20 = vpop.permute.xlu1 %5026  ;;  %v4680_v43 = vmul.f32 %v4536_v5, %v10276_v62  ;;  %v4321_v3 = vld [vmem:[%s12028_s4 + $0xa0] sm:$0xff]  ;;  %v12540_v62 = vld [vmem:[#allocation53_spill] sm:$0xff] }
 0x55b   :  { %6129 = vst [vmem:[%s12031_s6 + $0xe0] sm:$0xff] %v5985_v51  ;;  %6130 = vst.msk [vmem:[%s12031_s6 + $0xe8] sm:$0xff] %vm3220_vm1, %v5986_v54  ;;  %v3631_v51 = vmul.f32 %v9613_v1, %v9613_v1  ;;  %v3893_v54 = vsel %vm3220_vm1, %v3630_v33, 0.0  ;;  %v4393_v15 = vadd.f32 1e-05, %v4249_v2  ;;  %v4608_v33 = vld [vmem:[%s12029_s5 + $0x98] sm:$0xff]  ;;  %v5339_v5 = vmul.f32 %v12540_v62, %v5027_v20 }
 0x55c   :  { %v4250_v40 = vmax.f32 %v4178_v0, 0.0  ;;  %v3894_v30 = vadd.f32 %v3893_v54, %v3629_v42  ;;  %v4752_v2 = vsub.f32 %v4608_v33, %v4680_v43  ;;  %v4609_v43 = vld [vmem:[%s12029_s5 + $0xa0] sm:$0xff]  ;;  %v4838_v62 = vld [vmem:[%s12030_s3 + $0x108] sm:$0xff]  ;;  %v12595_v1 = vld [vmem:[#allocation185_spill] sm:$0xff] }
 0x55d   :  { %v3898_v50 = vadd.f32 %v3897_v9, %v3631_v51  ;;  %7080 = vrsqrt.f32 %v4393_v15  ;;  %v12541_v51 = vld [vmem:[#allocation54_spill] sm:$0xff]  ;;  %v4835_v15 = vld [vmem:[%s12030_s3 + $0xf0] sm:$0xff] }
 0x55e   :  { %v4394_v59 = vadd.f32 1e-05, %v4250_v40  ;;  %v4322_v40 = vld [vmem:[%s12028_s4 + $0xa8] sm:$0xff]  ;;  %v5340_v54 = vmul.f32 %v12541_v51, %v5027_v20  ;;  %v5483_v20 = vadd.f32 %v5339_v5, %v4835_v15 }
 0x55f   :  { %v12542_v5 = vld [vmem:[#allocation55_spill] sm:$0xff] }
 0x560   :  { %7082 = vrsqrt.f32 %v4394_v59 }
 0x567   :  { %v7081_v14 = vpop.eup %7080 }
 0x568   :  { %v4537_v0 = vmul.f32 %v7081_v14, %v4321_v3 }
 0x56a   :  { %v4681_v59 = vmul.f32 %v4537_v0, %v3961_v34 }
 0x572   :  { %3467 = vadd.xlane.f32.xlu0 %v3466_v41  ;;  %3463 = vadd.xlane.f32.xlu1 %v3462_v23  ;;  %v7083_v23 = vpop.eup %7082 }
 0x576   :  { %3899 = vadd.xlane.f32.xlu0 %v3898_v50  ;;  %3895 = vadd.xlane.f32.xlu1 %v3894_v30  ;;  %v4538_v50 = vmul.f32 %v7083_v23, %v4322_v40  ;;  %v4836_v30 = vld [vmem:[%s12030_s3 + $0xf8] sm:$0xff] }
 0x577   :  { %v5484_v33 = vadd.f32 %v5340_v54, %v4836_v30  ;;  %v12543_v54 = vld [vmem:[#allocation56_spill] sm:$0xff] }
 0x585   :  { %v10379_v41 = vpop.xlane.xlu1 %3447  ;;  %v10381_v9 = vpop.xlane.xlu0 %3451 }
 0x587   :  { %5694 = vperm.xlu1 %6787, %v4752_v2   ;;  %v4753_v2 = vsub.f32 %v4609_v43, %v4681_v59 }
 0x589   :  { %v10388_v42 = vpop.xlane.xlu1 %3879  ;;  %v10399_v14 = vpop.xlane.xlu0 %3883 }
 0x58b   :  { %5056 = vperm.xlu1 %6787, %v4538_v50  }
 0x58c   :  { %5051 = vperm.xlu0 %6786, %v4537_v0   ;;  %v4837_v0 = vld [vmem:[%s12030_s3 + $0x100] sm:$0xff] }
 0x58d   :  { %v5675_v3 = vpop.permute.xlu1 %5674 }
 0x58e   :  { %v5987_v23 = vadd.f32 %v5675_v3, %v5483_v20  ;;  %v5988_v40 = vadd.f32 %v5675_v3, %v5484_v33  ;;  %v3963_v3 = vmul.f32 0.0051020407, %v9593_v44  ;;  %v3469_v44 = vsel %vm3220_vm1, %v9636_v31, 0.0 }
 0x590   :  { %5699 = vperm.xlu0 %6786, %v4753_v2   ;;  %6131 = vst [vmem:[%s12031_s6 + $0xf0] sm:$0xff] %v5987_v23  ;;  %6132 = vst.msk [vmem:[%s12031_s6 + $0xf8] sm:$0xff] %vm3220_vm1, %v5988_v40  ;;  %v4035_v2 = vmul.f32 0.0051020407, %v9602_v46  ;;  %v4107_v23 = vmul.f32 %v3963_v3, %v3963_v3  ;;  %v12544_v40 = vld [vmem:[#allocation150_spill] sm:$0xff] }
 0x591   :  { %v5032_v34 = vpop.permute.xlu0 %5031 }
 0x592   :  { %v5341_v51 = vmul.f32 %v12542_v5, %v5032_v34  ;;  %v5342_v15 = vmul.f32 %v12543_v54, %v5032_v34  ;;  %v10426_v34 = vmul.f32 0.0051020407, %v12544_v40  ;;  %v3636_v5 = vmul.f32 %v9642_v55, %v9642_v55 }
 0x593   :  { %v3634_v54 = vmul.f32 %v9636_v31, %v9636_v31 }
 0x594   :  { %v5485_v30 = vadd.f32 %v5341_v51, %v4837_v0  ;;  %v5486_v59 = vadd.f32 %v5342_v15, %v4838_v62  ;;  %v4179_v0 = vsub.f32 %v4035_v2, %v4107_v23  ;;  %v4036_v62 = vmul.f32 0.0051020407, %v9623_v8 }
 0x595   :  { %v5680_v43 = vpop.permute.xlu0 %5679  ;;  %v3473_v51 = vsel %vm3220_vm1, %v9642_v55, 0.0  ;;  %v4108_v46 = vmul.f32 %v10426_v34, %v10426_v34  ;;  %v3470_v8 = vadd.f32 %v9626_v39, %v3469_v44  ;;  %v3633_v2 = vmul.f32 %v9626_v39, %v9626_v39  ;;  %v12594_v39 = vld [vmem:[#allocation186_spill] sm:$0xff] }
 0x596   :  { %v5989_v20 = vadd.f32 %v5680_v43, %v5485_v30  ;;  %v5990_v33 = vadd.f32 %v5680_v43, %v5486_v59  ;;  %v3474_v15 = vadd.f32 %v9639_v22, %v3473_v51  ;;  %v4251_v30 = vmax.f32 %v4179_v0, 0.0 }
 0x597   :  { %v4180_v59 = vsub.f32 %v4036_v62, %v4108_v46  ;;  %v3905_v43 = vsel %vm3220_vm1, %v3636_v5, 0.0  ;;  %v5037_v62 = vpop.permute.xlu1 %5036  ;;  %v4682_v5 = vmul.f32 %v4538_v50, %v10351_v56  ;;  %v4323_v46 = vld [vmem:[%s12028_s4 + $0xb0] sm:$0xff]  ;;  %v12545_v56 = vld [vmem:[#allocation57_spill] sm:$0xff] }
 0x598   :  { %6133 = vst [vmem:[%s12031_s6 + $0x100] sm:$0xff] %v5989_v20  ;;  %6134 = vst.msk [vmem:[%s12031_s6 + $0x108] sm:$0xff] %vm3220_vm1, %v5990_v33  ;;  %v3635_v20 = vmul.f32 %v9639_v22, %v9639_v22  ;;  %v3901_v33 = vsel %vm3220_vm1, %v3634_v54, 0.0  ;;  %v4395_v40 = vadd.f32 1e-05, %v4251_v30  ;;  %v4610_v54 = vld [vmem:[%s12029_s5 + $0xa8] sm:$0xff]  ;;  %v5343_v50 = vmul.f32 %v12545_v56, %v5037_v62 }
 0x599   :  { %v4252_v55 = vmax.f32 %v4180_v59, 0.0  ;;  %v3902_v51 = vadd.f32 %v3901_v33, %v3633_v2  ;;  %v4754_v30 = vsub.f32 %v4610_v54, %v4682_v5  ;;  %v4611_v5 = vld [vmem:[%s12029_s5 + $0xb0] sm:$0xff]  ;;  %v4842_v56 = vld [vmem:[%s12030_s3 + $0x128] sm:$0xff] }
 0x59a   :  { %v3906_v23 = vadd.f32 %v3905_v43, %v3635_v20  ;;  %7084 = vrsqrt.f32 %v4395_v40  ;;  %v12546_v20 = vld [vmem:[#allocation58_spill] sm:$0xff]  ;;  %v4839_v40 = vld [vmem:[%s12030_s3 + $0x110] sm:$0xff] }
 0x59b   :  { %v4396_v0 = vadd.f32 1e-05, %v4252_v55  ;;  %v4324_v55 = vld [vmem:[%s12028_s4 + $0xb8] sm:$0xff]  ;;  %v5344_v33 = vmul.f32 %v12546_v20, %v5037_v62  ;;  %v5487_v62 = vadd.f32 %v5343_v50, %v4839_v40  ;;  %v12548_v50 = vld [vmem:[#allocation59_spill] sm:$0xff] }
 0x59d   :  { %7086 = vrsqrt.f32 %v4396_v0 }
 0x5a4   :  { %v7085_v44 = vpop.eup %7084 }
 0x5a5   :  { %v4539_v59 = vmul.f32 %v7085_v44, %v4323_v46 }
 0x5a7   :  { %v4683_v0 = vmul.f32 %v4539_v59, %v3963_v3 }
 0x5af   :  { %3475 = vadd.xlane.f32.xlu0 %v3474_v15  ;;  %3471 = vadd.xlane.f32.xlu1 %v3470_v8  ;;  %v7087_v8 = vpop.eup %7086 }
 0x5b3   :  { %3907 = vadd.xlane.f32.xlu0 %v3906_v23  ;;  %3903 = vadd.xlane.f32.xlu1 %v3902_v51  ;;  %v4540_v23 = vmul.f32 %v7087_v8, %v4324_v55  ;;  %v4840_v51 = vld [vmem:[%s12030_s3 + $0x118] sm:$0xff] }
 0x5b4   :  { %v5488_v54 = vadd.f32 %v5344_v33, %v4840_v51  ;;  %v12549_v33 = vld [vmem:[#allocation60_spill] sm:$0xff] }
 0x5c2   :  { %v10454_v15 = vpop.xlane.xlu1 %3455  ;;  %v10456_v43 = vpop.xlane.xlu0 %3459 }
 0x5c4   :  { %5704 = vperm.xlu1 %6787, %v4754_v30   ;;  %v4755_v30 = vsub.f32 %v4611_v5, %v4683_v0 }
 0x5c6   :  { %v10463_v2 = vpop.xlane.xlu1 %3887  ;;  %v10474_v44 = vpop.xlane.xlu0 %3891 }
 0x5c7   :  { %12547 = vst [vmem:[#allocation29_spill] sm:$0xff] %v10463_v2 }
 0x5c8   :  { %5066 = vperm.xlu1 %6787, %v4540_v23  }
 0x5c9   :  { %5061 = vperm.xlu0 %6786, %v4539_v59   ;;  %v4841_v59 = vld [vmem:[%s12030_s3 + $0x120] sm:$0xff] }
 0x5ca   :  { %v5685_v46 = vpop.permute.xlu1 %5684 }
 0x5cb   :  { %v5991_v8 = vadd.f32 %v5685_v46, %v5487_v62  ;;  %v5992_v55 = vadd.f32 %v5685_v46, %v5488_v54  ;;  %v12550_v46 = vld [vmem:[#allocation154_spill] sm:$0xff] }
 0x5cd   :  { %5709 = vperm.xlu0 %6786, %v4755_v30   ;;  %6135 = vst [vmem:[%s12031_s6 + $0x110] sm:$0xff] %v5991_v8  ;;  %6136 = vst.msk [vmem:[%s12031_s6 + $0x118] sm:$0xff] %vm3220_vm1, %v5992_v55  ;;  %v3965_v30 = vmul.f32 0.0051020407, %v12550_v46  ;;  %v12551_v8 = vld [vmem:[#allocation156_spill] sm:$0xff] }
 0x5ce   :  { %v5042_v3 = vpop.permute.xlu0 %5041  ;;  %v4037_v55 = vmul.f32 0.0051020407, %v12551_v8 }
 0x5cf   :  { %v5345_v20 = vmul.f32 %v12548_v50, %v5042_v3  ;;  %v5346_v40 = vmul.f32 %v12549_v33, %v5042_v3  ;;  %v4109_v50 = vmul.f32 %v3965_v30, %v3965_v30  ;;  %v12552_v3 = vld [vmem:[#allocation157_spill] sm:$0xff] }
 0x5d1   :  { %v5489_v51 = vadd.f32 %v5345_v20, %v4841_v59  ;;  %v5490_v0 = vadd.f32 %v5346_v40, %v4842_v56  ;;  %v10501_v59 = vmul.f32 0.0051020407, %v12552_v3  ;;  %v4181_v56 = vsub.f32 %v4037_v55, %v4109_v50  ;;  %v12553_v20 = vld [vmem:[#allocation162_spill] sm:$0xff] }
 0x5d2   :  { %v5690_v5 = vpop.permute.xlu0 %5689  ;;  %v4038_v33 = vmul.f32 0.0051020407, %v12553_v20  ;;  %v3640_v40 = vmul.f32 %v9669_v38, %v9669_v38  ;;  %v3639_v3 = vmul.f32 %v9666_v10, %v9666_v10 }
 0x5d3   :  { %v5993_v62 = vadd.f32 %v5690_v5, %v5489_v51  ;;  %v5994_v54 = vadd.f32 %v5690_v5, %v5490_v0  ;;  %v3481_v51 = vsel %vm3220_vm1, %v9669_v38, 0.0  ;;  %v3638_v0 = vmul.f32 %v9663_v11, %v9663_v11 }
 0x5d4   :  { %v3477_v5 = vsel %vm3220_vm1, %v9663_v11, 0.0  ;;  %v4253_v46 = vmax.f32 %v4181_v56, 0.0  ;;  %v3913_v50 = vsel %vm3220_vm1, %v3640_v40, 0.0  ;;  %v3637_v38 = vmul.f32 %v9656_v12, %v9656_v12 }
 0x5d5   :  { %6137 = vst [vmem:[%s12031_s6 + $0x120] sm:$0xff] %v5993_v62  ;;  %6138 = vst.msk [vmem:[%s12031_s6 + $0x128] sm:$0xff] %vm3220_vm1, %v5994_v54  ;;  %v4110_v62 = vmul.f32 %v10501_v59, %v10501_v59  ;;  %v3482_v54 = vadd.f32 %v9666_v10, %v3481_v51  ;;  %v3478_v55 = vadd.f32 %v9656_v12, %v3477_v5  ;;  %v3909_v20 = vsel %vm3220_vm1, %v3638_v0, 0.0  ;;  %v4612_v0 = vld [vmem:[%s12029_s5 + $0xb8] sm:$0xff] }
 0x5d6   :  { %v3914_v11 = vadd.f32 %v3913_v50, %v3639_v3  ;;  %v4397_v22 = vadd.f32 1e-05, %v4253_v46  ;;  %v3910_v51 = vadd.f32 %v3909_v20, %v3637_v38  ;;  %v4684_v40 = vmul.f32 %v4540_v23, %v10426_v34  ;;  %v12556_v34 = vld [vmem:[#allocation61_spill] sm:$0xff]  ;;  %v4843_v20 = vld [vmem:[%s12030_s3 + $0x130] sm:$0xff] }
 0x5d7   :  { %v4182_v8 = vsub.f32 %v4038_v33, %v4110_v62  ;;  %v5047_v33 = vpop.permute.xlu1 %5046  ;;  %v4325_v62 = vld [vmem:[%s12028_s4 + $0xc0] sm:$0xff] }
 0x5d8   :  { %7088 = vrsqrt.f32 %v4397_v22  ;;  %v4756_v38 = vsub.f32 %v4612_v0, %v4684_v40  ;;  %v5347_v23 = vmul.f32 %v12556_v34, %v5047_v33  ;;  %v4613_v40 = vld [vmem:[%s12029_s5 + $0xc0] sm:$0xff]  ;;  %v4846_v34 = vld [vmem:[%s12030_s3 + $0x148] sm:$0xff] }
 0x5d9   :  { %v4254_v31 = vmax.f32 %v4182_v8, 0.0  ;;  %v12557_v8 = vld [vmem:[#allocation62_spill] sm:$0xff] }
 0x5db   :  { %v4398_v56 = vadd.f32 1e-05, %v4254_v31  ;;  %v4326_v31 = vld [vmem:[%s12028_s4 + $0xc8] sm:$0xff] }
 0x5dd   :  { %7090 = vrsqrt.f32 %v4398_v56 }
 0x5e2   :  { %v7089_v5 = vpop.eup %7088 }
 0x5e7   :  { %v7091_v46 = vpop.eup %7090 }
 0x5e8   :  { %v4542_v3 = vmul.f32 %v7091_v46, %v4326_v31 }
 0x5ec   :  { %3483 = vadd.xlane.f32.xlu0 %v3482_v54  ;;  %3479 = vadd.xlane.f32.xlu1 %v3478_v55  ;;  %v5348_v55 = vmul.f32 %v12557_v8, %v5047_v33  ;;  %v5491_v33 = vadd.f32 %v5347_v23, %v4843_v20  ;;  %v12560_v23 = vld [vmem:[#allocation63_spill] sm:$0xff] }
 0x5f0   :  { %3915 = vadd.xlane.f32.xlu0 %v3914_v11  ;;  %3911 = vadd.xlane.f32.xlu1 %v3910_v51  ;;  %v4541_v11 = vmul.f32 %v7089_v5, %v4325_v62  ;;  %v4844_v51 = vld [vmem:[%s12030_s3 + $0x138] sm:$0xff] }
 0x5f1   :  { %v5492_v0 = vadd.f32 %v5348_v55, %v4844_v51  ;;  %v12561_v55 = vld [vmem:[#allocation64_spill] sm:$0xff] }
 0x5f2   :  { %v4685_v56 = vmul.f32 %v4541_v11, %v3965_v30 }
 0x5ff   :  { %v10529_v54 = vpop.xlane.xlu1 %3463  ;;  %v10531_v22 = vpop.xlane.xlu0 %3467 }
 0x600   :  { %12554 = vst [vmem:[#allocation30_spill] sm:$0xff] %v10529_v54  ;;  %12555 = vst [vmem:[#allocation31_spill] sm:$0xff] %v10531_v22 }
 0x601   :  { %5714 = vperm.xlu1 %6787, %v4756_v38   ;;  %v4757_v38 = vsub.f32 %v4613_v40, %v4685_v56 }
 0x603   :  { %v10538_v50 = vpop.xlane.xlu1 %3895  ;;  %v10549_v5 = vpop.xlane.xlu0 %3899 }
 0x604   :  { %12558 = vst [vmem:[#allocation32_spill] sm:$0xff] %v10538_v50  ;;  %12559 = vst [vmem:[#allocation105_spill] sm:$0xff] %v10549_v5  ;;  %v12614_v50 = vld [vmem:[#allocation206_spill] sm:$0xff] }
 0x605   :  { %5076 = vperm.xlu1 %6787, %v4542_v3   ;;  %v10847_v5 = vmul.f32 0.0051020407, %v12614_v50 }
 0x606   :  { %5071 = vperm.xlu0 %6786, %v4541_v11   ;;  %v4845_v11 = vld [vmem:[%s12030_s3 + $0x140] sm:$0xff] }
 0x607   :  { %v5695_v62 = vpop.permute.xlu1 %5694 }
 0x608   :  { %v5995_v46 = vadd.f32 %v5695_v62, %v5491_v33  ;;  %v5996_v31 = vadd.f32 %v5695_v62, %v5492_v0  ;;  %v12562_v62 = vld [vmem:[#allocation161_spill] sm:$0xff] }
 0x60a   :  { %5719 = vperm.xlu0 %6786, %v4757_v38   ;;  %6139 = vst [vmem:[%s12031_s6 + $0x130] sm:$0xff] %v5995_v46  ;;  %6140 = vst.msk [vmem:[%s12031_s6 + $0x138] sm:$0xff] %vm3220_vm1, %v5996_v31  ;;  %v3967_v38 = vmul.f32 0.0051020407, %v12562_v62  ;;  %v4039_v46 = vmul.f32 0.0051020407, %v9658_v53  ;;  %v3643_v62 = vmul.f32 %v9686_v37, %v9686_v37 }
 0x60b   :  { %v5052_v30 = vpop.permute.xlu0 %5051 }
 0x60c   :  { %v5349_v8 = vmul.f32 %v12560_v23, %v5052_v30  ;;  %v5350_v20 = vmul.f32 %v12561_v55, %v5052_v30  ;;  %v4111_v31 = vmul.f32 %v3967_v38, %v3967_v38  ;;  %v12563_v30 = vld [vmem:[#allocation164_spill] sm:$0xff]  ;;  %v4040_v23 = vmul.f32 0.0051020407, %v9673_v45 }
 0x60d   :  { %v3489_v55 = vsel %vm3220_vm1, %v9689_v58, 0.0 }
 0x60e   :  { %v5493_v51 = vadd.f32 %v5349_v8, %v4845_v11  ;;  %v5494_v56 = vadd.f32 %v5350_v20, %v4846_v34  ;;  %v10576_v11 = vmul.f32 0.0051020407, %v12563_v30  ;;  %v4183_v34 = vsub.f32 %v4039_v46, %v4111_v31 }
 0x60f   :  { %v5700_v40 = vpop.permute.xlu0 %5699  ;;  %v3644_v8 = vmul.f32 %v9689_v58, %v9689_v58  ;;  %v3642_v20 = vmul.f32 %v9683_v49, %v9683_v49  ;;  %v3641_v31 = vmul.f32 %v9676_v27, %v9676_v27 }
 0x610   :  { %v5997_v33 = vadd.f32 %v5700_v40, %v5493_v51  ;;  %v5998_v0 = vadd.f32 %v5700_v40, %v5494_v56  ;;  %v3485_v51 = vsel %vm3220_vm1, %v9683_v49, 0.0  ;;  %v4112_v53 = vmul.f32 %v10576_v11, %v10576_v11 }
 0x611   :  { %v3490_v56 = vadd.f32 %v9686_v37, %v3489_v55  ;;  %v4255_v40 = vmax.f32 %v4183_v34, 0.0  ;;  %v3486_v45 = vadd.f32 %v9676_v27, %v3485_v51  ;;  %v3917_v46 = vsel %vm3220_vm1, %v3642_v20, 0.0  ;;  %v4614_v20 = vld [vmem:[%s12029_s5 + $0xc8] sm:$0xff] }
 0x612   :  { %6141 = vst [vmem:[%s12031_s6 + $0x140] sm:$0xff] %v5997_v33  ;;  %6142 = vst.msk [vmem:[%s12031_s6 + $0x148] sm:$0xff] %vm3220_vm1, %v5998_v0  ;;  %v4184_v33 = vsub.f32 %v4040_v23, %v4112_v53  ;;  %v3921_v0 = vsel %vm3220_vm1, %v3644_v8, 0.0  ;;  %v3918_v55 = vadd.f32 %v3917_v46, %v3641_v31  ;;  %v5057_v23 = vpop.permute.xlu1 %5056  ;;  %v4686_v8 = vmul.f32 %v4542_v3, %v10501_v59  ;;  %v4327_v53 = vld [vmem:[%s12028_s4 + $0xd0] sm:$0xff]  ;;  %v12566_v59 = vld [vmem:[#allocation65_spill] sm:$0xff] }
 0x613   :  { %v3922_v30 = vadd.f32 %v3921_v0, %v3643_v62  ;;  %v4399_v58 = vadd.f32 1e-05, %v4255_v40  ;;  %v5351_v3 = vmul.f32 %v12566_v59, %v5057_v23  ;;  %v12567_v0 = vld [vmem:[#allocation66_spill] sm:$0xff]  ;;  %v4850_v59 = vld [vmem:[%s12030_s3 + $0x168] sm:$0xff] }
 0x614   :  { %v4256_v49 = vmax.f32 %v4184_v33, 0.0  ;;  %v4758_v40 = vsub.f32 %v4614_v20, %v4686_v8  ;;  %v5352_v62 = vmul.f32 %v12567_v0, %v5057_v23  ;;  %v4615_v8 = vld [vmem:[%s12029_s5 + $0xd0] sm:$0xff] }
 0x615   :  { %7092 = vrsqrt.f32 %v4399_v58 }
 0x616   :  { %v4400_v34 = vadd.f32 1e-05, %v4256_v49  ;;  %v4328_v49 = vld [vmem:[%s12028_s4 + $0xd8] sm:$0xff] }
 0x618   :  { %7094 = vrsqrt.f32 %v4400_v34 }
 0x61f   :  { %v7093_v51 = vpop.eup %7092 }
 0x620   :  { %v4543_v33 = vmul.f32 %v7093_v51, %v4327_v53 }
 0x622   :  { %v4687_v34 = vmul.f32 %v4543_v33, %v3967_v38 }
 0x629   :  { %3491 = vadd.xlane.f32.xlu0 %v3490_v56  ;;  %3487 = vadd.xlane.f32.xlu1 %v3486_v45  ;;  %v7095_v45 = vpop.eup %7094 }
 0x62a   :  { %v4544_v31 = vmul.f32 %v7095_v45, %v4328_v49 }
 0x62d   :  { %3923 = vadd.xlane.f32.xlu0 %v3922_v30  ;;  %3919 = vadd.xlane.f32.xlu1 %v3918_v55  ;;  %v4847_v30 = vld [vmem:[%s12030_s3 + $0x150] sm:$0xff]  ;;  %v4848_v55 = vld [vmem:[%s12030_s3 + $0x158] sm:$0xff] }
 0x62e   :  { %v5495_v23 = vadd.f32 %v5351_v3, %v4847_v30  ;;  %v5496_v20 = vadd.f32 %v5352_v62, %v4848_v55  ;;  %v12570_v3 = vld [vmem:[#allocation67_spill] sm:$0xff]  ;;  %v12571_v62 = vld [vmem:[#allocation68_spill] sm:$0xff] }
 0x63c   :  { %v10604_v56 = vpop.xlane.xlu1 %3471  ;;  %v10606_v58 = vpop.xlane.xlu0 %3475 }
 0x63d   :  { %12564 = vst [vmem:[#allocation108_spill] sm:$0xff] %v10604_v56  ;;  %12565 = vst [vmem:[#allocation109_spill] sm:$0xff] %v10606_v58 }
 0x63e   :  { %5724 = vperm.xlu1 %6787, %v4758_v40   ;;  %v4759_v40 = vsub.f32 %v4615_v8, %v4687_v34 }
 0x640   :  { %v10613_v46 = vpop.xlane.xlu1 %3903  ;;  %v10624_v51 = vpop.xlane.xlu0 %3907 }
 0x641   :  { %12568 = vst [vmem:[#allocation114_spill] sm:$0xff] %v10613_v46  ;;  %12569 = vst [vmem:[#allocation33_spill] sm:$0xff] %v10624_v51 }
 0x642   :  { %5086 = vperm.xlu1 %6787, %v4544_v31  }
 0x643   :  { %5081 = vperm.xlu0 %6786, %v4543_v33   ;;  %v4849_v33 = vld [vmem:[%s12030_s3 + $0x160] sm:$0xff] }
 0x644   :  { %v5705_v53 = vpop.permute.xlu1 %5704 }
 0x645   :  { %v5999_v45 = vadd.f32 %v5705_v53, %v5495_v23  ;;  %v6000_v49 = vadd.f32 %v5705_v53, %v5496_v20  ;;  %v12572_v53 = vld [vmem:[#allocation168_spill] sm:$0xff] }
 0x647   :  { %5729 = vperm.xlu0 %6786, %v4759_v40   ;;  %6143 = vst [vmem:[%s12031_s6 + $0x150] sm:$0xff] %v5999_v45  ;;  %6144 = vst.msk [vmem:[%s12031_s6 + $0x158] sm:$0xff] %vm3220_vm1, %v6000_v49  ;;  %v3969_v40 = vmul.f32 0.0051020407, %v12572_v53  ;;  %v12573_v45 = vld [vmem:[#allocation170_spill] sm:$0xff] }
 0x648   :  { %v5062_v38 = vpop.permute.xlu0 %5061  ;;  %v4041_v49 = vmul.f32 0.0051020407, %v12573_v45 }
 0x649   :  { %v5353_v0 = vmul.f32 %v12570_v3, %v5062_v38  ;;  %v5354_v30 = vmul.f32 %v12571_v62, %v5062_v38  ;;  %v4113_v3 = vmul.f32 %v3969_v40, %v3969_v40  ;;  %v12574_v38 = vld [vmem:[#allocation171_spill] sm:$0xff] }
 0x64b   :  { %v5497_v55 = vadd.f32 %v5353_v0, %v4849_v33  ;;  %v5498_v34 = vadd.f32 %v5354_v30, %v4850_v59  ;;  %v10651_v33 = vmul.f32 0.0051020407, %v12574_v38  ;;  %v4185_v59 = vsub.f32 %v4041_v49, %v4113_v3  ;;  %v12575_v0 = vld [vmem:[#allocation176_spill] sm:$0xff]  ;;  %v12576_v49 = vld [vmem:[#allocation177_spill] sm:$0xff] }
 0x64c   :  { %v5710_v8 = vpop.permute.xlu0 %5709  ;;  %v4042_v62 = vmul.f32 0.0051020407, %v12575_v0  ;;  %v3648_v30 = vmul.f32 %v9709_v24, %v9709_v24  ;;  %v3647_v0 = vmul.f32 %v9706_v6, %v9706_v6 }
 0x64d   :  { %v6001_v23 = vadd.f32 %v5710_v8, %v5497_v55  ;;  %v6002_v20 = vadd.f32 %v5710_v8, %v5498_v34  ;;  %v3497_v55 = vsel %vm3220_vm1, %v9709_v24, 0.0  ;;  %v3646_v34 = vmul.f32 %v9703_v32, %v9703_v32 }
 0x64e   :  { %v3493_v8 = vsel %vm3220_vm1, %v9703_v32, 0.0  ;;  %v4257_v53 = vmax.f32 %v4185_v59, 0.0  ;;  %v3929_v38 = vsel %vm3220_vm1, %v3648_v30, 0.0  ;;  %v3645_v32 = vmul.f32 %v12576_v49, %v12576_v49 }
 0x64f   :  { %6145 = vst [vmem:[%s12031_s6 + $0x160] sm:$0xff] %v6001_v23  ;;  %6146 = vst.msk [vmem:[%s12031_s6 + $0x168] sm:$0xff] %vm3220_vm1, %v6002_v20  ;;  %v4114_v23 = vmul.f32 %v10651_v33, %v10651_v33  ;;  %v3498_v20 = vadd.f32 %v9706_v6, %v3497_v55  ;;  %v3494_v3 = vadd.f32 %v12576_v49, %v3493_v8  ;;  %v3925_v24 = vsel %vm3220_vm1, %v3646_v34, 0.0  ;;  %v4616_v34 = vld [vmem:[%s12029_s5 + $0xd8] sm:$0xff] }
 0x650   :  { %v3930_v37 = vadd.f32 %v3929_v38, %v3647_v0  ;;  %v4401_v27 = vadd.f32 1e-05, %v4257_v53  ;;  %v3926_v55 = vadd.f32 %v3925_v24, %v3645_v32  ;;  %v4688_v30 = vmul.f32 %v4544_v31, %v10576_v11  ;;  %v12579_v11 = vld [vmem:[#allocation69_spill] sm:$0xff]  ;;  %v12580_v53 = vld [vmem:[#allocation70_spill] sm:$0xff]  ;;  %v4851_v0 = vld [vmem:[%s12030_s3 + $0x170] sm:$0xff] }
 0x651   :  { %v4186_v45 = vsub.f32 %v4042_v62, %v4114_v23  ;;  %v5067_v62 = vpop.permute.xlu1 %5066  ;;  %v4329_v23 = vld [vmem:[%s12028_s4 + $0xe0] sm:$0xff] }
 0x652   :  { %7096 = vrsqrt.f32 %v4401_v27  ;;  %v4760_v24 = vsub.f32 %v4616_v34, %v4688_v30  ;;  %v5355_v31 = vmul.f32 %v12579_v11, %v5067_v62  ;;  %v4617_v30 = vld [vmem:[%s12029_s5 + $0xe0] sm:$0xff]  ;;  %v4854_v11 = vld [vmem:[%s12030_s3 + $0x188] sm:$0xff] }
 0x653   :  { %v4258_v10 = vmax.f32 %v4186_v45, 0.0  ;;  %v5356_v45 = vmul.f32 %v12580_v53, %v5067_v62 }
 0x655   :  { %v4402_v59 = vadd.f32 1e-05, %v4258_v10  ;;  %v4330_v10 = vld [vmem:[%s12028_s4 + $0xe8] sm:$0xff] }
 0x657   :  { %7098 = vrsqrt.f32 %v4402_v59 }
 0x65c   :  { %v7097_v8 = vpop.eup %7096 }
 0x661   :  { %v7099_v32 = vpop.eup %7098 }
 0x662   :  { %v10690_v38 = vmul.f32 %v7099_v32, %v4330_v10 }
 0x666   :  { %3499 = vadd.xlane.f32.xlu0 %v3498_v20  ;;  %3495 = vadd.xlane.f32.xlu1 %v3494_v3 }
 0x66a   :  { %3931 = vadd.xlane.f32.xlu0 %v3930_v37  ;;  %3927 = vadd.xlane.f32.xlu1 %v3926_v55  ;;  %v4545_v37 = vmul.f32 %v7097_v8, %v4329_v23  ;;  %v4852_v55 = vld [vmem:[%s12030_s3 + $0x178] sm:$0xff]  ;;  %v5499_v8 = vadd.f32 %v5355_v31, %v4851_v0  ;;  %v12583_v31 = vld [vmem:[#allocation71_spill] sm:$0xff] }
 0x66b   :  { %v5500_v34 = vadd.f32 %v5356_v45, %v4852_v55  ;;  %v12584_v45 = vld [vmem:[#allocation72_spill] sm:$0xff] }
 0x66c   :  { %v4689_v59 = vmul.f32 %v4545_v37, %v3969_v40 }
 0x679   :  { %v10679_v20 = vpop.xlane.xlu1 %3479  ;;  %v10681_v27 = vpop.xlane.xlu0 %3483 }
 0x67a   :  { %12577 = vst [vmem:[#allocation34_spill] sm:$0xff] %v10679_v20  ;;  %12578 = vst [vmem:[#allocation35_spill] sm:$0xff] %v10681_v27 }
 0x67b   :  { %5734 = vperm.xlu1 %6787, %v4760_v24   ;;  %v4761_v24 = vsub.f32 %v4617_v30, %v4689_v59 }
 0x67d   :  { %v10688_v3 = vpop.xlane.xlu1 %3911  ;;  %v10702_v62 = vpop.xlane.xlu0 %3915 }
 0x67e   :  { %12581 = vst [vmem:[#allocation36_spill] sm:$0xff] %v10688_v3  ;;  %12582 = vst [vmem:[#allocation113_spill] sm:$0xff] %v10702_v62 }
 0x67f   :  { %5096 = vperm.xlu1 %6787, %v10690_v38  }
 0x680   :  { %5091 = vperm.xlu0 %6786, %v4545_v37   ;;  %v4853_v37 = vld [vmem:[%s12030_s3 + $0x180] sm:$0xff] }
 0x681   :  { %v5715_v23 = vpop.permute.xlu1 %5714 }
 0x682   :  { %v6003_v32 = vadd.f32 %v5715_v23, %v5499_v8  ;;  %v6004_v10 = vadd.f32 %v5715_v23, %v5500_v34  ;;  %v12585_v23 = vld [vmem:[#allocation175_spill] sm:$0xff] }
 0x684   :  { %5739 = vperm.xlu0 %6786, %v4761_v24   ;;  %6147 = vst [vmem:[%s12031_s6 + $0x170] sm:$0xff] %v6003_v32  ;;  %6148 = vst.msk [vmem:[%s12031_s6 + $0x178] sm:$0xff] %vm3220_vm1, %v6004_v10  ;;  %v10727_v24 = vmul.f32 0.0051020407, %v12585_v23  ;;  %v12586_v32 = vld [vmem:[#allocation179_spill] sm:$0xff]  ;;  %v12590_v23 = vld [vmem:[#allocation188_spill] sm:$0xff] }
 0x685   :  { %v5072_v40 = vpop.permute.xlu0 %5071  ;;  %v10730_v10 = vmul.f32 0.0051020407, %v12586_v32  ;;  %v3650_v32 = vmul.f32 %v12590_v23, %v12590_v23 }
 0x686   :  { %v5357_v53 = vmul.f32 %v12583_v31, %v5072_v40  ;;  %v5358_v0 = vmul.f32 %v12584_v45, %v5072_v40  ;;  %v12587_v40 = vld [vmem:[#allocation178_spill] sm:$0xff] }
 0x687   :  { %v4116_v45 = vmul.f32 %v10730_v10, %v10730_v10 }
 0x688   :  { %v5501_v55 = vadd.f32 %v5357_v53, %v4853_v37  ;;  %v5502_v59 = vadd.f32 %v5358_v0, %v4854_v11  ;;  %v4043_v37 = vmul.f32 0.0051020407, %v12587_v40  ;;  %v12588_v11 = vld [vmem:[#allocation184_spill] sm:$0xff]  ;;  %v4115_v53 = vmul.f32 %v10727_v24, %v10727_v24 }
 0x689   :  { %v5720_v30 = vpop.permute.xlu0 %5719  ;;  %v4044_v31 = vmul.f32 0.0051020407, %v12588_v11  ;;  %v3501_v40 = vsel %vm3220_vm1, %v12590_v23, 0.0  ;;  %v12591_v11 = vld [vmem:[#allocation183_spill] sm:$0xff] }
 0x68a   :  { %v6005_v8 = vadd.f32 %v5720_v30, %v5501_v55  ;;  %v6006_v34 = vadd.f32 %v5720_v30, %v5502_v59  ;;  %v4187_v0 = vsub.f32 %v4043_v37, %v4115_v53  ;;  %v3652_v59 = vmul.f32 %v9741_v63, %v9741_v63 }
 0x68b   :  { %v4188_v55 = vsub.f32 %v4044_v31, %v4116_v45  ;;  %v3505_v30 = vsel %vm3220_vm1, %v9741_v63, 0.0  ;;  %v10750_v6 = vmul.f32 0.0051020407, %v12591_v11  ;;  %v12592_v31 = vld [vmem:[#allocation192_spill] sm:$0xff]  ;;  %v12593_v45 = vld [vmem:[#allocation189_spill] sm:$0xff] }
 0x68c   :  { %6149 = vst [vmem:[%s12031_s6 + $0x180] sm:$0xff] %v6005_v8  ;;  %6150 = vst.msk [vmem:[%s12031_s6 + $0x188] sm:$0xff] %vm3220_vm1, %v6006_v34  ;;  %v12589_v8 = vld [vmem:[#allocation187_spill] sm:$0xff]  ;;  %v4259_v37 = vmax.f32 %v4187_v0, 0.0  ;;  %v4046_v53 = vmul.f32 0.0051020407, %v12592_v31  ;;  %v3506_v49 = vadd.f32 %v12593_v45, %v3505_v30  ;;  %v3651_v23 = vmul.f32 %v12593_v45, %v12593_v45 }
 0x68d   :  { %v10743_v34 = vmul.f32 0.0051020407, %v12589_v8  ;;  %v4260_v12 = vmax.f32 %v4188_v55, 0.0  ;;  %v4045_v63 = vmul.f32 0.0051020407, %v12594_v39  ;;  %v3502_v8 = vadd.f32 %v12595_v1, %v3501_v40  ;;  %v12597_v45 = vld [vmem:[#allocation194_spill] sm:$0xff] }
 0x68e   :  { %v3937_v52 = vsel %vm3220_vm1, %v3652_v59, 0.0  ;;  %v3933_v0 = vsel %vm3220_vm1, %v3650_v32, 0.0  ;;  %v4117_v11 = vmul.f32 %v10750_v6, %v10750_v6  ;;  %v3649_v55 = vmul.f32 %v12595_v1, %v12595_v1  ;;  %v12598_v32 = vld [vmem:[#allocation193_spill] sm:$0xff]  ;;  %v12599_v1 = vld [vmem:[#allocation196_spill] sm:$0xff] }
 0x68f   :  { %v4118_v47 = vmul.f32 %v10743_v34, %v10743_v34  ;;  %v4403_v39 = vadd.f32 1e-05, %v4259_v37  ;;  %v3938_v40 = vadd.f32 %v3937_v52, %v3651_v23  ;;  %v4404_v59 = vadd.f32 1e-05, %v4260_v12 }
 0x690   :  { %v4189_v31 = vsub.f32 %v4045_v63, %v4117_v11  ;;  %v3934_v60 = vadd.f32 %v3933_v0, %v3649_v55  ;;  %v4047_v28 = vmul.f32 0.0051020407, %v12598_v32  ;;  %v4119_v52 = vmul.f32 %v10767_v29, %v10767_v29  ;;  %v12602_v55 = vld [vmem:[#allocation197_spill] sm:$0xff] }
 0x691   :  { %v4190_v30 = vsub.f32 %v4046_v53, %v4118_v47  ;;  %7100 = vrsqrt.f32 %v4403_v39  ;;  %v12600_v53 = vld [vmem:[#allocation195_spill] sm:$0xff]  ;;  %v4049_v39 = vmul.f32 0.0051020407, %v12602_v55  ;;  %v4690_v32 = vmul.f32 %v10690_v38, %v10651_v33 }
 0x692   :  { %7102 = vrsqrt.f32 %v4404_v59  ;;  %v4261_v47 = vmax.f32 %v4189_v31, 0.0  ;;  %v4191_v12 = vsub.f32 %v4047_v28, %v4119_v52  ;;  %v5077_v31 = vpop.permute.xlu1 %5076  ;;  %v4618_v52 = vld [vmem:[%s12029_s5 + $0xe8] sm:$0xff] }
 0x693   :  { %v4262_v3 = vmax.f32 %v4190_v30, 0.0  ;;  %v12603_v30 = vld [vmem:[#allocation200_spill] sm:$0xff]  ;;  %v4762_v38 = vsub.f32 %v4618_v52, %v4690_v32 }
 0x694   :  { %v4405_v37 = vadd.f32 1e-05, %v4261_v47  ;;  %v4263_v11 = vmax.f32 %v4191_v12, 0.0  ;;  %v4331_v12 = vld [vmem:[%s12028_s4 + $0xf0] sm:$0xff] }
 0x695   :  { %v4406_v63 = vadd.f32 1e-05, %v4262_v3  ;;  %v4855_v52 = vld [vmem:[%s12030_s3 + $0x190] sm:$0xff] }
 0x696   :  { %v4407_v47 = vadd.f32 1e-05, %v4263_v11 }
 0x697   :  { %7104 = vrsqrt.f32 %v4406_v63 }
 0x698   :  { %7106 = vrsqrt.f32 %v4405_v37 }
 0x699   :  { %7108 = vrsqrt.f32 %v4407_v47 }
 0x69b   :  { %v7101_v59 = vpop.eup %7100 }
 0x69c   :  { %v4547_v55 = vmul.f32 %v7101_v59, %v4331_v12 }
 0x6a3   :  { %3507 = vadd.xlane.f32.xlu0 %v3506_v49  ;;  %3503 = vadd.xlane.f32.xlu1 %v3502_v8  ;;  %v10770_v49 = vmul.f32 0.0051020407, %v12597_v45  ;;  %v4048_v8 = vmul.f32 0.0051020407, %v12599_v1  ;;  %v10779_v45 = vmul.f32 0.0051020407, %v12600_v53 }
 0x6a4   :  { %v12604_v53 = vld [vmem:[#allocation199_spill] sm:$0xff] }
 0x6a5   :  { %v4120_v48 = vmul.f32 %v10770_v49, %v10770_v49  ;;  %v4121_v28 = vmul.f32 %v10779_v45, %v10779_v45 }
 0x6a7   :  { %3939 = vadd.xlane.f32.xlu0 %v3938_v40  ;;  %3935 = vadd.xlane.f32.xlu1 %v3934_v60  ;;  %v4192_v23 = vsub.f32 %v4048_v8, %v4120_v48  ;;  %v12601_v60 = vld [vmem:[#allocation198_spill] sm:$0xff]  ;;  %v4050_v40 = vmul.f32 0.0051020407, %v12603_v30  ;;  %v7103_v8 = vpop.eup %7102  ;;  %v4332_v48 = vld [vmem:[%s12028_s4 + $0xf8] sm:$0xff] }
 0x6a8   :  { %v10782_v0 = vmul.f32 0.0051020407, %v12601_v60  ;;  %v10802_v60 = vmul.f32 0.0051020407, %v12604_v53  ;;  %v4548_v11 = vmul.f32 %v7103_v8, %v4332_v48  ;;  %v12606_v30 = vld [vmem:[#allocation202_spill] sm:$0xff]  ;;  %v7105_v8 = vpop.eup %7104  ;;  %v4856_v48 = vld [vmem:[%s12030_s3 + $0x198] sm:$0xff] }
 0x6a9   :  { %v4264_v1 = vmax.f32 %v4192_v23, 0.0  ;;  %v4193_v23 = vsub.f32 %v4049_v39, %v4121_v28  ;;  %v10807_v62 = vmul.f32 0.0051020407, %v12606_v30 }
 0x6aa   :  { %v4122_v3 = vmul.f32 %v10782_v0, %v10782_v0  ;;  %v4123_v59 = vmul.f32 %v10802_v60, %v10802_v60  ;;  %v4692_v12 = vmul.f32 %v4548_v11, %v10730_v10 }
 0x6ab   :  { %v4408_v63 = vadd.f32 1e-05, %v4264_v1  ;;  %v4265_v27 = vmax.f32 %v4193_v23, 0.0  ;;  %v12608_v1 = vld [vmem:[#allocation201_spill] sm:$0xff]  ;;  %v7107_v23 = vpop.eup %7106 }
 0x6ac   :  { %v4194_v37 = vsub.f32 %v4050_v40, %v4122_v3  ;;  %v4051_v39 = vmul.f32 0.0051020407, %v12608_v1  ;;  %v12609_v40 = vld [vmem:[#allocation204_spill] sm:$0xff]  ;;  %v12610_v3 = vld [vmem:[#allocation73_spill] sm:$0xff] }
 0x6ad   :  { %7110 = vrsqrt.f32 %v4408_v63  ;;  %v4052_v28 = vmul.f32 0.0051020407, %v12609_v40  ;;  %v5359_v53 = vmul.f32 %v12610_v3, %v5077_v31  ;;  %v4691_v63 = vmul.f32 %v4547_v55, %v10727_v24  ;;  %v4333_v24 = vld [vmem:[%s12028_s4 + $0x100] sm:$0xff]  ;;  %v12613_v40 = vld [vmem:[#allocation203_spill] sm:$0xff] }
 0x6ae   :  { %v4266_v46 = vmax.f32 %v4194_v37, 0.0  ;;  %v4124_v37 = vmul.f32 %v10807_v62, %v10807_v62  ;;  %v4409_v10 = vadd.f32 1e-05, %v4265_v27  ;;  %v4195_v1 = vsub.f32 %v4051_v39, %v4123_v59 }
 0x6af   :  { %v10842_v3 = vmul.f32 0.0051020407, %v12613_v40  ;;  %v5503_v51 = vadd.f32 %v5359_v53, %v4855_v52  ;;  %v4549_v27 = vmul.f32 %v7107_v23, %v4333_v24  ;;  %v7109_v53 = vpop.eup %7108  ;;  %v4336_v23 = vld [vmem:[%s12028_s4 + $0x118] sm:$0xff] }
 0x6b0   :  { %v4410_v30 = vadd.f32 1e-05, %v4266_v46  ;;  %v12615_v46 = vld [vmem:[#allocation205_spill] sm:$0xff] }
 0x6b1   :  { %v4053_v39 = vmul.f32 0.0051020407, %v12615_v46  ;;  %v4125_v50 = vmul.f32 %v10842_v3, %v10842_v3 }
 0x6b2   :  { %7112 = vrsqrt.f32 %v4410_v30 }
 0x6b3   :  { %7114 = vrsqrt.f32 %v4409_v10 }
 0x6b6   :  { %v10804_v33 = vpop.xlane.xlu1 %3487  ;;  %v10809_v20 = vpop.xlane.xlu0 %3491 }
 0x6b7   :  { %12605 = vst [vmem:[#allocation116_spill] sm:$0xff] %v10804_v33  ;;  %12607 = vst [vmem:[#allocation117_spill] sm:$0xff] %v10809_v20  ;;  %v12611_v33 = vld [vmem:[#allocation2_spill] sm:$0xff] }
 0x6b8   :  { %5744 = vperm.xlu1 %6787, %v4762_v38   ;;  %v5360_v32 = vmul.f32 %v12611_v33, %v5077_v31  ;;  %v4334_v31 = vld [vmem:[%s12028_s4 + $0x108] sm:$0xff]  ;;  %v4620_v33 = vld [vmem:[%s12029_s5 + $0xf8] sm:$0xff]  ;;  %v4619_v38 = vld [vmem:[%s12029_s5 + $0xf0] sm:$0xff] }
 0x6b9   :  { %v4550_v58 = vmul.f32 %v7105_v8, %v4334_v31  ;;  %v4764_v22 = vsub.f32 %v4620_v33, %v4692_v12  ;;  %v4763_v2 = vsub.f32 %v4619_v38, %v4691_v63  ;;  %v4126_v8 = vmul.f32 %v10847_v5, %v10847_v5  ;;  %v4622_v63 = vld [vmem:[%s12029_s5 + $0x108] sm:$0xff]  ;;  %v4621_v33 = vld [vmem:[%s12029_s5 + $0x100] sm:$0xff] }
 0x6ba   :  { %v10817_v47 = vpop.xlane.xlu1 %3919  ;;  %v10844_v20 = vpop.xlane.xlu0 %3923  ;;  %v5504_v56 = vadd.f32 %v5360_v32, %v4856_v48  ;;  %v12618_v48 = vld [vmem:[#allocation4_spill] sm:$0xff]  ;;  %v4693_v31 = vmul.f32 %v4549_v27, %v10750_v6 }
 0x6bb   :  { %12612 = vst [vmem:[#allocation122_spill] sm:$0xff] %v10817_v47  ;;  %v4196_v47 = vsub.f32 %v4052_v28, %v4124_v37  ;;  %v4197_v37 = vsub.f32 %v4053_v39, %v4125_v50 }
 0x6bc   :  { %5106 = vperm.xlu1 %6787, %v4548_v11   ;;  %v4267_v11 = vmax.f32 %v4195_v1, 0.0  ;;  %v4765_v50 = vsub.f32 %v4621_v33, %v4693_v31  ;;  %v12621_v31 = vld [vmem:[#allocation92_spill] sm:$0xff] }
 0x6bd   :  { %5101 = vperm.xlu0 %6786, %v4547_v55   ;;  %v12616_v55 = vld [vmem:[#allocation207_spill] sm:$0xff]  ;;  %v4268_v32 = vmax.f32 %v4196_v47, 0.0 }
 0x6be   :  { %v5725_v54 = vpop.permute.xlu1 %5724  ;;  %v4054_v28 = vmul.f32 0.0051020407, %v12616_v55  ;;  %v12617_v47 = vld [vmem:[#allocation3_spill] sm:$0xff]  ;;  %v4411_v38 = vadd.f32 1e-05, %v4267_v11 }
 0x6bf   :  { %v6007_v59 = vadd.f32 %v5725_v54, %v5503_v51  ;;  %v6008_v40 = vadd.f32 %v5725_v54, %v5504_v56  ;;  %v4694_v56 = vmul.f32 %v4550_v58, %v10743_v34  ;;  %v7111_v51 = vpop.eup %7110  ;;  %v4335_v34 = vld [vmem:[%s12028_s4 + $0x110] sm:$0xff]  ;;  %v4412_v6 = vadd.f32 1e-05, %v4268_v32 }
 0x6c0   :  { %5754 = vperm.xlu1 %6787, %v4764_v22   ;;  %v4858_v22 = vld [vmem:[%s12030_s3 + $0x1a8] sm:$0xff]  ;;  %v4198_v24 = vsub.f32 %v4054_v28, %v4126_v8  ;;  %v10885_v55 = vmul.f32 0.0051020407, %v9847_v57  ;;  %7116 = vrsqrt.f32 %v4411_v38  ;;  %v12620_v57 = vld [vmem:[#allocation24_spill] sm:$0xff] }
 0x6c1   :  { %5749 = vperm.xlu0 %6786, %v4763_v2   ;;  %6151 = vst [vmem:[%s12031_s6 + $0x190] sm:$0xff] %v6007_v59  ;;  %6152 = vst.msk [vmem:[%s12031_s6 + $0x198] sm:$0xff] %vm3220_vm1, %v6008_v40  ;;  %v4857_v2 = vld [vmem:[%s12030_s3 + $0x1a0] sm:$0xff]  ;;  %v4766_v46 = vsub.f32 %v4622_v63, %v4694_v56  ;;  %v4552_v59 = vmul.f32 %v7111_v51, %v4336_v23  ;;  %v4551_v40 = vmul.f32 %v7109_v53, %v4335_v34 }
 0x6c2   :  { %v5082_v54 = vpop.permute.xlu0 %5081  ;;  %7118 = vrsqrt.f32 %v4412_v6  ;;  %v4056_v28 = vmul.f32 0.0051020407, %v12620_v57  ;;  %v4127_v53 = vmul.f32 %v10885_v55, %v10885_v55  ;;  %v10918_v23 = vmul.f32 0.0051020407, %v12621_v31 }
 0x6c3   :  { %v5361_v52 = vmul.f32 %v12617_v47, %v5082_v54  ;;  %v5362_v12 = vmul.f32 %v12618_v48, %v5082_v54  ;;  %v4269_v47 = vmax.f32 %v4197_v37, 0.0  ;;  %v10888_v48 = vmul.f32 0.0051020407, %v9869_v21  ;;  %v7113_v21 = vpop.eup %7112  ;;  %v12622_v37 = vld [vmem:[#allocation90_spill] sm:$0xff] }
 0x6c4   :  { %5116 = vperm.xlu1 %6787, %v4550_v58   ;;  %v4270_v58 = vmax.f32 %v4198_v24, 0.0  ;;  %v4696_v32 = vmul.f32 %v4552_v59, %v10770_v49  ;;  %v7115_v56 = vpop.eup %7114  ;;  %v10921_v33 = vmul.f32 0.0051020407, %v12622_v37  ;;  %v12623_v24 = vld [vmem:[#allocation98_spill] sm:$0xff] }
 0x6c5   :  { %5111 = vperm.xlu0 %6786, %v4549_v27   ;;  %v5505_v10 = vadd.f32 %v5361_v52, %v4857_v2  ;;  %v5506_v30 = vadd.f32 %v5362_v12, %v4858_v22  ;;  %v12619_v27 = vld [vmem:[#allocation23_spill] sm:$0xff]  ;;  %v4695_v2 = vmul.f32 %v4551_v40, %v10767_v29  ;;  %v4413_v51 = vadd.f32 1e-05, %v4269_v47  ;;  %v4624_v52 = vld [vmem:[%s12029_s5 + $0x118] sm:$0xff]  ;;  %v4623_v12 = vld [vmem:[%s12029_s5 + $0x110] sm:$0xff] }
 0x6c6   :  { %v5730_v1 = vpop.permute.xlu0 %5729  ;;  %v4055_v11 = vmul.f32 0.0051020407, %v12619_v27  ;;  %v4338_v22 = vld [vmem:[%s12028_s4 + $0x128] sm:$0xff]  ;;  %v4128_v8 = vmul.f32 %v10888_v48, %v10888_v48  ;;  %v4337_v29 = vld [vmem:[%s12028_s4 + $0x120] sm:$0xff]  ;;  %v4414_v49 = vadd.f32 1e-05, %v4270_v58  ;;  %v4129_v58 = vmul.f32 %v10921_v33, %v10921_v33 }
 0x6c7   :  { %v6009_v54 = vadd.f32 %v5730_v1, %v5505_v10  ;;  %v6010_v39 = vadd.f32 %v5730_v1, %v5506_v30  ;;  %v4554_v38 = vmul.f32 %v7113_v21, %v4338_v22  ;;  %v4058_v10 = vmul.f32 0.0051020407, %v12623_v24  ;;  %v12626_v27 = vld [vmem:[#allocation28_spill] sm:$0xff] }
 0x6c8   :  { %5764 = vperm.xlu1 %6787, %v4766_v46   ;;  %v4199_v63 = vsub.f32 %v4055_v11, %v4127_v53  ;;  %v4200_v34 = vsub.f32 %v4056_v28, %v4128_v8  ;;  %v4768_v30 = vsub.f32 %v4624_v52, %v4696_v32  ;;  %v4767_v6 = vsub.f32 %v4623_v12, %v4695_v2  ;;  %v12624_v46 = vld [vmem:[#allocation93_spill] sm:$0xff]  ;;  %v4626_v2 = vld [vmem:[%s12029_s5 + $0x128] sm:$0xff]  ;;  %v4625_v52 = vld [vmem:[%s12029_s5 + $0x120] sm:$0xff] }
 0x6c9   :  { %6153 = vst [vmem:[%s12031_s6 + $0x1a0] sm:$0xff] %v6009_v54  ;;  %6154 = vst.msk [vmem:[%s12031_s6 + $0x1a8] sm:$0xff] %vm3220_vm1, %v6010_v39  ;;  %5759 = vperm.xlu0 %6786, %v4765_v50   ;;  %v4553_v1 = vmul.f32 %v7115_v56, %v4337_v29  ;;  %7120 = vrsqrt.f32 %v4413_v51  ;;  %v4057_v54 = vmul.f32 0.0051020407, %v12624_v46  ;;  %v12625_v39 = vld [vmem:[#allocation26_spill] sm:$0xff]  ;;  %v4698_v57 = vmul.f32 %v4554_v38, %v10782_v0  ;;  %v12627_v53 = vld [vmem:[#allocation25_spill] sm:$0xff] }
 0x6ca   :  { %v10926_v50 = vmul.f32 0.0051020407, %v12625_v39  ;;  %7122 = vrsqrt.f32 %v4414_v49  ;;  %v4271_v47 = vmax.f32 %v4199_v63, 0.0  ;;  %v4060_v11 = vmul.f32 0.0051020407, %v12626_v27  ;;  %v7117_v28 = vpop.eup %7116  ;;  %v4339_v56 = vld [vmem:[%s12028_s4 + $0x130] sm:$0xff] }
 0x6cb   :  { %v10935_v32 = vmul.f32 0.0051020407, %v12627_v53  ;;  %v4697_v22 = vmul.f32 %v4553_v1, %v10779_v45  ;;  %v4201_v8 = vsub.f32 %v4057_v54, %v4129_v58  ;;  %v4340_v12 = vld [vmem:[%s12028_s4 + $0x138] sm:$0xff]  ;;  %v12628_v49 = vld [vmem:[#allocation27_spill] sm:$0xff]  ;;  %v4555_v37 = vmul.f32 %v7117_v28, %v4339_v56  ;;  %v4341_v27 = vld [vmem:[%s12028_s4 + $0x140] sm:$0xff] }
 0x6cc   :  { %5126 = vperm.xlu1 %6787, %v4552_v59   ;;  %v4130_v59 = vmul.f32 %v10918_v23, %v10918_v23  ;;  %v7119_v51 = vpop.eup %7118  ;;  %v4132_v0 = vmul.f32 %v10926_v50, %v10926_v50  ;;  %v4415_v29 = vadd.f32 1e-05, %v4271_v47  ;;  %v4059_v45 = vmul.f32 0.0051020407, %v12628_v49  ;;  %v4342_v58 = vld [vmem:[%s12028_s4 + $0x148] sm:$0xff]  ;;  %v4627_v28 = vld [vmem:[%s12029_s5 + $0x130] sm:$0xff] }
 0x6cd   :  { %5121 = vperm.xlu0 %6786, %v4551_v40   ;;  %v4272_v40 = vmax.f32 %v4200_v34, 0.0  ;;  %v4770_v34 = vsub.f32 %v4626_v2, %v4698_v57  ;;  %v4273_v46 = vmax.f32 %v4201_v8, 0.0  ;;  %v4628_v57 = vld [vmem:[%s12029_s5 + $0x138] sm:$0xff]  ;;  %v12630_v56 = vld [vmem:[#allocation106_spill] sm:$0xff] }
 0x6ce   :  { %v4202_v21 = vsub.f32 %v4058_v10, %v4130_v59  ;;  %v4204_v31 = vsub.f32 %v4060_v11, %v4132_v0  ;;  %v4131_v10 = vmul.f32 %v10935_v32, %v10935_v32  ;;  %7124 = vrsqrt.f32 %v4415_v29 }
 0x6cf   :  { %v4416_v63 = vadd.f32 1e-05, %v4272_v40  ;;  %v4699_v40 = vmul.f32 %v4555_v37, %v10802_v60  ;;  %v4417_v11 = vadd.f32 1e-05, %v4273_v46 }
 0x6d0   :  { %5774 = vperm.xlu1 %6787, %v4768_v30   ;;  %v4274_v24 = vmax.f32 %v4202_v21, 0.0  ;;  %v4769_v30 = vsub.f32 %v4625_v52, %v4697_v22  ;;  %v4203_v54 = vsub.f32 %v4059_v45, %v4131_v10  ;;  %v4276_v47 = vmax.f32 %v4204_v31, 0.0  ;;  %v12629_v21 = vld [vmem:[#allocation100_spill] sm:$0xff]  ;;  %v12631_v52 = vld [vmem:[#allocation97_spill] sm:$0xff]  ;;  %v4630_v10 = vld [vmem:[%s12029_s5 + $0x148] sm:$0xff] }
 0x6d1   :  { %5769 = vperm.xlu0 %6786, %v4767_v6   ;;  %v4556_v6 = vmul.f32 %v7119_v51, %v4340_v12  ;;  %7126 = vrsqrt.f32 %v4416_v63  ;;  %v10970_v60 = vmul.f32 0.0051020407, %v12629_v21  ;;  %v4062_v51 = vmul.f32 0.0051020407, %v12630_v56  ;;  %v12632_v45 = vld [vmem:[#allocation101_spill] sm:$0xff]  ;;  %v4346_v21 = vld [vmem:[%s12028_s4 + $0x168] sm:$0xff] }
 0x6d2   :  { %v4420_v53 = vadd.f32 1e-05, %v4276_v47  ;;  %v4771_v0 = vsub.f32 %v4627_v28, %v4699_v40  ;;  %v10974_v12 = vmul.f32 0.0051020407, %v12631_v52  ;;  %v4061_v63 = vmul.f32 0.0051020407, %v12632_v45 }
 0x6d3   :  { %v7121_v39 = vpop.eup %7120  ;;  %v4700_v59 = vmul.f32 %v4556_v6, %v10807_v62  ;;  %v4275_v62 = vmax.f32 %v4203_v54, 0.0  ;;  %v4134_v49 = vmul.f32 %v10970_v60, %v10970_v60  ;;  %v4632_v52 = vld [vmem:[%s12029_s5 + $0x158] sm:$0xff] }
 0x6d4   :  { %5136 = vperm.xlu1 %6787, %v4554_v38   ;;  %v7123_v38 = vpop.eup %7122  ;;  %v4557_v22 = vmul.f32 %v7121_v39, %v4341_v27  ;;  %v4133_v46 = vmul.f32 %v10974_v12, %v10974_v12  ;;  %v10996_v39 = vmul.f32 0.0051020407, %v10156_v35  ;;  %v4064_v27 = vmul.f32 0.0051020407, %v10174_v26 }
 0x6d5   :  { %5131 = vperm.xlu0 %6786, %v4553_v1   ;;  %v4418_v1 = vadd.f32 1e-05, %v4274_v24  ;;  %v4558_v2 = vmul.f32 %v7123_v38, %v4342_v58  ;;  %v4772_v8 = vsub.f32 %v4628_v57, %v4700_v59  ;;  %v4419_v29 = vadd.f32 1e-05, %v4275_v62 }
 0x6d6   :  { %v4206_v24 = vsub.f32 %v4062_v51, %v4134_v49  ;;  %v4205_v54 = vsub.f32 %v4061_v63, %v4133_v46  ;;  %v10999_v59 = vmul.f32 0.0051020407, %v10154_v18  ;;  %v4063_v57 = vmul.f32 0.0051020407, %v10163_v16  ;;  %v4345_v18 = vld [vmem:[%s12028_s4 + $0x160] sm:$0xff] }
 0x6d7   :  { %7128 = vrsqrt.f32 %v4418_v1  ;;  %v4702_v31 = vmul.f32 %v4558_v2, %v10847_v5  ;;  %v4344_v5 = vld [vmem:[%s12028_s4 + $0x158] sm:$0xff]  ;;  %v4136_v35 = vmul.f32 %v10996_v39, %v10996_v39  ;;  %v4066_v63 = vmul.f32 0.0051020407, %v10249_v61 }
 0x6d8   :  { %5784 = vperm.xlu1 %6787, %v4770_v34   ;;  %7130 = vrsqrt.f32 %v4417_v11  ;;  %v4701_v34 = vmul.f32 %v4557_v22, %v10842_v3  ;;  %v4343_v3 = vld [vmem:[%s12028_s4 + $0x150] sm:$0xff]  ;;  %v4278_v1 = vmax.f32 %v4206_v24, 0.0  ;;  %v4277_v62 = vmax.f32 %v4205_v54, 0.0 }
 0x6d9   :  { %5779 = vperm.xlu0 %6786, %v4769_v30   ;;  %7132 = vrsqrt.f32 %v4420_v53  ;;  %v4629_v30 = vld [vmem:[%s12029_s5 + $0x140] sm:$0xff]  ;;  %v4774_v47 = vsub.f32 %v4630_v10, %v4702_v31  ;;  %v4135_v26 = vmul.f32 %v10999_v59, %v10999_v59  ;;  %v4208_v51 = vsub.f32 %v4064_v27, %v4136_v35  ;;  %v4347_v24 = vld [vmem:[%s12028_s4 + $0x170] sm:$0xff] }
 0x6da   :  { %7134 = vrsqrt.f32 %v4419_v29  ;;  %v4773_v38 = vsub.f32 %v4629_v30, %v4701_v34  ;;  %v4422_v53 = vadd.f32 1e-05, %v4278_v1  ;;  %v4421_v45 = vadd.f32 1e-05, %v4277_v62 }
 0x6db   :  { %v4207_v29 = vsub.f32 %v4063_v57, %v4135_v26  ;;  %v4280_v10 = vmax.f32 %v4208_v51, 0.0  ;;  %v12633_v26 = vld [vmem:[#allocation5_spill] sm:$0xff] }
 0x6dc   :  { %5146 = vperm.xlu1 %6787, %v4556_v6   ;;  %7136 = vrsqrt.f32 %v4422_v53  ;;  %v11066_v53 = vmul.f32 0.0051020407, %v10306_v19  ;;  %v4859_v19 = vld [vmem:[%s12030_s3 + $0x1b0] sm:$0xff] }
 0x6dd   :  { %5141 = vperm.xlu0 %6786, %v4555_v37   ;;  %v7125_v37 = vpop.eup %7124  ;;  %v4279_v46 = vmax.f32 %v4207_v29, 0.0  ;;  %7138 = vrsqrt.f32 %v4421_v45  ;;  %v4068_v45 = vmul.f32 0.0051020407, %v10324_v36 }
 0x6de   :  { %v7127_v6 = vpop.eup %7126  ;;  %v4559_v58 = vmul.f32 %v7125_v37, %v4343_v3  ;;  %v4140_v36 = vmul.f32 %v11066_v53, %v11066_v53 }
 0x6df   :  { %v4560_v40 = vmul.f32 %v7127_v6, %v4344_v5  ;;  %v4423_v57 = vadd.f32 1e-05, %v4279_v46 }
 0x6e0   :  { %5794 = vperm.xlu1 %6787, %v4772_v8   ;;  %v11019_v8 = vmul.f32 0.0051020407, %v10229_v17  ;;  %v4065_v17 = vmul.f32 0.0051020407, %v10238_v13  ;;  %v5087_v13 = vpop.permute.xlu1 %5086 }
 0x6e1   :  { %5789 = vperm.xlu0 %6786, %v4771_v0   ;;  %v7129_v11 = vpop.eup %7128  ;;  %v4704_v16 = vmul.f32 %v4560_v40, %v10888_v48  ;;  %v11022_v0 = vmul.f32 0.0051020407, %v10231_v4  ;;  %v4348_v48 = vld [vmem:[%s12028_s4 + $0x178] sm:$0xff] }
 0x6e2   :  { %v7131_v28 = vpop.eup %7130  ;;  %v4137_v30 = vmul.f32 %v11019_v8, %v11019_v8 }
 0x6e3   :  { %v7133_v56 = vpop.eup %7132  ;;  %v4561_v49 = vmul.f32 %v7131_v28, %v4345_v18  ;;  %v4776_v31 = vsub.f32 %v4632_v52, %v4704_v16  ;;  %v4138_v6 = vmul.f32 %v11022_v0, %v11022_v0  ;;  %v5363_v16 = vmul.f32 %v12633_v26, %v5087_v13  ;;  %v12636_v26 = vld [vmem:[#allocation8_spill] sm:$0xff] }
 0x6e4   :  { %5156 = vperm.xlu1 %6787, %v4558_v2   ;;  %v4631_v2 = vld [vmem:[%s12029_s5 + $0x150] sm:$0xff]  ;;  %v7135_v4 = vpop.eup %7134  ;;  %v11032_v37 = vmul.f32 %v7133_v56, %v4348_v48  ;;  %v4209_v3 = vsub.f32 %v4065_v17, %v4137_v30  ;;  %v11073_v52 = vmul.f32 0.0051020407, %v10304_v7 }
 0x6e5   :  { %5151 = vperm.xlu0 %6786, %v4557_v22   ;;  %v4703_v22 = vmul.f32 %v4559_v58, %v10885_v55  ;;  %v4562_v55 = vmul.f32 %v7129_v11, %v4346_v21  ;;  %v4705_v5 = vmul.f32 %v4561_v49, %v10921_v33  ;;  %v4210_v54 = vsub.f32 %v4066_v63, %v4138_v6  ;;  %v11058_v11 = vld [vmem:[%s12029_s5 + $0x178] sm:$0xff]  ;;  %v4635_v63 = vld [vmem:[%s12029_s5 + $0x170] sm:$0xff] }
 0x6e6   :  { %v4281_v35 = vmax.f32 %v4209_v3, 0.0  ;;  %v5507_v6 = vadd.f32 %v5363_v16, %v4859_v19 }
 0x6e7   :  { %v4775_v34 = vsub.f32 %v4631_v2, %v4703_v22  ;;  %v4706_v61 = vmul.f32 %v4562_v55, %v10918_v23  ;;  %v4424_v23 = vadd.f32 1e-05, %v4280_v10  ;;  %v4282_v21 = vmax.f32 %v4210_v54, 0.0  ;;  %v12634_v2 = vld [vmem:[#allocation6_spill] sm:$0xff] }
 0x6e8   :  { %5804 = vperm.xlu1 %6787, %v4774_v47   ;;  %v4634_v47 = vld [vmem:[%s12029_s5 + $0x168] sm:$0xff]  ;;  %v5364_v22 = vmul.f32 %v12634_v2, %v5087_v13 }
 0x6e9   :  { %5799 = vperm.xlu0 %6786, %v4773_v38   ;;  %v4563_v38 = vmul.f32 %v7135_v4, %v4347_v24  ;;  %v4778_v62 = vsub.f32 %v4634_v47, %v4706_v61  ;;  %7140 = vrsqrt.f32 %v4424_v23  ;;  %v4350_v4 = vld [vmem:[%s12028_s4 + $0x188] sm:$0xff]  ;;  %v4067_v24 = vmul.f32 0.0051020407, %v10313_v25  ;;  %v4349_v25 = vld [vmem:[%s12028_s4 + $0x180] sm:$0xff] }
 0x6ea   :  { %7142 = vrsqrt.f32 %v4423_v57  ;;  %v4139_v61 = vmul.f32 %v11073_v52, %v11073_v52 }
 0x6ec   :  { %5166 = vperm.xlu1 %6787, %v4560_v40   ;;  %v4633_v40 = vld [vmem:[%s12029_s5 + $0x160] sm:$0xff] }
 0x6ed   :  { %5161 = vperm.xlu0 %6786, %v4559_v58   ;;  %v11051_v58 = vmul.f32 %v11032_v37, %v10926_v50  ;;  %v4777_v18 = vsub.f32 %v4633_v40, %v4705_v5  ;;  %v11063_v50 = vmul.f32 %v4563_v38, %v10935_v32 }
 0x6ef   :  { %v4780_v51 = vsub.f32 %v11058_v11, %v11051_v58  ;;  %v4779_v54 = vsub.f32 %v4635_v63, %v11063_v50  ;;  %v11103_v11 = vmul.f32 0.0051020407, %v10381_v9  ;;  %v4861_v9 = vld [vmem:[%s12030_s3 + $0x1c0] sm:$0xff] }
 0x6f0   :  { %5814 = vperm.xlu1 %6787, %v4776_v31   ;;  %v4425_v31 = vadd.f32 1e-05, %v4281_v35  ;;  %v4637_v63 = vld [vmem:[%s12029_s5 + $0x180] sm:$0xff] }
 0x6f1   :  { %5809 = vperm.xlu0 %6786, %v4775_v34   ;;  %v4426_v34 = vadd.f32 1e-05, %v4282_v21  ;;  %v4070_v21 = vmul.f32 0.0051020407, %v10399_v14 }
 0x6f3   :  { %v3500_v1 = vpop.xlane.xlu0 %3499  ;;  %v3496_v27 = vpop.xlane.xlu1 %3495  ;;  %7144 = vrsqrt.f32 %v4426_v34 }
 0x6f4   :  { %v11053_v33 = vmul.f32 0.0051020407, %v3500_v1  ;;  %v11060_v28 = vmul.f32 0.0051020407, %v3496_v27  ;;  %5176 = vperm.xlu1 %6787, %v4562_v55   ;;  %v4860_v55 = vld [vmem:[%s12030_s3 + $0x1b8] sm:$0xff]  ;;  %v4212_v1 = vsub.f32 %v4068_v45, %v4140_v36  ;;  %v4211_v27 = vsub.f32 %v4067_v24, %v4139_v61 }
 0x6f5   :  { %5171 = vperm.xlu0 %6786, %v4561_v49   ;;  %v7137_v49 = vpop.eup %7136  ;;  %v5508_v13 = vadd.f32 %v5364_v22, %v4860_v55  ;;  %7146 = vrsqrt.f32 %v4425_v31  ;;  %v4069_v22 = vmul.f32 0.0051020407, %v10388_v42  ;;  %v4638_v42 = vld [vmem:[%s12029_s5 + $0x188] sm:$0xff]  ;;  %v4351_v31 = vld [vmem:[%s12028_s4 + $0x190] sm:$0xff]  ;;  %v11151_v36 = vmul.f32 0.0051020407, %v10456_v43 }
 0x6f6   :  { %v4154_v48 = vmul.f32 %v11053_v33, %v11053_v33  ;;  %v4153_v7 = vmul.f32 %v11060_v28, %v11060_v28  ;;  %v7139_v46 = vpop.eup %7138  ;;  %v4566_v47 = vmul.f32 %v7137_v49, %v4350_v4  ;;  %v4284_v2 = vmax.f32 %v4212_v1, 0.0  ;;  %v4352_v4 = vld [vmem:[%s12028_s4 + $0x198] sm:$0xff]  ;;  %v4369_v43 = vld [vmem:[%s12028_s4 + $0x220] sm:$0xff] }
 0x6f7   :  { %v3932_v56 = vpop.xlane.xlu0 %3931  ;;  %v3928_v32 = vpop.xlane.xlu1 %3927 }
 0x6f8   :  { %v4082_v29 = vmul.f32 0.0051020407, %v3932_v56  ;;  %v4081_v17 = vmul.f32 0.0051020407, %v3928_v32  ;;  %5824 = vperm.xlu1 %6787, %v4778_v62   ;;  %v11106_v62 = vmul.f32 0.0051020407, %v10379_v41  ;;  %v4710_v56 = vmul.f32 %v4566_v47, %v10970_v60 }
 0x6f9   :  { %5819 = vperm.xlu0 %6786, %v4777_v18   ;;  %v4862_v41 = vld [vmem:[%s12030_s3 + $0x1c8] sm:$0xff]  ;;  %v4283_v32 = vmax.f32 %v4211_v27, 0.0  ;;  %v4428_v34 = vadd.f32 1e-05, %v4284_v2 }
 0x6fa   :  { %v4226_v10 = vsub.f32 %v4082_v29, %v4154_v48  ;;  %v4225_v30 = vsub.f32 %v4081_v17, %v4153_v7  ;;  %v12635_v18 = vld [vmem:[#allocation7_spill] sm:$0xff]  ;;  %v7141_v48 = vpop.eup %7140  ;;  %v4142_v29 = vmul.f32 %v11103_v11, %v11103_v11  ;;  %v4141_v49 = vmul.f32 %v11106_v62, %v11106_v62 }
 0x6fb   :  { %v5735_v3 = vpop.permute.xlu1 %5734  ;;  %v7143_v55 = vpop.eup %7142 }
 0x6fc   :  { %v4298_v5 = vmax.f32 %v4226_v10, 0.0  ;;  %v4297_v40 = vmax.f32 %v4225_v30, 0.0  ;;  %v6011_v58 = vadd.f32 %v5735_v3, %v5507_v6  ;;  %v6012_v23 = vadd.f32 %v5735_v3, %v5508_v13  ;;  %5186 = vperm.xlu1 %6787, %v11032_v37   ;;  %v4370_v3 = vld [vmem:[%s12028_s4 + $0x228] sm:$0xff] }
 0x6fd   :  { %5181 = vperm.xlu0 %6786, %v4563_v38   ;;  %v4565_v38 = vmul.f32 %v7139_v46, %v4349_v25  ;;  %v4214_v7 = vsub.f32 %v4070_v21, %v4142_v29  ;;  %v4213_v24 = vsub.f32 %v4069_v22, %v4141_v49  ;;  %v4782_v10 = vsub.f32 %v4638_v42, %v4710_v56  ;;  %v7145_v46 = vpop.eup %7144  ;;  %v12638_v22 = vld [vmem:[#allocation31_spill] sm:$0xff]  ;;  %v12641_v42 = vld [vmem:[#allocation32_spill] sm:$0xff] }
 0x6fe   :  { %v4442_v57 = vadd.f32 1e-05, %v4298_v5  ;;  %v4441_v35 = vadd.f32 1e-05, %v4297_v40  ;;  %6155 = vst [vmem:[%s12031_s6 + $0x1b0] sm:$0xff] %v6011_v58  ;;  %6156 = vst.msk [vmem:[%s12031_s6 + $0x1b8] sm:$0xff] %vm3220_vm1, %v6012_v23  ;;  %v4568_v6 = vmul.f32 %v7141_v48, %v4352_v4  ;;  %v4567_v13 = vmul.f32 %v7143_v55, %v4351_v31 }
 0x6ff   :  { %v5092_v37 = vpop.permute.xlu0 %5091  ;;  %v4286_v61 = vmax.f32 %v4214_v7, 0.0  ;;  %v11154_v5 = vmul.f32 0.0051020407, %v10454_v15  ;;  %v4072_v25 = vmul.f32 0.0051020407, %v10474_v44  ;;  %v12637_v40 = vld [vmem:[#allocation29_spill] sm:$0xff]  ;;  %v4144_v23 = vmul.f32 %v11151_v36, %v11151_v36 }
 0x700   :  { %7148 = vrsqrt.f32 %v4442_v57  ;;  %v5365_v50 = vmul.f32 %v12635_v18, %v5092_v37  ;;  %v5366_v16 = vmul.f32 %v12636_v26, %v5092_v37  ;;  %5834 = vperm.xlu1 %6787, %v4780_v51   ;;  %v4709_v51 = vmul.f32 %v4565_v38, %v10974_v12  ;;  %v4354_v44 = vld [vmem:[%s12028_s4 + $0x1a8] sm:$0xff] }
 0x701   :  { %7150 = vrsqrt.f32 %v4441_v35  ;;  %5829 = vperm.xlu0 %6786, %v4779_v54   ;;  %v4427_v12 = vadd.f32 1e-05, %v4283_v32  ;;  %v7147_v54 = vpop.eup %7146  ;;  %v4071_v15 = vmul.f32 0.0051020407, %v12637_v40  ;;  %v4712_v27 = vmul.f32 %v4568_v6, %v10996_v39  ;;  %v4639_v39 = vld [vmem:[%s12029_s5 + $0x190] sm:$0xff] }
 0x702   :  { %v5509_v19 = vadd.f32 %v5365_v50, %v4861_v9  ;;  %v5510_v14 = vadd.f32 %v5366_v16, %v4862_v41  ;;  %v4781_v30 = vsub.f32 %v4637_v63, %v4709_v51  ;;  %7152 = vrsqrt.f32 %v4428_v34  ;;  %v4640_v41 = vld [vmem:[%s12029_s5 + $0x198] sm:$0xff]  ;;  %v4641_v34 = vld [vmem:[%s12029_s5 + $0x1a0] sm:$0xff] }
 0x703   :  { %v5740_v45 = vpop.permute.xlu0 %5739  ;;  %7154 = vrsqrt.f32 %v4427_v12  ;;  %v4711_v57 = vmul.f32 %v4567_v13, %v10999_v59  ;;  %v4430_v37 = vadd.f32 1e-05, %v4286_v61  ;;  %v4143_v9 = vmul.f32 %v11154_v5, %v11154_v5  ;;  %v4353_v59 = vld [vmem:[%s12028_s4 + $0x1a0] sm:$0xff] }
 0x704   :  { %v6013_v60 = vadd.f32 %v5740_v45, %v5509_v19  ;;  %v6014_v17 = vadd.f32 %v5740_v45, %v5510_v14  ;;  %5196 = vperm.xlu1 %6787, %v4566_v47   ;;  %v4285_v47 = vmax.f32 %v4213_v24, 0.0  ;;  %v4216_v18 = vsub.f32 %v4072_v25, %v4144_v23  ;;  %v12639_v19 = vld [vmem:[#allocation30_spill] sm:$0xff]  ;;  %v4355_v24 = vld [vmem:[%s12028_s4 + $0x1b0] sm:$0xff] }
 0x705   :  { %5191 = vperm.xlu0 %6786, %v4565_v38   ;;  %v4215_v26 = vsub.f32 %v4071_v15, %v4143_v9  ;;  %v4570_v16 = vmul.f32 %v7145_v46, %v4354_v44  ;;  %v11195_v56 = vmul.f32 0.0051020407, %v12638_v22  ;;  %v4784_v48 = vsub.f32 %v4640_v41, %v4712_v27  ;;  %v12645_v23 = vld [vmem:[#allocation114_spill] sm:$0xff]  ;;  %v4358_v41 = vld [vmem:[%s12028_s4 + $0x1c8] sm:$0xff] }
 0x706   :  { %6157 = vst [vmem:[%s12031_s6 + $0x1c0] sm:$0xff] %v6013_v60  ;;  %6158 = vst.msk [vmem:[%s12031_s6 + $0x1c8] sm:$0xff] %vm3220_vm1, %v6014_v17  ;;  %v4429_v21 = vadd.f32 1e-05, %v4285_v47  ;;  %v4783_v32 = vsub.f32 %v4639_v39, %v4711_v57  ;;  %v4569_v29 = vmul.f32 %v7147_v54, %v4353_v59  ;;  %7156 = vrsqrt.f32 %v4430_v37  ;;  %v4642_v17 = vld [vmem:[%s12029_s5 + $0x1a8] sm:$0xff]  ;;  %v12643_v47 = vld [vmem:[#allocation108_spill] sm:$0xff] }
 0x707   :  { %v11198_v14 = vmul.f32 0.0051020407, %v12639_v19  ;;  %v4288_v55 = vmax.f32 %v4216_v18, 0.0  ;;  %v4287_v45 = vmax.f32 %v4215_v26, 0.0  ;;  %v4714_v51 = vmul.f32 %v4570_v16, %v11022_v0  ;;  %v4356_v0 = vld [vmem:[%s12028_s4 + $0x1b8] sm:$0xff]  ;;  %v4357_v39 = vld [vmem:[%s12028_s4 + $0x1c0] sm:$0xff] }
 0x708   :  { %5844 = vperm.xlu1 %6787, %v4782_v10   ;;  %7158 = vrsqrt.f32 %v4429_v21  ;;  %v4146_v60 = vmul.f32 %v11195_v56, %v11195_v56  ;;  %v4713_v63 = vmul.f32 %v4569_v29, %v11019_v8  ;;  %v11224_v25 = vmul.f32 0.0051020407, %v12643_v47  ;;  %v4644_v21 = vld [vmem:[%s12029_s5 + $0x1b8] sm:$0xff]  ;;  %v12646_v26 = vld [vmem:[#allocation35_spill] sm:$0xff]  ;;  %v12647_v19 = vld [vmem:[#allocation34_spill] sm:$0xff] }
 0x709   :  { %5839 = vperm.xlu0 %6786, %v4781_v30   ;;  %v4145_v31 = vmul.f32 %v11198_v14, %v11198_v14  ;;  %v4432_v12 = vadd.f32 1e-05, %v4288_v55  ;;  %v4431_v8 = vadd.f32 1e-05, %v4287_v45  ;;  %v4075_v27 = vmul.f32 0.0051020407, %v12645_v23 }
 0x70a   :  { %v7149_v1 = vpop.eup %7148  ;;  %v4785_v61 = vsub.f32 %v4641_v34, %v4713_v63  ;;  %v4147_v59 = vmul.f32 %v11224_v25, %v11224_v25  ;;  %v11250_v55 = vmul.f32 0.0051020407, %v12647_v19  ;;  %v4080_v23 = vmul.f32 0.0051020407, %v10844_v20 }
 0x70b   :  { %v7151_v58 = vpop.eup %7150  ;;  %v11171_v35 = vmul.f32 %v7149_v1, %v4370_v3  ;;  %7160 = vrsqrt.f32 %v4432_v12  ;;  %v12644_v1 = vld [vmem:[#allocation33_spill] sm:$0xff]  ;;  %v4645_v12 = vld [vmem:[%s12029_s5 + $0x1c0] sm:$0xff] }
 0x70c   :  { %v11184_v38 = vmul.f32 %v7151_v58, %v4369_v43  ;;  %5206 = vperm.xlu1 %6787, %v4568_v6   ;;  %v7153_v7 = vpop.eup %7152  ;;  %v4786_v6 = vsub.f32 %v4642_v17, %v4714_v51  ;;  %v4076_v40 = vmul.f32 0.0051020407, %v12644_v1  ;;  %7162 = vrsqrt.f32 %v4431_v8 }
 0x70d   :  { %5201 = vperm.xlu0 %6786, %v4567_v13   ;;  %v11188_v50 = vmul.f32 %v11171_v35, %v11053_v33  ;;  %v12640_v33 = vld [vmem:[#allocation105_spill] sm:$0xff]  ;;  %v7155_v4 = vpop.eup %7154  ;;  %v4572_v3 = vmul.f32 %v7153_v7, %v4356_v0  ;;  %v12649_v7 = vld [vmem:[#allocation36_spill] sm:$0xff]  ;;  %v4149_v34 = vmul.f32 %v11250_v55, %v11250_v55 }
 0x70e   :  { %v11192_v2 = vmul.f32 %v11184_v38, %v11060_v28  ;;  %v4074_v49 = vmul.f32 0.0051020407, %v12640_v33  ;;  %v4073_v28 = vmul.f32 0.0051020407, %v12641_v42  ;;  %v12642_v13 = vld [vmem:[#allocation109_spill] sm:$0xff]  ;;  %v4571_v54 = vmul.f32 %v7155_v4, %v4355_v24  ;;  %v4646_v24 = vld [vmem:[%s12029_s5 + $0x1c8] sm:$0xff] }
 0x70f   :  { %v11221_v46 = vmul.f32 0.0051020407, %v12642_v13  ;;  %v4716_v37 = vmul.f32 %v4572_v3, %v11066_v53  ;;  %v4643_v53 = vld [vmem:[%s12029_s5 + $0x1b0] sm:$0xff]  ;;  %v12648_v33 = vld [vmem:[#allocation113_spill] sm:$0xff] }
 0x710   :  { %5854 = vperm.xlu1 %6787, %v4784_v48   ;;  %v4218_v10 = vsub.f32 %v4074_v49, %v4146_v60  ;;  %v4217_v30 = vsub.f32 %v4073_v28, %v4145_v31  ;;  %v7157_v15 = vpop.eup %7156  ;;  %v4715_v9 = vmul.f32 %v4571_v54, %v11073_v52  ;;  %v4219_v48 = vsub.f32 %v4075_v27, %v4147_v59  ;;  %v12652_v27 = vld [vmem:[#allocation122_spill] sm:$0xff]  ;;  %v4362_v59 = vld [vmem:[%s12028_s4 + $0x1e8] sm:$0xff] }
 0x711   :  { %5849 = vperm.xlu0 %6786, %v4783_v32   ;;  %v4148_v44 = vmul.f32 %v11221_v46, %v11221_v46  ;;  %v4574_v32 = vmul.f32 %v7157_v15, %v4358_v41  ;;  %v4078_v49 = vmul.f32 0.0051020407, %v12648_v33  ;;  %v4788_v45 = vsub.f32 %v4644_v21, %v4716_v37 }
 0x712   :  { %v4290_v43 = vmax.f32 %v4218_v10, 0.0  ;;  %v4289_v58 = vmax.f32 %v4217_v30, 0.0  ;;  %v7159_v57 = vpop.eup %7158  ;;  %v4787_v42 = vsub.f32 %v4643_v53, %v4715_v9  ;;  %v4077_v60 = vmul.f32 0.0051020407, %v12649_v7  ;;  %v4648_v53 = vld [vmem:[%s12029_s5 + $0x1d8] sm:$0xff]  ;;  %v4650_v7 = vld [vmem:[%s12029_s5 + $0x1e8] sm:$0xff] }
 0x713   :  { %v4220_v18 = vsub.f32 %v4076_v40, %v4148_v44  ;;  %v4291_v17 = vmax.f32 %v4219_v48, 0.0  ;;  %v4718_v63 = vmul.f32 %v4574_v32, %v11103_v11  ;;  %v4360_v11 = vld [vmem:[%s12028_s4 + $0x1d8] sm:$0xff]  ;;  %v12651_v40 = vld [vmem:[#allocation116_spill] sm:$0xff] }
 0x714   :  { %5216 = vperm.xlu1 %6787, %v4570_v16   ;;  %v4434_v52 = vadd.f32 1e-05, %v4290_v43  ;;  %v11247_v16 = vmul.f32 0.0051020407, %v12646_v26  ;;  %v4433_v22 = vadd.f32 1e-05, %v4289_v58  ;;  %v4221_v30 = vsub.f32 %v4077_v60, %v4149_v34  ;;  %v5097_v26 = vpop.permute.xlu1 %5096 }
 0x715   :  { %5211 = vperm.xlu0 %6786, %v4569_v29   ;;  %v4573_v29 = vmul.f32 %v7159_v57, %v4357_v39  ;;  %v4292_v28 = vmax.f32 %v4220_v18, 0.0  ;;  %v7161_v31 = vpop.eup %7160  ;;  %v4790_v13 = vsub.f32 %v4646_v24, %v4718_v63  ;;  %v11276_v15 = vmul.f32 0.0051020407, %v12651_v40  ;;  %v12653_v63 = vld [vmem:[#allocation9_spill] sm:$0xff]  ;;  %v4363_v24 = vld [vmem:[%s12028_s4 + $0x1f0] sm:$0xff] }
 0x716   :  { %7164 = vrsqrt.f32 %v4434_v52  ;;  %v4150_v51 = vmul.f32 %v11247_v16, %v11247_v16  ;;  %v7163_v10 = vpop.eup %7162  ;;  %v4576_v43 = vmul.f32 %v7161_v31, %v4360_v11  ;;  %v4293_v58 = vmax.f32 %v4221_v30, 0.0  ;;  %v4647_v52 = vld [vmem:[%s12029_s5 + $0x1d0] sm:$0xff]  ;;  %v12654_v31 = vld [vmem:[#allocation10_spill] sm:$0xff]  ;;  %v4864_v11 = vld [vmem:[%s12030_s3 + $0x1d8] sm:$0xff] }
 0x717   :  { %7166 = vrsqrt.f32 %v4433_v22  ;;  %v4717_v4 = vmul.f32 %v4573_v29, %v11106_v62  ;;  %v4359_v62 = vld [vmem:[%s12028_s4 + $0x1d0] sm:$0xff]  ;;  %v4436_v8 = vadd.f32 1e-05, %v4292_v28  ;;  %v4079_v57 = vmul.f32 0.0051020407, %v12652_v27  ;;  %v4366_v27 = vld [vmem:[%s12028_s4 + $0x208] sm:$0xff] }
 0x718   :  { %5864 = vperm.xlu1 %6787, %v4786_v6   ;;  %v4222_v0 = vsub.f32 %v4078_v49, %v4150_v51  ;;  %v4435_v6 = vadd.f32 1e-05, %v4291_v17  ;;  %v4575_v1 = vmul.f32 %v7163_v10, %v4359_v62  ;;  %v4720_v41 = vmul.f32 %v4576_v43, %v11151_v36  ;;  %v4361_v36 = vld [vmem:[%s12028_s4 + $0x1e0] sm:$0xff] }
 0x719   :  { %5859 = vperm.xlu0 %6786, %v4785_v61   ;;  %v4789_v61 = vsub.f32 %v4645_v12, %v4717_v4  ;;  %7168 = vrsqrt.f32 %v4436_v8  ;;  %v4151_v20 = vmul.f32 %v11276_v15, %v11276_v15  ;;  %v5367_v4 = vmul.f32 %v12653_v63, %v5097_v26 }
 0x71a   :  { %7170 = vrsqrt.f32 %v4435_v6  ;;  %v4719_v39 = vmul.f32 %v4575_v1, %v11154_v5  ;;  %v4437_v5 = vadd.f32 1e-05, %v4293_v58  ;;  %v5368_v34 = vmul.f32 %v12654_v31, %v5097_v26 }
 0x71b   :  { %v4223_v22 = vsub.f32 %v4079_v57, %v4151_v20  ;;  %v4365_v20 = vld [vmem:[%s12028_s4 + $0x200] sm:$0xff] }
 0x71c   :  { %5226 = vperm.xlu1 %6787, %v4572_v3   ;;  %v4294_v3 = vmax.f32 %v4222_v0, 0.0  ;;  %v4649_v0 = vld [vmem:[%s12029_s5 + $0x1e0] sm:$0xff] }
 0x71d   :  { %5221 = vperm.xlu0 %6786, %v4571_v54   ;;  %v12650_v54 = vld [vmem:[#allocation117_spill] sm:$0xff] }
 0x71e   :  { %v11273_v47 = vmul.f32 0.0051020407, %v12650_v54  ;;  %v4438_v37 = vadd.f32 1e-05, %v4294_v3 }
 0x720   :  { %5874 = vperm.xlu1 %6787, %v4788_v45   ;;  %v7165_v44 = vpop.eup %7164  ;;  %v4152_v9 = vmul.f32 %v11273_v47, %v11273_v47  ;;  %7172 = vrsqrt.f32 %v4438_v37 }
 0x721   :  { %5869 = vperm.xlu0 %6786, %v4787_v42   ;;  %v7167_v21 = vpop.eup %7166  ;;  %v4578_v48 = vmul.f32 %v7165_v44, %v4362_v59  ;;  %7174 = vrsqrt.f32 %v4437_v5  ;;  %v4295_v42 = vmax.f32 %v4223_v22, 0.0  ;;  %v12655_v22 = vld [vmem:[#allocation11_spill] sm:$0xff] }
 0x722   :  { %v4224_v18 = vsub.f32 %v4080_v23, %v4152_v9  ;;  %v4577_v19 = vmul.f32 %v7167_v21, %v4361_v36  ;;  %v4651_v36 = vld [vmem:[%s12029_s5 + $0x1f0] sm:$0xff] }
 0x723   :  { %v4722_v28 = vmul.f32 %v4578_v48, %v11195_v56  ;;  %v7169_v51 = vpop.eup %7168  ;;  %v4364_v56 = vld [vmem:[%s12028_s4 + $0x1f8] sm:$0xff]  ;;  %v4439_v62 = vadd.f32 1e-05, %v4295_v42 }
 0x724   :  { %5236 = vperm.xlu1 %6787, %v4574_v32   ;;  %v4792_v32 = vsub.f32 %v4648_v53, %v4720_v41  ;;  %v4296_v49 = vmax.f32 %v4224_v18, 0.0  ;;  %v4721_v60 = vmul.f32 %v4577_v19, %v11198_v14  ;;  %v7171_v17 = vpop.eup %7170  ;;  %v4863_v14 = vld [vmem:[%s12030_s3 + $0x1d0] sm:$0xff] }
 0x725   :  { %5231 = vperm.xlu0 %6786, %v4573_v29   ;;  %v4791_v29 = vsub.f32 %v4647_v52, %v4719_v39  ;;  %v4794_v30 = vsub.f32 %v4650_v7, %v4722_v28  ;;  %v4579_v3 = vmul.f32 %v7171_v17, %v4363_v24  ;;  %v4652_v39 = vld [vmem:[%s12029_s5 + $0x1f8] sm:$0xff]  ;;  %v12658_v28 = vld [vmem:[#allocation14_spill] sm:$0xff] }
 0x726   :  { %v4440_v12 = vadd.f32 1e-05, %v4296_v49 }
 0x727   :  { %v4723_v21 = vmul.f32 %v4579_v3, %v11224_v25  ;;  %v4866_v25 = vld [vmem:[%s12030_s3 + $0x1e8] sm:$0xff] }
 0x728   :  { %5884 = vperm.xlu1 %6787, %v4790_v13   ;;  %v4793_v13 = vsub.f32 %v4649_v0, %v4721_v60  ;;  %7176 = vrsqrt.f32 %v4440_v12 }
 0x729   :  { %5879 = vperm.xlu0 %6786, %v4789_v61   ;;  %v4580_v61 = vmul.f32 %v7169_v51, %v4364_v56  ;;  %7178 = vrsqrt.f32 %v4439_v62 }
 0x72a   :  { %v7173_v40 = vpop.eup %7172 }
 0x72b   :  { %v7175_v9 = vpop.eup %7174  ;;  %v4724_v59 = vmul.f32 %v4580_v61, %v11221_v46  ;;  %v4865_v46 = vld [vmem:[%s12030_s3 + $0x1e0] sm:$0xff]  ;;  %v4582_v5 = vmul.f32 %v7173_v40, %v4366_v27  ;;  %v4870_v40 = vld [vmem:[%s12030_s3 + $0x208] sm:$0xff] }
 0x72c   :  { %5246 = vperm.xlu1 %6787, %v4576_v43   ;;  %v5511_v43 = vadd.f32 %v5367_v4, %v4863_v14  ;;  %v4581_v7 = vmul.f32 %v7175_v9, %v4365_v20  ;;  %v4795_v4 = vsub.f32 %v4651_v36, %v4723_v21  ;;  %v12661_v20 = vld [vmem:[#allocation17_spill] sm:$0xff] }
 0x72d   :  { %5241 = vperm.xlu0 %6786, %v4575_v1   ;;  %v5512_v1 = vadd.f32 %v5368_v34, %v4864_v11  ;;  %v4796_v60 = vsub.f32 %v4652_v39, %v4724_v59  ;;  %v4726_v14 = vmul.f32 %v4582_v5, %v11247_v16  ;;  %v4653_v16 = vld [vmem:[%s12029_s5 + $0x200] sm:$0xff]  ;;  %v4872_v39 = vld [vmem:[%s12030_s3 + $0x218] sm:$0xff] }
 0x730   :  { %v3508_v33 = vpop.xlane.xlu0 %3507  ;;  %v3504_v45 = vpop.xlane.xlu1 %3503  ;;  %5894 = vperm.xlu1 %6787, %v4792_v32   ;;  %v12656_v32 = vld [vmem:[#allocation12_spill] sm:$0xff] }
 0x731   :  { %5889 = vperm.xlu0 %6786, %v4791_v29   ;;  %v11320_v6 = vmul.f32 0.0051020407, %v3508_v33  ;;  %v11322_v54 = vmul.f32 0.0051020407, %v3504_v45  ;;  %v4868_v33 = vld [vmem:[%s12030_s3 + $0x1f8] sm:$0xff] }
 0x732   :  { %v12657_v45 = vld [vmem:[#allocation13_spill] sm:$0xff] }
 0x733   :  { %v4156_v41 = vmul.f32 %v11320_v6, %v11320_v6  ;;  %v4155_v53 = vmul.f32 %v11322_v54, %v11322_v54 }
 0x734   :  { %v3936_v10 = vpop.xlane.xlu1 %3935  ;;  %5256 = vperm.xlu1 %6787, %v4578_v48   ;;  %v3940_v8 = vpop.xlane.xlu0 %3939 }
 0x735   :  { %5251 = vperm.xlu0 %6786, %v4577_v19   ;;  %v4084_v58 = vmul.f32 0.0051020407, %v3940_v8  ;;  %v4083_v57 = vmul.f32 0.0051020407, %v3936_v10  ;;  %v4867_v19 = vld [vmem:[%s12030_s3 + $0x1f0] sm:$0xff] }
 0x737   :  { %v4228_v18 = vsub.f32 %v4084_v58, %v4156_v41  ;;  %v4227_v49 = vsub.f32 %v4083_v57, %v4155_v53  ;;  %v4367_v58 = vld [vmem:[%s12028_s4 + $0x210] sm:$0xff]  ;;  %v12659_v57 = vld [vmem:[#allocation15_spill] sm:$0xff] }
 0x738   :  { %v5745_v23 = vpop.permute.xlu1 %5744  ;;  %5904 = vperm.xlu1 %6787, %v4794_v30   ;;  %v4654_v30 = vld [vmem:[%s12029_s5 + $0x208] sm:$0xff]  ;;  %v4871_v41 = vld [vmem:[%s12030_s3 + $0x210] sm:$0xff] }
 0x739   :  { %5899 = vperm.xlu0 %6786, %v4793_v13   ;;  %v6015_v44 = vadd.f32 %v5745_v23, %v5511_v43  ;;  %v6016_v37 = vadd.f32 %v5745_v23, %v5512_v1  ;;  %v4300_v56 = vmax.f32 %v4228_v18, 0.0  ;;  %v4299_v11 = vmax.f32 %v4227_v49, 0.0  ;;  %v4869_v1 = vld [vmem:[%s12030_s3 + $0x200] sm:$0xff] }
 0x73a   :  { %v4725_v13 = vmul.f32 %v4581_v7, %v11250_v55  ;;  %v4798_v59 = vsub.f32 %v4654_v30, %v4726_v14 }
 0x73b   :  { %6159 = vst [vmem:[%s12031_s6 + $0x1d0] sm:$0xff] %v6015_v44  ;;  %6160 = vst.msk [vmem:[%s12031_s6 + $0x1d8] sm:$0xff] %vm3220_vm1, %v6016_v37  ;;  %v4444_v23 = vadd.f32 1e-05, %v4300_v56  ;;  %v12660_v37 = vld [vmem:[#allocation16_spill] sm:$0xff]  ;;  %v4876_v56 = vld [vmem:[%s12030_s3 + $0x238] sm:$0xff] }
 0x73c   :  { %v5102_v52 = vpop.permute.xlu0 %5101  ;;  %v5107_v26 = vpop.permute.xlu1 %5106  ;;  %5266 = vperm.xlu1 %6787, %v4580_v61   ;;  %v4443_v21 = vadd.f32 1e-05, %v4299_v11 }
 0x73d   :  { %v5369_v48 = vmul.f32 %v12655_v22, %v5102_v52  ;;  %v5370_v29 = vmul.f32 %v12656_v32, %v5102_v52  ;;  %5261 = vperm.xlu0 %6786, %v4579_v3   ;;  %v5371_v42 = vmul.f32 %v12657_v45, %v5107_v26  ;;  %v5372_v51 = vmul.f32 %v12658_v28, %v5107_v26  ;;  %v7177_v61 = vpop.eup %7176  ;;  %v4368_v3 = vld [vmem:[%s12028_s4 + $0x218] sm:$0xff]  ;;  %v12662_v52 = vld [vmem:[#allocation18_spill] sm:$0xff] }
 0x73e   :  { %v7179_v43 = vpop.eup %7178  ;;  %v4584_v18 = vmul.f32 %v7177_v61, %v4368_v3  ;;  %7180 = vrsqrt.f32 %v4444_v23  ;;  %v4658_v23 = vld [vmem:[%s12029_s5 + $0x228] sm:$0xff] }
 0x73f   :  { %v5513_v17 = vadd.f32 %v5369_v48, %v4865_v46  ;;  %v5514_v63 = vadd.f32 %v5370_v29, %v4866_v25  ;;  %v5515_v31 = vadd.f32 %v5371_v42, %v4867_v19  ;;  %v5516_v34 = vadd.f32 %v5372_v51, %v4868_v33  ;;  %v4656_v42 = vld [vmem:[%s12029_s5 + $0x218] sm:$0xff] }
 0x740   :  { %v5750_v0 = vpop.permute.xlu0 %5749  ;;  %v5755_v24 = vpop.permute.xlu1 %5754  ;;  %5914 = vperm.xlu1 %6787, %v4796_v60   ;;  %v4797_v25 = vsub.f32 %v4653_v16, %v4725_v13  ;;  %v4583_v26 = vmul.f32 %v7179_v43, %v4367_v58  ;;  %7182 = vrsqrt.f32 %v4443_v21  ;;  %v4728_v28 = vmul.f32 %v4584_v18, %v11273_v47  ;;  %v4873_v60 = vld [vmem:[%s12030_s3 + $0x220] sm:$0xff]  ;;  %v4874_v47 = vld [vmem:[%s12030_s3 + $0x228] sm:$0xff] }
 0x741   :  { %v6017_v12 = vadd.f32 %v5750_v0, %v5513_v17  ;;  %v6018_v10 = vadd.f32 %v5750_v0, %v5514_v63  ;;  %5909 = vperm.xlu0 %6786, %v4795_v4   ;;  %v6019_v62 = vadd.f32 %v5755_v24, %v5515_v31  ;;  %v6020_v8 = vadd.f32 %v5755_v24, %v5516_v34  ;;  %v12663_v63 = vld [vmem:[#allocation19_spill] sm:$0xff]  ;;  %v12664_v31 = vld [vmem:[#allocation20_spill] sm:$0xff]  ;;  %v12665_v24 = vld [vmem:[#allocation21_spill] sm:$0xff] }
 0x742   :  { %v4727_v51 = vmul.f32 %v4583_v26, %v11276_v15  ;;  %v4655_v15 = vld [vmem:[%s12029_s5 + $0x210] sm:$0xff]  ;;  %v4800_v11 = vsub.f32 %v4656_v42, %v4728_v28  ;;  %v12667_v21 = vld [vmem:[#allocation74_spill] sm:$0xff] }
 0x743   :  { %6161 = vst [vmem:[%s12031_s6 + $0x1e0] sm:$0xff] %v6017_v12  ;;  %6162 = vst.msk [vmem:[%s12031_s6 + $0x1e8] sm:$0xff] %vm3220_vm1, %v6018_v10  ;;  %v4875_v0 = vld [vmem:[%s12030_s3 + $0x230] sm:$0xff]  ;;  %v12666_v10 = vld [vmem:[#allocation22_spill] sm:$0xff] }
 0x744   :  { %6163 = vst [vmem:[%s12031_s6 + $0x1f0] sm:$0xff] %v6019_v62  ;;  %6164 = vst.msk [vmem:[%s12031_s6 + $0x1f8] sm:$0xff] %vm3220_vm1, %v6020_v8  ;;  %v5112_v55 = vpop.permute.xlu0 %5111  ;;  %v5117_v27 = vpop.permute.xlu1 %5116  ;;  %5276 = vperm.xlu1 %6787, %v4582_v5   ;;  %v4799_v30 = vsub.f32 %v4655_v15, %v4727_v51  ;;  %v4881_v15 = vld [vmem:[%s12030_s3 + $0x260] sm:$0xff] }
 0x745   :  { %v5373_v44 = vmul.f32 %v12659_v57, %v5112_v55  ;;  %v5374_v9 = vmul.f32 %v12660_v37, %v5112_v55  ;;  %5271 = vperm.xlu0 %6786, %v4581_v7   ;;  %v5375_v53 = vmul.f32 %v12661_v20, %v5117_v27  ;;  %v5376_v46 = vmul.f32 %v12662_v52, %v5117_v27  ;;  %v4877_v27 = vld [vmem:[%s12030_s3 + $0x240] sm:$0xff] }
 0x746   :  { %v4657_v57 = vld [vmem:[%s12029_s5 + $0x220] sm:$0xff] }
 0x747   :  { %v5517_v36 = vadd.f32 %v5373_v44, %v4869_v1  ;;  %v5518_v5 = vadd.f32 %v5374_v9, %v4870_v40  ;;  %v5519_v22 = vadd.f32 %v5375_v53, %v4871_v41  ;;  %v5520_v48 = vadd.f32 %v5376_v46, %v4872_v39  ;;  %v4878_v9 = vld [vmem:[%s12030_s3 + $0x248] sm:$0xff]  ;;  %v4372_v41 = vld [vmem:[%s12028_s4 + $0x238] sm:$0xff]  ;;  %v4371_v39 = vld [vmem:[%s12028_s4 + $0x230] sm:$0xff] }
 0x748   :  { %v5760_v32 = vpop.permute.xlu0 %5759  ;;  %v5765_v29 = vpop.permute.xlu1 %5764  ;;  %5924 = vperm.xlu1 %6787, %v4798_v59   ;;  %v12668_v53 = vld [vmem:[#allocation75_spill] sm:$0xff]  ;;  %v4879_v46 = vld [vmem:[%s12030_s3 + $0x250] sm:$0xff] }
 0x749   :  { %v6021_v19 = vadd.f32 %v5760_v32, %v5517_v36  ;;  %v6022_v33 = vadd.f32 %v5760_v32, %v5518_v5  ;;  %5919 = vperm.xlu0 %6786, %v4797_v25   ;;  %v6023_v49 = vadd.f32 %v5765_v29, %v5519_v22  ;;  %v6024_v45 = vadd.f32 %v5765_v29, %v5520_v48  ;;  %v7181_v58 = vpop.eup %7180  ;;  %v4880_v25 = vld [vmem:[%s12030_s3 + $0x258] sm:$0xff]  ;;  %v12669_v36 = vld [vmem:[#allocation76_spill] sm:$0xff] }
 0x74a   :  { %v7183_v44 = vpop.eup %7182  ;;  %v4801_v22 = vsub.f32 %v4657_v57, %v11192_v2  ;;  %v4588_v29 = vmul.f32 %v7181_v58, %v4372_v41 }
 0x74b   :  { %6165 = vst [vmem:[%s12031_s6 + $0x200] sm:$0xff] %v6021_v19  ;;  %6166 = vst.msk [vmem:[%s12031_s6 + $0x208] sm:$0xff] %vm3220_vm1, %v6022_v33 }
 0x74c   :  { %6167 = vst [vmem:[%s12031_s6 + $0x210] sm:$0xff] %v6023_v49  ;;  %6168 = vst.msk [vmem:[%s12031_s6 + $0x218] sm:$0xff] %vm3220_vm1, %v6024_v45  ;;  %v5122_v7 = vpop.permute.xlu0 %5121  ;;  %v5127_v17 = vpop.permute.xlu1 %5126  ;;  %5286 = vperm.xlu1 %6787, %v4584_v18   ;;  %v12670_v18 = vld [vmem:[#allocation77_spill] sm:$0xff]  ;;  %v4732_v2 = vmul.f32 %v4588_v29, %v11320_v6  ;;  %v4882_v6 = vld [vmem:[%s12030_s3 + $0x268] sm:$0xff] }
 0x74d   :  { %v5377_v4 = vmul.f32 %v12663_v63, %v5122_v7  ;;  %v5378_v34 = vmul.f32 %v12664_v31, %v5122_v7  ;;  %5281 = vperm.xlu0 %6786, %v4583_v26   ;;  %v5379_v12 = vmul.f32 %v12665_v24, %v5127_v17  ;;  %v5380_v14 = vmul.f32 %v12666_v10, %v5127_v17  ;;  %v12671_v63 = vld [vmem:[#allocation78_spill] sm:$0xff]  ;;  %v12672_v31 = vld [vmem:[#allocation79_spill] sm:$0xff]  ;;  %v12673_v24 = vld [vmem:[#allocation80_spill] sm:$0xff] }
 0x74e   :  { %v12674_v10 = vld [vmem:[#allocation81_spill] sm:$0xff] }
 0x74f   :  { %v5521_v62 = vadd.f32 %v5377_v4, %v4873_v60  ;;  %v5522_v8 = vadd.f32 %v5378_v34, %v4874_v47  ;;  %v5523_v13 = vadd.f32 %v5379_v12, %v4875_v0  ;;  %v5524_v61 = vadd.f32 %v5380_v14, %v4876_v56  ;;  %v4883_v0 = vld [vmem:[%s12030_s3 + $0x270] sm:$0xff]  ;;  %v4884_v56 = vld [vmem:[%s12030_s3 + $0x278] sm:$0xff] }
 0x750   :  { %v5770_v16 = vpop.permute.xlu0 %5769  ;;  %v5775_v3 = vpop.permute.xlu1 %5774  ;;  %5934 = vperm.xlu1 %6787, %v4800_v11  }
 0x751   :  { %v6025_v43 = vadd.f32 %v5770_v16, %v5521_v62  ;;  %v6026_v55 = vadd.f32 %v5770_v16, %v5522_v8  ;;  %5929 = vperm.xlu0 %6786, %v4799_v30   ;;  %v6027_v1 = vadd.f32 %v5775_v3, %v5523_v13  ;;  %v6028_v40 = vadd.f32 %v5775_v3, %v5524_v61 }
 0x753   :  { %6169 = vst [vmem:[%s12031_s6 + $0x220] sm:$0xff] %v6025_v43  ;;  %6170 = vst.msk [vmem:[%s12031_s6 + $0x228] sm:$0xff] %vm3220_vm1, %v6026_v55 }
 0x754   :  { %6171 = vst [vmem:[%s12031_s6 + $0x230] sm:$0xff] %v6027_v1  ;;  %6172 = vst.msk [vmem:[%s12031_s6 + $0x238] sm:$0xff] %vm3220_vm1, %v6028_v40  ;;  %v5132_v37 = vpop.permute.xlu0 %5131  ;;  %v5137_v59 = vpop.permute.xlu1 %5136  ;;  %5296 = vperm.xlu1 %6787, %v11171_v35   ;;  %v4802_v35 = vsub.f32 %v4658_v23, %v11188_v50  ;;  %v4660_v50 = vld [vmem:[%s12029_s5 + $0x238] sm:$0xff]  ;;  %v4885_v23 = vld [vmem:[%s12030_s3 + $0x280] sm:$0xff] }
 0x755   :  { %v5381_v20 = vmul.f32 %v12667_v21, %v5132_v37  ;;  %v5382_v52 = vmul.f32 %v12668_v53, %v5132_v37  ;;  %5291 = vperm.xlu0 %6786, %v11184_v38   ;;  %v5383_v5 = vmul.f32 %v12669_v36, %v5137_v59  ;;  %v5384_v26 = vmul.f32 %v12670_v18, %v5137_v59  ;;  %v4888_v59 = vld [vmem:[%s12030_s3 + $0x298] sm:$0xff]  ;;  %v12677_v21 = vld [vmem:[#allocation84_spill] sm:$0xff] }
 0x756   :  { %v4587_v38 = vmul.f32 %v7183_v44, %v4371_v39  ;;  %v4804_v11 = vsub.f32 %v4660_v50, %v4732_v2  ;;  %v12675_v44 = vld [vmem:[#allocation82_spill] sm:$0xff]  ;;  %v4887_v39 = vld [vmem:[%s12030_s3 + $0x290] sm:$0xff]  ;;  %v12678_v53 = vld [vmem:[#allocation85_spill] sm:$0xff] }
 0x757   :  { %v5525_v48 = vadd.f32 %v5381_v20, %v4877_v27  ;;  %v5526_v32 = vadd.f32 %v5382_v52, %v4878_v9  ;;  %v5527_v19 = vadd.f32 %v5383_v5, %v4879_v46  ;;  %v5528_v33 = vadd.f32 %v5384_v26, %v4880_v25  ;;  %v4886_v27 = vld [vmem:[%s12030_s3 + $0x288] sm:$0xff]  ;;  %v12681_v50 = vld [vmem:[#allocation88_spill] sm:$0xff] }
 0x758   :  { %v5780_v49 = vpop.permute.xlu0 %5779  ;;  %v5785_v45 = vpop.permute.xlu1 %5784  ;;  %5944 = vperm.xlu1 %6787, %v4802_v35   ;;  %v4731_v60 = vmul.f32 %v4587_v38, %v11322_v54  ;;  %v4659_v54 = vld [vmem:[%s12029_s5 + $0x230] sm:$0xff]  ;;  %v12676_v9 = vld [vmem:[#allocation83_spill] sm:$0xff] }
 0x759   :  { %v6029_v42 = vadd.f32 %v5780_v49, %v5525_v48  ;;  %v6030_v28 = vadd.f32 %v5780_v49, %v5526_v32  ;;  %5939 = vperm.xlu0 %6786, %v4801_v22   ;;  %v6031_v51 = vadd.f32 %v5785_v45, %v5527_v19  ;;  %v6032_v7 = vadd.f32 %v5785_v45, %v5528_v33  ;;  %v4890_v19 = vld [vmem:[%s12030_s3 + $0x2a8] sm:$0xff]  ;;  %v12679_v49 = vld [vmem:[#allocation86_spill] sm:$0xff] }
 0x75a   :  { %v4803_v30 = vsub.f32 %v4659_v54, %v4731_v60  ;;  %v12682_v60 = vld [vmem:[#allocation89_spill] sm:$0xff] }
 0x75b   :  { %6173 = vst [vmem:[%s12031_s6 + $0x240] sm:$0xff] %v6029_v42  ;;  %6174 = vst.msk [vmem:[%s12031_s6 + $0x248] sm:$0xff] %vm3220_vm1, %v6030_v28  ;;  %v12680_v42 = vld [vmem:[#allocation87_spill] sm:$0xff] }
 0x75c   :  { %6175 = vst [vmem:[%s12031_s6 + $0x250] sm:$0xff] %v6031_v51  ;;  %6176 = vst.msk [vmem:[%s12031_s6 + $0x258] sm:$0xff] %vm3220_vm1, %v6032_v7  ;;  %v5142_v47 = vpop.permute.xlu0 %5141  ;;  %v5147_v17 = vpop.permute.xlu1 %5146  ;;  %5306 = vperm.xlu1 %6787, %v4588_v29   ;;  %v4891_v51 = vld [vmem:[%s12030_s3 + $0x2b0] sm:$0xff]  ;;  %v4892_v7 = vld [vmem:[%s12030_s3 + $0x2b8] sm:$0xff] }
 0x75d   :  { %v5385_v4 = vmul.f32 %v12671_v63, %v5142_v47  ;;  %v5386_v34 = vmul.f32 %v12672_v31, %v5142_v47  ;;  %5301 = vperm.xlu0 %6786, %v4587_v38   ;;  %v5387_v12 = vmul.f32 %v12673_v24, %v5147_v17  ;;  %v5388_v14 = vmul.f32 %v12674_v10, %v5147_v17  ;;  %v4889_v38 = vld [vmem:[%s12030_s3 + $0x2a0] sm:$0xff]  ;;  %v4894_v10 = vld [vmem:[%s12030_s3 + $0x2c8] sm:$0xff] }
 0x75f   :  { %v5529_v62 = vadd.f32 %v5385_v4, %v4881_v15  ;;  %v5530_v8 = vadd.f32 %v5386_v34, %v4882_v6  ;;  %v5531_v13 = vadd.f32 %v5387_v12, %v4883_v0  ;;  %v5532_v61 = vadd.f32 %v5388_v14, %v4884_v56  ;;  %v4893_v12 = vld [vmem:[%s12030_s3 + $0x2c0] sm:$0xff] }
 0x760   :  { %v5790_v16 = vpop.permute.xlu0 %5789  ;;  %v5795_v3 = vpop.permute.xlu1 %5794  ;;  %5954 = vperm.xlu1 %6787, %v4804_v11   ;;  %v12683_v11 = vld [vmem:[#allocation91_spill] sm:$0xff] }
 0x761   :  { %v6033_v43 = vadd.f32 %v5790_v16, %v5529_v62  ;;  %v6034_v55 = vadd.f32 %v5790_v16, %v5530_v8  ;;  %5949 = vperm.xlu0 %6786, %v4803_v30   ;;  %v6035_v1 = vadd.f32 %v5795_v3, %v5531_v13  ;;  %v6036_v40 = vadd.f32 %v5795_v3, %v5532_v61  ;;  %v12684_v8 = vld [vmem:[#allocation94_spill] sm:$0xff]  ;;  %v4895_v13 = vld [vmem:[%s12030_s3 + $0x2d0] sm:$0xff]  ;;  %v4896_v61 = vld [vmem:[%s12030_s3 + $0x2d8] sm:$0xff] }
 0x762   :  { %v12685_v16 = vld [vmem:[#allocation95_spill] sm:$0xff] }
 0x763   :  { %6177 = vst [vmem:[%s12031_s6 + $0x260] sm:$0xff] %v6033_v43  ;;  %6178 = vst.msk [vmem:[%s12031_s6 + $0x268] sm:$0xff] %vm3220_vm1, %v6034_v55  ;;  %v12686_v43 = vld [vmem:[#allocation96_spill] sm:$0xff] }
 0x764   :  { %6179 = vst [vmem:[%s12031_s6 + $0x270] sm:$0xff] %v6035_v1  ;;  %6180 = vst.msk [vmem:[%s12031_s6 + $0x278] sm:$0xff] %vm3220_vm1, %v6036_v40  ;;  %v5152_v58 = vpop.permute.xlu0 %5151  ;;  %v5157_v57 = vpop.permute.xlu1 %5156 }
 0x765   :  { %v5389_v37 = vmul.f32 %v12675_v44, %v5152_v58  ;;  %v5390_v41 = vmul.f32 %v12676_v9, %v5152_v58  ;;  %v5391_v20 = vmul.f32 %v12677_v21, %v5157_v57  ;;  %v5392_v52 = vmul.f32 %v12678_v53, %v5157_v57  ;;  %v4898_v21 = vld [vmem:[%s12030_s3 + $0x2e8] sm:$0xff] }
 0x766   :  { %v12687_v53 = vld [vmem:[#allocation99_spill] sm:$0xff] }
 0x767   :  { %v5533_v46 = vadd.f32 %v5389_v37, %v4885_v23  ;;  %v5534_v25 = vadd.f32 %v5390_v41, %v4886_v27  ;;  %v5535_v36 = vadd.f32 %v5391_v20, %v4887_v39  ;;  %v5536_v5 = vadd.f32 %v5392_v52, %v4888_v59  ;;  %v4897_v59 = vld [vmem:[%s12030_s3 + $0x2e0] sm:$0xff] }
 0x768   :  { %v5800_v18 = vpop.permute.xlu0 %5799  ;;  %v5805_v26 = vpop.permute.xlu1 %5804 }
 0x769   :  { %v6037_v35 = vadd.f32 %v5800_v18, %v5533_v46  ;;  %v6038_v22 = vadd.f32 %v5800_v18, %v5534_v25  ;;  %v6039_v48 = vadd.f32 %v5805_v26, %v5535_v36  ;;  %v6040_v32 = vadd.f32 %v5805_v26, %v5536_v5  ;;  %v12688_v46 = vld [vmem:[#allocation102_spill] sm:$0xff]  ;;  %v4899_v36 = vld [vmem:[%s12030_s3 + $0x2f0] sm:$0xff]  ;;  %v4900_v5 = vld [vmem:[%s12030_s3 + $0x2f8] sm:$0xff] }
 0x76a   :  { %v12689_v18 = vld [vmem:[#allocation103_spill] sm:$0xff] }
 0x76b   :  { %6181 = vst [vmem:[%s12031_s6 + $0x280] sm:$0xff] %v6037_v35  ;;  %6182 = vst.msk [vmem:[%s12031_s6 + $0x288] sm:$0xff] %vm3220_vm1, %v6038_v22  ;;  %v12690_v35 = vld [vmem:[#allocation104_spill] sm:$0xff] }
 0x76c   :  { %6183 = vst [vmem:[%s12031_s6 + $0x290] sm:$0xff] %v6039_v48  ;;  %6184 = vst.msk [vmem:[%s12031_s6 + $0x298] sm:$0xff] %vm3220_vm1, %v6040_v32  ;;  %v5162_v29 = vpop.permute.xlu0 %5161  ;;  %v5167_v33 = vpop.permute.xlu1 %5166 }
 0x76d   :  { %v5393_v45 = vmul.f32 %v12679_v49, %v5162_v29  ;;  %v5394_v28 = vmul.f32 %v12680_v42, %v5162_v29  ;;  %v5395_v2 = vmul.f32 %v12681_v50, %v5167_v33  ;;  %v5396_v47 = vmul.f32 %v12682_v60, %v5167_v33  ;;  %v4902_v50 = vld [vmem:[%s12030_s3 + $0x308] sm:$0xff] }
 0x76e   :  { %v12691_v60 = vld [vmem:[#allocation107_spill] sm:$0xff] }
 0x76f   :  { %v5537_v15 = vadd.f32 %v5393_v45, %v4889_v38  ;;  %v5538_v6 = vadd.f32 %v5394_v28, %v4890_v19  ;;  %v5539_v54 = vadd.f32 %v5395_v2, %v4891_v51  ;;  %v5540_v17 = vadd.f32 %v5396_v47, %v4892_v7  ;;  %v4901_v7 = vld [vmem:[%s12030_s3 + $0x300] sm:$0xff] }
 0x770   :  { %v5810_v63 = vpop.permute.xlu0 %5809  ;;  %v5815_v4 = vpop.permute.xlu1 %5814 }
 0x771   :  { %v6041_v31 = vadd.f32 %v5810_v63, %v5537_v15  ;;  %v6042_v34 = vadd.f32 %v5810_v63, %v5538_v6  ;;  %v6043_v0 = vadd.f32 %v5815_v4, %v5539_v54  ;;  %v6044_v56 = vadd.f32 %v5815_v4, %v5540_v17  ;;  %v12692_v15 = vld [vmem:[#allocation110_spill] sm:$0xff]  ;;  %v4903_v54 = vld [vmem:[%s12030_s3 + $0x310] sm:$0xff]  ;;  %v4904_v17 = vld [vmem:[%s12030_s3 + $0x318] sm:$0xff] }
 0x772   :  { %v12693_v63 = vld [vmem:[#allocation111_spill] sm:$0xff] }
 0x773   :  { %6185 = vst [vmem:[%s12031_s6 + $0x2a0] sm:$0xff] %v6041_v31  ;;  %6186 = vst.msk [vmem:[%s12031_s6 + $0x2a8] sm:$0xff] %vm3220_vm1, %v6042_v34  ;;  %v12694_v31 = vld [vmem:[#allocation112_spill] sm:$0xff] }
 0x774   :  { %6187 = vst [vmem:[%s12031_s6 + $0x2b0] sm:$0xff] %v6043_v0  ;;  %6188 = vst.msk [vmem:[%s12031_s6 + $0x2b8] sm:$0xff] %vm3220_vm1, %v6044_v56  ;;  %v5172_v24 = vpop.permute.xlu0 %5171  ;;  %v5177_v14 = vpop.permute.xlu1 %5176 }
 0x775   :  { %v5397_v62 = vmul.f32 %v12683_v11, %v5172_v24  ;;  %v5398_v30 = vmul.f32 %v12684_v8, %v5172_v24  ;;  %v5399_v3 = vmul.f32 %v12685_v16, %v5177_v14  ;;  %v5400_v55 = vmul.f32 %v12686_v43, %v5177_v14  ;;  %v4906_v16 = vld [vmem:[%s12030_s3 + $0x328] sm:$0xff] }
 0x776   :  { %v12695_v43 = vld [vmem:[#allocation115_spill] sm:$0xff] }
 0x777   :  { %v5541_v1 = vadd.f32 %v5397_v62, %v4893_v12  ;;  %v5542_v40 = vadd.f32 %v5398_v30, %v4894_v10  ;;  %v5543_v58 = vadd.f32 %v5399_v3, %v4895_v13  ;;  %v5544_v23 = vadd.f32 %v5400_v55, %v4896_v61  ;;  %v4905_v61 = vld [vmem:[%s12030_s3 + $0x320] sm:$0xff] }
 0x778   :  { %v5820_v27 = vpop.permute.xlu0 %5819  ;;  %v5825_v57 = vpop.permute.xlu1 %5824 }
 0x779   :  { %v6045_v44 = vadd.f32 %v5820_v27, %v5541_v1  ;;  %v6046_v37 = vadd.f32 %v5820_v27, %v5542_v40  ;;  %v6047_v9 = vadd.f32 %v5825_v57, %v5543_v58  ;;  %v6048_v41 = vadd.f32 %v5825_v57, %v5544_v23  ;;  %v12696_v1 = vld [vmem:[#allocation118_spill] sm:$0xff]  ;;  %v4907_v58 = vld [vmem:[%s12030_s3 + $0x330] sm:$0xff]  ;;  %v4908_v23 = vld [vmem:[%s12030_s3 + $0x338] sm:$0xff] }
 0x77a   :  { %v12697_v27 = vld [vmem:[#allocation119_spill] sm:$0xff] }
 0x77b   :  { %6189 = vst [vmem:[%s12031_s6 + $0x2c0] sm:$0xff] %v6045_v44  ;;  %6190 = vst.msk [vmem:[%s12031_s6 + $0x2c8] sm:$0xff] %vm3220_vm1, %v6046_v37  ;;  %v12698_v44 = vld [vmem:[#allocation120_spill] sm:$0xff] }
 0x77c   :  { %6191 = vst [vmem:[%s12031_s6 + $0x2d0] sm:$0xff] %v6047_v9  ;;  %6192 = vst.msk [vmem:[%s12031_s6 + $0x2d8] sm:$0xff] %vm3220_vm1, %v6048_v41  ;;  %v5182_v39 = vpop.permute.xlu0 %5181  ;;  %v5187_v20 = vpop.permute.xlu1 %5186 }
 0x77d   :  { %v5401_v52 = vmul.f32 %v12687_v53, %v5182_v39  ;;  %v5402_v25 = vmul.f32 %v12688_v46, %v5182_v39  ;;  %v5403_v26 = vmul.f32 %v12689_v18, %v5187_v20  ;;  %v5404_v22 = vmul.f32 %v12690_v35, %v5187_v20  ;;  %v4910_v18 = vld [vmem:[%s12030_s3 + $0x348] sm:$0xff] }
 0x77e   :  { %v12699_v35 = vld [vmem:[#allocation123_spill] sm:$0xff] }
 0x77f   :  { %v5545_v48 = vadd.f32 %v5401_v52, %v4897_v59  ;;  %v5546_v32 = vadd.f32 %v5402_v25, %v4898_v21  ;;  %v5547_v29 = vadd.f32 %v5403_v26, %v4899_v36  ;;  %v5548_v38 = vadd.f32 %v5404_v22, %v4900_v5  ;;  %v4909_v5 = vld [vmem:[%s12030_s3 + $0x340] sm:$0xff] }
 0x780   :  { %v5830_v19 = vpop.permute.xlu0 %5829  ;;  %v5835_v33 = vpop.permute.xlu1 %5834 }
 0x781   :  { %v6049_v49 = vadd.f32 %v5830_v19, %v5545_v48  ;;  %v6050_v45 = vadd.f32 %v5830_v19, %v5546_v32  ;;  %v6051_v42 = vadd.f32 %v5835_v33, %v5547_v29  ;;  %v6052_v28 = vadd.f32 %v5835_v33, %v5548_v38  ;;  %v12700_v48 = vld [vmem:[#allocation126_spill] sm:$0xff]  ;;  %v4911_v29 = vld [vmem:[%s12030_s3 + $0x350] sm:$0xff]  ;;  %v4912_v38 = vld [vmem:[%s12030_s3 + $0x358] sm:$0xff] }
 0x782   :  { %v12701_v19 = vld [vmem:[#allocation127_spill] sm:$0xff] }
 0x783   :  { %6193 = vst [vmem:[%s12031_s6 + $0x2e0] sm:$0xff] %v6049_v49  ;;  %6194 = vst.msk [vmem:[%s12031_s6 + $0x2e8] sm:$0xff] %vm3220_vm1, %v6050_v45  ;;  %v12702_v49 = vld [vmem:[#allocation128_spill] sm:$0xff] }
 0x784   :  { %6195 = vst [vmem:[%s12031_s6 + $0x2f0] sm:$0xff] %v6051_v42  ;;  %6196 = vst.msk [vmem:[%s12031_s6 + $0x2f8] sm:$0xff] %vm3220_vm1, %v6052_v28  ;;  %v5192_v51 = vpop.permute.xlu0 %5191  ;;  %v5197_v2 = vpop.permute.xlu1 %5196 }
 0x785   :  { %v5405_v47 = vmul.f32 %v12691_v60, %v5192_v51  ;;  %v5406_v6 = vmul.f32 %v12692_v15, %v5192_v51  ;;  %v5407_v4 = vmul.f32 %v12693_v63, %v5197_v2  ;;  %v5408_v34 = vmul.f32 %v12694_v31, %v5197_v2  ;;  %v4914_v63 = vld [vmem:[%s12030_s3 + $0x368] sm:$0xff] }
 0x786   :  { %v12703_v31 = vld [vmem:[#allocation131_spill] sm:$0xff] }
 0x787   :  { %v5549_v0 = vadd.f32 %v5405_v47, %v4901_v7  ;;  %v5550_v56 = vadd.f32 %v5406_v6, %v4902_v50  ;;  %v5551_v24 = vadd.f32 %v5407_v4, %v4903_v54  ;;  %v5552_v12 = vadd.f32 %v5408_v34, %v4904_v17  ;;  %v4913_v17 = vld [vmem:[%s12030_s3 + $0x360] sm:$0xff] }
 0x788   :  { %v5840_v10 = vpop.permute.xlu0 %5839  ;;  %v5845_v14 = vpop.permute.xlu1 %5844 }
 0x789   :  { %v6053_v11 = vadd.f32 %v5840_v10, %v5549_v0  ;;  %v6054_v62 = vadd.f32 %v5840_v10, %v5550_v56  ;;  %v6055_v8 = vadd.f32 %v5845_v14, %v5551_v24  ;;  %v6056_v30 = vadd.f32 %v5845_v14, %v5552_v12  ;;  %v12704_v0 = vld [vmem:[#allocation134_spill] sm:$0xff]  ;;  %v4915_v24 = vld [vmem:[%s12030_s3 + $0x370] sm:$0xff]  ;;  %v4916_v12 = vld [vmem:[%s12030_s3 + $0x378] sm:$0xff] }
 0x78a   :  { %v12705_v10 = vld [vmem:[#allocation135_spill] sm:$0xff] }
 0x78b   :  { %6197 = vst [vmem:[%s12031_s6 + $0x300] sm:$0xff] %v6053_v11  ;;  %6198 = vst.msk [vmem:[%s12031_s6 + $0x308] sm:$0xff] %vm3220_vm1, %v6054_v62  ;;  %v12706_v11 = vld [vmem:[#allocation136_spill] sm:$0xff] }
 0x78c   :  { %6199 = vst [vmem:[%s12031_s6 + $0x310] sm:$0xff] %v6055_v8  ;;  %6200 = vst.msk [vmem:[%s12031_s6 + $0x318] sm:$0xff] %vm3220_vm1, %v6056_v30  ;;  %v5202_v13 = vpop.permute.xlu0 %5201  ;;  %v5207_v3 = vpop.permute.xlu1 %5206 }
 0x78d   :  { %v5409_v55 = vmul.f32 %v12695_v43, %v5202_v13  ;;  %v5410_v40 = vmul.f32 %v12696_v1, %v5202_v13  ;;  %v5411_v57 = vmul.f32 %v12697_v27, %v5207_v3  ;;  %v5412_v37 = vmul.f32 %v12698_v44, %v5207_v3  ;;  %v4918_v27 = vld [vmem:[%s12030_s3 + $0x388] sm:$0xff] }
 0x78e   :  { %v12707_v44 = vld [vmem:[#allocation139_spill] sm:$0xff] }
 0x78f   :  { %v5553_v9 = vadd.f32 %v5409_v55, %v4905_v61  ;;  %v5554_v41 = vadd.f32 %v5410_v40, %v4906_v16  ;;  %v5555_v39 = vadd.f32 %v5411_v57, %v4907_v58  ;;  %v5556_v59 = vadd.f32 %v5412_v37, %v4908_v23  ;;  %v4917_v23 = vld [vmem:[%s12030_s3 + $0x380] sm:$0xff] }
 0x790   :  { %v5850_v21 = vpop.permute.xlu0 %5849  ;;  %v5855_v20 = vpop.permute.xlu1 %5854 }
 0x791   :  { %v6057_v53 = vadd.f32 %v5850_v21, %v5553_v9  ;;  %v6058_v52 = vadd.f32 %v5850_v21, %v5554_v41  ;;  %v6059_v46 = vadd.f32 %v5855_v20, %v5555_v39  ;;  %v6060_v25 = vadd.f32 %v5855_v20, %v5556_v59  ;;  %v12708_v9 = vld [vmem:[#allocation141_spill] sm:$0xff]  ;;  %v4919_v39 = vld [vmem:[%s12030_s3 + $0x390] sm:$0xff]  ;;  %v12709_v21 = vld [vmem:[#allocation142_spill] sm:$0xff] }
 0x792   :  { %v4920_v59 = vld [vmem:[%s12030_s3 + $0x398] sm:$0xff] }
 0x793   :  { %6201 = vst [vmem:[%s12031_s6 + $0x320] sm:$0xff] %v6057_v53  ;;  %6202 = vst.msk [vmem:[%s12031_s6 + $0x328] sm:$0xff] %vm3220_vm1, %v6058_v52  ;;  %v12710_v53 = vld [vmem:[#allocation143_spill] sm:$0xff] }
 0x794   :  { %6203 = vst [vmem:[%s12031_s6 + $0x330] sm:$0xff] %v6059_v46  ;;  %6204 = vst.msk [vmem:[%s12031_s6 + $0x338] sm:$0xff] %vm3220_vm1, %v6060_v25  ;;  %v5212_v36 = vpop.permute.xlu0 %5211  ;;  %v5217_v26 = vpop.permute.xlu1 %5216 }
 0x795   :  { %v5413_v22 = vmul.f32 %v12699_v35, %v5212_v36  ;;  %v5414_v32 = vmul.f32 %v12700_v48, %v5212_v36  ;;  %v5415_v33 = vmul.f32 %v12701_v19, %v5217_v26  ;;  %v5416_v45 = vmul.f32 %v12702_v49, %v5217_v26  ;;  %v4922_v19 = vld [vmem:[%s12030_s3 + $0x3a8] sm:$0xff]  ;;  %v12711_v49 = vld [vmem:[#allocation144_spill] sm:$0xff] }
 0x797   :  { %v5557_v42 = vadd.f32 %v5413_v22, %v4909_v5  ;;  %v5558_v28 = vadd.f32 %v5414_v32, %v4910_v18  ;;  %v5559_v51 = vadd.f32 %v5415_v33, %v4911_v29  ;;  %v5560_v7 = vadd.f32 %v5416_v45, %v4912_v38  ;;  %v4921_v38 = vld [vmem:[%s12030_s3 + $0x3a0] sm:$0xff] }
 0x798   :  { %v5860_v50 = vpop.permute.xlu0 %5859  ;;  %v5865_v2 = vpop.permute.xlu1 %5864 }
 0x799   :  { %v6061_v60 = vadd.f32 %v5860_v50, %v5557_v42  ;;  %v6062_v47 = vadd.f32 %v5860_v50, %v5558_v28  ;;  %v6063_v15 = vadd.f32 %v5865_v2, %v5559_v51  ;;  %v6064_v6 = vadd.f32 %v5865_v2, %v5560_v7  ;;  %v12712_v42 = vld [vmem:[#allocation146_spill] sm:$0xff]  ;;  %v4923_v51 = vld [vmem:[%s12030_s3 + $0x3b0] sm:$0xff]  ;;  %v4924_v7 = vld [vmem:[%s12030_s3 + $0x3b8] sm:$0xff] }
 0x79a   :  { %v12713_v50 = vld [vmem:[#allocation147_spill] sm:$0xff] }
 0x79b   :  { %6205 = vst [vmem:[%s12031_s6 + $0x340] sm:$0xff] %v6061_v60  ;;  %6206 = vst.msk [vmem:[%s12031_s6 + $0x348] sm:$0xff] %vm3220_vm1, %v6062_v47  ;;  %v12714_v60 = vld [vmem:[#allocation148_spill] sm:$0xff] }
 0x79c   :  { %6207 = vst [vmem:[%s12031_s6 + $0x350] sm:$0xff] %v6063_v15  ;;  %6208 = vst.msk [vmem:[%s12031_s6 + $0x358] sm:$0xff] %vm3220_vm1, %v6064_v6  ;;  %v5222_v54 = vpop.permute.xlu0 %5221  ;;  %v5227_v4 = vpop.permute.xlu1 %5226 }
 0x79d   :  { %v5417_v34 = vmul.f32 %v12703_v31, %v5222_v54  ;;  %v5418_v56 = vmul.f32 %v12704_v0, %v5222_v54  ;;  %v5419_v14 = vmul.f32 %v12705_v10, %v5227_v4  ;;  %v5420_v62 = vmul.f32 %v12706_v11, %v5227_v4  ;;  %v4926_v10 = vld [vmem:[%s12030_s3 + $0x3c8] sm:$0xff]  ;;  %v12715_v11 = vld [vmem:[#allocation149_spill] sm:$0xff] }
 0x79f   :  { %v5561_v8 = vadd.f32 %v5417_v34, %v4913_v17  ;;  %v5562_v30 = vadd.f32 %v5418_v56, %v4914_v63  ;;  %v5563_v13 = vadd.f32 %v5419_v14, %v4915_v24  ;;  %v5564_v61 = vadd.f32 %v5420_v62, %v4916_v12  ;;  %v4925_v12 = vld [vmem:[%s12030_s3 + $0x3c0] sm:$0xff] }
 0x7a0   :  { %v5870_v16 = vpop.permute.xlu0 %5869  ;;  %v5875_v3 = vpop.permute.xlu1 %5874 }
 0x7a1   :  { %v6065_v43 = vadd.f32 %v5870_v16, %v5561_v8  ;;  %v6066_v55 = vadd.f32 %v5870_v16, %v5562_v30  ;;  %v6067_v1 = vadd.f32 %v5875_v3, %v5563_v13  ;;  %v6068_v40 = vadd.f32 %v5875_v3, %v5564_v61  ;;  %v12716_v8 = vld [vmem:[#allocation151_spill] sm:$0xff]  ;;  %v4927_v13 = vld [vmem:[%s12030_s3 + $0x3d0] sm:$0xff]  ;;  %v4928_v61 = vld [vmem:[%s12030_s3 + $0x3d8] sm:$0xff] }
 0x7a2   :  { %v12717_v16 = vld [vmem:[#allocation152_spill] sm:$0xff] }
 0x7a3   :  { %6209 = vst [vmem:[%s12031_s6 + $0x360] sm:$0xff] %v6065_v43  ;;  %6210 = vst.msk [vmem:[%s12031_s6 + $0x368] sm:$0xff] %vm3220_vm1, %v6066_v55  ;;  %v12718_v43 = vld [vmem:[#allocation153_spill] sm:$0xff] }
 0x7a4   :  { %6211 = vst [vmem:[%s12031_s6 + $0x370] sm:$0xff] %v6067_v1  ;;  %6212 = vst.msk [vmem:[%s12031_s6 + $0x378] sm:$0xff] %vm3220_vm1, %v6068_v40  ;;  %v5232_v58 = vpop.permute.xlu0 %5231  ;;  %v5237_v57 = vpop.permute.xlu1 %5236 }
 0x7a5   :  { %v5421_v37 = vmul.f32 %v12707_v44, %v5232_v58  ;;  %v5422_v41 = vmul.f32 %v12708_v9, %v5232_v58  ;;  %v5423_v20 = vmul.f32 %v12709_v21, %v5237_v57  ;;  %v5424_v52 = vmul.f32 %v12710_v53, %v5237_v57  ;;  %v4930_v21 = vld [vmem:[%s12030_s3 + $0x3e8] sm:$0xff] }
 0x7a6   :  { %v12719_v53 = vld [vmem:[#allocation155_spill] sm:$0xff] }
 0x7a7   :  { %v5565_v46 = vadd.f32 %v5421_v37, %v4917_v23  ;;  %v5566_v25 = vadd.f32 %v5422_v41, %v4918_v27  ;;  %v5567_v36 = vadd.f32 %v5423_v20, %v4919_v39  ;;  %v5568_v5 = vadd.f32 %v5424_v52, %v4920_v59  ;;  %v4929_v59 = vld [vmem:[%s12030_s3 + $0x3e0] sm:$0xff] }
 0x7a8   :  { %v5880_v18 = vpop.permute.xlu0 %5879  ;;  %v5885_v26 = vpop.permute.xlu1 %5884 }
 0x7a9   :  { %v6069_v35 = vadd.f32 %v5880_v18, %v5565_v46  ;;  %v6070_v22 = vadd.f32 %v5880_v18, %v5566_v25  ;;  %v6071_v48 = vadd.f32 %v5885_v26, %v5567_v36  ;;  %v6072_v32 = vadd.f32 %v5885_v26, %v5568_v5  ;;  %v12720_v46 = vld [vmem:[#allocation158_spill] sm:$0xff]  ;;  %v4931_v36 = vld [vmem:[%s12030_s3 + $0x3f0] sm:$0xff]  ;;  %v4932_v5 = vld [vmem:[%s12030_s3 + $0x3f8] sm:$0xff] }
 0x7aa   :  { %v12721_v18 = vld [vmem:[#allocation159_spill] sm:$0xff] }
 0x7ab   :  { %6213 = vst [vmem:[%s12031_s6 + $0x380] sm:$0xff] %v6069_v35  ;;  %6214 = vst.msk [vmem:[%s12031_s6 + $0x388] sm:$0xff] %vm3220_vm1, %v6070_v22  ;;  %v12722_v35 = vld [vmem:[#allocation160_spill] sm:$0xff] }
 0x7ac   :  { %6215 = vst [vmem:[%s12031_s6 + $0x390] sm:$0xff] %v6071_v48  ;;  %6216 = vst.msk [vmem:[%s12031_s6 + $0x398] sm:$0xff] %vm3220_vm1, %v6072_v32  ;;  %v5242_v29 = vpop.permute.xlu0 %5241  ;;  %v5247_v33 = vpop.permute.xlu1 %5246 }
 0x7ad   :  { %v5425_v45 = vmul.f32 %v12711_v49, %v5242_v29  ;;  %v5426_v28 = vmul.f32 %v12712_v42, %v5242_v29  ;;  %v5427_v2 = vmul.f32 %v12713_v50, %v5247_v33  ;;  %v5428_v47 = vmul.f32 %v12714_v60, %v5247_v33  ;;  %v4934_v50 = vld [vmem:[%s12030_s3 + $0x408] sm:$0xff] }
 0x7ae   :  { %v12723_v60 = vld [vmem:[#allocation163_spill] sm:$0xff] }
 0x7af   :  { %v5569_v15 = vadd.f32 %v5425_v45, %v4921_v38  ;;  %v5570_v6 = vadd.f32 %v5426_v28, %v4922_v19  ;;  %v5571_v54 = vadd.f32 %v5427_v2, %v4923_v51  ;;  %v5572_v17 = vadd.f32 %v5428_v47, %v4924_v7  ;;  %v4933_v7 = vld [vmem:[%s12030_s3 + $0x400] sm:$0xff] }
 0x7b0   :  { %v5890_v63 = vpop.permute.xlu0 %5889  ;;  %v5895_v4 = vpop.permute.xlu1 %5894 }
 0x7b1   :  { %v6073_v31 = vadd.f32 %v5890_v63, %v5569_v15  ;;  %v6074_v34 = vadd.f32 %v5890_v63, %v5570_v6  ;;  %v6075_v0 = vadd.f32 %v5895_v4, %v5571_v54  ;;  %v6076_v56 = vadd.f32 %v5895_v4, %v5572_v17  ;;  %v12724_v15 = vld [vmem:[#allocation165_spill] sm:$0xff]  ;;  %v4935_v54 = vld [vmem:[%s12030_s3 + $0x410] sm:$0xff]  ;;  %v12725_v63 = vld [vmem:[#allocation166_spill] sm:$0xff] }
 0x7b2   :  { %v4936_v17 = vld [vmem:[%s12030_s3 + $0x418] sm:$0xff] }
 0x7b3   :  { %6217 = vst [vmem:[%s12031_s6 + $0x3a0] sm:$0xff] %v6073_v31  ;;  %6218 = vst.msk [vmem:[%s12031_s6 + $0x3a8] sm:$0xff] %vm3220_vm1, %v6074_v34  ;;  %v12726_v31 = vld [vmem:[#allocation167_spill] sm:$0xff] }
 0x7b4   :  { %6219 = vst [vmem:[%s12031_s6 + $0x3b0] sm:$0xff] %v6075_v0  ;;  %6220 = vst.msk [vmem:[%s12031_s6 + $0x3b8] sm:$0xff] %vm3220_vm1, %v6076_v56  ;;  %v5252_v24 = vpop.permute.xlu0 %5251  ;;  %v5257_v14 = vpop.permute.xlu1 %5256 }
 0x7b5   :  { %v5429_v62 = vmul.f32 %v12715_v11, %v5252_v24  ;;  %v5430_v30 = vmul.f32 %v12716_v8, %v5252_v24  ;;  %v5431_v3 = vmul.f32 %v12717_v16, %v5257_v14  ;;  %v5432_v55 = vmul.f32 %v12718_v43, %v5257_v14  ;;  %v4938_v16 = vld [vmem:[%s12030_s3 + $0x428] sm:$0xff]  ;;  %v12727_v43 = vld [vmem:[#allocation169_spill] sm:$0xff] }
 0x7b7   :  { %v5573_v1 = vadd.f32 %v5429_v62, %v4925_v12  ;;  %v5574_v40 = vadd.f32 %v5430_v30, %v4926_v10  ;;  %v5575_v58 = vadd.f32 %v5431_v3, %v4927_v13  ;;  %v5576_v23 = vadd.f32 %v5432_v55, %v4928_v61  ;;  %v4937_v61 = vld [vmem:[%s12030_s3 + $0x420] sm:$0xff] }
 0x7b8   :  { %v5900_v27 = vpop.permute.xlu0 %5899  ;;  %v5905_v57 = vpop.permute.xlu1 %5904 }
 0x7b9   :  { %v6077_v44 = vadd.f32 %v5900_v27, %v5573_v1  ;;  %v6078_v37 = vadd.f32 %v5900_v27, %v5574_v40  ;;  %v6079_v9 = vadd.f32 %v5905_v57, %v5575_v58  ;;  %v6080_v41 = vadd.f32 %v5905_v57, %v5576_v23  ;;  %v12728_v1 = vld [vmem:[#allocation172_spill] sm:$0xff]  ;;  %v4940_v23 = vld [vmem:[%s12030_s3 + $0x438] sm:$0xff] }
 0x7ba   :  { %v4939_v58 = vld [vmem:[%s12030_s3 + $0x430] sm:$0xff]  ;;  %v12729_v27 = vld [vmem:[#allocation173_spill] sm:$0xff] }
 0x7bb   :  { %6221 = vst [vmem:[%s12031_s6 + $0x3c0] sm:$0xff] %v6077_v44  ;;  %6222 = vst.msk [vmem:[%s12031_s6 + $0x3c8] sm:$0xff] %vm3220_vm1, %v6078_v37  ;;  %v12730_v44 = vld [vmem:[#allocation174_spill] sm:$0xff] }
 0x7bc   :  { %6223 = vst [vmem:[%s12031_s6 + $0x3d0] sm:$0xff] %v6079_v9  ;;  %6224 = vst.msk [vmem:[%s12031_s6 + $0x3d8] sm:$0xff] %vm3220_vm1, %v6080_v41  ;;  %v5262_v39 = vpop.permute.xlu0 %5261  ;;  %v5267_v20 = vpop.permute.xlu1 %5266 }
 0x7bd   :  { %v5433_v52 = vmul.f32 %v12719_v53, %v5262_v39  ;;  %v5434_v25 = vmul.f32 %v12720_v46, %v5262_v39  ;;  %v5435_v26 = vmul.f32 %v12721_v18, %v5267_v20  ;;  %v5436_v22 = vmul.f32 %v12722_v35, %v5267_v20  ;;  %v4942_v18 = vld [vmem:[%s12030_s3 + $0x448] sm:$0xff]  ;;  %v12731_v35 = vld [vmem:[#allocation177_spill] sm:$0xff] }
 0x7bf   :  { %v5577_v48 = vadd.f32 %v5433_v52, %v4929_v59  ;;  %v5578_v32 = vadd.f32 %v5434_v25, %v4930_v21  ;;  %v5579_v29 = vadd.f32 %v5435_v26, %v4931_v36  ;;  %v5580_v38 = vadd.f32 %v5436_v22, %v4932_v5  ;;  %v4941_v5 = vld [vmem:[%s12030_s3 + $0x440] sm:$0xff] }
 0x7c0   :  { %v5910_v19 = vpop.permute.xlu0 %5909  ;;  %v5915_v33 = vpop.permute.xlu1 %5914 }
 0x7c1   :  { %v6081_v49 = vadd.f32 %v5910_v19, %v5577_v48  ;;  %v6082_v45 = vadd.f32 %v5910_v19, %v5578_v32  ;;  %v6083_v42 = vadd.f32 %v5915_v33, %v5579_v29  ;;  %v6084_v28 = vadd.f32 %v5915_v33, %v5580_v38  ;;  %v12732_v48 = vld [vmem:[#allocation180_spill] sm:$0xff]  ;;  %v4944_v38 = vld [vmem:[%s12030_s3 + $0x458] sm:$0xff] }
 0x7c2   :  { %v4943_v29 = vld [vmem:[%s12030_s3 + $0x450] sm:$0xff]  ;;  %v12733_v19 = vld [vmem:[#allocation181_spill] sm:$0xff] }
 0x7c3   :  { %6225 = vst [vmem:[%s12031_s6 + $0x3e0] sm:$0xff] %v6081_v49  ;;  %6226 = vst.msk [vmem:[%s12031_s6 + $0x3e8] sm:$0xff] %vm3220_vm1, %v6082_v45  ;;  %v12734_v49 = vld [vmem:[#allocation182_spill] sm:$0xff] }
 0x7c4   :  { %6227 = vst [vmem:[%s12031_s6 + $0x3f0] sm:$0xff] %v6083_v42  ;;  %6228 = vst.msk [vmem:[%s12031_s6 + $0x3f8] sm:$0xff] %vm3220_vm1, %v6084_v28  ;;  %v5272_v51 = vpop.permute.xlu0 %5271  ;;  %v5277_v2 = vpop.permute.xlu1 %5276 }
 0x7c5   :  { %v5437_v47 = vmul.f32 %v12723_v60, %v5272_v51  ;;  %v5438_v6 = vmul.f32 %v12724_v15, %v5272_v51  ;;  %v5439_v4 = vmul.f32 %v12725_v63, %v5277_v2  ;;  %v5440_v34 = vmul.f32 %v12726_v31, %v5277_v2  ;;  %v4946_v63 = vld [vmem:[%s12030_s3 + $0x468] sm:$0xff]  ;;  %v12735_v31 = vld [vmem:[#allocation185_spill] sm:$0xff] }
 0x7c7   :  { %v5581_v0 = vadd.f32 %v5437_v47, %v4933_v7  ;;  %v5582_v56 = vadd.f32 %v5438_v6, %v4934_v50  ;;  %v5583_v24 = vadd.f32 %v5439_v4, %v4935_v54  ;;  %v5584_v12 = vadd.f32 %v5440_v34, %v4936_v17  ;;  %v4945_v17 = vld [vmem:[%s12030_s3 + $0x460] sm:$0xff] }
 0x7c8   :  { %v5920_v10 = vpop.permute.xlu0 %5919  ;;  %v5925_v14 = vpop.permute.xlu1 %5924 }
 0x7c9   :  { %v6085_v11 = vadd.f32 %v5920_v10, %v5581_v0  ;;  %v6086_v62 = vadd.f32 %v5920_v10, %v5582_v56  ;;  %v6087_v8 = vadd.f32 %v5925_v14, %v5583_v24  ;;  %v6088_v30 = vadd.f32 %v5925_v14, %v5584_v12  ;;  %v12736_v0 = vld [vmem:[#allocation188_spill] sm:$0xff]  ;;  %v4948_v12 = vld [vmem:[%s12030_s3 + $0x478] sm:$0xff] }
 0x7ca   :  { %v4947_v24 = vld [vmem:[%s12030_s3 + $0x470] sm:$0xff]  ;;  %v12737_v10 = vld [vmem:[#allocation189_spill] sm:$0xff] }
 0x7cb   :  { %6229 = vst [vmem:[%s12031_s6 + $0x400] sm:$0xff] %v6085_v11  ;;  %6230 = vst.msk [vmem:[%s12031_s6 + $0x408] sm:$0xff] %vm3220_vm1, %v6086_v62  ;;  %v12738_v11 = vld [vmem:[#allocation190_spill] sm:$0xff] }
 0x7cc   :  { %6231 = vst [vmem:[%s12031_s6 + $0x410] sm:$0xff] %v6087_v8  ;;  %6232 = vst.msk [vmem:[%s12031_s6 + $0x418] sm:$0xff] %vm3220_vm1, %v6088_v30  ;;  %v5282_v13 = vpop.permute.xlu0 %5281  ;;  %v5287_v3 = vpop.permute.xlu1 %5286 }
 0x7cd   :  { %v5441_v55 = vmul.f32 %v12727_v43, %v5282_v13  ;;  %v5442_v40 = vmul.f32 %v12728_v1, %v5282_v13  ;;  %v5443_v57 = vmul.f32 %v12729_v27, %v5287_v3  ;;  %v5444_v37 = vmul.f32 %v12730_v44, %v5287_v3 }
 0x7cf   :  { %v5585_v9 = vadd.f32 %v5441_v55, %v4937_v61  ;;  %v5586_v41 = vadd.f32 %v5442_v40, %v4938_v16  ;;  %v5587_v39 = vadd.f32 %v5443_v57, %v4939_v58  ;;  %v5588_v59 = vadd.f32 %v5444_v37, %v4940_v23 }
 0x7d0   :  { %v5930_v21 = vpop.permute.xlu0 %5929  ;;  %v5935_v20 = vpop.permute.xlu1 %5934 }
 0x7d1   :  { %v6089_v53 = vadd.f32 %v5930_v21, %v5585_v9  ;;  %v6090_v52 = vadd.f32 %v5930_v21, %v5586_v41  ;;  %v6091_v46 = vadd.f32 %v5935_v20, %v5587_v39  ;;  %v6092_v25 = vadd.f32 %v5935_v20, %v5588_v59 }
 0x7d3   :  { %6233 = vst [vmem:[%s12031_s6 + $0x420] sm:$0xff] %v6089_v53  ;;  %6234 = vst.msk [vmem:[%s12031_s6 + $0x428] sm:$0xff] %vm3220_vm1, %v6090_v52 }
 0x7d4   :  { %6235 = vst [vmem:[%s12031_s6 + $0x430] sm:$0xff] %v6091_v46  ;;  %6236 = vst.msk [vmem:[%s12031_s6 + $0x438] sm:$0xff] %vm3220_vm1, %v6092_v25  ;;  %v5292_v36 = vpop.permute.xlu0 %5291  ;;  %v5297_v26 = vpop.permute.xlu1 %5296 }
 0x7d5   :  { %v5445_v22 = vmul.f32 %v12731_v35, %v5292_v36  ;;  %v5446_v32 = vmul.f32 %v12732_v48, %v5292_v36  ;;  %v5447_v33 = vmul.f32 %v12733_v19, %v5297_v26  ;;  %v5448_v45 = vmul.f32 %v12734_v49, %v5297_v26 }
 0x7d7   :  { %v5589_v42 = vadd.f32 %v5445_v22, %v4941_v5  ;;  %v5590_v28 = vadd.f32 %v5446_v32, %v4942_v18  ;;  %v5591_v51 = vadd.f32 %v5447_v33, %v4943_v29  ;;  %v5592_v7 = vadd.f32 %v5448_v45, %v4944_v38 }
 0x7d8   :  { %v5940_v50 = vpop.permute.xlu0 %5939  ;;  %v5945_v2 = vpop.permute.xlu1 %5944 }
 0x7d9   :  { %v6093_v60 = vadd.f32 %v5940_v50, %v5589_v42  ;;  %v6094_v47 = vadd.f32 %v5940_v50, %v5590_v28  ;;  %v6095_v15 = vadd.f32 %v5945_v2, %v5591_v51  ;;  %v6096_v6 = vadd.f32 %v5945_v2, %v5592_v7 }
 0x7db   :  { %6237 = vst [vmem:[%s12031_s6 + $0x440] sm:$0xff] %v6093_v60  ;;  %6238 = vst.msk [vmem:[%s12031_s6 + $0x448] sm:$0xff] %vm3220_vm1, %v6094_v47 }
 0x7dc   :  { %6239 = vst [vmem:[%s12031_s6 + $0x450] sm:$0xff] %v6095_v15  ;;  %6240 = vst.msk [vmem:[%s12031_s6 + $0x458] sm:$0xff] %vm3220_vm1, %v6096_v6  ;;  %v5302_v54 = vpop.permute.xlu0 %5301  ;;  %v5307_v4 = vpop.permute.xlu1 %5306 }
 0x7dd   :  { %v5449_v34 = vmul.f32 %v12735_v31, %v5302_v54  ;;  %v5450_v56 = vmul.f32 %v12736_v0, %v5302_v54  ;;  %v5451_v14 = vmul.f32 %v12737_v10, %v5307_v4  ;;  %v5452_v62 = vmul.f32 %v12738_v11, %v5307_v4 }
 0x7df   :  { %v5593_v8 = vadd.f32 %v5449_v34, %v4945_v17  ;;  %v5594_v30 = vadd.f32 %v5450_v56, %v4946_v63  ;;  %v5595_v13 = vadd.f32 %v5451_v14, %v4947_v24  ;;  %v5596_v61 = vadd.f32 %v5452_v62, %v4948_v12 }
 0x7e0   :  { %v5950_v16 = vpop.permute.xlu0 %5949  ;;  %v5955_v3 = vpop.permute.xlu1 %5954 }
 0x7e1   :  { %v6097_v43 = vadd.f32 %v5950_v16, %v5593_v8  ;;  %v6098_v55 = vadd.f32 %v5950_v16, %v5594_v30  ;;  %v6099_v1 = vadd.f32 %v5955_v3, %v5595_v13  ;;  %v6100_v40 = vadd.f32 %v5955_v3, %v5596_v61 }
 0x7e3   :  { %6241 = vst [vmem:[%s12031_s6 + $0x460] sm:$0xff] %v6097_v43  ;;  %6242 = vst.msk [vmem:[%s12031_s6 + $0x468] sm:$0xff] %vm3220_vm1, %v6098_v55 }
 0x7e4   :  { %6243 = vst [vmem:[%s12031_s6 + $0x470] sm:$0xff] %v6099_v1  ;;  %6244 = vst.msk [vmem:[%s12031_s6 + $0x478] sm:$0xff] %vm3220_vm1, %v6100_v40 }

</bundles_post_ra>
